<compile_context>
chip_gen: v7x
topology: tpu7x:2x2x1
jax: 0.10.0
libtpu: 0.0.40
codegen_flags: <defaults>
</compile_context>

<pallas_src>
import functools

import numpy as np

import jax
import jax.numpy as jnp
from jax import lax
from jax.experimental import pallas as pl
from jax.experimental.pallas import tpu as pltpu


# ----------------------------------------------------------------------------
# Pallas kernels
# ----------------------------------------------------------------------------
def _conv_relu_bn_pool_kernel(p0_ref, p1_ref, p2_ref, p3_ref,
                              w_ref, s_ref, b_ref, o_ref):
    """One batch element of Conv -> ReLU -> BN(eval) -> 2x2 MaxPool.

    p{q}_ref : (1, K, M) bf16   im2col patches of pool phase q (stride 2).
    w_ref    : (Cout, K) bf16   conv weight, K ordered (ci, di, dj).
    s_ref/b_ref : (Cout, 1) f32 folded BN scale / shift.
    o_ref    : (1, Cout, M) bf16 pooled output (channels-first, lane-dense M).
    """
    w = w_ref[...]
    _, cout, m = o_ref.shape
    # Hoist the lane broadcast of scale/shift out of the 4 pool phases.
    sb = jnp.broadcast_to(s_ref[...], (cout, m))
    bb = jnp.broadcast_to(b_ref[...], (cout, m))

    def phase(p_ref):
        z = jnp.dot(w, p_ref[0], preferred_element_type=jnp.float32)
        return jnp.maximum(z, 0.0) * sb + bb          # ReLU, then eval-mode BN

    z01 = jnp.maximum(phase(p0_ref), phase(p1_ref))
    z23 = jnp.maximum(phase(p2_ref), phase(p3_ref))
    o_ref[0] = jnp.maximum(z01, z23).astype(o_ref.dtype)


def _tail_kernel(p0_ref, p1_ref, p2_ref, p3_ref,
                 w2_ref, s2_ref, b2_ref,
                 w3c_ref, sel3_ref,
                 w4_ref, sel4_ref, avg_ref,
                 fw1_ref, fb1_ref, fw2_ref, fb2_ref, fw3_ref, fb3_ref,
                 o_ref):
    """Fused tail: layer2 conv5x5+ReLU+BN+pool (patches precomputed), layer3
    conv3x3+ReLU+pool (in-kernel, tap matmul + 0/1 lane selection), layer4
    conv1x1+ReLU+pool, global spatial mean, 3-layer MLP head, sigmoid.

    p{q}_ref : (K2, M2) bf16        layer-2 phase patches (M2 = N*8*8).
    w3c_ref  : (9*64, 32) bf16      layer-3 weight, rows (tap, cout), cols cin.
    sel3_ref : (4, 9*M2, M3) bf16   per-phase 0/1 tap/lane selection (M3 = N*16).
    sel4_ref : (4, M3, M4)  bf16    per-phase 2x2-pool lane selection (M4 = N*4).
    avg_ref  : (M4, N) bf16         per-image averaging matrix (global mean).
    o_ref    : (2, N) f32           sigmoid probabilities.
    """
    f32 = jnp.float32

    # ---- layer 2: conv 5x5 (16->32) + ReLU + BN + 2x2 pool -------------------
    w2 = w2_ref[...]
    cout2 = w2.shape[0]
    m2 = p0_ref.shape[-1]
    s2 = jnp.broadcast_to(s2_ref[...], (cout2, m2))
    b2 = jnp.broadcast_to(b2_ref[...], (cout2, m2))

    def l2_phase(p_ref):
        z = jnp.dot(w2, p_ref[...], preferred_element_type=f32)
        return jnp.maximum(z, 0.0) * s2 + b2

    a2 = jnp.maximum(jnp.maximum(l2_phase(p0_ref), l2_phase(p1_ref)),
                     jnp.maximum(l2_phase(p2_ref), l2_phase(p3_ref)))
    a2 = a2.astype(jnp.bfloat16)                                  # (32, M2)

    # ---- layer 3: conv 3x3 (32->64) + ReLU + 2x2 pool ------------------------
    # Per-tap matmul U_t = W3_t @ a2 (single stacked matmul), then one
    # lane-selection matmul per pool phase (zero-padding handled by zero columns).
    cout3 = w3c_ref.shape[0] // 9
    u = jnp.dot(w3c_ref[...], a2, preferred_element_type=f32)     # (9*64, M2)
    ucat = jnp.concatenate(
        [u[t * cout3:(t + 1) * cout3, :] for t in range(9)],
        axis=1).astype(jnp.bfloat16)                              # (64, 9*M2)
    z3 = None
    for q in range(4):
        zq = jnp.dot(ucat, sel3_ref[q], preferred_element_type=f32)  # (64, M3)
        z3 = zq if z3 is None else jnp.maximum(z3, zq)
    a3 = jnp.maximum(z3, 0.0).astype(jnp.bfloat16)                # (64, M3)

    # ---- layer 4: conv 1x1 (64->128) + ReLU + 2x2 pool + global mean ---------
    z4 = jnp.maximum(jnp.dot(w4_ref[...], a3, preferred_element_type=f32), 0.0)
    z4 = z4.astype(jnp.bfloat16)                                  # (128, M3)
    pooled = None
    for q in range(4):
        pq = jnp.dot(z4, sel4_ref[q], preferred_element_type=f32)  # (128, M4)
        pooled = pq if pooled is None else jnp.maximum(pooled, pq)
    feat = jnp.dot(pooled.astype(jnp.bfloat16), avg_ref[...],
                   preferred_element_type=f32)                    # (128, N)

    # ---- MLP head + sigmoid ---------------------------------------------------
    h = jnp.maximum(jnp.dot(fw1_ref[...], feat.astype(jnp.bfloat16),
                            preferred_element_type=f32) + fb1_ref[...], 0.0)
    h = jnp.maximum(jnp.dot(fw2_ref[...], h.astype(jnp.bfloat16),
                            preferred_element_type=f32) + fb2_ref[...], 0.0)
    logits = jnp.dot(fw3_ref[...], h.astype(jnp.bfloat16),
                     preferred_element_type=f32) + fb3_ref[...]
    o_ref[...] = jax.nn.sigmoid(logits)                           # (2, N)


# ----------------------------------------------------------------------------
# Wrappers (minimal XLA glue + pallas_call)
# ----------------------------------------------------------------------------
def _phase_patches(act_nchw, k, pad, merged):
    """4 pool-phase im2col slabs via ONE lax conv-patches op per phase.

    merged=False -> (N, K, Ho*Wo) each (batch kept, feeds the batch-grid kernels)
    merged=True  -> (K, N*Ho*Wo)  each (feeds the fused tail kernel)
    K ordering is (ci, di, dj), matching weight.reshape(Cout, Cin*k*k).
    """
    n, c, h, w = act_nchw.shape
    ho, wo = h // 2, w // 2
    dn = ("NCHW", "OIHW", "CNHW") if merged else None   # None -> NCHW output
    outs = []
    for a in range(2):
        for b in range(2):
            pat = lax.conv_general_dilated_patches(
                act_nchw,
                filter_shape=(k, k),
                window_strides=(2, 2),
                padding=((pad - a, k - pad - 2 + a), (pad - b, k - pad - 2 + b)),
                dimension_numbers=dn,
            )
            if merged:
                pat = pat.reshape(c * k * k, n * ho * wo)     # (K, N*Ho*Wo)
            else:
                pat = pat.reshape(n, c * k * k, ho * wo)      # (N, K, Ho*Wo)
            outs.append(pat)
    return outs


def conv_relu_bn_pool(act_nchw, wt, scale, shift, k, pad):
    """One fused layer.  act: (N, Cin, H, W) bf16 -> (N, Cout, H/2, W/2) bf16."""
    n, cin, h, w = act_nchw.shape
    ho, wo = h // 2, w // 2
    m = ho * wo
    cout, kdim = wt.shape
    phases = _phase_patches(act_nchw, k, pad, merged=False)
    p_spec = pl.BlockSpec((1, kdim, m), lambda i: (i, 0, 0))
    out = pl.pallas_call(
        _conv_relu_bn_pool_kernel,
        out_shape=jax.ShapeDtypeStruct((n, cout, m), jnp.bfloat16),
        grid=(n,),
        in_specs=[p_spec, p_spec, p_spec, p_spec,
                  pl.BlockSpec((cout, kdim), lambda i: (0, 0)),
                  pl.BlockSpec((cout, 1), lambda i: (0, 0)),
                  pl.BlockSpec((cout, 1), lambda i: (0, 0))],
        out_specs=pl.BlockSpec((1, cout, m), lambda i: (i, 0, 0)),
        compiler_params=pltpu.CompilerParams(
            dimension_semantics=("parallel",)),      # batch across 2 TCs on v7x
    )(phases[0], phases[1], phases[2], phases[3], wt, scale, shift)
    return out.reshape(n, cout, ho, wo)


def fused_tail(p2_phases, params, sel3, sel4, avg, n):
    """Layers 2-4 + global mean + MLP head + sigmoid in a single pallas_call."""
    out = pl.pallas_call(
        _tail_kernel,
        out_shape=jax.ShapeDtypeStruct((2, n), jnp.float32),
    )(p2_phases[0], p2_phases[1], p2_phases[2], p2_phases[3],
      params["w2"], params["s2"], params["b2"],
      params["w3cat"], sel3,
      params["w4"], sel4, avg,
      params["fc_w1"], params["fc_b1"], params["fc_w2"], params["fc_b2"],
      params["fc_w3"], params["fc_b3"])
    return out[0], out[1]


# ----------------------------------------------------------------------------
# Constant 0/1 selection / averaging matrices for the fused tail
# ----------------------------------------------------------------------------
def _build_tail_constants(n, s2=8):
    """Selection matmul constants for layer-3 conv/pool, layer-4 pool and mean.

    s2 = spatial size of layer-2 output (8 for a 64x64 network input).
    a2 lanes are ordered m = n*s2*s2 + y*s2 + x.
    """
    s3, s4 = s2 // 2, s2 // 4
    m2, m3, m4 = n * s2 * s2, n * s3 * s3, n * s4 * s4

    sel3 = np.zeros((4, 9 * m2, m3), np.float32)      # layer-3 tap/phase gather
    for a in range(2):
        for b in range(2):
            q = 2 * a + b
            for di in range(3):
                for dj in range(3):
                    t = 3 * di + dj
                    for nn in range(n):
                        for i in range(s3):
                            for j in range(s3):
                                m = nn * s3 * s3 + i * s3 + j
                                y = 2 * i + a + di - 1     # conv pad = 1
                                x = 2 * j + b + dj - 1
                                if 0 <= y < s2 and 0 <= x < s2:
                                    src = nn * s2 * s2 + y * s2 + x
                                    sel3[q, t * m2 + src, m] = 1.0

    sel4 = np.zeros((4, m3, m4), np.float32)          # layer-4 2x2 pool gather
    for a in range(2):
        for b in range(2):
            q = 2 * a + b
            for nn in range(n):
                for i2 in range(s4):
                    for j2 in range(s4):
                        mo = nn * s4 * s4 + i2 * s4 + j2
                        src = nn * s3 * s3 + (2 * i2 + a) * s3 + (2 * j2 + b)
                        sel4[q, src, mo] = 1.0

    avg = np.zeros((m4, n), np.float32)               # global spatial mean
    inv = 1.0 / float(s4 * s4)
    for nn in range(n):
        for pos in range(s4 * s4):
            avg[nn * s4 * s4 + pos, nn] = inv

    return (jnp.asarray(sel3, jnp.bfloat16),
            jnp.asarray(sel4, jnp.bfloat16),
            jnp.asarray(avg, jnp.bfloat16))


# ----------------------------------------------------------------------------
# Parameter construction (deterministic, synthetic)
# ----------------------------------------------------------------------------
def _bn_scale_shift(key, c):
    k1, k2, k3, k4 = jax.random.split(key, 4)
    gamma = 1.0 + 0.1 * jax.random.normal(k1, (c,), jnp.float32)
    beta = 0.1 * jax.random.normal(k2, (c,), jnp.float32)
    running_mean = 0.1 * jax.random.normal(k3, (c,), jnp.float32)
    running_var = 1.0 + 0.1 * jnp.abs(jax.random.normal(k4, (c,), jnp.float32))
    eps = 1e-5
    scale = gamma / jnp.sqrt(running_var + eps)
    shift = beta - running_mean * scale
    return scale, shift


def make_params(seed=0):
    key = jax.random.PRNGKey(seed)
    ks = jax.random.split(key, 16)
    p = {}
    # layers 0-2: 5x5 convs with BN; K ordered (ci, di, dj) to match the patches.
    cfg = [(3, 8, 5, 2), (8, 16, 5, 2), (16, 32, 5, 2)]
    p["cfg"] = cfg
    for li, (cin, cout, k, pad) in enumerate(cfg):
        w = 0.1 * jax.random.normal(ks[li], (cout, cin, k, k), jnp.float32)
        p[f"w{li}"] = w.reshape(cout, cin * k * k).astype(jnp.bfloat16)
        scale, shift = _bn_scale_shift(ks[5 + li], cout)
        p[f"s{li}"] = scale.reshape(cout, 1)
        p[f"b{li}"] = shift.reshape(cout, 1)
    # layer 3: 3x3 conv 32->64 (no BN), stored tap-major for the in-kernel form.
    w3 = 0.1 * jax.random.normal(ks[3], (64, 32, 3, 3), jnp.float32)
    p["w3cat"] = (jnp.transpose(w3, (2, 3, 0, 1))
                  .reshape(9 * 64, 32).astype(jnp.bfloat16))
    # layer 4: 1x1 conv 64->128 (no BN).
    w4 = 0.1 * jax.random.normal(ks[4], (128, 64, 1, 1), jnp.float32)
    p["w4"] = w4.reshape(128, 64).astype(jnp.bfloat16)
    # fc head (PyTorch (out, in) layout): bf16 weights, f32 biases.
    p["fc_w1"] = (0.1 * jax.random.normal(ks[10], (64, 128))).astype(jnp.bfloat16)
    p["fc_b1"] = 0.01 * jax.random.normal(ks[11], (64, 1), jnp.float32)
    p["fc_w2"] = (0.1 * jax.random.normal(ks[12], (32, 64))).astype(jnp.bfloat16)
    p["fc_b2"] = 0.01 * jax.random.normal(ks[13], (32, 1), jnp.float32)
    p["fc_w3"] = (0.1 * jax.random.normal(ks[14], (2, 32))).astype(jnp.bfloat16)
    p["fc_b3"] = 0.01 * jax.random.normal(ks[15], (2, 1), jnp.float32)
    return p


# ----------------------------------------------------------------------------
# Full forward pass (3 pallas_calls)
# ----------------------------------------------------------------------------
def dpen_forward(x_nchw, params, tail_consts):
    sel3, sel4, avg = tail_consts
    n = x_nchw.shape[0]
    act = x_nchw.astype(jnp.bfloat16)                      # (N, 3, 64, 64)
    # layers 0-1: conv + ReLU + BN + pool, batch as a parallel grid axis.
    for li in range(2):
        _, _, k, pad = params["cfg"][li]
        act = conv_relu_bn_pool(act, params[f"w{li}"],
                                params[f"s{li}"], params[f"b{li}"], k, pad)
    # layers 2-4 + global mean + MLP + sigmoid, fused in one call.
    p2 = _phase_patches(act, 5, 2, merged=True)            # 4 x (400, N*64)
    return fused_tail(p2, params, sel3, sel4, avg, n)


if __name__ == "__main__":
    n_batch = 2
    params = make_params(seed=0)
    # Tail constants are tied to 64x64 input (layer-2 output spatial = 8x8).
    tail_consts = _build_tail_constants(n_batch, s2=8)

    key = jax.random.PRNGKey(0)
    # NCHW input; spatial must be divisible by 2^5 = 32 for the 5 pools.
    x = jax.random.normal(key, (n_batch, 3, 64, 64), jnp.float32)

    fwd = jax.jit(functools.partial(dpen_forward, params=params,
                                    tail_consts=tail_consts))
    out0, out1 = fwd(x)
    jax.block_until_ready((out0, out1))

    assert out0.shape == (n_batch,) and out1.shape == (n_batch,)
    assert bool(jnp.all(jnp.isfinite(out0))) and bool(jnp.all(jnp.isfinite(out1)))
    assert bool(jnp.all((out0 >= 0) & (out0 <= 1)))
    assert bool(jnp.all((out1 >= 0) & (out1 <= 1)))
    print("KERNEL_OK")
</pallas_src>

<mosaic_0001>
module attributes {stable_mosaic.version = 11 : i64} {
  func.func @_conv_relu_bn_pool_kernel(%arg0: i32, %arg1: memref<1x75x1024xbf16, #tpu.memory_space<vmem>>, %arg2: memref<1x75x1024xbf16, #tpu.memory_space<vmem>>, %arg3: memref<1x75x1024xbf16, #tpu.memory_space<vmem>>, %arg4: memref<1x75x1024xbf16, #tpu.memory_space<vmem>>, %arg5: memref<8x75xbf16, #tpu.memory_space<vmem>>, %arg6: memref<8x1xf32, #tpu.memory_space<vmem>>, %arg7: memref<8x1xf32, #tpu.memory_space<vmem>>, %arg8: memref<1x8x1024xbf16, #tpu.memory_space<vmem>>) attributes {dimension_semantics = [#tpu.dimension_semantics<parallel>], iteration_bounds = array<i64: 2>, scalar_prefetch = 0 : i64, scratch_operands = 0 : i64, tpu.core_type = #tpu.core_type<tc>, window_params = [{transform_indices = @transform_0, window_bounds = array<i64: 1, 75, 1024>}, {transform_indices = @transform_1, window_bounds = array<i64: 1, 75, 1024>}, {transform_indices = @transform_2, window_bounds = array<i64: 1, 75, 1024>}, {transform_indices = @transform_3, window_bounds = array<i64: 1, 75, 1024>}, {pipeline_mode = #tpu.pipeline_mode<synchronous>, transform_indices = @transform_4, window_bounds = array<i64: 8, 75>}, {pipeline_mode = #tpu.pipeline_mode<synchronous>, transform_indices = @transform_5, window_bounds = array<i64: 8, 1>}, {pipeline_mode = #tpu.pipeline_mode<synchronous>, transform_indices = @transform_6, window_bounds = array<i64: 8, 1>}, {transform_indices = @transform_7, window_bounds = array<i64: 1, 8, 1024>}]} {
    %c0 = arith.constant 0 : index
    %c0_0 = arith.constant 0 : index
    %0 = vector.load %arg5[%c0, %c0_0] : memref<8x75xbf16, #tpu.memory_space<vmem>>, vector<8x75xbf16>
    %c0_1 = arith.constant 0 : index
    %c0_2 = arith.constant 0 : index
    %1 = vector.load %arg6[%c0_1, %c0_2] : memref<8x1xf32, #tpu.memory_space<vmem>>, vector<8x1xf32>
    %2 = vector.shape_cast %1 : vector<8x1xf32> to vector<8x1xf32>
    %3 = vector.broadcast %2 : vector<8x1xf32> to vector<8x1024xf32>
    %c0_3 = arith.constant 0 : index
    %c0_4 = arith.constant 0 : index
    %4 = vector.load %arg7[%c0_3, %c0_4] : memref<8x1xf32, #tpu.memory_space<vmem>>, vector<8x1xf32>
    %5 = vector.shape_cast %4 : vector<8x1xf32> to vector<8x1xf32>
    %6 = vector.broadcast %5 : vector<8x1xf32> to vector<8x1024xf32>
    %c0_5 = arith.constant 0 : index
    %c0_6 = arith.constant 0 : index
    %c0_7 = arith.constant 0 : index
    %7 = vector.load %arg1[%c0_5, %c0_6, %c0_7] : memref<1x75x1024xbf16, #tpu.memory_space<vmem>>, vector<1x75x1024xbf16>
    %8 = vector.shape_cast %7 : vector<1x75x1024xbf16> to vector<75x1024xbf16>
    %cst = arith.constant dense<0.000000e+00> : vector<8x1024xf32>
    %9 = tpu.matmul %0, %8, %cst {dimension_numbers = #tpu.dot_dimension_numbers<[1], [0], [0], [1], [0, 0, 1, 1], [], []>} : vector<8x75xbf16>, vector<75x1024xbf16>, vector<8x1024xf32> -> vector<8x1024xf32>
    %cst_8 = arith.constant 0.000000e+00 : f32
    %10 = vector.broadcast %cst_8 : f32 to vector<8x1024xf32>
    %11 = arith.maximumf %9, %10 : vector<8x1024xf32>
    %12 = arith.mulf %11, %3 : vector<8x1024xf32>
    %13 = arith.addf %12, %6 : vector<8x1024xf32>
    %c0_9 = arith.constant 0 : index
    %c0_10 = arith.constant 0 : index
    %c0_11 = arith.constant 0 : index
    %14 = vector.load %arg2[%c0_9, %c0_10, %c0_11] : memref<1x75x1024xbf16, #tpu.memory_space<vmem>>, vector<1x75x1024xbf16>
    %15 = vector.shape_cast %14 : vector<1x75x1024xbf16> to vector<75x1024xbf16>
    %cst_12 = arith.constant dense<0.000000e+00> : vector<8x1024xf32>
    %16 = tpu.matmul %0, %15, %cst_12 {dimension_numbers = #tpu.dot_dimension_numbers<[1], [0], [0], [1], [0, 0, 1, 1], [], []>} : vector<8x75xbf16>, vector<75x1024xbf16>, vector<8x1024xf32> -> vector<8x1024xf32>
    %cst_13 = arith.constant 0.000000e+00 : f32
    %17 = vector.broadcast %cst_13 : f32 to vector<8x1024xf32>
    %18 = arith.maximumf %16, %17 : vector<8x1024xf32>
    %19 = arith.mulf %18, %3 : vector<8x1024xf32>
    %20 = arith.addf %19, %6 : vector<8x1024xf32>
    %21 = arith.maximumf %13, %20 : vector<8x1024xf32>
    %c0_14 = arith.constant 0 : index
    %c0_15 = arith.constant 0 : index
    %c0_16 = arith.constant 0 : index
    %22 = vector.load %arg3[%c0_14, %c0_15, %c0_16] : memref<1x75x1024xbf16, #tpu.memory_space<vmem>>, vector<1x75x1024xbf16>
    %23 = vector.shape_cast %22 : vector<1x75x1024xbf16> to vector<75x1024xbf16>
    %cst_17 = arith.constant dense<0.000000e+00> : vector<8x1024xf32>
    %24 = tpu.matmul %0, %23, %cst_17 {dimension_numbers = #tpu.dot_dimension_numbers<[1], [0], [0], [1], [0, 0, 1, 1], [], []>} : vector<8x75xbf16>, vector<75x1024xbf16>, vector<8x1024xf32> -> vector<8x1024xf32>
    %cst_18 = arith.constant 0.000000e+00 : f32
    %25 = vector.broadcast %cst_18 : f32 to vector<8x1024xf32>
    %26 = arith.maximumf %24, %25 : vector<8x1024xf32>
    %27 = arith.mulf %26, %3 : vector<8x1024xf32>
    %28 = arith.addf %27, %6 : vector<8x1024xf32>
    %c0_19 = arith.constant 0 : index
    %c0_20 = arith.constant 0 : index
    %c0_21 = arith.constant 0 : index
    %29 = vector.load %arg4[%c0_19, %c0_20, %c0_21] : memref<1x75x1024xbf16, #tpu.memory_space<vmem>>, vector<1x75x1024xbf16>
    %30 = vector.shape_cast %29 : vector<1x75x1024xbf16> to vector<75x1024xbf16>
    %cst_22 = arith.constant dense<0.000000e+00> : vector<8x1024xf32>
    %31 = tpu.matmul %0, %30, %cst_22 {dimension_numbers = #tpu.dot_dimension_numbers<[1], [0], [0], [1], [0, 0, 1, 1], [], []>} : vector<8x75xbf16>, vector<75x1024xbf16>, vector<8x1024xf32> -> vector<8x1024xf32>
    %cst_23 = arith.constant 0.000000e+00 : f32
    %32 = vector.broadcast %cst_23 : f32 to vector<8x1024xf32>
    %33 = arith.maximumf %31, %32 : vector<8x1024xf32>
    %34 = arith.mulf %33, %3 : vector<8x1024xf32>
    %35 = arith.addf %34, %6 : vector<8x1024xf32>
    %36 = arith.maximumf %28, %35 : vector<8x1024xf32>
    %37 = arith.maximumf %21, %36 : vector<8x1024xf32>
    %38 = arith.truncf %37 : vector<8x1024xf32> to vector<8x1024xbf16>
    %c0_24 = arith.constant 0 : index
    %c0_25 = arith.constant 0 : index
    %c0_26 = arith.constant 0 : index
    %39 = vector.load %arg8[%c0_24, %c0_25, %c0_26] : memref<1x8x1024xbf16, #tpu.memory_space<vmem>>, vector<1x8x1024xbf16>
    %40 = vector.shape_cast %39 : vector<1x8x1024xbf16> to vector<8x1024xbf16>
    %41 = vector.shape_cast %38 : vector<8x1024xbf16> to vector<1x8x1024xbf16>
    tpu.vector_store %arg8[%c0_24, %c0_25, %c0_26], %41 {strides = array<i32>} : memref<1x8x1024xbf16, #tpu.memory_space<vmem>>, vector<1x8x1024xbf16>,
    return
  }
  func.func @transform_0(%arg0: i32) -> (i32, i32, i32) {
    %c0_i32 = arith.constant 0 : i32
    %c0_i32_0 = arith.constant 0 : i32
    %c0_i32_1 = arith.constant 0 : i32
    return %arg0, %c0_i32, %c0_i32_0 : i32, i32, i32
  }
  func.func @transform_1(%arg0: i32) -> (i32, i32, i32) {
    %c0_i32 = arith.constant 0 : i32
    %c0_i32_0 = arith.constant 0 : i32
    %c0_i32_1 = arith.constant 0 : i32
    return %arg0, %c0_i32, %c0_i32_0 : i32, i32, i32
  }
  func.func @transform_2(%arg0: i32) -> (i32, i32, i32) {
    %c0_i32 = arith.constant 0 : i32
    %c0_i32_0 = arith.constant 0 : i32
    %c0_i32_1 = arith.constant 0 : i32
    return %arg0, %c0_i32, %c0_i32_0 : i32, i32, i32
  }
  func.func @transform_3(%arg0: i32) -> (i32, i32, i32) {
    %c0_i32 = arith.constant 0 : i32
    %c0_i32_0 = arith.constant 0 : i32
    %c0_i32_1 = arith.constant 0 : i32
    return %arg0, %c0_i32, %c0_i32_0 : i32, i32, i32
  }
  func.func @transform_4(%arg0: i32) -> (i32, i32) {
    %c0_i32 = arith.constant 0 : i32
    %c0_i32_0 = arith.constant 0 : i32
    %c0_i32_1 = arith.constant 0 : i32
    return %c0_i32, %c0_i32_0 : i32, i32
  }
  func.func @transform_5(%arg0: i32) -> (i32, i32) {
    %c0_i32 = arith.constant 0 : i32
    %c0_i32_0 = arith.constant 0 : i32
    %c0_i32_1 = arith.constant 0 : i32
    return %c0_i32, %c0_i32_0 : i32, i32
  }
  func.func @transform_6(%arg0: i32) -> (i32, i32) {
    %c0_i32 = arith.constant 0 : i32
    %c0_i32_0 = arith.constant 0 : i32
    %c0_i32_1 = arith.constant 0 : i32
    return %c0_i32, %c0_i32_0 : i32, i32
  }
  func.func @transform_7(%arg0: i32) -> (i32, i32, i32) {
    %c0_i32 = arith.constant 0 : i32
    %c0_i32_0 = arith.constant 0 : i32
    %c0_i32_1 = arith.constant 0 : i32
    return %arg0, %c0_i32, %c0_i32_0 : i32, i32, i32
  }
}

module attributes {stable_mosaic.version = 11 : i64} {
  func.func @_conv_relu_bn_pool_kernel(%arg0: i32, %arg1: memref<1x200x256xbf16, #tpu.memory_space<vmem>>, %arg2: memref<1x200x256xbf16, #tpu.memory_space<vmem>>, %arg3: memref<1x200x256xbf16, #tpu.memory_space<vmem>>, %arg4: memref<1x200x256xbf16, #tpu.memory_space<vmem>>, %arg5: memref<16x200xbf16, #tpu.memory_space<vmem>>, %arg6: memref<16x1xf32, #tpu.memory_space<vmem>>, %arg7: memref<16x1xf32, #tpu.memory_space<vmem>>, %arg8: memref<1x16x256xbf16, #tpu.memory_space<vmem>>) attributes {dimension_semantics = [#tpu.dimension_semantics<parallel>], iteration_bounds = array<i64: 2>, scalar_prefetch = 0 : i64, scratch_operands = 0 : i64, tpu.core_type = #tpu.core_type<tc>, window_params = [{transform_indices = @transform_0, window_bounds = array<i64: 1, 200, 256>}, {transform_indices = @transform_1, window_bounds = array<i64: 1, 200, 256>}, {transform_indices = @transform_2, window_bounds = array<i64: 1, 200, 256>}, {transform_indices = @transform_3, window_bounds = array<i64: 1, 200, 256>}, {pipeline_mode = #tpu.pipeline_mode<synchronous>, transform_indices = @transform_4, window_bounds = array<i64: 16, 200>}, {pipeline_mode = #tpu.pipeline_mode<synchronous>, transform_indices = @transform_5, window_bounds = array<i64: 16, 1>}, {pipeline_mode = #tpu.pipeline_mode<synchronous>, transform_indices = @transform_6, window_bounds = array<i64: 16, 1>}, {transform_indices = @transform_7, window_bounds = array<i64: 1, 16, 256>}]} {
    %c0 = arith.constant 0 : index
    %c0_0 = arith.constant 0 : index
    %0 = vector.load %arg5[%c0, %c0_0] : memref<16x200xbf16, #tpu.memory_space<vmem>>, vector<16x200xbf16>
    %c0_1 = arith.constant 0 : index
    %c0_2 = arith.constant 0 : index
    %1 = vector.load %arg6[%c0_1, %c0_2] : memref<16x1xf32, #tpu.memory_space<vmem>>, vector<16x1xf32>
    %2 = vector.shape_cast %1 : vector<16x1xf32> to vector<16x1xf32>
    %3 = vector.broadcast %2 : vector<16x1xf32> to vector<16x256xf32>
    %c0_3 = arith.constant 0 : index
    %c0_4 = arith.constant 0 : index
    %4 = vector.load %arg7[%c0_3, %c0_4] : memref<16x1xf32, #tpu.memory_space<vmem>>, vector<16x1xf32>
    %5 = vector.shape_cast %4 : vector<16x1xf32> to vector<16x1xf32>
    %6 = vector.broadcast %5 : vector<16x1xf32> to vector<16x256xf32>
    %c0_5 = arith.constant 0 : index
    %c0_6 = arith.constant 0 : index
    %c0_7 = arith.constant 0 : index
    %7 = vector.load %arg1[%c0_5, %c0_6, %c0_7] : memref<1x200x256xbf16, #tpu.memory_space<vmem>>, vector<1x200x256xbf16>
    %8 = vector.shape_cast %7 : vector<1x200x256xbf16> to vector<200x256xbf16>
    %cst = arith.constant dense<0.000000e+00> : vector<16x256xf32>
    %9 = tpu.matmul %0, %8, %cst {dimension_numbers = #tpu.dot_dimension_numbers<[1], [0], [0], [1], [0, 0, 1, 1], [], []>} : vector<16x200xbf16>, vector<200x256xbf16>, vector<16x256xf32> -> vector<16x256xf32>
    %cst_8 = arith.constant 0.000000e+00 : f32
    %10 = vector.broadcast %cst_8 : f32 to vector<16x256xf32>
    %11 = arith.maximumf %9, %10 : vector<16x256xf32>
    %12 = arith.mulf %11, %3 : vector<16x256xf32>
    %13 = arith.addf %12, %6 : vector<16x256xf32>
    %c0_9 = arith.constant 0 : index
    %c0_10 = arith.constant 0 : index
    %c0_11 = arith.constant 0 : index
    %14 = vector.load %arg2[%c0_9, %c0_10, %c0_11] : memref<1x200x256xbf16, #tpu.memory_space<vmem>>, vector<1x200x256xbf16>
    %15 = vector.shape_cast %14 : vector<1x200x256xbf16> to vector<200x256xbf16>
    %cst_12 = arith.constant dense<0.000000e+00> : vector<16x256xf32>
    %16 = tpu.matmul %0, %15, %cst_12 {dimension_numbers = #tpu.dot_dimension_numbers<[1], [0], [0], [1], [0, 0, 1, 1], [], []>} : vector<16x200xbf16>, vector<200x256xbf16>, vector<16x256xf32> -> vector<16x256xf32>
    %cst_13 = arith.constant 0.000000e+00 : f32
    %17 = vector.broadcast %cst_13 : f32 to vector<16x256xf32>
    %18 = arith.maximumf %16, %17 : vector<16x256xf32>
    %19 = arith.mulf %18, %3 : vector<16x256xf32>
    %20 = arith.addf %19, %6 : vector<16x256xf32>
    %21 = arith.maximumf %13, %20 : vector<16x256xf32>
    %c0_14 = arith.constant 0 : index
    %c0_15 = arith.constant 0 : index
    %c0_16 = arith.constant 0 : index
    %22 = vector.load %arg3[%c0_14, %c0_15, %c0_16] : memref<1x200x256xbf16, #tpu.memory_space<vmem>>, vector<1x200x256xbf16>
    %23 = vector.shape_cast %22 : vector<1x200x256xbf16> to vector<200x256xbf16>
    %cst_17 = arith.constant dense<0.000000e+00> : vector<16x256xf32>
    %24 = tpu.matmul %0, %23, %cst_17 {dimension_numbers = #tpu.dot_dimension_numbers<[1], [0], [0], [1], [0, 0, 1, 1], [], []>} : vector<16x200xbf16>, vector<200x256xbf16>, vector<16x256xf32> -> vector<16x256xf32>
    %cst_18 = arith.constant 0.000000e+00 : f32
    %25 = vector.broadcast %cst_18 : f32 to vector<16x256xf32>
    %26 = arith.maximumf %24, %25 : vector<16x256xf32>
    %27 = arith.mulf %26, %3 : vector<16x256xf32>
    %28 = arith.addf %27, %6 : vector<16x256xf32>
    %c0_19 = arith.constant 0 : index
    %c0_20 = arith.constant 0 : index
    %c0_21 = arith.constant 0 : index
    %29 = vector.load %arg4[%c0_19, %c0_20, %c0_21] : memref<1x200x256xbf16, #tpu.memory_space<vmem>>, vector<1x200x256xbf16>
    %30 = vector.shape_cast %29 : vector<1x200x256xbf16> to vector<200x256xbf16>
    %cst_22 = arith.constant dense<0.000000e+00> : vector<16x256xf32>
    %31 = tpu.matmul %0, %30, %cst_22 {dimension_numbers = #tpu.dot_dimension_numbers<[1], [0], [0], [1], [0, 0, 1, 1], [], []>} : vector<16x200xbf16>, vector<200x256xbf16>, vector<16x256xf32> -> vector<16x256xf32>
    %cst_23 = arith.constant 0.000000e+00 : f32
    %32 = vector.broadcast %cst_23 : f32 to vector<16x256xf32>
    %33 = arith.maximumf %31, %32 : vector<16x256xf32>
    %34 = arith.mulf %33, %3 : vector<16x256xf32>
    %35 = arith.addf %34, %6 : vector<16x256xf32>
    %36 = arith.maximumf %28, %35 : vector<16x256xf32>
    %37 = arith.maximumf %21, %36 : vector<16x256xf32>
    %38 = arith.truncf %37 : vector<16x256xf32> to vector<16x256xbf16>
    %c0_24 = arith.constant 0 : index
    %c0_25 = arith.constant 0 : index
    %c0_26 = arith.constant 0 : index
    %39 = vector.load %arg8[%c0_24, %c0_25, %c0_26] : memref<1x16x256xbf16, #tpu.memory_space<vmem>>, vector<1x16x256xbf16>
    %40 = vector.shape_cast %39 : vector<1x16x256xbf16> to vector<16x256xbf16>
    %41 = vector.shape_cast %38 : vector<16x256xbf16> to vector<1x16x256xbf16>
    tpu.vector_store %arg8[%c0_24, %c0_25, %c0_26], %41 {strides = array<i32>} : memref<1x16x256xbf16, #tpu.memory_space<vmem>>, vector<1x16x256xbf16>,
    return
  }
  func.func @transform_0(%arg0: i32) -> (i32, i32, i32) {
    %c0_i32 = arith.constant 0 : i32
    %c0_i32_0 = arith.constant 0 : i32
    %c0_i32_1 = arith.constant 0 : i32
    return %arg0, %c0_i32, %c0_i32_0 : i32, i32, i32
  }
  func.func @transform_1(%arg0: i32) -> (i32, i32, i32) {
    %c0_i32 = arith.constant 0 : i32
    %c0_i32_0 = arith.constant 0 : i32
    %c0_i32_1 = arith.constant 0 : i32
    return %arg0, %c0_i32, %c0_i32_0 : i32, i32, i32
  }
  func.func @transform_2(%arg0: i32) -> (i32, i32, i32) {
    %c0_i32 = arith.constant 0 : i32
    %c0_i32_0 = arith.constant 0 : i32
    %c0_i32_1 = arith.constant 0 : i32
    return %arg0, %c0_i32, %c0_i32_0 : i32, i32, i32
  }
  func.func @transform_3(%arg0: i32) -> (i32, i32, i32) {
    %c0_i32 = arith.constant 0 : i32
    %c0_i32_0 = arith.constant 0 : i32
    %c0_i32_1 = arith.constant 0 : i32
    return %arg0, %c0_i32, %c0_i32_0 : i32, i32, i32
  }
  func.func @transform_4(%arg0: i32) -> (i32, i32) {
    %c0_i32 = arith.constant 0 : i32
    %c0_i32_0 = arith.constant 0 : i32
    %c0_i32_1 = arith.constant 0 : i32
    return %c0_i32, %c0_i32_0 : i32, i32
  }
  func.func @transform_5(%arg0: i32) -> (i32, i32) {
    %c0_i32 = arith.constant 0 : i32
    %c0_i32_0 = arith.constant 0 : i32
    %c0_i32_1 = arith.constant 0 : i32
    return %c0_i32, %c0_i32_0 : i32, i32
  }
  func.func @transform_6(%arg0: i32) -> (i32, i32) {
    %c0_i32 = arith.constant 0 : i32
    %c0_i32_0 = arith.constant 0 : i32
    %c0_i32_1 = arith.constant 0 : i32
    return %c0_i32, %c0_i32_0 : i32, i32
  }
  func.func @transform_7(%arg0: i32) -> (i32, i32, i32) {
    %c0_i32 = arith.constant 0 : i32
    %c0_i32_0 = arith.constant 0 : i32
    %c0_i32_1 = arith.constant 0 : i32
    return %arg0, %c0_i32, %c0_i32_0 : i32, i32, i32
  }
}

module attributes {stable_mosaic.version = 11 : i64} {
  func.func @_tail_kernel(%arg0: memref<400x128xbf16, #tpu.memory_space<vmem>>, %arg1: memref<400x128xbf16, #tpu.memory_space<vmem>>, %arg2: memref<400x128xbf16, #tpu.memory_space<vmem>>, %arg3: memref<400x128xbf16, #tpu.memory_space<vmem>>, %arg4: memref<32x400xbf16, #tpu.memory_space<vmem>>, %arg5: memref<32x1xf32, #tpu.memory_space<vmem>>, %arg6: memref<32x1xf32, #tpu.memory_space<vmem>>, %arg7: memref<576x32xbf16, #tpu.memory_space<vmem>>, %arg8: memref<4x1152x32xbf16, #tpu.memory_space<vmem>>, %arg9: memref<128x64xbf16, #tpu.memory_space<vmem>>, %arg10: memref<4x32x8xbf16, #tpu.memory_space<vmem>>, %arg11: memref<8x2xbf16, #tpu.memory_space<vmem>>, %arg12: memref<64x128xbf16, #tpu.memory_space<vmem>>, %arg13: memref<64x1xf32, #tpu.memory_space<vmem>>, %arg14: memref<32x64xbf16, #tpu.memory_space<vmem>>, %arg15: memref<32x1xf32, #tpu.memory_space<vmem>>, %arg16: memref<2x32xbf16, #tpu.memory_space<vmem>>, %arg17: memref<2x1xf32, #tpu.memory_space<vmem>>, %arg18: memref<2x2xf32, #tpu.memory_space<vmem>>) attributes {dimension_semantics = [], scalar_prefetch = 0 : i64, scratch_operands = 0 : i64, tpu.core_type = #tpu.core_type<tc>} {
    %c0 = arith.constant 0 : index
    %c0_0 = arith.constant 0 : index
    %0 = vector.load %arg4[%c0, %c0_0] : memref<32x400xbf16, #tpu.memory_space<vmem>>, vector<32x400xbf16>
    %c0_1 = arith.constant 0 : index
    %c0_2 = arith.constant 0 : index
    %1 = vector.load %arg5[%c0_1, %c0_2] : memref<32x1xf32, #tpu.memory_space<vmem>>, vector<32x1xf32>
    %2 = vector.shape_cast %1 : vector<32x1xf32> to vector<32x1xf32>
    %3 = vector.broadcast %2 : vector<32x1xf32> to vector<32x128xf32>
    %c0_3 = arith.constant 0 : index
    %c0_4 = arith.constant 0 : index
    %4 = vector.load %arg6[%c0_3, %c0_4] : memref<32x1xf32, #tpu.memory_space<vmem>>, vector<32x1xf32>
    %5 = vector.shape_cast %4 : vector<32x1xf32> to vector<32x1xf32>
    %6 = vector.broadcast %5 : vector<32x1xf32> to vector<32x128xf32>
    %c0_5 = arith.constant 0 : index
    %c0_6 = arith.constant 0 : index
    %7 = vector.load %arg0[%c0_5, %c0_6] : memref<400x128xbf16, #tpu.memory_space<vmem>>, vector<400x128xbf16>
    %cst = arith.constant dense<0.000000e+00> : vector<32x128xf32>
    %8 = tpu.matmul %0, %7, %cst {dimension_numbers = #tpu.dot_dimension_numbers<[1], [0], [0], [1], [0, 0, 1, 1], [], []>} : vector<32x400xbf16>, vector<400x128xbf16>, vector<32x128xf32> -> vector<32x128xf32>
    %cst_7 = arith.constant 0.000000e+00 : f32
    %9 = vector.broadcast %cst_7 : f32 to vector<32x128xf32>
    %10 = arith.maximumf %8, %9 : vector<32x128xf32>
    %11 = arith.mulf %10, %3 : vector<32x128xf32>
    %12 = arith.addf %11, %6 : vector<32x128xf32>
    %c0_8 = arith.constant 0 : index
    %c0_9 = arith.constant 0 : index
    %13 = vector.load %arg1[%c0_8, %c0_9] : memref<400x128xbf16, #tpu.memory_space<vmem>>, vector<400x128xbf16>
    %cst_10 = arith.constant dense<0.000000e+00> : vector<32x128xf32>
    %14 = tpu.matmul %0, %13, %cst_10 {dimension_numbers = #tpu.dot_dimension_numbers<[1], [0], [0], [1], [0, 0, 1, 1], [], []>} : vector<32x400xbf16>, vector<400x128xbf16>, vector<32x128xf32> -> vector<32x128xf32>
    %cst_11 = arith.constant 0.000000e+00 : f32
    %15 = vector.broadcast %cst_11 : f32 to vector<32x128xf32>
    %16 = arith.maximumf %14, %15 : vector<32x128xf32>
    %17 = arith.mulf %16, %3 : vector<32x128xf32>
    %18 = arith.addf %17, %6 : vector<32x128xf32>
    %19 = arith.maximumf %12, %18 : vector<32x128xf32>
    %c0_12 = arith.constant 0 : index
    %c0_13 = arith.constant 0 : index
    %20 = vector.load %arg2[%c0_12, %c0_13] : memref<400x128xbf16, #tpu.memory_space<vmem>>, vector<400x128xbf16>
    %cst_14 = arith.constant dense<0.000000e+00> : vector<32x128xf32>
    %21 = tpu.matmul %0, %20, %cst_14 {dimension_numbers = #tpu.dot_dimension_numbers<[1], [0], [0], [1], [0, 0, 1, 1], [], []>} : vector<32x400xbf16>, vector<400x128xbf16>, vector<32x128xf32> -> vector<32x128xf32>
    %cst_15 = arith.constant 0.000000e+00 : f32
    %22 = vector.broadcast %cst_15 : f32 to vector<32x128xf32>
    %23 = arith.maximumf %21, %22 : vector<32x128xf32>
    %24 = arith.mulf %23, %3 : vector<32x128xf32>
    %25 = arith.addf %24, %6 : vector<32x128xf32>
    %c0_16 = arith.constant 0 : index
    %c0_17 = arith.constant 0 : index
    %26 = vector.load %arg3[%c0_16, %c0_17] : memref<400x128xbf16, #tpu.memory_space<vmem>>, vector<400x128xbf16>
    %cst_18 = arith.constant dense<0.000000e+00> : vector<32x128xf32>
    %27 = tpu.matmul %0, %26, %cst_18 {dimension_numbers = #tpu.dot_dimension_numbers<[1], [0], [0], [1], [0, 0, 1, 1], [], []>} : vector<32x400xbf16>, vector<400x128xbf16>, vector<32x128xf32> -> vector<32x128xf32>
    %cst_19 = arith.constant 0.000000e+00 : f32
    %28 = vector.broadcast %cst_19 : f32 to vector<32x128xf32>
    %29 = arith.maximumf %27, %28 : vector<32x128xf32>
    %30 = arith.mulf %29, %3 : vector<32x128xf32>
    %31 = arith.addf %30, %6 : vector<32x128xf32>
    %32 = arith.maximumf %25, %31 : vector<32x128xf32>
    %33 = arith.maximumf %19, %32 : vector<32x128xf32>
    %34 = arith.truncf %33 : vector<32x128xf32> to vector<32x128xbf16>
    %c0_20 = arith.constant 0 : index
    %c0_21 = arith.constant 0 : index
    %35 = vector.load %arg7[%c0_20, %c0_21] : memref<576x32xbf16, #tpu.memory_space<vmem>>, vector<576x32xbf16>
    %cst_22 = arith.constant dense<0.000000e+00> : vector<576x128xf32>
    %36 = tpu.matmul %35, %34, %cst_22 {dimension_numbers = #tpu.dot_dimension_numbers<[1], [0], [0], [1], [0, 0, 1, 1], [], []>} : vector<576x32xbf16>, vector<32x128xbf16>, vector<576x128xf32> -> vector<576x128xf32>
    %37 = vector.extract_strided_slice %36 {offsets = [0, 0], sizes = [64, 128], strides = [1, 1]} : vector<576x128xf32> to vector<64x128xf32>
    %38 = vector.extract_strided_slice %36 {offsets = [64, 0], sizes = [64, 128], strides = [1, 1]} : vector<576x128xf32> to vector<64x128xf32>
    %39 = vector.extract_strided_slice %36 {offsets = [128, 0], sizes = [64, 128], strides = [1, 1]} : vector<576x128xf32> to vector<64x128xf32>
    %40 = vector.extract_strided_slice %36 {offsets = [192, 0], sizes = [64, 128], strides = [1, 1]} : vector<576x128xf32> to vector<64x128xf32>
    %41 = vector.extract_strided_slice %36 {offsets = [256, 0], sizes = [64, 128], strides = [1, 1]} : vector<576x128xf32> to vector<64x128xf32>
    %42 = vector.extract_strided_slice %36 {offsets = [320, 0], sizes = [64, 128], strides = [1, 1]} : vector<576x128xf32> to vector<64x128xf32>
    %43 = vector.extract_strided_slice %36 {offsets = [384, 0], sizes = [64, 128], strides = [1, 1]} : vector<576x128xf32> to vector<64x128xf32>
    %44 = vector.extract_strided_slice %36 {offsets = [448, 0], sizes = [64, 128], strides = [1, 1]} : vector<576x128xf32> to vector<64x128xf32>
    %45 = vector.extract_strided_slice %36 {offsets = [512, 0], sizes = [64, 128], strides = [1, 1]} : vector<576x128xf32> to vector<64x128xf32>
    %46 = tpu.concatenate %37, %38, %39, %40, %41, %42, %43, %44, %45 in 1 : vector<64x128xf32>, vector<64x128xf32>, vector<64x128xf32>, vector<64x128xf32>, vector<64x128xf32>, vector<64x128xf32>, vector<64x128xf32>, vector<64x128xf32>, vector<64x128xf32> -> vector<64x1152xf32>
    %47 = arith.truncf %46 : vector<64x1152xf32> to vector<64x1152xbf16>
    %c0_23 = arith.constant 0 : index
    %c0_24 = arith.constant 0 : index
    %c0_25 = arith.constant 0 : index
    %48 = vector.load %arg8[%c0_23, %c0_24, %c0_25] : memref<4x1152x32xbf16, #tpu.memory_space<vmem>>, vector<1x1152x32xbf16>
    %49 = vector.shape_cast %48 : vector<1x1152x32xbf16> to vector<1152x32xbf16>
    %cst_26 = arith.constant dense<0.000000e+00> : vector<64x32xf32>
    %50 = tpu.matmul %47, %49, %cst_26 {dimension_numbers = #tpu.dot_dimension_numbers<[1], [0], [0], [1], [0, 0, 1, 1], [], []>} : vector<64x1152xbf16>, vector<1152x32xbf16>, vector<64x32xf32> -> vector<64x32xf32>
    %c1 = arith.constant 1 : index
    %c0_27 = arith.constant 0 : index
    %c0_28 = arith.constant 0 : index
    %51 = vector.load %arg8[%c1, %c0_27, %c0_28] : memref<4x1152x32xbf16, #tpu.memory_space<vmem>>, vector<1x1152x32xbf16>
    %52 = vector.shape_cast %51 : vector<1x1152x32xbf16> to vector<1152x32xbf16>
    %cst_29 = arith.constant dense<0.000000e+00> : vector<64x32xf32>
    %53 = tpu.matmul %47, %52, %cst_29 {dimension_numbers = #tpu.dot_dimension_numbers<[1], [0], [0], [1], [0, 0, 1, 1], [], []>} : vector<64x1152xbf16>, vector<1152x32xbf16>, vector<64x32xf32> -> vector<64x32xf32>
    %54 = arith.maximumf %50, %53 : vector<64x32xf32>
    %c2 = arith.constant 2 : index
    %c0_30 = arith.constant 0 : index
    %c0_31 = arith.constant 0 : index
    %55 = vector.load %arg8[%c2, %c0_30, %c0_31] : memref<4x1152x32xbf16, #tpu.memory_space<vmem>>, vector<1x1152x32xbf16>
    %56 = vector.shape_cast %55 : vector<1x1152x32xbf16> to vector<1152x32xbf16>
    %cst_32 = arith.constant dense<0.000000e+00> : vector<64x32xf32>
    %57 = tpu.matmul %47, %56, %cst_32 {dimension_numbers = #tpu.dot_dimension_numbers<[1], [0], [0], [1], [0, 0, 1, 1], [], []>} : vector<64x1152xbf16>, vector<1152x32xbf16>, vector<64x32xf32> -> vector<64x32xf32>
    %58 = arith.maximumf %54, %57 : vector<64x32xf32>
    %c3 = arith.constant 3 : index
    %c0_33 = arith.constant 0 : index
    %c0_34 = arith.constant 0 : index
    %59 = vector.load %arg8[%c3, %c0_33, %c0_34] : memref<4x1152x32xbf16, #tpu.memory_space<vmem>>, vector<1x1152x32xbf16>
    %60 = vector.shape_cast %59 : vector<1x1152x32xbf16> to vector<1152x32xbf16>
    %cst_35 = arith.constant dense<0.000000e+00> : vector<64x32xf32>
    %61 = tpu.matmul %47, %60, %cst_35 {dimension_numbers = #tpu.dot_dimension_numbers<[1], [0], [0], [1], [0, 0, 1, 1], [], []>} : vector<64x1152xbf16>, vector<1152x32xbf16>, vector<64x32xf32> -> vector<64x32xf32>
    %62 = arith.maximumf %58, %61 : vector<64x32xf32>
    %cst_36 = arith.constant 0.000000e+00 : f32
    %63 = vector.broadcast %cst_36 : f32 to vector<64x32xf32>
    %64 = arith.maximumf %62, %63 : vector<64x32xf32>
    %65 = arith.truncf %64 : vector<64x32xf32> to vector<64x32xbf16>
    %c0_37 = arith.constant 0 : index
    %c0_38 = arith.constant 0 : index
    %66 = vector.load %arg9[%c0_37, %c0_38] : memref<128x64xbf16, #tpu.memory_space<vmem>>, vector<128x64xbf16>
    %cst_39 = arith.constant dense<0.000000e+00> : vector<128x32xf32>
    %67 = tpu.matmul %66, %65, %cst_39 {dimension_numbers = #tpu.dot_dimension_numbers<[1], [0], [0], [1], [0, 0, 1, 1], [], []>} : vector<128x64xbf16>, vector<64x32xbf16>, vector<128x32xf32> -> vector<128x32xf32>
    %cst_40 = arith.constant 0.000000e+00 : f32
    %68 = vector.broadcast %cst_40 : f32 to vector<128x32xf32>
    %69 = arith.maximumf %67, %68 : vector<128x32xf32>
    %70 = arith.truncf %69 : vector<128x32xf32> to vector<128x32xbf16>
    %c0_41 = arith.constant 0 : index
    %c0_42 = arith.constant 0 : index
    %c0_43 = arith.constant 0 : index
    %71 = vector.load %arg10[%c0_41, %c0_42, %c0_43] : memref<4x32x8xbf16, #tpu.memory_space<vmem>>, vector<1x32x8xbf16>
    %72 = vector.shape_cast %71 : vector<1x32x8xbf16> to vector<32x8xbf16>
    %cst_44 = arith.constant dense<0.000000e+00> : vector<128x8xf32>
    %73 = tpu.matmul %70, %72, %cst_44 {dimension_numbers = #tpu.dot_dimension_numbers<[1], [0], [0], [1], [0, 0, 1, 1], [], []>} : vector<128x32xbf16>, vector<32x8xbf16>, vector<128x8xf32> -> vector<128x8xf32>
    %c1_45 = arith.constant 1 : index
    %c0_46 = arith.constant 0 : index
    %c0_47 = arith.constant 0 : index
    %74 = vector.load %arg10[%c1_45, %c0_46, %c0_47] : memref<4x32x8xbf16, #tpu.memory_space<vmem>>, vector<1x32x8xbf16>
    %75 = vector.shape_cast %74 : vector<1x32x8xbf16> to vector<32x8xbf16>
    %cst_48 = arith.constant dense<0.000000e+00> : vector<128x8xf32>
    %76 = tpu.matmul %70, %75, %cst_48 {dimension_numbers = #tpu.dot_dimension_numbers<[1], [0], [0], [1], [0, 0, 1, 1], [], []>} : vector<128x32xbf16>, vector<32x8xbf16>, vector<128x8xf32> -> vector<128x8xf32>
    %77 = arith.maximumf %73, %76 : vector<128x8xf32>
    %c2_49 = arith.constant 2 : index
    %c0_50 = arith.constant 0 : index
    %c0_51 = arith.constant 0 : index
    %78 = vector.load %arg10[%c2_49, %c0_50, %c0_51] : memref<4x32x8xbf16, #tpu.memory_space<vmem>>, vector<1x32x8xbf16>
    %79 = vector.shape_cast %78 : vector<1x32x8xbf16> to vector<32x8xbf16>
    %cst_52 = arith.constant dense<0.000000e+00> : vector<128x8xf32>
    %80 = tpu.matmul %70, %79, %cst_52 {dimension_numbers = #tpu.dot_dimension_numbers<[1], [0], [0], [1], [0, 0, 1, 1], [], []>} : vector<128x32xbf16>, vector<32x8xbf16>, vector<128x8xf32> -> vector<128x8xf32>
    %81 = arith.maximumf %77, %80 : vector<128x8xf32>
    %c3_53 = arith.constant 3 : index
    %c0_54 = arith.constant 0 : index
    %c0_55 = arith.constant 0 : index
    %82 = vector.load %arg10[%c3_53, %c0_54, %c0_55] : memref<4x32x8xbf16, #tpu.memory_space<vmem>>, vector<1x32x8xbf16>
    %83 = vector.shape_cast %82 : vector<1x32x8xbf16> to vector<32x8xbf16>
    %cst_56 = arith.constant dense<0.000000e+00> : vector<128x8xf32>
    %84 = tpu.matmul %70, %83, %cst_56 {dimension_numbers = #tpu.dot_dimension_numbers<[1], [0], [0], [1], [0, 0, 1, 1], [], []>} : vector<128x32xbf16>, vector<32x8xbf16>, vector<128x8xf32> -> vector<128x8xf32>
    %85 = arith.maximumf %81, %84 : vector<128x8xf32>
    %86 = arith.truncf %85 : vector<128x8xf32> to vector<128x8xbf16>
    %c0_57 = arith.constant 0 : index
    %c0_58 = arith.constant 0 : index
    %87 = vector.load %arg11[%c0_57, %c0_58] : memref<8x2xbf16, #tpu.memory_space<vmem>>, vector<8x2xbf16>
    %cst_59 = arith.constant dense<0.000000e+00> : vector<128x2xf32>
    %88 = tpu.matmul %86, %87, %cst_59 {dimension_numbers = #tpu.dot_dimension_numbers<[1], [0], [0], [1], [0, 0, 1, 1], [], []>} : vector<128x8xbf16>, vector<8x2xbf16>, vector<128x2xf32> -> vector<128x2xf32>
    %c0_60 = arith.constant 0 : index
    %c0_61 = arith.constant 0 : index
    %89 = vector.load %arg12[%c0_60, %c0_61] : memref<64x128xbf16, #tpu.memory_space<vmem>>, vector<64x128xbf16>
    %90 = arith.truncf %88 : vector<128x2xf32> to vector<128x2xbf16>
    %cst_62 = arith.constant dense<0.000000e+00> : vector<64x2xf32>
    %91 = tpu.matmul %89, %90, %cst_62 {dimension_numbers = #tpu.dot_dimension_numbers<[1], [0], [0], [1], [0, 0, 1, 1], [], []>} : vector<64x128xbf16>, vector<128x2xbf16>, vector<64x2xf32> -> vector<64x2xf32>
    %c0_63 = arith.constant 0 : index
    %c0_64 = arith.constant 0 : index
    %92 = vector.load %arg13[%c0_63, %c0_64] : memref<64x1xf32, #tpu.memory_space<vmem>>, vector<64x1xf32>
    %93 = vector.broadcast %92 : vector<64x1xf32> to vector<64x2xf32>
    %94 = arith.addf %91, %93 : vector<64x2xf32>
    %cst_65 = arith.constant 0.000000e+00 : f32
    %95 = vector.broadcast %cst_65 : f32 to vector<64x2xf32>
    %96 = arith.maximumf %94, %95 : vector<64x2xf32>
    %c0_66 = arith.constant 0 : index
    %c0_67 = arith.constant 0 : index
    %97 = vector.load %arg14[%c0_66, %c0_67] : memref<32x64xbf16, #tpu.memory_space<vmem>>, vector<32x64xbf16>
    %98 = arith.truncf %96 : vector<64x2xf32> to vector<64x2xbf16>
    %cst_68 = arith.constant dense<0.000000e+00> : vector<32x2xf32>
    %99 = tpu.matmul %97, %98, %cst_68 {dimension_numbers = #tpu.dot_dimension_numbers<[1], [0], [0], [1], [0, 0, 1, 1], [], []>} : vector<32x64xbf16>, vector<64x2xbf16>, vector<32x2xf32> -> vector<32x2xf32>
    %c0_69 = arith.constant 0 : index
    %c0_70 = arith.constant 0 : index
    %100 = vector.load %arg15[%c0_69, %c0_70] : memref<32x1xf32, #tpu.memory_space<vmem>>, vector<32x1xf32>
    %101 = vector.broadcast %100 : vector<32x1xf32> to vector<32x2xf32>
    %102 = arith.addf %99, %101 : vector<32x2xf32>
    %cst_71 = arith.constant 0.000000e+00 : f32
    %103 = vector.broadcast %cst_71 : f32 to vector<32x2xf32>
    %104 = arith.maximumf %102, %103 : vector<32x2xf32>
    %c0_72 = arith.constant 0 : index
    %c0_73 = arith.constant 0 : index
    %105 = vector.load %arg16[%c0_72, %c0_73] : memref<2x32xbf16, #tpu.memory_space<vmem>>, vector<2x32xbf16>
    %106 = arith.truncf %104 : vector<32x2xf32> to vector<32x2xbf16>
    %cst_74 = arith.constant dense<0.000000e+00> : vector<2x2xf32>
    %107 = tpu.matmul %105, %106, %cst_74 {dimension_numbers = #tpu.dot_dimension_numbers<[1], [0], [0], [1], [0, 0, 1, 1], [], []>} : vector<2x32xbf16>, vector<32x2xbf16>, vector<2x2xf32> -> vector<2x2xf32>
    %c0_75 = arith.constant 0 : index
    %c0_76 = arith.constant 0 : index
    %108 = vector.load %arg17[%c0_75, %c0_76] : memref<2x1xf32, #tpu.memory_space<vmem>>, vector<2x1xf32>
    %109 = vector.broadcast %108 : vector<2x1xf32> to vector<2x2xf32>
    %110 = arith.addf %107, %109 : vector<2x2xf32>
    %111 = arith.negf %110 : vector<2x2xf32>
    %112 = math.exp %111 : vector<2x2xf32>
    %cst_77 = arith.constant 1.000000e+00 : f32
    %113 = vector.broadcast %cst_77 : f32 to vector<2x2xf32>
    %114 = arith.addf %113, %112 : vector<2x2xf32>
    %115 = arith.divf %113, %114 : vector<2x2xf32>
    %c0_78 = arith.constant 0 : index
    %c0_79 = arith.constant 0 : index
    %116 = vector.load %arg18[%c0_78, %c0_79] : memref<2x2xf32, #tpu.memory_space<vmem>>, vector<2x2xf32>
    tpu.vector_store %arg18[%c0_78, %c0_79], %115 {strides = array<i32>} : memref<2x2xf32, #tpu.memory_space<vmem>>, vector<2x2xf32>,
    return
  }
}

</mosaic_0001>

<bundles_post_ra>
// kernel: dpen_forward.3
= control target key start
LH: loop header
LB: loop body
LE: loop exit
PB: predicated region body
PF: predicated region fallthrough
CT: control target
= control target key end

     0   :  { %s2548_s24 = smov 0   ;;  %s3049_s0 = inlined_call_operand.vmem [shape: bf16[2,75,1024], index: 0, kind: input, shape index: {}]   ;;  %s3050_s1 = inlined_call_operand.vmem [shape: bf16[2,75,1024], index: 1, kind: input, shape index: {}]   ;;  %s3051_s2 = inlined_call_operand.vmem [shape: bf16[2,75,1024], index: 2, kind: input, shape index: {}]   ;;  %s3052_s3 = inlined_call_operand.vmem [shape: bf16[2,75,1024], index: 3, kind: input, shape index: {}]   ;;  %s3053_s4 = inlined_call_operand.vmem [shape: bf16[8,75], index: 4, kind: input, shape index: {}]   ;;  %s3054_s5 = inlined_call_operand.vmem [shape: f32[8,1], index: 5, kind: input, shape index: {}]   ;;  %s3055_s6 = inlined_call_operand.vmem [shape: f32[8,1], index: 6, kind: input, shape index: {}]   ;;  %s3056_s7 = inlined_call_operand.vmem [shape: bf16[2,8,1024], index: 7, kind: output, shape index: {}]  }
   0x1 LB: > { %s2288_s25 = sadd.s32 4294967295, %s2504_s24   ;;  %p2292_p0 = scmp.ge.s32.totalorder %s2504_s24, 1  ;;  %s2504_s24 = sphi %s2548_s24, %s17_s24  }
   0x2   : > { %p267_p1 = scmp.lt.s32.totalorder %s2504_s24, 3 }
   0x4   : > { %p268_p2 = pnand %p2292_p0, %p267_p1 }
   0x5   : > { %p314_p3 = scmp.lt.s32.totalorder (!%p268_p2), %s2288_s25, 1  ;;  %v341_v0 = vld [vmem:[%s3054_s5] sm:$0xff] (!%p268_p2)  ;;  %v2506_v1 = vmov (!%p268_p2), 0   ;;  %vm589_vm0 = vcmask (!%p268_p2), 1044480   ;;  %vm590_vm1 = vcmask (!%p268_p2), 1045504   ;;  %v2507_v31 = vmov (!%p268_p2), 65535  }
   0x6   : > { %271 = sbr.rel (%p268_p2) target bundleno = 407 (0x197), region = 48  ;;  %649 = vmatprep.mubr.bf16.mxu0 (!%p268_p2), %v2506_v1  ;;  %690 = vmatprep.mubr.bf16.mxu1 (!%p268_p2), %v2506_v1  ;;  %v347_v2 = vld [vmem:[%s3055_s6] sm:$0xff] (!%p268_p2)  ;;  %v591_v32 = vsel (!%p268_p2), %vm589_vm0, 4294967295, %v2507_v31  ;;  %vm585_vm2 = vcmask (!%p268_p2), 613376  }
   0x7   : > { %2497 = vset.pattern.permute.xlu0 (!%p268_p2), %v2506_v1  ;;  %v2596_v40 = vsel (!%p268_p2), %vm590_vm1, %v591_v32, 0  ;;  %v2613_v60 = vld [vmem:[%s3053_s4] sm:$0xf] (!%p268_p2) }
   0x8   : > { %344 = vperm.xlu0 (!%p268_p2), %2497, %v341_v0  }
   0xc   : > { %350 = vperm.xlu0 (!%p268_p2), %2497, %v347_v2  }
   0xd   : > { %s3058_s25 = smov (!%p314_p3, %s2288_s25), 1 }
   0xe   : > { %s2565_s28 = smul.u32 320, %s3058_s25  ;;  %s2481_s22 = sshll.u32 %s3058_s25, 5 }
   0xf   : > { %s3006_s27 = scalar_lea.vmem %s3056_s7, %s2481_s22 }
  0x10   : > { %s2574_s10 = scalar_lea.vmem %s3049_s0, %s2565_s28  ;;  %s2637_s15 = scalar_lea.vmem %s3050_s1, %s2565_s28 }
  0x11   : > { %v353_v3 = vld [vmem:[%s2574_s10] sm:$0xff]  ;;  %v354_v5 = vld [vmem:[%s2574_s10 + $0x8] sm:$0xff]  ;;  %v355_v48 = vld [vmem:[%s2574_s10 + $0x10] sm:$0xff]  ;;  %s2643_s18 = scalar_lea.vmem %s3051_s2, %s2565_s28  ;;  %s2704_s21 = scalar_lea.vmem %s3052_s3, %s2565_s28 }
  0x12   : > { %v357_v4 = vld [vmem:[%s2574_s10 + $0x20] sm:$0xff]  ;;  %v358_v7 = vld [vmem:[%s2574_s10 + $0x28] sm:$0xff]  ;;  %v359_v49 = vld [vmem:[%s2574_s10 + $0x30] sm:$0xff] }
  0x13   : > { %v2300_v6 = vcombine.high %v353_v3, %v357_v4  ;;  %v2299_v8 = vcombine.low %v353_v3, %v357_v4  ;;  %v361_v9 = vld [vmem:[%s2574_s10 + $0x40] sm:$0xff]  ;;  %v2302_v11 = vcombine.high %v354_v5, %v358_v7  ;;  %v2301_v12 = vcombine.low %v354_v5, %v358_v7  ;;  %v362_v14 = vld [vmem:[%s2574_s10 + $0x48] sm:$0xff]  ;;  %v356_v50 = vld [vmem:[%s2574_s10 + $0x18] sm:$0xff] }
  0x14   : > { %v365_v10 = vld [vmem:[%s2574_s10 + $0x60] sm:$0xff]  ;;  %v366_v15 = vld [vmem:[%s2574_s10 + $0x68] sm:$0xff]  ;;  %v360_v51 = vld [vmem:[%s2574_s10 + $0x38] sm:$0xff]  ;;  %v2304_v54 = vcombine.high %v355_v48, %v359_v49  ;;  %v2303_v61 = vcombine.low %v355_v48, %v359_v49 }
  0x15   : > { %v2308_v13 = vcombine.high %v361_v9, %v365_v10  ;;  %v369_v16 = vld [vmem:[%s2574_s10 + $0x80] sm:$0xff]  ;;  %617 = vmatprep.subr.bf16.mxu0 %v2300_v6  ;;  %v2310_v17 = vcombine.high %v362_v14, %v366_v15  ;;  %v370_v19 = vld [vmem:[%s2574_s10 + $0x88] sm:$0xff]  ;;  %658 = vmatprep.subr.bf16.mxu1 %v2302_v11  ;;  %v2307_v21 = vcombine.low %v361_v9, %v365_v10  ;;  %v363_v56 = vld [vmem:[%s2574_s10 + $0x50] sm:$0xff] }
  0x16   : > { %v373_v18 = vld [vmem:[%s2574_s10 + $0xa0] sm:$0xff]  ;;  %v374_v20 = vld [vmem:[%s2574_s10 + $0xa8] sm:$0xff]  ;;  %618 = vmatpush1.bf16.msra.mxu0 %v2299_v8  ;;  %659 = vmatpush1.bf16.msra.mxu1 %v2301_v12  ;;  %v2309_v22 = vcombine.low %v362_v14, %v366_v15  ;;  %v2306_v55 = vcombine.high %v356_v50, %v360_v51  ;;  %v367_v57 = vld [vmem:[%s2574_s10 + $0x70] sm:$0xff]  ;;  %v2305_v62 = vcombine.low %v356_v50, %v360_v51 }
  0x17   : > { %619 = vmatprep.subr.bf16.mxu0 %v2308_v13  ;;  %v2316_v23 = vcombine.high %v369_v16, %v373_v18  ;;  %v377_v24 = vld [vmem:[%s2574_s10 + $0xc0] sm:$0xff]  ;;  %660 = vmatprep.subr.bf16.mxu1 %v2310_v17  ;;  %v2318_v26 = vcombine.high %v370_v19, %v374_v20  ;;  %v378_v27 = vld [vmem:[%s2574_s10 + $0xc8] sm:$0xff]  ;;  %v2315_v35 = vcombine.low %v369_v16, %v373_v18  ;;  %v364_v58 = vld [vmem:[%s2574_s10 + $0x58] sm:$0xff] }
  0x18   : > { %v381_v25 = vld [vmem:[%s2574_s10 + $0xe0] sm:$0xff]  ;;  %v382_v30 = vld [vmem:[%s2574_s10 + $0xe8] sm:$0xff]  ;;  %v2317_v36 = vcombine.low %v370_v19, %v374_v20  ;;  %v368_v59 = vld [vmem:[%s2574_s10 + $0x78] sm:$0xff]  ;;  %v2312_v63 = vcombine.high %v363_v56, %v367_v57  ;;  %v2311_v6 = vcombine.low %v363_v56, %v367_v57 }
  0x19   : > { %v385_v28 = vld [vmem:[%s2574_s10 + $0x100] sm:$0xff]  ;;  %v386_v33 = vld [vmem:[%s2574_s10 + $0x108] sm:$0xff]  ;;  %v2324_v37 = vcombine.high %v377_v24, %v381_v25  ;;  %v2326_v39 = vcombine.high %v378_v27, %v382_v30  ;;  %v2323_v42 = vcombine.low %v377_v24, %v381_v25  ;;  %v2325_v44 = vcombine.low %v378_v27, %v382_v30  ;;  %v371_v2 = vld [vmem:[%s2574_s10 + $0x90] sm:$0xff] }
  0x1a   : > { %v389_v29 = vld [vmem:[%s2574_s10 + $0x120] sm:$0x33]  ;;  %v390_v34 = vld [vmem:[%s2574_s10 + $0x128] sm:$0x33]  ;;  %620 = vmatpush1.bf16.msra.mxu0 %v2307_v21  ;;  %661 = vmatpush1.bf16.msra.mxu1 %v2309_v22  ;;  %v2314_v0 = vcombine.high %v364_v58, %v368_v59  ;;  %v375_v3 = vld [vmem:[%s2574_s10 + $0xb0] sm:$0xff]  ;;  %v2313_v7 = vcombine.low %v364_v58, %v368_v59 }
  0x1b   : > { %621 = vmatprep.subr.bf16.mxu0 %v2316_v23  ;;  %v2332_v38 = vcombine.high %v385_v28, %v389_v29  ;;  %662 = vmatprep.subr.bf16.mxu1 %v2318_v26  ;;  %v2334_v41 = vcombine.high %v386_v33, %v390_v34  ;;  %v2331_v43 = vcombine.low %v385_v28, %v389_v29  ;;  %v372_v4 = vld [vmem:[%s2574_s10 + $0x98] sm:$0xff]  ;;  %v379_v9 = vld [vmem:[%s2574_s10 + $0xd0] sm:$0xff]  ;;  %v1289_v27 = vld [vmem:[%s2643_s18 + $0x100] sm:$0xff] }
  0x1c   : > { %v2333_v46 = vcombine.low %v386_v33, %v390_v34  ;;  %v376_v5 = vld [vmem:[%s2574_s10 + $0xb8] sm:$0xff]  ;;  %v2320_v8 = vcombine.high %v371_v2, %v375_v3  ;;  %v383_v10 = vld [vmem:[%s2574_s10 + $0xf0] sm:$0xff]  ;;  %v2319_v18 = vcombine.low %v371_v2, %v375_v3  ;;  %v1293_v28 = vld [vmem:[%s2643_s18 + $0x120] sm:$0x33] }
  0x1d   : > { %v597_v45 = vand.u32 %v2332_v38, %v2596_v40  ;;  %v603_v47 = vand.u32 %v2334_v41, %v2596_v40  ;;  %v594_v52 = vand.u32 %v2331_v43, %v2596_v40  ;;  %v2322_v11 = vcombine.high %v372_v4, %v376_v5  ;;  %v380_v12 = vld [vmem:[%s2574_s10 + $0xd8] sm:$0xff]  ;;  %v387_v13 = vld [vmem:[%s2574_s10 + $0x110] sm:$0xff]  ;;  %v1290_v29 = vld [vmem:[%s2643_s18 + $0x108] sm:$0xff] }
  0x1e   : > { %622 = vmatpush1.bf16.msra.mxu0 %v2315_v35  ;;  %663 = vmatpush1.bf16.msra.mxu1 %v2317_v36  ;;  %v600_v53 = vand.u32 %v2333_v46, %v2596_v40  ;;  %v391_v14 = vld [vmem:[%s2574_s10 + $0x130] sm:$0x33]  ;;  %v384_v15 = vld [vmem:[%s2574_s10 + $0xf8] sm:$0xff]  ;;  %v2321_v19 = vcombine.low %v372_v4, %v376_v5  ;;  %v2328_v20 = vcombine.high %v379_v9, %v383_v10  ;;  %v1294_v33 = vld [vmem:[%s2643_s18 + $0x128] sm:$0x33] }
  0x1f   : > { %623 = vmatprep.subr.bf16.mxu0 %v2324_v37  ;;  %664 = vmatprep.subr.bf16.mxu1 %v2326_v39  ;;  %v388_v16 = vld [vmem:[%s2574_s10 + $0x118] sm:$0xff]  ;;  %v2336_v21 = vcombine.high %v387_v13, %v391_v14  ;;  %v2330_v22 = vcombine.high %v380_v12, %v384_v15  ;;  %v2327_v24 = vcombine.low %v379_v9, %v383_v10  ;;  %v805_v35 = vld [vmem:[%s2637_s15] sm:$0xff]  ;;  %v806_v41 = vld [vmem:[%s2637_s15 + $0x8] sm:$0xff] }
  0x20   : > { %v392_v17 = vld [vmem:[%s2574_s10 + $0x138] sm:$0x33]  ;;  %v2329_v25 = vcombine.low %v380_v12, %v384_v15  ;;  %v2335_v26 = vcombine.low %v387_v13, %v391_v14  ;;  %v2419_v32 = vcombine.low %v1289_v27, %v1293_v28  ;;  %v809_v36 = vld [vmem:[%s2637_s15 + $0x20] sm:$0xff]  ;;  %v2420_v37 = vcombine.high %v1289_v27, %v1293_v28  ;;  %v1295_v57 = vld [vmem:[%s2643_s18 + $0x130] sm:$0x33] }
  0x21   : > { %v2338_v23 = vcombine.high %v388_v16, %v392_v17  ;;  %v609_v30 = vand.u32 %v2336_v21, %v2596_v40  ;;  %v2337_v31 = vcombine.low %v388_v16, %v392_v17  ;;  %v2421_v38 = vcombine.low %v1290_v29, %v1294_v33  ;;  %v813_v50 = vld [vmem:[%s2637_s15 + $0x40] sm:$0xff]  ;;  %v1292_v58 = vld [vmem:[%s2643_s18 + $0x118] sm:$0xff]  ;;  %v826_v12 = vld [vmem:[%s2637_s15 + $0xa8] sm:$0xff] }
  0x22   : > { %624 = vmatpush1.bf16.msra.mxu0 %v2323_v42  ;;  %665 = vmatpush1.bf16.msra.mxu1 %v2325_v44  ;;  %v2422_v39 = vcombine.high %v1290_v29, %v1294_v33  ;;  %v810_v42 = vld [vmem:[%s2637_s15 + $0x28] sm:$0xff]  ;;  %v2656_v43 = vand.u32 %v2419_v32, %v2596_v40  ;;  %v606_v44 = vand.u32 %v2335_v26, %v2596_v40  ;;  %v817_v51 = vld [vmem:[%s2637_s15 + $0x60] sm:$0xff]  ;;  %v1296_v59 = vld [vmem:[%s2643_s18 + $0x138] sm:$0x33] }
  0x23   : > { %625 = vmatprep.subr.bf16.mxu0 %v597_v45  ;;  %666 = vmatprep.subr.bf16.mxu1 %v603_v47  ;;  %v615_v34 = vand.u32 %v2338_v23, %v2596_v40  ;;  %v2660_v45 = vand.u32 %v2420_v37, %v2596_v40  ;;  %v2666_v47 = vand.u32 %v2421_v38, %v2596_v40  ;;  %v821_v5 = vld [vmem:[%s2637_s15 + $0x80] sm:$0xff]  ;;  %v830_v23 = vld [vmem:[%s2637_s15 + $0xc8] sm:$0xff] }
  0x24   : > { %v2663_v46 = vand.u32 %v2422_v39, %v2596_v40  ;;  %v612_v48 = vand.u32 %v2337_v31, %v2596_v40  ;;  %v2344_v49 = vcombine.high %v805_v35, %v809_v36  ;;  %v2343_v56 = vcombine.low %v805_v35, %v809_v36  ;;  %v829_v14 = vld [vmem:[%s2637_s15 + $0xc0] sm:$0xff]  ;;  %v834_v27 = vld [vmem:[%s2637_s15 + $0xe8] sm:$0xff] }
  0x25   : > { %v2345_v2 = vcombine.low %v806_v41, %v810_v42  ;;  %v2352_v3 = vcombine.high %v813_v50, %v817_v51  ;;  %v2351_v13 = vcombine.low %v813_v50, %v817_v51  ;;  %v833_v15 = vld [vmem:[%s2637_s15 + $0xe0] sm:$0xff]  ;;  %v838_v28 = vld [vmem:[%s2637_s15 + $0x108] sm:$0xff]  ;;  %v1735_v51 = vld [vmem:[%s2704_s21 + $0x110] sm:$0xff] }
  0x26   : > { %626 = vmatpush1.bf16.msra.mxu0 %v594_v52  ;;  %667 = vmatpush1.bf16.msra.mxu1 %v600_v53  ;;  %v2346_v52 = vcombine.high %v806_v41, %v810_v42  ;;  %v814_v53 = vld [vmem:[%s2637_s15 + $0x48] sm:$0xff]  ;;  %v837_v16 = vld [vmem:[%s2637_s15 + $0x100] sm:$0xff]  ;;  %v2370_v41 = vcombine.high %v830_v23, %v834_v27 }
  0x27   : > { %699 = vmatprep.subr.bf16.mxu0 %v2304_v54  ;;  %740 = vmatprep.subr.bf16.mxu1 %v2306_v55  ;;  %v818_v54 = vld [vmem:[%s2637_s15 + $0x68] sm:$0xff]  ;;  %v1291_v55 = vld [vmem:[%s2643_s18 + $0x110] sm:$0xff]  ;;  %v1737_v21 = vld [vmem:[%s2704_s21 + $0x120] sm:$0x33] }
  0x28   : > { %v2354_v4 = vcombine.high %v814_v53, %v818_v54  ;;  %v2353_v17 = vcombine.low %v814_v53, %v818_v54  ;;  %v842_v29 = vld [vmem:[%s2637_s15 + $0x128] sm:$0x33]  ;;  %v1736_v53 = vld [vmem:[%s2704_s21 + $0x118] sm:$0xff] }
  0x29   : > { %2339 = vmatmul.mubr.msk.bf16.vlgmr.msra.gmra.mrb[0].mxu0 %vm585_vm2, %v2613_v60  ;;  %2340 = vmatmul.mubr.msk.bf16.vlgmr.msra.gmra.mrb[0].mxu1 %vm585_vm2, %v2613_v60  ;;  %v2378_v42 = vcombine.high %v838_v28, %v842_v29 }
  0x2a   : > { %700 = vmatpush1.bf16.msra.mxu0 %v2303_v61  ;;  %741 = vmatpush1.bf16.msra.mxu1 %v2305_v62  ;;  %v2423_v61 = vcombine.low %v1291_v55, %v1295_v57  ;;  %v2424_v62 = vcombine.high %v1291_v55, %v1295_v57  ;;  %v2377_v55 = vcombine.low %v838_v28, %v842_v29  ;;  %v1740_v57 = vld [vmem:[%s2704_s21 + $0x138] sm:$0x33] }
  0x2b   : > { %701 = vmatprep.subr.bf16.mxu0 %v2312_v63  ;;  %742 = vmatprep.subr.bf16.mxu1 %v2314_v0  ;;  %v2425_v63 = vcombine.low %v1292_v58, %v1296_v59  ;;  %v2426_v0 = vcombine.high %v1292_v58, %v1296_v59  ;;  %v1047_v58 = vand.u32 %v2378_v42, %v2596_v40  ;;  %v807_v59 = vld [vmem:[%s2637_s15 + $0x10] sm:$0xff]  ;;  %v840_v42 = vld [vmem:[%s2637_s15 + $0x118] sm:$0xff] }
  0x2c   : > { %731 = vmatprep.mubr.bf16.mxu0 %v2506_v1  ;;  %772 = vmatprep.mubr.bf16.mxu1 %v2506_v1  ;;  %v2686_v9 = vand.u32 %v2423_v61, %v2596_v40  ;;  %v811_v61 = vld [vmem:[%s2637_s15 + $0x30] sm:$0xff] }
  0x2d   : > { %v2689_v10 = vand.u32 %v2425_v63, %v2596_v40  ;;  %v2469_v63 = vcombine.low %v1736_v53, %v1740_v57 }
  0x2e   : > { %702 = vmatpush1.bf16.msra.mxu0 %v2311_v6  ;;  %743 = vmatpush1.bf16.msra.mxu1 %v2313_v7  ;;  %v825_v6 = vld [vmem:[%s2637_s15 + $0xa0] sm:$0xff]  ;;  %v2680_v7 = vand.u32 %v2424_v62, %v2596_v40 }
  0x2f   : > { %703 = vmatprep.subr.bf16.mxu0 %v2320_v8  ;;  %744 = vmatprep.subr.bf16.mxu1 %v2322_v11  ;;  %v2683_v8 = vand.u32 %v2426_v0, %v2596_v40  ;;  %v822_v11 = vld [vmem:[%s2637_s15 + $0x88] sm:$0xff]  ;;  %v2359_v26 = vcombine.low %v821_v5, %v825_v6  ;;  %v2470_v0 = vcombine.high %v1736_v53, %v1740_v57 }
  0x30   : > { %v2361_v33 = vcombine.low %v822_v11, %v826_v12 }
  0x32   : > { %704 = vmatpush1.bf16.msra.mxu0 %v2319_v18  ;;  %745 = vmatpush1.bf16.msra.mxu1 %v2321_v19  ;;  %v2360_v18 = vcombine.high %v821_v5, %v825_v6  ;;  %v841_v19 = vld [vmem:[%s2637_s15 + $0x120] sm:$0x33] }
  0x33   : > { %705 = vmatprep.subr.bf16.mxu0 %v2328_v20  ;;  %746 = vmatprep.subr.bf16.mxu1 %v2330_v22  ;;  %v1733_v20 = vld [vmem:[%s2704_s21 + $0x100] sm:$0xff]  ;;  %v2362_v22 = vcombine.high %v822_v11, %v826_v12  ;;  %v2376_v35 = vcombine.high %v837_v16, %v841_v19  ;;  %v2375_v50 = vcombine.low %v837_v16, %v841_v19  ;;  %v815_v16 = vld [vmem:[%s2637_s15 + $0x50] sm:$0xff]  ;;  %v820_v19 = vld [vmem:[%s2637_s15 + $0x78] sm:$0xff] }
  0x34   : > { %v2464_v31 = vcombine.high %v1733_v20, %v1737_v21  ;;  %v2747_v11 = vand.u32 %v2470_v0, %v2596_v40  ;;  %v2750_v12 = vand.u32 %v2469_v63, %v2596_v40  ;;  %v1261_v63 = vld [vmem:[%s2643_s18 + $0x20] sm:$0xff]  ;;  %v1258_v0 = vld [vmem:[%s2643_s18 + $0x8] sm:$0xff] }
  0x35   : > { %v1041_v54 = vand.u32 %v2376_v35, %v2596_v40  ;;  %v1038_v5 = vand.u32 %v2375_v50, %v2596_v40  ;;  %v839_v35 = vld [vmem:[%s2637_s15 + $0x110] sm:$0xff] }
  0x36   : > { %706 = vmatpush1.bf16.msra.mxu0 %v2327_v24  ;;  %747 = vmatpush1.bf16.msra.mxu1 %v2329_v25  ;;  %v1734_v24 = vld [vmem:[%s2704_s21 + $0x108] sm:$0xff]  ;;  %v2718_v37 = vand.u32 %v2464_v31, %v2596_v40  ;;  %v831_v31 = vld [vmem:[%s2637_s15 + $0xd0] sm:$0xff] }
  0x37   : > { %707 = vmatprep.subr.bf16.mxu0 %v609_v30  ;;  %748 = vmatprep.subr.bf16.mxu1 %v615_v34  ;;  %v1738_v25 = vld [vmem:[%s2704_s21 + $0x128] sm:$0x33]  ;;  %v2463_v30 = vcombine.low %v1733_v20, %v1737_v21  ;;  %v2368_v34 = vcombine.high %v829_v14, %v833_v15  ;;  %v2347_v20 = vcombine.low %v807_v59, %v811_v61 }
  0x38   : > { %v2465_v32 = vcombine.low %v1734_v24, %v1738_v25  ;;  %v2466_v36 = vcombine.high %v1734_v24, %v1738_v25  ;;  %v823_v24 = vld [vmem:[%s2637_s15 + $0x90] sm:$0xff] }
  0x39   : > { %v2721_v38 = vand.u32 %v2463_v30, %v2596_v40  ;;  %v827_v25 = vld [vmem:[%s2637_s15 + $0xb0] sm:$0xff] }
  0x3a   : > { %708 = vmatpush1.bf16.msra.mxu0 %v606_v44  ;;  %749 = vmatpush1.bf16.msra.mxu1 %v612_v48  ;;  %v2724_v39 = vand.u32 %v2465_v32, %v2596_v40  ;;  %v2727_v44 = vand.u32 %v2466_v36, %v2596_v40  ;;  %v2367_v48 = vcombine.low %v829_v14, %v833_v15  ;;  %v835_v32 = vld [vmem:[%s2637_s15 + $0xf0] sm:$0xff] }
  0x3b   : > { %1061 = vmatprep.subr.bf16.mxu0 %v2344_v49  ;;  %1102 = vmatprep.subr.bf16.mxu1 %v2346_v52  ;;  %v2369_v49 = vcombine.low %v830_v23, %v834_v27  ;;  %v1739_v52 = vld [vmem:[%s2704_s21 + $0x130] sm:$0x33]  ;;  %v2348_v14 = vcombine.high %v807_v59, %v811_v61  ;;  %v828_v27 = vld [vmem:[%s2637_s15 + $0xb8] sm:$0xff]  ;;  %v2364_v30 = vcombine.high %v823_v24, %v827_v25 }
  0x3c   : > { %v2468_v62 = vcombine.high %v1735_v51, %v1739_v52  ;;  %v843_v36 = vld [vmem:[%s2637_s15 + $0x130] sm:$0x33] }
  0x3d   : > { %2341 = vmatmul.mubr.msk.bf16.vlgmr.msra.gmra.mrb[4].mxu0 %vm585_vm2, %v2613_v60  ;;  %2342 = vmatmul.mubr.msk.bf16.vlgmr.msra.gmra.mrb[4].mxu1 %vm585_vm2, %v2613_v60 }
  0x3e   : > { %1062 = vmatpush1.bf16.msra.mxu0 %v2343_v56  ;;  %1103 = vmatpush1.bf16.msra.mxu1 %v2345_v2  ;;  %v2467_v56 = vcombine.low %v1735_v51, %v1739_v52  ;;  %v808_v2 = vld [vmem:[%s2637_s15 + $0x18] sm:$0xff]  ;;  %v2744_v6 = vand.u32 %v2468_v62, %v2596_v40  ;;  %v2372_v51 = vcombine.high %v831_v31, %v835_v32  ;;  %v1257_v62 = vld [vmem:[%s2643_s18] sm:$0xff] }
  0x3f   : > { %1063 = vmatprep.subr.bf16.mxu0 %v2352_v3  ;;  %1104 = vmatprep.subr.bf16.mxu1 %v2354_v4  ;;  %v812_v3 = vld [vmem:[%s2637_s15 + $0x38] sm:$0xff]  ;;  %v2380_v52 = vcombine.high %v839_v35, %v843_v36 }
  0x40   : > { %1093 = vmatprep.mubr.bf16.mxu0 %v2506_v1  ;;  %1134 = vmatprep.mubr.bf16.mxu1 %v2506_v1  ;;  %v2740_v4 = vand.u32 %v2467_v56, %v2596_v40  ;;  %v2350_v15 = vcombine.high %v808_v2, %v812_v3  ;;  %v2349_v21 = vcombine.low %v808_v2, %v812_v3  ;;  %v1262_v2 = vld [vmem:[%s2643_s18 + $0x28] sm:$0xff] }
  0x41   : > { %v2379_v56 = vcombine.low %v839_v35, %v843_v36 }
  0x42   : > { %1064 = vmatpush1.bf16.msra.mxu0 %v2351_v13  ;;  %1105 = vmatpush1.bf16.msra.mxu1 %v2353_v17  ;;  %v1044_v13 = vand.u32 %v2377_v55, %v2596_v40  ;;  %v819_v17 = vld [vmem:[%s2637_s15 + $0x70] sm:$0xff]  ;;  %v2371_v55 = vcombine.low %v831_v31, %v835_v32  ;;  %v1285_v31 = vld [vmem:[%s2643_s18 + $0xe0] sm:$0xff]  ;;  %v1282_v32 = vld [vmem:[%s2643_s18 + $0xc8] sm:$0xff] }
  0x43   : > { %1065 = vmatprep.subr.bf16.mxu0 %v2360_v18  ;;  %1106 = vmatprep.subr.bf16.mxu1 %v2362_v22  ;;  %v816_v18 = vld [vmem:[%s2637_s15 + $0x58] sm:$0xff]  ;;  %v2356_v22 = vcombine.high %v815_v16, %v819_v17  ;;  %v2355_v28 = vcombine.low %v815_v16, %v819_v17  ;;  %v1050_v3 = vand.u32 %v2379_v56, %v2596_v40  ;;  %v1269_v16 = vld [vmem:[%s2643_s18 + $0x60] sm:$0xff]  ;;  %v1266_v17 = vld [vmem:[%s2643_s18 + $0x48] sm:$0xff] }
  0x44   : > { %v2358_v23 = vcombine.high %v816_v18, %v820_v19  ;;  %v2357_v29 = vcombine.low %v816_v18, %v820_v19  ;;  %v1270_v18 = vld [vmem:[%s2643_s18 + $0x68] sm:$0xff]  ;;  %v2387_v19 = vcombine.low %v1257_v62, %v1261_v63  ;;  %v1271_v56 = vld [vmem:[%s2643_s18 + $0x70] sm:$0xff] }
  0x46   : > { %1066 = vmatpush1.bf16.msra.mxu0 %v2359_v26  ;;  %1107 = vmatpush1.bf16.msra.mxu1 %v2361_v33  ;;  %v824_v26 = vld [vmem:[%s2637_s15 + $0x98] sm:$0xff] }
  0x47   : > { %1067 = vmatprep.subr.bf16.mxu0 %v2368_v34  ;;  %1108 = vmatprep.subr.bf16.mxu1 %v2370_v41  ;;  %v2366_v33 = vcombine.high %v824_v26, %v828_v27  ;;  %v832_v34 = vld [vmem:[%s2637_s15 + $0xd8] sm:$0xff]  ;;  %v2365_v50 = vcombine.low %v824_v26, %v828_v27  ;;  %v2397_v27 = vcombine.low %v1266_v17, %v1270_v18 }
  0x48   : > { %v836_v41 = vld [vmem:[%s2637_s15 + $0xf8] sm:$0xff] }
  0x49   : > { %v2374_v53 = vcombine.high %v832_v34, %v836_v41  ;;  %v2373_v57 = vcombine.low %v832_v34, %v836_v41 }
  0x4a   : > { %1068 = vmatpush1.bf16.msra.mxu0 %v2367_v48  ;;  %1109 = vmatpush1.bf16.msra.mxu1 %v2369_v49  ;;  %v844_v48 = vld [vmem:[%s2637_s15 + $0x138] sm:$0x33]  ;;  %v2363_v49 = vcombine.low %v823_v24, %v827_v25  ;;  %v1274_v24 = vld [vmem:[%s2643_s18 + $0x88] sm:$0xff] }
  0x4b   : > { %1069 = vmatprep.subr.bf16.mxu0 %v1041_v54  ;;  %1110 = vmatprep.subr.bf16.mxu1 %v1047_v58  ;;  %v2382_v54 = vcombine.high %v840_v42, %v844_v48  ;;  %v1053_v58 = vand.u32 %v2380_v52, %v2596_v40  ;;  %v2381_v59 = vcombine.low %v840_v42, %v844_v48  ;;  %v1278_v25 = vld [vmem:[%s2643_s18 + $0xa8] sm:$0xff]  ;;  %v1264_v52 = vld [vmem:[%s2643_s18 + $0x38] sm:$0xff] }
  0x4c   : > { %v2405_v35 = vcombine.low %v1274_v24, %v1278_v25 }
  0x4d   : > { %v1059_v61 = vand.u32 %v2382_v54, %v2596_v40 }
  0x4e   : > { %1070 = vmatpush1.bf16.msra.mxu0 %v1038_v5  ;;  %1111 = vmatpush1.bf16.msra.mxu1 %v1044_v13  ;;  %v1056_v5 = vand.u32 %v2381_v59, %v2596_v40  ;;  %v2388_v13 = vcombine.high %v1257_v62, %v1261_v63  ;;  %v2398_v40 = vcombine.high %v1266_v17, %v1270_v18  ;;  %v1279_v63 = vld [vmem:[%s2643_s18 + $0xb0] sm:$0xff] }
  0x4f   : > { %1143 = vmatprep.subr.bf16.mxu0 %v2348_v14  ;;  %1184 = vmatprep.subr.bf16.mxu1 %v2350_v15  ;;  %v2390_v14 = vcombine.high %v1258_v0, %v1262_v2  ;;  %v1265_v15 = vld [vmem:[%s2643_s18 + $0x40] sm:$0xff] }
  0x50   : > { %v2395_v26 = vcombine.low %v1265_v15, %v1269_v16 }
  0x51   : > { %2383 = vmatmul.mubr.msk.bf16.vlgmr.msra.gmra.mrb[8].mxu0 %vm585_vm2, %v2613_v60  ;;  %2384 = vmatmul.mubr.msk.bf16.vlgmr.msra.gmra.mrb[8].mxu1 %vm585_vm2, %v2613_v60 }
  0x52   : > { %1144 = vmatpush1.bf16.msra.mxu0 %v2347_v20  ;;  %1185 = vmatpush1.bf16.msra.mxu1 %v2349_v21  ;;  %v2389_v20 = vcombine.low %v1258_v0, %v1262_v2  ;;  %v2396_v21 = vcombine.high %v1265_v15, %v1269_v16  ;;  %v1276_v0 = vld [vmem:[%s2643_s18 + $0x98] sm:$0xff] }
  0x53   : > { %1145 = vmatprep.subr.bf16.mxu0 %v2356_v22  ;;  %1186 = vmatprep.subr.bf16.mxu1 %v2358_v23  ;;  %v1273_v22 = vld [vmem:[%s2643_s18 + $0x80] sm:$0xff]  ;;  %v1280_v2 = vld [vmem:[%s2643_s18 + $0xb8] sm:$0xff] }
  0x54   : > { %1175 = vmatprep.mubr.bf16.mxu0 %v2506_v1  ;;  %1216 = vmatprep.mubr.bf16.mxu1 %v2506_v1  ;;  %v1277_v23 = vld [vmem:[%s2643_s18 + $0xa0] sm:$0xff]  ;;  %v1284_v15 = vld [vmem:[%s2643_s18 + $0xd8] sm:$0xff]  ;;  %v2409_v18 = vcombine.low %v1276_v0, %v1280_v2 }
  0x55   : > { %v2403_v34 = vcombine.low %v1273_v22, %v1277_v23  ;;  %v1288_v16 = vld [vmem:[%s2643_s18 + $0xf8] sm:$0xff] }
  0x56   : > { %1146 = vmatpush1.bf16.msra.mxu0 %v2355_v28  ;;  %1187 = vmatpush1.bf16.msra.mxu1 %v2357_v29  ;;  %v2404_v28 = vcombine.high %v1273_v22, %v1277_v23  ;;  %v2406_v29 = vcombine.high %v1274_v24, %v1278_v25  ;;  %v1701_v22 = vld [vmem:[%s2704_s21] sm:$0xff]  ;;  %v1702_v24 = vld [vmem:[%s2704_s21 + $0x8] sm:$0xff] }
  0x57   : > { %1147 = vmatprep.subr.bf16.mxu0 %v2364_v30  ;;  %1188 = vmatprep.subr.bf16.mxu1 %v2366_v33  ;;  %v1281_v30 = vld [vmem:[%s2643_s18 + $0xc0] sm:$0xff]  ;;  %v1286_v33 = vld [vmem:[%s2643_s18 + $0xe8] sm:$0xff] }
  0x58   : > { %v2412_v36 = vcombine.high %v1281_v30, %v1285_v31  ;;  %v2414_v41 = vcombine.high %v1282_v32, %v1286_v33  ;;  %v2411_v42 = vcombine.low %v1281_v30, %v1285_v31  ;;  %v2413_v48 = vcombine.low %v1282_v32, %v1286_v33  ;;  %v1705_v23 = vld [vmem:[%s2704_s21 + $0x20] sm:$0xff]  ;;  %v1706_v25 = vld [vmem:[%s2704_s21 + $0x28] sm:$0xff] }
  0x59   : > { %v1710_v30 = vld [vmem:[%s2704_s21 + $0x48] sm:$0xff]  ;;  %v2431_v32 = vcombine.low %v1701_v22, %v1705_v23  ;;  %v2433_v33 = vcombine.low %v1702_v24, %v1706_v25 }
  0x5a   : > { %1148 = vmatpush1.bf16.msra.mxu0 %v2363_v49  ;;  %1189 = vmatpush1.bf16.msra.mxu1 %v2365_v50  ;;  %v1259_v49 = vld [vmem:[%s2643_s18 + $0x10] sm:$0xff]  ;;  %v1714_v31 = vld [vmem:[%s2704_s21 + $0x68] sm:$0xff] }
  0x5b   : > { %1149 = vmatprep.subr.bf16.mxu0 %v2372_v51  ;;  %1190 = vmatprep.subr.bf16.mxu1 %v2374_v53  ;;  %v1263_v50 = vld [vmem:[%s2643_s18 + $0x30] sm:$0xff]  ;;  %v1260_v51 = vld [vmem:[%s2643_s18 + $0x18] sm:$0xff] }
  0x5c   : > { %v2392_v53 = vcombine.high %v1259_v49, %v1263_v50  ;;  %v2394_v54 = vcombine.high %v1260_v51, %v1264_v52  ;;  %v2391_v59 = vcombine.low %v1259_v49, %v1263_v50  ;;  %v1725_v49 = vld [vmem:[%s2704_s21 + $0xc0] sm:$0xff] }
  0x5d   : > { %v1729_v50 = vld [vmem:[%s2704_s21 + $0xe0] sm:$0xff] }
  0x5e   : > { %1150 = vmatpush1.bf16.msra.mxu0 %v2371_v55  ;;  %1191 = vmatpush1.bf16.msra.mxu1 %v2373_v57  ;;  %v1267_v55 = vld [vmem:[%s2643_s18 + $0x50] sm:$0xff]  ;;  %v1268_v57 = vld [vmem:[%s2643_s18 + $0x58] sm:$0xff] }
  0x5f   : > { %1151 = vmatprep.subr.bf16.mxu0 %v1053_v58  ;;  %1192 = vmatprep.subr.bf16.mxu1 %v1059_v61  ;;  %v1272_v58 = vld [vmem:[%s2643_s18 + $0x78] sm:$0xff]  ;;  %v2393_v61 = vcombine.low %v1260_v51, %v1264_v52  ;;  %v1726_v51 = vld [vmem:[%s2704_s21 + $0xc8] sm:$0xff] }
  0x60   : > { %v2402_v62 = vcombine.high %v1268_v57, %v1272_v58  ;;  %v1730_v52 = vld [vmem:[%s2704_s21 + $0xe8] sm:$0xff] }
  0x62   : > { %1152 = vmatpush1.bf16.msra.mxu0 %v1050_v3  ;;  %1193 = vmatpush1.bf16.msra.mxu1 %v1056_v5  ;;  %v2410_v5 = vcombine.high %v1276_v0, %v1280_v2  ;;  %v1711_v0 = vld [vmem:[%s2704_s21 + $0x50] sm:$0xff] }
  0x63   : > { %1513 = vmatprep.subr.bf16.mxu0 %v2388_v13  ;;  %1554 = vmatprep.subr.bf16.mxu1 %v2390_v14  ;;  %v1283_v13 = vld [vmem:[%s2643_s18 + $0xd0] sm:$0xff] }
  0x64   : > { %v1287_v14 = vld [vmem:[%s2643_s18 + $0xf0] sm:$0xff] }
  0x65   : > { %2385 = vmatmul.mubr.msk.bf16.vlgmr.msra.gmra.mrb[12].mxu0 %vm585_vm2, %v2613_v60  ;;  %2386 = vmatmul.mubr.msk.bf16.vlgmr.msra.gmra.mrb[12].mxu1 %vm585_vm2, %v2613_v60  ;;  %v1715_v2 = vld [vmem:[%s2704_s21 + $0x70] sm:$0xff] }
  0x66   : > { %1514 = vmatpush1.bf16.msra.mxu0 %v2387_v19  ;;  %1555 = vmatpush1.bf16.msra.mxu1 %v2389_v20  ;;  %v2416_v19 = vcombine.high %v1283_v13, %v1287_v14  ;;  %v2418_v20 = vcombine.high %v1284_v15, %v1288_v16 }
  0x67   : > { %1515 = vmatprep.subr.bf16.mxu0 %v2396_v21  ;;  %1556 = vmatprep.subr.bf16.mxu1 %v2398_v40  ;;  %v2415_v21 = vcombine.low %v1283_v13, %v1287_v14  ;;  %v2417_v40 = vcombine.low %v1284_v15, %v1288_v16  ;;  %v1723_v14 = vld [vmem:[%s2704_s21 + $0xb0] sm:$0xff]  ;;  %v1720_v15 = vld [vmem:[%s2704_s21 + $0x98] sm:$0xff] }
  0x68   : > { %1545 = vmatprep.mubr.bf16.mxu0 %v2506_v1  ;;  %1586 = vmatprep.mubr.bf16.mxu1 %v2506_v1  ;;  %v1724_v16 = vld [vmem:[%s2704_s21 + $0xb8] sm:$0xff] }
  0x6a   : > { %1516 = vmatpush1.bf16.msra.mxu0 %v2395_v26  ;;  %1557 = vmatpush1.bf16.msra.mxu1 %v2397_v27  ;;  %v2432_v26 = vcombine.high %v1701_v22, %v1705_v23  ;;  %v2434_v27 = vcombine.high %v1702_v24, %v1706_v25  ;;  %v2453_v23 = vcombine.low %v1720_v15, %v1724_v16 }
  0x6b   : > { %1517 = vmatprep.subr.bf16.mxu0 %v2404_v28  ;;  %1558 = vmatprep.subr.bf16.mxu1 %v2406_v29  ;;  %v1709_v28 = vld [vmem:[%s2704_s21 + $0x40] sm:$0xff] }
  0x6c   : > { %v1713_v29 = vld [vmem:[%s2704_s21 + $0x60] sm:$0xff] }
  0x6e   : > { %1518 = vmatpush1.bf16.msra.mxu0 %v2403_v34  ;;  %1559 = vmatpush1.bf16.msra.mxu1 %v2405_v35  ;;  %v2442_v34 = vcombine.high %v1710_v30, %v1714_v31  ;;  %v1721_v35 = vld [vmem:[%s2704_s21 + $0xa0] sm:$0xff] }
  0x6f   : > { %1519 = vmatprep.subr.bf16.mxu0 %v2412_v36  ;;  %1560 = vmatprep.subr.bf16.mxu1 %v2414_v41  ;;  %v1718_v36 = vld [vmem:[%s2704_s21 + $0x88] sm:$0xff] }
  0x70   : > { %v1722_v41 = vld [vmem:[%s2704_s21 + $0xa8] sm:$0xff] }
  0x72   : > { %1520 = vmatpush1.bf16.msra.mxu0 %v2411_v42  ;;  %1561 = vmatpush1.bf16.msra.mxu1 %v2413_v48  ;;  %v2450_v48 = vcombine.high %v1718_v36, %v1722_v41 }
  0x73   : > { %1521 = vmatprep.subr.bf16.mxu0 %v2660_v45  ;;  %1562 = vmatprep.subr.bf16.mxu1 %v2663_v46  ;;  %v2400_v45 = vcombine.high %v1267_v55, %v1271_v56  ;;  %v1275_v46 = vld [vmem:[%s2643_s18 + $0x90] sm:$0xff] }
  0x74   : > { %v2408_v3 = vcombine.high %v1275_v46, %v1279_v63  ;;  %v2407_v17 = vcombine.low %v1275_v46, %v1279_v63 }
  0x76   : > { %1522 = vmatpush1.bf16.msra.mxu0 %v2656_v43  ;;  %1563 = vmatpush1.bf16.msra.mxu1 %v2666_v47  ;;  %v2399_v43 = vcombine.low %v1267_v55, %v1271_v56  ;;  %v2401_v47 = vcombine.low %v1268_v57, %v1272_v58  ;;  %v2456_v55 = vcombine.high %v1725_v49, %v1729_v50 }
  0x77   : > { %1595 = vmatprep.subr.bf16.mxu0 %v2392_v53  ;;  %1636 = vmatprep.subr.bf16.mxu1 %v2394_v54  ;;  %v2449_v54 = vcombine.low %v1718_v36, %v1722_v41  ;;  %v2458_v56 = vcombine.high %v1726_v51, %v1730_v52  ;;  %v2455_v57 = vcombine.low %v1725_v49, %v1729_v50 }
  0x78   : > { %v2457_v58 = vcombine.low %v1726_v51, %v1730_v52 }
  0x79   : > { %2427 = vmatmul.mubr.msk.bf16.vlgmr.msra.gmra.mrb[16].mxu0 %vm585_vm2, %v2613_v60  ;;  %2428 = vmatmul.mubr.msk.bf16.vlgmr.msra.gmra.mrb[16].mxu1 %vm585_vm2, %v2613_v60 }
  0x7a   : > { %1596 = vmatpush1.bf16.msra.mxu0 %v2391_v59  ;;  %1637 = vmatpush1.bf16.msra.mxu1 %v2393_v61  ;;  %v1703_v59 = vld [vmem:[%s2704_s21 + $0x10] sm:$0xff] }
  0x7b   : > { %1597 = vmatprep.subr.bf16.mxu0 %v2400_v45  ;;  %1638 = vmatprep.subr.bf16.mxu1 %v2402_v62  ;;  %v1707_v61 = vld [vmem:[%s2704_s21 + $0x30] sm:$0xff]  ;;  %v1704_v45 = vld [vmem:[%s2704_s21 + $0x18] sm:$0xff] }
  0x7c   : > { %1627 = vmatprep.mubr.bf16.mxu0 %v2506_v1  ;;  %1668 = vmatprep.mubr.bf16.mxu1 %v2506_v1  ;;  %v1708_v62 = vld [vmem:[%s2704_s21 + $0x38] sm:$0xff]  ;;  %v2436_v46 = vcombine.high %v1703_v59, %v1707_v61 }
  0x7d   : > { %v2438_v63 = vcombine.high %v1704_v45, %v1708_v62 }
  0x7e   : > { %1598 = vmatpush1.bf16.msra.mxu0 %v2399_v43  ;;  %1639 = vmatpush1.bf16.msra.mxu1 %v2401_v47  ;;  %v1712_v43 = vld [vmem:[%s2704_s21 + $0x58] sm:$0xff] }
  0x7f   : > { %1599 = vmatprep.subr.bf16.mxu0 %v2408_v3  ;;  %1640 = vmatprep.subr.bf16.mxu1 %v2410_v5  ;;  %v1716_v47 = vld [vmem:[%s2704_s21 + $0x78] sm:$0xff]  ;;  %v2435_v3 = vcombine.low %v1703_v59, %v1707_v61  ;;  %v2437_v5 = vcombine.low %v1704_v45, %v1708_v62 }
  0x80   : > { %v2446_v13 = vcombine.high %v1712_v43, %v1716_v47 }
  0x82   : > { %1600 = vmatpush1.bf16.msra.mxu0 %v2407_v17  ;;  %1641 = vmatpush1.bf16.msra.mxu1 %v2409_v18  ;;  %v2454_v18 = vcombine.high %v1720_v15, %v1724_v16 }
  0x83   : > { %1601 = vmatprep.subr.bf16.mxu0 %v2416_v19  ;;  %1642 = vmatprep.subr.bf16.mxu1 %v2418_v20  ;;  %v1727_v19 = vld [vmem:[%s2704_s21 + $0xd0] sm:$0xff] }
  0x84   : > { %v1731_v20 = vld [vmem:[%s2704_s21 + $0xf0] sm:$0xff] }
  0x85   : > { %v2460_v24 = vcombine.high %v1727_v19, %v1731_v20 }
  0x86   : > { %1602 = vmatpush1.bf16.msra.mxu0 %v2415_v21  ;;  %1643 = vmatpush1.bf16.msra.mxu1 %v2417_v40  ;;  %v1728_v21 = vld [vmem:[%s2704_s21 + $0xd8] sm:$0xff] }
  0x87   : > { %1603 = vmatprep.subr.bf16.mxu0 %v2680_v7  ;;  %1644 = vmatprep.subr.bf16.mxu1 %v2683_v8  ;;  %v2440_v7 = vcombine.high %v1709_v28, %v1713_v29  ;;  %v1717_v8 = vld [vmem:[%s2704_s21 + $0x80] sm:$0xff]  ;;  %v1732_v40 = vld [vmem:[%s2704_s21 + $0xf8] sm:$0xff]  ;;  %v2887_v41 = vpop.permute.xlu0 %344 }
  0x88   : > { %v2448_v42 = vcombine.high %v1717_v8, %v1721_v35  ;;  %v2447_v53 = vcombine.low %v1717_v8, %v1721_v35  ;;  %v2462_v25 = vcombine.high %v1728_v21, %v1732_v40 }
  0x8a   : > { %1604 = vmatpush1.bf16.msra.mxu0 %v2686_v9  ;;  %1645 = vmatpush1.bf16.msra.mxu1 %v2689_v10  ;;  %v2439_v9 = vcombine.low %v1709_v28, %v1713_v29  ;;  %v2441_v10 = vcombine.low %v1710_v30, %v1714_v31 }
  0x8b   : > { %1957 = vmatprep.subr.bf16.mxu0 %v2432_v26  ;;  %1998 = vmatprep.subr.bf16.mxu1 %v2434_v27  ;;  %v2459_v26 = vcombine.low %v1727_v19, %v1731_v20  ;;  %v2461_v27 = vcombine.low %v1728_v21, %v1732_v40 }
  0x8d   : > { %2429 = vmatmul.mubr.msk.bf16.vlgmr.msra.gmra.mrb[20].mxu0 %vm585_vm2, %v2613_v60  ;;  %2430 = vmatmul.mubr.msk.bf16.vlgmr.msra.gmra.mrb[20].mxu1 %vm585_vm2, %v2613_v60 }
  0x8e   : > { %1958 = vmatpush1.bf16.msra.mxu0 %v2431_v32  ;;  %1999 = vmatpush1.bf16.msra.mxu1 %v2433_v33 }
  0x8f   : > { %1959 = vmatprep.subr.bf16.mxu0 %v2440_v7  ;;  %2000 = vmatprep.subr.bf16.mxu1 %v2442_v34 }
  0x90   : > { %1989 = vmatprep.mubr.bf16.mxu0 %v2506_v1  ;;  %2030 = vmatprep.mubr.bf16.mxu1 %v2506_v1 }
  0x92   : > { %1960 = vmatpush1.bf16.msra.mxu0 %v2439_v9  ;;  %2001 = vmatpush1.bf16.msra.mxu1 %v2441_v10 }
  0x93   : > { %1961 = vmatprep.subr.bf16.mxu0 %v2448_v42  ;;  %2002 = vmatprep.subr.bf16.mxu1 %v2450_v48  ;;  %v2889_v48 = vpop.permute.xlu0 %350 }
  0x96   : > { %1962 = vmatpush1.bf16.msra.mxu0 %v2447_v53  ;;  %2003 = vmatpush1.bf16.msra.mxu1 %v2449_v54 }
  0x97   : > { %1963 = vmatprep.subr.bf16.mxu0 %v2456_v55  ;;  %2004 = vmatprep.subr.bf16.mxu1 %v2458_v56 }
  0x9a   : > { %1964 = vmatpush1.bf16.msra.mxu0 %v2455_v57  ;;  %2005 = vmatpush1.bf16.msra.mxu1 %v2457_v58 }
  0x9b   : > { %1965 = vmatprep.subr.bf16.mxu0 %v2718_v37  ;;  %2006 = vmatprep.subr.bf16.mxu1 %v2727_v44  ;;  %v2444_v37 = vcombine.high %v1711_v0, %v1715_v2  ;;  %v1719_v44 = vld [vmem:[%s2704_s21 + $0x90] sm:$0xff] }
  0x9c   : > { %v2452_v17 = vcombine.high %v1719_v44, %v1723_v14  ;;  %v2451_v22 = vcombine.low %v1719_v44, %v1723_v14 }
  0x9e   : > { %1966 = vmatpush1.bf16.msra.mxu0 %v2721_v38  ;;  %2007 = vmatpush1.bf16.msra.mxu1 %v2724_v39  ;;  %v2443_v38 = vcombine.low %v1711_v0, %v1715_v2  ;;  %v2445_v39 = vcombine.low %v1712_v43, %v1716_v47 }
  0x9f   : > { %2039 = vmatprep.subr.bf16.mxu0 %v2436_v46  ;;  %2080 = vmatprep.subr.bf16.mxu1 %v2438_v63 }
  0xa1   : > { %2471 = vmatmul.mubr.msk.bf16.vlgmr.msra.gmra.mrb[24].mxu0 %vm585_vm2, %v2613_v60  ;;  %2472 = vmatmul.mubr.msk.bf16.vlgmr.msra.gmra.mrb[24].mxu1 %vm585_vm2, %v2613_v60 }
  0xa2   : > { %2040 = vmatpush1.bf16.msra.mxu0 %v2435_v3  ;;  %2081 = vmatpush1.bf16.msra.mxu1 %v2437_v5 }
  0xa3   : > { %2041 = vmatprep.subr.bf16.mxu0 %v2444_v37  ;;  %2082 = vmatprep.subr.bf16.mxu1 %v2446_v13 }
  0xa4   : > { %2071 = vmatprep.mubr.bf16.mxu0 %v2506_v1  ;;  %2112 = vmatprep.mubr.bf16.mxu1 %v2506_v1 }
  0xa6   : > { %2042 = vmatpush1.bf16.msra.mxu0 %v2443_v38  ;;  %2083 = vmatpush1.bf16.msra.mxu1 %v2445_v39 }
  0xa7   : > { %2043 = vmatprep.subr.bf16.mxu0 %v2452_v17  ;;  %2084 = vmatprep.subr.bf16.mxu1 %v2454_v18 }
  0xaa   : > { %2044 = vmatpush1.bf16.msra.mxu0 %v2451_v22  ;;  %2085 = vmatpush1.bf16.msra.mxu1 %v2453_v23 }
  0xab   : > { %2045 = vmatprep.subr.bf16.mxu0 %v2460_v24  ;;  %2086 = vmatprep.subr.bf16.mxu1 %v2462_v25 }
  0xae   : > { %2046 = vmatpush1.bf16.msra.mxu0 %v2459_v26  ;;  %2087 = vmatpush1.bf16.msra.mxu1 %v2461_v27 }
  0xaf   : > { %2047 = vmatprep.subr.bf16.mxu0 %v2744_v6  ;;  %2088 = vmatprep.subr.bf16.mxu1 %v2747_v11 }
  0xb2   : > { %2048 = vmatpush1.bf16.msra.mxu0 %v2740_v4  ;;  %2089 = vmatpush1.bf16.msra.mxu1 %v2750_v12 }
  0xb5   : > { %2473 = vmatmul.mubr.msk.bf16.vlgmr.msra.gmra.mrb[28].mxu0 %vm585_vm2, %v2613_v60  ;;  %2474 = vmatmul.mubr.msk.bf16.vlgmr.msra.gmra.mrb[28].mxu1 %vm585_vm2, %v2613_v60 }
  0xfc   : > { %v651_v1 = vpop.f32.mrb[0].mxu0  ;;  %v692_v28 = vpop.f32.mrb[0].mxu1 }
  0xfd   : > { %v653_v29 = vpop.f32.mrb[1].mxu0  ;;  %v694_v30 = vpop.f32.mrb[1].mxu1  ;;  %v781_v9 = vmax.f32 %v651_v1, 0.0  ;;  %v783_v60 = vmax.f32 %v692_v28, 0.0 }
  0xfe   : > { %v655_v31 = vpop.f32.mrb[2].mxu0  ;;  %v696_v32 = vpop.f32.mrb[2].mxu1  ;;  %v782_v10 = vmax.f32 %v653_v29, 0.0  ;;  %v784_v42 = vmax.f32 %v694_v30, 0.0 }
  0xff   : > { %v656_v33 = vpop.f32.mrb[3].mxu0  ;;  %v697_v6 = vpop.f32.mrb[3].mxu1  ;;  %v789_v50 = vmul.f32 %v781_v9, %v2887_v41  ;;  %v791_v55 = vmul.f32 %v783_v60, %v2887_v41 }
 0x100   : > { %v790_v54 = vmul.f32 %v782_v10, %v2887_v41  ;;  %v792_v61 = vmul.f32 %v784_v42, %v2887_v41 }
 0x101   : > { %v2899_v47 = vadd.f32 %v789_v50, %v2889_v48  ;;  %v2906_v37 = vadd.f32 %v791_v55, %v2889_v48 }
 0x102   : > { %v2912_v44 = vadd.f32 %v790_v54, %v2889_v48  ;;  %v2920_v16 = vadd.f32 %v792_v61, %v2889_v48 }
 0x110   : > { %v733_v7 = vpop.f32.mrb[4].mxu0  ;;  %v774_v11 = vpop.f32.mrb[4].mxu1 }
 0x111   : > { %v735_v34 = vpop.f32.mrb[5].mxu0  ;;  %v776_v4 = vpop.f32.mrb[5].mxu1  ;;  %v785_v19 = vmax.f32 %v733_v7, 0.0  ;;  %v787_v20 = vmax.f32 %v774_v11, 0.0 }
 0x112   : > { %v737_v8 = vpop.f32.mrb[6].mxu0  ;;  %v778_v12 = vpop.f32.mrb[6].mxu1  ;;  %v786_v21 = vmax.f32 %v735_v34, 0.0  ;;  %v788_v40 = vmax.f32 %v776_v4, 0.0 }
 0x113   : > { %v738_v35 = vpop.f32.mrb[7].mxu0  ;;  %v779_v36 = vpop.f32.mrb[7].mxu1  ;;  %v793_v23 = vmul.f32 %v785_v19, %v2887_v41  ;;  %v795_v27 = vmul.f32 %v787_v20, %v2887_v41 }
 0x114   : > { %v794_v1 = vmul.f32 %v786_v21, %v2887_v41  ;;  %v796_v32 = vmul.f32 %v788_v40, %v2887_v41 }
 0x115   : > { %v2939_v12 = vadd.f32 %v793_v23, %v2889_v48  ;;  %v2946_v9 = vadd.f32 %v795_v27, %v2889_v48 }
 0x116   : > { %v2949_v60 = vadd.f32 %v794_v1, %v2889_v48 }
 0x124   : > { %v1095_v49 = vpop.f32.mrb[8].mxu0  ;;  %v1136_v52 = vpop.f32.mrb[8].mxu1 }
 0x125   : > { %v1225_v51 = vmax.f32 %v1095_v49, 0.0  ;;  %v1097_v53 = vpop.f32.mrb[9].mxu0  ;;  %v1227_v56 = vmax.f32 %v1136_v52, 0.0  ;;  %v1138_v58 = vpop.f32.mrb[9].mxu1  ;;  %v2958_v49 = vadd.f32 %v796_v32, %v2889_v48 }
 0x126   : > { %v1226_v57 = vmax.f32 %v1097_v53, 0.0  ;;  %v1099_v59 = vpop.f32.mrb[10].mxu0  ;;  %v1228_v62 = vmax.f32 %v1138_v58, 0.0  ;;  %v1140_v46 = vpop.f32.mrb[10].mxu1 }
 0x127   : > { %v1233_v45 = vmul.f32 %v1225_v51, %v2887_v41  ;;  %v1100_v63 = vpop.f32.mrb[11].mxu0  ;;  %v1235_v0 = vmul.f32 %v1227_v56, %v2887_v41  ;;  %v1141_v43 = vpop.f32.mrb[11].mxu1 }
 0x128   : > { %v1234_v2 = vmul.f32 %v1226_v57, %v2887_v41  ;;  %v1236_v5 = vmul.f32 %v1228_v62, %v2887_v41 }
 0x129   : > { %v2902_v3 = vadd.f32 %v1233_v45, %v2889_v48  ;;  %v2909_v13 = vadd.f32 %v1235_v0, %v2889_v48 }
 0x12a   : > { %v2915_v14 = vadd.f32 %v1234_v2, %v2889_v48  ;;  %v2923_v38 = vadd.f32 %v1236_v5, %v2889_v48 }
 0x12b   : > { %v1249_v15 = vmax.f32 %v2899_v47, %v2902_v3  ;;  %v1251_v39 = vmax.f32 %v2906_v37, %v2909_v13 }
 0x12c   : > { %v1250_v17 = vmax.f32 %v2912_v44, %v2915_v14  ;;  %v1252_v18 = vmax.f32 %v2920_v16, %v2923_v38 }
 0x138   : > { %v1177_v22 = vpop.f32.mrb[12].mxu0  ;;  %v1218_v25 = vpop.f32.mrb[12].mxu1 }
 0x139   : > { %v1229_v24 = vmax.f32 %v1177_v22, 0.0  ;;  %v1179_v26 = vpop.f32.mrb[13].mxu0  ;;  %v1231_v28 = vmax.f32 %v1218_v25, 0.0  ;;  %v1220_v30 = vpop.f32.mrb[13].mxu1 }
 0x13a   : > { %v1230_v29 = vmax.f32 %v1179_v26, 0.0  ;;  %v1181_v31 = vpop.f32.mrb[14].mxu0  ;;  %v1232_v6 = vmax.f32 %v1220_v30, 0.0  ;;  %v1222_v7 = vpop.f32.mrb[14].mxu1 }
 0x13b   : > { %v1237_v33 = vmul.f32 %v1229_v24, %v2887_v41  ;;  %v1182_v11 = vpop.f32.mrb[15].mxu0  ;;  %v1239_v34 = vmul.f32 %v1231_v28, %v2887_v41  ;;  %v1223_v8 = vpop.f32.mrb[15].mxu1 }
 0x13c   : > { %v1238_v4 = vmul.f32 %v1230_v29, %v2887_v41  ;;  %v1240_v36 = vmul.f32 %v1232_v6, %v2887_v41 }
 0x13d   : > { %v2942_v35 = vadd.f32 %v1237_v33, %v2889_v48  ;;  %v2952_v10 = vadd.f32 %v1239_v34, %v2889_v48 }
 0x13e   : > { %v2955_v42 = vadd.f32 %v1238_v4, %v2889_v48  ;;  %v2963_v51 = vadd.f32 %v1240_v36, %v2889_v48 }
 0x13f   : > { %v1253_v50 = vmax.f32 %v2939_v12, %v2942_v35  ;;  %v1255_v52 = vmax.f32 %v2946_v9, %v2952_v10 }
 0x140   : > { %v1254_v53 = vmax.f32 %v2949_v60, %v2955_v42  ;;  %v1256_v54 = vmax.f32 %v2958_v49, %v2963_v51 }
 0x14c   : > { %v1547_v55 = vpop.f32.mrb[16].mxu0  ;;  %v1588_v56 = vpop.f32.mrb[16].mxu1 }
 0x14d   : > { %v1549_v57 = vpop.f32.mrb[17].mxu0  ;;  %v1590_v58 = vpop.f32.mrb[17].mxu1  ;;  %v1677_v21 = vmax.f32 %v1547_v55, 0.0  ;;  %v1679_v40 = vmax.f32 %v1588_v56, 0.0 }
 0x14e   : > { %v1551_v59 = vpop.f32.mrb[18].mxu0  ;;  %v1592_v61 = vpop.f32.mrb[18].mxu1  ;;  %v1678_v22 = vmax.f32 %v1549_v57, 0.0  ;;  %v1680_v23 = vmax.f32 %v1590_v58, 0.0 }
 0x14f   : > { %v1552_v45 = vpop.f32.mrb[19].mxu0  ;;  %v1593_v62 = vpop.f32.mrb[19].mxu1  ;;  %v1685_v25 = vmul.f32 %v1677_v21, %v2887_v41  ;;  %v1687_v28 = vmul.f32 %v1679_v40, %v2887_v41 }
 0x150   : > { %v1686_v29 = vmul.f32 %v1678_v22, %v2887_v41  ;;  %v1688_v6 = vmul.f32 %v1680_v23, %v2887_v41 }
 0x151   : > { %v1693_v56 = vadd.f32 %v1685_v25, %v2889_v48  ;;  %v1695_v59 = vadd.f32 %v1687_v28, %v2889_v48 }
 0x152   : > { %v1694_v61 = vadd.f32 %v1686_v29, %v2889_v48 }
 0x160   : > { %v1629_v46 = vpop.f32.mrb[20].mxu0  ;;  %v2971_v63 = vpop.f32.mrb[20].mxu1 }
 0x161   : > { %v2973_v0 = vpop.f32.mrb[21].mxu0  ;;  %v2975_v2 = vpop.f32.mrb[21].mxu1  ;;  %v1681_v37 = vmax.f32 %v1629_v46, 0.0  ;;  %v1683_v13 = vmax.f32 %v2971_v63, 0.0 }
 0x162   : > { %v1633_v43 = vpop.f32.mrb[22].mxu0  ;;  %v1674_v5 = vpop.f32.mrb[22].mxu1  ;;  %v1682_v44 = vmax.f32 %v2973_v0, 0.0  ;;  %v1684_v14 = vmax.f32 %v2975_v2, 0.0 }
 0x163   : > { %v1634_v19 = vpop.f32.mrb[23].mxu0  ;;  %v1675_v20 = vpop.f32.mrb[23].mxu1  ;;  %v1696_v43 = vadd.f32 %v1688_v6, %v2889_v48  ;;  %v1691_v38 = vmul.f32 %v1683_v13, %v2887_v41 }
 0x164   : > { %v1692_v63 = vmul.f32 %v1684_v14, %v2887_v41 }
 0x174   : > { %v1991_v24 = vpop.f32.mrb[24].mxu0  ;;  %v2032_v27 = vpop.f32.mrb[24].mxu1 }
 0x175   : > { %v2121_v26 = vmax.f32 %v1991_v24, 0.0  ;;  %v1993_v1 = vpop.f32.mrb[25].mxu0  ;;  %v2123_v30 = vmax.f32 %v2032_v27, 0.0  ;;  %v2034_v32 = vpop.f32.mrb[25].mxu1 }
 0x176   : > { %v2122_v31 = vmax.f32 %v1993_v1, 0.0  ;;  %v1995_v33 = vpop.f32.mrb[26].mxu0  ;;  %v2124_v11 = vmax.f32 %v2034_v32, 0.0  ;;  %v2036_v34 = vpop.f32.mrb[26].mxu1 }
 0x177   : > { %v2129_v7 = vmul.f32 %v2121_v26, %v2887_v41  ;;  %v1996_v4 = vpop.f32.mrb[27].mxu0  ;;  %v2131_v8 = vmul.f32 %v2123_v30, %v2887_v41  ;;  %v2037_v55 = vpop.f32.mrb[27].mxu1  ;;  %v1699_v34 = vadd.f32 %v1691_v38, %v2889_v48 }
 0x178   : > { %v2130_v36 = vmul.f32 %v2122_v31, %v2887_v41  ;;  %v2132_v58 = vmul.f32 %v2124_v11, %v2887_v41  ;;  %v1700_v55 = vadd.f32 %v1692_v63, %v2889_v48 }
 0x179   : > { %v2137_v57 = vadd.f32 %v2129_v7, %v2889_v48  ;;  %v2139_v45 = vadd.f32 %v2131_v8, %v2889_v48 }
 0x17a   : > { %v2138_v62 = vadd.f32 %v2130_v36, %v2889_v48  ;;  %v2140_v19 = vadd.f32 %v2132_v58, %v2889_v48 }
 0x17b   : > { %v2145_v5 = vmax.f32 %v1693_v56, %v2137_v57  ;;  %v2147_v20 = vmax.f32 %v1695_v59, %v2139_v45 }
 0x17c   : > { %v2146_v21 = vmax.f32 %v1694_v61, %v2138_v62  ;;  %v2148_v22 = vmax.f32 %v1696_v43, %v2140_v19 }
 0x17d   : > { %v2153_v40 = vmax.f32 %v1249_v15, %v2145_v5  ;;  %v2155_v23 = vmax.f32 %v1251_v39, %v2147_v20 }
 0x17e   : > { %v2154_v24 = vmax.f32 %v1250_v17, %v2146_v21  ;;  %v2156_v47 = vmax.f32 %v1252_v18, %v2148_v22  ;;  %v1689_v17 = vmul.f32 %v1681_v37, %v2887_v41  ;;  %v1690_v18 = vmul.f32 %v1682_v44, %v2887_v41 }
 0x180   : > { %v2482_v3 = vpack.c.bf16 %v2154_v24, %v2153_v40  ;;  %v2483_v15 = vpack.c.bf16 %v2156_v47, %v2155_v23  ;;  %v1697_v6 = vadd.f32 %v1689_v17, %v2889_v48  ;;  %v1698_v4 = vadd.f32 %v1690_v18, %v2889_v48 }
 0x182   : > { %2193 = vst [vmem:[%s3006_s27] sm:$0xff] %v2482_v3  ;;  %2194 = vst [vmem:[%s3006_s27 + $0x8] sm:$0xff] %v2483_v15 }
 0x188   : > { %v2073_v39 = vpop.f32.mrb[28].mxu0  ;;  %v2114_v26 = vpop.f32.mrb[28].mxu1 }
 0x189   : > { %v2125_v25 = vmax.f32 %v2073_v39, 0.0  ;;  %v2075_v16 = vpop.f32.mrb[29].mxu0  ;;  %v2127_v27 = vmax.f32 %v2114_v26, 0.0  ;;  %v2116_v28 = vpop.f32.mrb[29].mxu1 }
 0x18a   : > { %v2126_v1 = vmax.f32 %v2075_v16, 0.0  ;;  %v2077_v46 = vpop.f32.mrb[30].mxu0  ;;  %v2128_v29 = vmax.f32 %v2116_v28, 0.0  ;;  %v2118_v2 = vpop.f32.mrb[30].mxu1 }
 0x18b   : > { %v2133_v0 = vmul.f32 %v2125_v25, %v2887_v41  ;;  %v2078_v30 = vpop.f32.mrb[31].mxu0  ;;  %v2135_v31 = vmul.f32 %v2127_v27, %v2887_v41  ;;  %v2119_v33 = vpop.f32.mrb[31].mxu1 }
 0x18c   : > { %v2134_v32 = vmul.f32 %v2126_v1, %v2887_v41  ;;  %v2136_v11 = vmul.f32 %v2128_v29, %v2887_v41 }
 0x18d   : > { %v2141_v7 = vadd.f32 %v2133_v0, %v2889_v48  ;;  %v2143_v8 = vadd.f32 %v2135_v31, %v2889_v48 }
 0x18e   : > { %v2142_v36 = vadd.f32 %v2134_v32, %v2889_v48  ;;  %v2144_v57 = vadd.f32 %v2136_v11, %v2889_v48 }
 0x18f   : > { %v2149_v56 = vmax.f32 %v1697_v6, %v2141_v7  ;;  %v2151_v58 = vmax.f32 %v1699_v34, %v2143_v8 }
 0x190   : > { %v2150_v59 = vmax.f32 %v1698_v4, %v2142_v36  ;;  %v2152_v61 = vmax.f32 %v1700_v55, %v2144_v57 }
 0x191   : > { %v2157_v41 = vmax.f32 %v1253_v50, %v2149_v56  ;;  %v2159_v45 = vmax.f32 %v1255_v52, %v2151_v58 }
 0x192   : > { %v2158_v62 = vmax.f32 %v1254_v53, %v2150_v59  ;;  %v2160_v43 = vmax.f32 %v1256_v54, %v2152_v61 }
 0x194   : > { %v2484_v48 = vpack.c.bf16 %v2158_v62, %v2157_v41  ;;  %v2485_v5 = vpack.c.bf16 %v2160_v43, %v2159_v45 }
 0x196   : > { %2195 = vst [vmem:[%s3006_s27 + $0x10] sm:$0xff] %v2484_v48  ;;  %2196 = vst [vmem:[%s3006_s27 + $0x18] sm:$0xff] %v2485_v5 }
 0x197 PF: > { %s17_s24 = sadd.s32 1, %s2504_s24  }
 0x198   : > { %p14_p4 = scmp.ge.s32.totalorder %s17_s24, 4  }
 0x19a   :  { %16 = sbr.rel (!%p14_p4) target bundleno = 1 (0x1), region = 87 }

// kernel: dpen_forward.4
= control target key start
LH: loop header
LB: loop body
LE: loop exit
PB: predicated region body
PF: predicated region fallthrough
CT: control target
= control target key end

     0   :  { %s1689_s24 = smov 0   ;;  %s1895_s0 = inlined_call_operand.vmem [shape: bf16[2,200,256], index: 0, kind: input, shape index: {}]   ;;  %s1896_s1 = inlined_call_operand.vmem [shape: bf16[2,200,256], index: 1, kind: input, shape index: {}]   ;;  %s1897_s2 = inlined_call_operand.vmem [shape: bf16[2,200,256], index: 2, kind: input, shape index: {}]   ;;  %s1898_s3 = inlined_call_operand.vmem [shape: bf16[2,200,256], index: 3, kind: input, shape index: {}]   ;;  %s1899_s4 = inlined_call_operand.vmem [shape: bf16[16,200], index: 4, kind: input, shape index: {}]   ;;  %s1900_s5 = inlined_call_operand.vmem [shape: f32[16,1], index: 5, kind: input, shape index: {}]   ;;  %s1901_s6 = inlined_call_operand.vmem [shape: f32[16,1], index: 6, kind: input, shape index: {}]   ;;  %s1902_s7 = inlined_call_operand.vmem [shape: bf16[2,16,256], index: 7, kind: output, shape index: {}]  }
   0x1 LB: > { %s1341_s25 = sadd.s32 4294967295, %s1646_s24   ;;  %p1345_p0 = scmp.ge.s32.totalorder %s1646_s24, 1  ;;  %s1646_s24 = sphi %s1689_s24, %s17_s24  }
   0x2   : > { %p267_p1 = scmp.lt.s32.totalorder %s1646_s24, 3 }
   0x4   : > { %p268_p2 = pnand %p1345_p0, %p267_p1 }
   0x5   : > { %p314_p3 = scmp.lt.s32.totalorder (!%p268_p2), %s1341_s25, 1  ;;  %v1700_v0 = vld [vmem:[%s1899_s4 + $0x4] ss:$8 sps:$4 sm:$0xff] (!%p268_p2)   ;;  %vm525_vm0 = vcmask (!%p268_p2), 588800   ;;  %v1648_v3 = vmov (!%p268_p2), 0   ;;  %vm529_vm1 = vcmask (!%p268_p2), 1043456  }
   0x6   : > { %271 = sbr.rel (%p268_p2) target bundleno = 351 (0x15f), region = 48  ;;  %v342_v1 = vld [vmem:[%s1900_s5] sm:$0xff] (!%p268_p2)  ;;  %1381 = vmatprep.mubr.msk.bf16.mxu0 (!%p268_p2), %vm525_vm0, %v1700_v0  ;;  %1409 = vmatprep.mubr.msk.bf16.mxu1 (!%p268_p2), %vm525_vm0, %v1700_v0  ;;  %v343_v4 = vld [vmem:[%s1900_s5 + $0x8] sm:$0xff] (!%p268_p2) }
   0x7   : > { %v354_v2 = vld [vmem:[%s1901_s6] sm:$0xff] (!%p268_p2)  ;;  %1483 = vset.pattern.permute.xlu0 (!%p268_p2), %v1648_v3  ;;  %1484 = vset.pattern.permute.xlu1 (!%p268_p2), %v1648_v3  ;;  %v355_v5 = vld [vmem:[%s1901_s6 + $0x8] sm:$0xff] (!%p268_p2) }
   0x8   : > { %346 = vperm.xlu0 (!%p268_p2), %1483, %v342_v1   ;;  %358 = vperm.xlu1 (!%p268_p2), %1484, %v354_v2   ;;  %v1806_v1 = vld [vmem:[%s1899_s4] ss:$8 sps:$4 sm:$0xff] (!%p268_p2)  }
   0xc   : > { %351 = vperm.xlu0 (!%p268_p2), %1483, %v343_v4   ;;  %363 = vperm.xlu1 (!%p268_p2), %1484, %v355_v5  }
   0xd   : > { %s1904_s25 = smov (!%p314_p3, %s1341_s25), 1 }
   0xe   : > { %s1715_s9 = smul.u32 200, %s1904_s25  ;;  %s1470_s30 = sshll.u32 %s1904_s25, 4 }
   0xf   : > { %s338_s10 = scalar_lea.vmem %s1902_s7, %s1470_s30 }
  0x10   : > { %s1727_s16 = scalar_lea.vmem %s1895_s0, %s1715_s9  ;;  %s1733_s19 = scalar_lea.vmem %s1896_s1, %s1715_s9 }
  0x11   : > { %v1485_v6 = vld [vmem:[%s1727_s16 + $0x4] ss:$8 sps:$4 sm:$0xff]   ;;  %v1489_v8 = vld [vmem:[%s1727_s16] ss:$8 sps:$4 sm:$0xff]   ;;  %v1491_v10 = vld [vmem:[%s1727_s16 + $0x14] ss:$8 sps:$4 sm:$0xff]   ;;  %s1773_s22 = scalar_lea.vmem %s1897_s2, %s1715_s9  ;;  %s1783_s27 = scalar_lea.vmem %s1898_s3, %s1715_s9 }
  0x12   : > { %v1487_v7 = vld [vmem:[%s1733_s19 + $0x4] ss:$8 sps:$4 sm:$0xff]   ;;  %536 = vmatprep.subr.bf16.mxu0 %v1485_v6  ;;  %v1490_v9 = vld [vmem:[%s1733_s19] ss:$8 sps:$4 sm:$0xff]   ;;  %v1493_v11 = vld [vmem:[%s1733_s19 + $0x14] ss:$8 sps:$4 sm:$0xff]  }
  0x13   : > { %747 = vmatprep.subr.bf16.mxu1 %v1487_v7  ;;  %537 = vmatpush1.bf16.msra.mxu0 %v1489_v8  ;;  %v1495_v12 = vld [vmem:[%s1727_s16 + $0x10] ss:$8 sps:$4 sm:$0xff]   ;;  %v1497_v14 = vld [vmem:[%s1727_s16 + $0x24] ss:$8 sps:$4 sm:$0xff]   ;;  %v1501_v16 = vld [vmem:[%s1727_s16 + $0x20] ss:$8 sps:$4 sm:$0xff]  }
  0x14   : > { %748 = vmatpush1.bf16.msra.mxu1 %v1490_v9  ;;  %538 = vmatprep.subr.bf16.mxu0 %v1491_v10  ;;  %v1496_v13 = vld [vmem:[%s1733_s19 + $0x10] ss:$8 sps:$4 sm:$0xff]   ;;  %v1499_v15 = vld [vmem:[%s1733_s19 + $0x24] ss:$8 sps:$4 sm:$0xff]   ;;  %v1502_v17 = vld [vmem:[%s1733_s19 + $0x20] ss:$8 sps:$4 sm:$0xff]  }
  0x15   : > { %749 = vmatprep.subr.bf16.mxu1 %v1493_v11  ;;  %v1503_v18 = vld [vmem:[%s1727_s16 + $0x34] ss:$8 sps:$4 sm:$0xff]   ;;  %v1507_v20 = vld [vmem:[%s1727_s16 + $0x30] ss:$8 sps:$4 sm:$0xff]   ;;  %v1509_v22 = vld [vmem:[%s1727_s16 + $0x44] ss:$8 sps:$4 sm:$0xff]  }
  0x16   : > { %v1505_v19 = vld [vmem:[%s1733_s19 + $0x34] ss:$8 sps:$4 sm:$0xff]   ;;  %v1508_v21 = vld [vmem:[%s1733_s19 + $0x30] ss:$8 sps:$4 sm:$0xff]   ;;  %v1511_v23 = vld [vmem:[%s1733_s19 + $0x44] ss:$8 sps:$4 sm:$0xff]  }
  0x17   : > { %539 = vmatpush1.bf16.msra.mxu0 %v1495_v12  ;;  %v1513_v24 = vld [vmem:[%s1727_s16 + $0x40] ss:$8 sps:$4 sm:$0xff]   ;;  %v1515_v26 = vld [vmem:[%s1727_s16 + $0x54] ss:$8 sps:$4 sm:$0xff]   ;;  %v1519_v28 = vld [vmem:[%s1727_s16 + $0x50] ss:$8 sps:$4 sm:$0xff]  }
  0x18   : > { %750 = vmatpush1.bf16.msra.mxu1 %v1496_v13  ;;  %540 = vmatprep.subr.bf16.mxu0 %v1497_v14  ;;  %v1514_v25 = vld [vmem:[%s1733_s19 + $0x40] ss:$8 sps:$4 sm:$0xff]   ;;  %v1517_v27 = vld [vmem:[%s1733_s19 + $0x54] ss:$8 sps:$4 sm:$0xff]   ;;  %v1520_v29 = vld [vmem:[%s1733_s19 + $0x50] ss:$8 sps:$4 sm:$0xff]  }
  0x19   : > { %751 = vmatprep.subr.bf16.mxu1 %v1499_v15  ;;  %v1521_v30 = vld [vmem:[%s1727_s16 + $0x64] ss:$8 sps:$4 sm:$0xff]   ;;  %v1525_v32 = vld [vmem:[%s1727_s16 + $0x60] ss:$8 sps:$4 sm:$0xff]   ;;  %v1527_v34 = vld [vmem:[%s1727_s16 + $0x74] ss:$8 sps:$4 sm:$0xff]  }
  0x1a   : > { %v1523_v31 = vld [vmem:[%s1733_s19 + $0x64] ss:$8 sps:$4 sm:$0xff]   ;;  %v1526_v33 = vld [vmem:[%s1733_s19 + $0x60] ss:$8 sps:$4 sm:$0xff]   ;;  %v1529_v35 = vld [vmem:[%s1733_s19 + $0x74] ss:$8 sps:$4 sm:$0xff]  }
  0x1b   : > { %541 = vmatpush1.bf16.msra.mxu0 %v1501_v16  ;;  %v1531_v36 = vld [vmem:[%s1727_s16 + $0x70] ss:$8 sps:$4 sm:$0xff]   ;;  %v1533_v38 = vld [vmem:[%s1727_s16 + $0x84] ss:$8 sps:$4 sm:$0xff]   ;;  %v1537_v40 = vld [vmem:[%s1727_s16 + $0x80] ss:$8 sps:$4 sm:$0xff]  }
  0x1c   : > { %752 = vmatpush1.bf16.msra.mxu1 %v1502_v17  ;;  %542 = vmatprep.subr.bf16.mxu0 %v1503_v18  ;;  %v1532_v37 = vld [vmem:[%s1733_s19 + $0x70] ss:$8 sps:$4 sm:$0xff]   ;;  %v1535_v39 = vld [vmem:[%s1733_s19 + $0x84] ss:$8 sps:$4 sm:$0xff]   ;;  %v1538_v41 = vld [vmem:[%s1733_s19 + $0x80] ss:$8 sps:$4 sm:$0xff]  }
  0x1d   : > { %753 = vmatprep.subr.bf16.mxu1 %v1505_v19  ;;  %v1539_v42 = vld [vmem:[%s1727_s16 + $0x94] ss:$8 sps:$4 sm:$0xff]   ;;  %v1543_v44 = vld [vmem:[%s1727_s16 + $0x90] ss:$8 sps:$4 sm:$0xff]   ;;  %v1545_v46 = vld [vmem:[%s1727_s16 + $0xa4] ss:$8 sps:$4 sm:$0xff]  }
  0x1e   : > { %v1541_v43 = vld [vmem:[%s1733_s19 + $0x94] ss:$8 sps:$4 sm:$0xff]   ;;  %v1544_v45 = vld [vmem:[%s1733_s19 + $0x90] ss:$8 sps:$4 sm:$0xff]   ;;  %v1547_v47 = vld [vmem:[%s1733_s19 + $0xa4] ss:$8 sps:$4 sm:$0xff]  }
  0x1f   : > { %543 = vmatpush1.bf16.msra.mxu0 %v1507_v20  ;;  %v1549_v48 = vld [vmem:[%s1727_s16 + $0xa0] ss:$8 sps:$4 sm:$0xff]   ;;  %v1551_v50 = vld [vmem:[%s1727_s16 + $0xb4] ss:$8 sps:$4 sm:$0xff]   ;;  %v1555_v54 = vld [vmem:[%s1727_s16 + $0xb0] ss:$8 sps:$4 sm:$0xff]  }
  0x20   : > { %754 = vmatpush1.bf16.msra.mxu1 %v1508_v21  ;;  %544 = vmatprep.subr.bf16.mxu0 %v1509_v22  ;;  %v1550_v49 = vld [vmem:[%s1733_s19 + $0xa0] ss:$8 sps:$4 sm:$0xff]   ;;  %v1553_v51 = vld [vmem:[%s1733_s19 + $0xb4] ss:$8 sps:$4 sm:$0xff]   ;;  %v1556_v55 = vld [vmem:[%s1733_s19 + $0xb0] ss:$8 sps:$4 sm:$0xff]  }
  0x21   : > { %755 = vmatprep.subr.bf16.mxu1 %v1511_v23  ;;  %v390_v52 = vld [vmem:[%s1727_s16 + $0xc0] sm:$0xff]  ;;  %v1572_v4 = vld [vmem:[%s1773_s22 + $0x14] ss:$8 sps:$4 sm:$0xff]   ;;  %v1570_v6 = vld [vmem:[%s1773_s22 + $0x10] ss:$8 sps:$4 sm:$0xff]  }
  0x22   : > { %v615_v53 = vld [vmem:[%s1733_s19 + $0xc0] sm:$0xff]  ;;  %v1379_v56 = vcombine.high %v390_v52, %v390_v52  ;;  %v1378_v58 = vcombine.low %v390_v52, %v390_v52  ;;  %v1575_v5 = vld [vmem:[%s1783_s27 + $0x14] ss:$8 sps:$4 sm:$0xff]   ;;  %v1573_v7 = vld [vmem:[%s1783_s27 + $0x10] ss:$8 sps:$4 sm:$0xff]  }
  0x23   : > { %545 = vmatpush1.bf16.msra.mxu0 %v1513_v24  ;;  %v1407_v57 = vcombine.high %v615_v53, %v615_v53  ;;  %v1406_v59 = vcombine.low %v615_v53, %v615_v53  ;;  %v1566_v60 = vld [vmem:[%s1773_s22 + $0x4] ss:$8 sps:$4 sm:$0xff]   ;;  %v1564_v2 = vld [vmem:[%s1773_s22] ss:$8 sps:$4 sm:$0xff]   ;;  %v1584_v12 = vld [vmem:[%s1773_s22 + $0x34] ss:$8 sps:$4 sm:$0xff]  }
  0x24   : > { %756 = vmatpush1.bf16.msra.mxu1 %v1514_v25  ;;  %546 = vmatprep.subr.bf16.mxu0 %v1515_v26  ;;  %v531_v61 = vsel %vm529_vm1, %v1378_v58, 0  ;;  %v1569_v63 = vld [vmem:[%s1783_s27 + $0x4] ss:$8 sps:$4 sm:$0xff]   ;;  %v1567_v3 = vld [vmem:[%s1783_s27] ss:$8 sps:$4 sm:$0xff]  }
  0x25   : > { %757 = vmatprep.subr.bf16.mxu1 %v1517_v27  ;;  %v742_v62 = vsel %vm529_vm1, %v1406_v59, 0  ;;  %v1578_v8 = vld [vmem:[%s1773_s22 + $0x24] ss:$8 sps:$4 sm:$0xff]   ;;  %v1576_v10 = vld [vmem:[%s1773_s22 + $0x20] ss:$8 sps:$4 sm:$0xff]  }
  0x26   : > { %v1581_v9 = vld [vmem:[%s1783_s27 + $0x24] ss:$8 sps:$4 sm:$0xff]   ;;  %v1579_v11 = vld [vmem:[%s1783_s27 + $0x20] ss:$8 sps:$4 sm:$0xff]   ;;  %v1587_v13 = vld [vmem:[%s1783_s27 + $0x34] ss:$8 sps:$4 sm:$0xff]  }
  0x27   : > { %547 = vmatpush1.bf16.msra.mxu0 %v1519_v28  ;;  %v1582_v14 = vld [vmem:[%s1773_s22 + $0x30] ss:$8 sps:$4 sm:$0xff]   ;;  %v1593_v16 = vld [vmem:[%s1783_s27 + $0x44] ss:$8 sps:$4 sm:$0xff]   ;;  %v1588_v17 = vld [vmem:[%s1773_s22 + $0x40] ss:$8 sps:$4 sm:$0xff]  }
  0x28   : > { %758 = vmatpush1.bf16.msra.mxu1 %v1520_v29  ;;  %548 = vmatprep.subr.bf16.mxu0 %v1521_v30  ;;  %v1585_v15 = vld [vmem:[%s1783_s27 + $0x30] ss:$8 sps:$4 sm:$0xff]   ;;  %v1591_v18 = vld [vmem:[%s1783_s27 + $0x40] ss:$8 sps:$4 sm:$0xff]   ;;  %v1596_v19 = vld [vmem:[%s1773_s22 + $0x54] ss:$8 sps:$4 sm:$0xff]  }
  0x29   : > { %759 = vmatprep.subr.bf16.mxu1 %v1523_v31  ;;  %v1599_v20 = vld [vmem:[%s1783_s27 + $0x54] ss:$8 sps:$4 sm:$0xff]   ;;  %v1594_v21 = vld [vmem:[%s1773_s22 + $0x50] ss:$8 sps:$4 sm:$0xff]   ;;  %v1602_v23 = vld [vmem:[%s1773_s22 + $0x64] ss:$8 sps:$4 sm:$0xff]  }
  0x2a   : > { %v1597_v22 = vld [vmem:[%s1783_s27 + $0x50] ss:$8 sps:$4 sm:$0xff]   ;;  %v1605_v24 = vld [vmem:[%s1783_s27 + $0x64] ss:$8 sps:$4 sm:$0xff]   ;;  %v1600_v25 = vld [vmem:[%s1773_s22 + $0x60] ss:$8 sps:$4 sm:$0xff]  }
  0x2b   : > { %549 = vmatpush1.bf16.msra.mxu0 %v1525_v32  ;;  %v1603_v26 = vld [vmem:[%s1783_s27 + $0x60] ss:$8 sps:$4 sm:$0xff]   ;;  %v1608_v27 = vld [vmem:[%s1773_s22 + $0x74] ss:$8 sps:$4 sm:$0xff]   ;;  %v1606_v29 = vld [vmem:[%s1773_s22 + $0x70] ss:$8 sps:$4 sm:$0xff]  }
  0x2c   : > { %760 = vmatpush1.bf16.msra.mxu1 %v1526_v33  ;;  %550 = vmatprep.subr.bf16.mxu0 %v1527_v34  ;;  %v1611_v28 = vld [vmem:[%s1783_s27 + $0x74] ss:$8 sps:$4 sm:$0xff]   ;;  %v1609_v30 = vld [vmem:[%s1783_s27 + $0x70] ss:$8 sps:$4 sm:$0xff]   ;;  %v1614_v31 = vld [vmem:[%s1773_s22 + $0x84] ss:$8 sps:$4 sm:$0xff]  }
  0x2d   : > { %761 = vmatprep.subr.bf16.mxu1 %v1529_v35  ;;  %v1617_v32 = vld [vmem:[%s1783_s27 + $0x84] ss:$8 sps:$4 sm:$0xff]   ;;  %v1612_v33 = vld [vmem:[%s1773_s22 + $0x80] ss:$8 sps:$4 sm:$0xff]   ;;  %v1620_v35 = vld [vmem:[%s1773_s22 + $0x94] ss:$8 sps:$4 sm:$0xff]  }
  0x2e   : > { %v1615_v34 = vld [vmem:[%s1783_s27 + $0x80] ss:$8 sps:$4 sm:$0xff]  }
  0x2f   : > { %551 = vmatpush1.bf16.msra.mxu0 %v1531_v36  ;;  %v1623_v36 = vld [vmem:[%s1783_s27 + $0x94] ss:$8 sps:$4 sm:$0xff]  }
  0x30   : > { %762 = vmatpush1.bf16.msra.mxu1 %v1532_v37  ;;  %552 = vmatprep.subr.bf16.mxu0 %v1533_v38  ;;  %v1618_v37 = vld [vmem:[%s1773_s22 + $0x90] ss:$8 sps:$4 sm:$0xff]  }
  0x31   : > { %763 = vmatprep.subr.bf16.mxu1 %v1535_v39  ;;  %v1621_v38 = vld [vmem:[%s1783_s27 + $0x90] ss:$8 sps:$4 sm:$0xff]   ;;  %v1626_v39 = vld [vmem:[%s1773_s22 + $0xa4] ss:$8 sps:$4 sm:$0xff]  }
  0x33   : > { %553 = vmatpush1.bf16.msra.mxu0 %v1537_v40  ;;  %v1629_v40 = vld [vmem:[%s1783_s27 + $0xa4] ss:$8 sps:$4 sm:$0xff]  }
  0x34   : > { %764 = vmatpush1.bf16.msra.mxu1 %v1538_v41  ;;  %554 = vmatprep.subr.bf16.mxu0 %v1539_v42  ;;  %v1624_v41 = vld [vmem:[%s1773_s22 + $0xa0] ss:$8 sps:$4 sm:$0xff]  }
  0x35   : > { %765 = vmatprep.subr.bf16.mxu1 %v1541_v43  ;;  %v1627_v42 = vld [vmem:[%s1783_s27 + $0xa0] ss:$8 sps:$4 sm:$0xff]   ;;  %v1632_v43 = vld [vmem:[%s1773_s22 + $0xb4] ss:$8 sps:$4 sm:$0xff]  }
  0x37   : > { %555 = vmatpush1.bf16.msra.mxu0 %v1543_v44  ;;  %v1635_v44 = vld [vmem:[%s1783_s27 + $0xb4] ss:$8 sps:$4 sm:$0xff]  }
  0x38   : > { %766 = vmatpush1.bf16.msra.mxu1 %v1544_v45  ;;  %556 = vmatprep.subr.bf16.mxu0 %v1545_v46  ;;  %v830_v45 = vld [vmem:[%s1773_s22 + $0xc0] sm:$0xff] }
  0x39   : > { %767 = vmatprep.subr.bf16.mxu1 %v1547_v47  ;;  %v1041_v46 = vld [vmem:[%s1783_s27 + $0xc0] sm:$0xff]  ;;  %v1630_v47 = vld [vmem:[%s1773_s22 + $0xb0] ss:$8 sps:$4 sm:$0xff]  }
  0x3a   : > { %v1462_v52 = vcombine.low %v1041_v46, %v1041_v46 }
  0x3b   : > { %557 = vmatpush1.bf16.msra.mxu0 %v1549_v48  ;;  %v1633_v48 = vld [vmem:[%s1783_s27 + $0xb0] ss:$8 sps:$4 sm:$0xff]  }
  0x3c   : > { %768 = vmatpush1.bf16.msra.mxu1 %v1550_v49  ;;  %558 = vmatprep.subr.bf16.mxu0 %v1551_v50  ;;  %v1435_v49 = vcombine.high %v830_v45, %v830_v45  ;;  %v1463_v50 = vcombine.high %v1041_v46, %v1041_v46 }
  0x3d   : > { %769 = vmatprep.subr.bf16.mxu1 %v1553_v51  ;;  %v1434_v51 = vcombine.low %v830_v45, %v830_v45 }
  0x3f   : > { %559 = vmatpush1.bf16.msra.mxu0 %v1555_v54  ;;  %v957_v53 = vsel %vm529_vm1, %v1434_v51, 0  ;;  %v1168_v54 = vsel %vm529_vm1, %v1462_v52, 0 }
  0x40   : > { %770 = vmatpush1.bf16.msra.mxu1 %v1556_v55  ;;  %1380 = vmatprep.subr.msk.bf16.mxu0 %vm529_vm1, %v1379_v56 }
  0x41   : > { %1408 = vmatprep.subr.msk.bf16.mxu1 %vm529_vm1, %v1407_v57 }
  0x43   : > { %561 = vmatpush1.bf16.msra.mxu0 %v531_v61 }
  0x44   : > { %772 = vmatpush1.bf16.msra.mxu1 %v742_v62  ;;  %962 = vmatprep.subr.bf16.mxu0 %v1566_v60 }
  0x45   : > { %1173 = vmatprep.subr.bf16.mxu1 %v1569_v63 }
  0x46   : > { %569 = vmatmul.mubr.bf16.vlgmr.msra.gmra.mrb[0].mxu0 %v1806_v1 }
  0x47   : > { %780 = vmatmul.mubr.bf16.vlgmr.msra.gmra.mrb[0].mxu1 %v1806_v1  ;;  %963 = vmatpush1.bf16.msra.mxu0 %v1564_v2 }
  0x48   : > { %1174 = vmatpush1.bf16.msra.mxu1 %v1567_v3  ;;  %964 = vmatprep.subr.bf16.mxu0 %v1572_v4 }
  0x49   : > { %1175 = vmatprep.subr.bf16.mxu1 %v1575_v5  ;;  %1437 = vmatprep.mubr.msk.bf16.mxu0 %vm525_vm0, %v1700_v0 }
  0x4a   : > { %1465 = vmatprep.mubr.msk.bf16.mxu1 %vm525_vm0, %v1700_v0  ;;  %v1590_v0 = vld [vmem:[%s1773_s22 + $0x44] ss:$8 sps:$4 sm:$0xff]  }
  0x4b   : > { %965 = vmatpush1.bf16.msra.mxu0 %v1570_v6 }
  0x4c   : > { %1176 = vmatpush1.bf16.msra.mxu1 %v1573_v7  ;;  %966 = vmatprep.subr.bf16.mxu0 %v1578_v8 }
  0x4d   : > { %1177 = vmatprep.subr.bf16.mxu1 %v1581_v9 }
  0x4f   : > { %967 = vmatpush1.bf16.msra.mxu0 %v1576_v10 }
  0x50   : > { %1178 = vmatpush1.bf16.msra.mxu1 %v1579_v11  ;;  %968 = vmatprep.subr.bf16.mxu0 %v1584_v12 }
  0x51   : > { %1179 = vmatprep.subr.bf16.mxu1 %v1587_v13 }
  0x53   : > { %969 = vmatpush1.bf16.msra.mxu0 %v1582_v14 }
  0x54   : > { %1180 = vmatpush1.bf16.msra.mxu1 %v1585_v15  ;;  %970 = vmatprep.subr.bf16.mxu0 %v1590_v0 }
  0x55   : > { %1181 = vmatprep.subr.bf16.mxu1 %v1593_v16 }
  0x57   : > { %971 = vmatpush1.bf16.msra.mxu0 %v1588_v17 }
  0x58   : > { %1182 = vmatpush1.bf16.msra.mxu1 %v1591_v18  ;;  %972 = vmatprep.subr.bf16.mxu0 %v1596_v19 }
  0x59   : > { %1183 = vmatprep.subr.bf16.mxu1 %v1599_v20 }
  0x5b   : > { %973 = vmatpush1.bf16.msra.mxu0 %v1594_v21 }
  0x5c   : > { %1184 = vmatpush1.bf16.msra.mxu1 %v1597_v22  ;;  %974 = vmatprep.subr.bf16.mxu0 %v1602_v23 }
  0x5d   : > { %1185 = vmatprep.subr.bf16.mxu1 %v1605_v24 }
  0x5f   : > { %975 = vmatpush1.bf16.msra.mxu0 %v1600_v25 }
  0x60   : > { %1186 = vmatpush1.bf16.msra.mxu1 %v1603_v26  ;;  %976 = vmatprep.subr.bf16.mxu0 %v1608_v27 }
  0x61   : > { %1187 = vmatprep.subr.bf16.mxu1 %v1611_v28 }
  0x63   : > { %977 = vmatpush1.bf16.msra.mxu0 %v1606_v29 }
  0x64   : > { %1188 = vmatpush1.bf16.msra.mxu1 %v1609_v30  ;;  %978 = vmatprep.subr.bf16.mxu0 %v1614_v31 }
  0x65   : > { %1189 = vmatprep.subr.bf16.mxu1 %v1617_v32 }
  0x67   : > { %979 = vmatpush1.bf16.msra.mxu0 %v1612_v33 }
  0x68   : > { %1190 = vmatpush1.bf16.msra.mxu1 %v1615_v34  ;;  %980 = vmatprep.subr.bf16.mxu0 %v1620_v35 }
  0x69   : > { %1191 = vmatprep.subr.bf16.mxu1 %v1623_v36 }
  0x6b   : > { %981 = vmatpush1.bf16.msra.mxu0 %v1618_v37 }
  0x6c   : > { %1192 = vmatpush1.bf16.msra.mxu1 %v1621_v38  ;;  %982 = vmatprep.subr.bf16.mxu0 %v1626_v39 }
  0x6d   : > { %1193 = vmatprep.subr.bf16.mxu1 %v1629_v40 }
  0x6f   : > { %983 = vmatpush1.bf16.msra.mxu0 %v1624_v41 }
  0x70   : > { %1194 = vmatpush1.bf16.msra.mxu1 %v1627_v42  ;;  %984 = vmatprep.subr.bf16.mxu0 %v1632_v43 }
  0x71   : > { %1195 = vmatprep.subr.bf16.mxu1 %v1635_v44 }
  0x73   : > { %985 = vmatpush1.bf16.msra.mxu0 %v1630_v47 }
  0x74   : > { %1196 = vmatpush1.bf16.msra.mxu1 %v1633_v48  ;;  %1436 = vmatprep.subr.msk.bf16.mxu0 %vm529_vm1, %v1435_v49 }
  0x75   : > { %1464 = vmatprep.subr.msk.bf16.mxu1 %vm529_vm1, %v1463_v50 }
  0x77   : > { %987 = vmatpush1.bf16.msra.mxu0 %v957_v53 }
  0x78   : > { %1198 = vmatpush1.bf16.msra.mxu1 %v1168_v54 }
  0x7a   : > { %995 = vmatmul.mubr.bf16.vlgmr.msra.gmra.mrb[4].mxu0 %v1806_v1 }
  0x7b   : > { %1206 = vmatmul.mubr.bf16.vlgmr.msra.gmra.mrb[4].mxu1 %v1806_v1 }
  0x87   : > { %v347_v55 = vpop.permute.xlu0 %346  ;;  %v1868_v56 = vpop.permute.xlu1 %358 }
  0x8b   : > { %v1870_v57 = vpop.permute.xlu0 %351  ;;  %v364_v15 = vpop.permute.xlu1 %363 }
 0x119   : > { %v570_v58 = vpop.f32.mrb[0].mxu0 }
 0x11a   : > { %v781_v59 = vpop.f32.mrb[0].mxu1  ;;  %v579_v60 = vmax.f32 %v570_v58, 0.0  ;;  %v572_v62 = vpop.f32.mrb[1].mxu0 }
 0x11b   : > { %v790_v61 = vmax.f32 %v781_v59, 0.0  ;;  %v783_v63 = vpop.f32.mrb[1].mxu1  ;;  %v580_v2 = vmax.f32 %v572_v62, 0.0  ;;  %v574_v4 = vpop.f32.mrb[2].mxu0 }
 0x11c   : > { %v791_v3 = vmax.f32 %v783_v63, 0.0  ;;  %v785_v5 = vpop.f32.mrb[2].mxu1  ;;  %v583_v6 = vmul.f32 %v579_v60, %v347_v55  ;;  %v581_v8 = vmax.f32 %v574_v4, 0.0  ;;  %v576_v1 = vpop.f32.mrb[3].mxu0 }
 0x11d   : > { %v794_v7 = vmul.f32 %v790_v61, %v347_v55  ;;  %v792_v9 = vmax.f32 %v785_v5, 0.0  ;;  %v787_v10 = vpop.f32.mrb[3].mxu1  ;;  %v584_v11 = vmul.f32 %v580_v2, %v347_v55  ;;  %v582_v13 = vmax.f32 %v576_v1, 0.0 }
 0x11e   : > { %v795_v12 = vmul.f32 %v791_v3, %v347_v55  ;;  %v793_v14 = vmax.f32 %v787_v10, 0.0  ;;  %v587_v0 = vadd.f32 %v583_v6, %v1868_v56  ;;  %v585_v17 = vmul.f32 %v581_v8, %v1870_v57 }
 0x11f   : > { %v798_v16 = vadd.f32 %v794_v7, %v1868_v56  ;;  %v796_v18 = vmul.f32 %v792_v9, %v1870_v57  ;;  %v588_v19 = vadd.f32 %v584_v11, %v1868_v56  ;;  %v586_v21 = vmul.f32 %v582_v13, %v1870_v57 }
 0x120   : > { %v799_v20 = vadd.f32 %v795_v12, %v1868_v56  ;;  %v797_v22 = vmul.f32 %v793_v14, %v1870_v57  ;;  %v589_v24 = vadd.f32 %v585_v17, %v364_v15 }
 0x121   : > { %v802_v23 = vmax.f32 %v587_v0, %v798_v16  ;;  %v800_v25 = vadd.f32 %v796_v18, %v364_v15  ;;  %v590_v27 = vadd.f32 %v586_v21, %v364_v15 }
 0x122   : > { %v803_v26 = vmax.f32 %v588_v19, %v799_v20  ;;  %v801_v28 = vadd.f32 %v797_v22, %v364_v15 }
 0x123   : > { %v804_v29 = vmax.f32 %v589_v24, %v800_v25 }
 0x124   : > { %v805_v30 = vmax.f32 %v590_v27, %v801_v28 }
 0x14d   : > { %v996_v31 = vpop.f32.mrb[4].mxu0 }
 0x14e   : > { %v1207_v32 = vpop.f32.mrb[4].mxu1  ;;  %v1005_v33 = vmax.f32 %v996_v31, 0.0  ;;  %v998_v35 = vpop.f32.mrb[5].mxu0 }
 0x14f   : > { %v1216_v34 = vmax.f32 %v1207_v32, 0.0  ;;  %v1209_v36 = vpop.f32.mrb[5].mxu1  ;;  %v1006_v37 = vmax.f32 %v998_v35, 0.0  ;;  %v1000_v39 = vpop.f32.mrb[6].mxu0 }
 0x150   : > { %v1217_v38 = vmax.f32 %v1209_v36, 0.0  ;;  %v1211_v40 = vpop.f32.mrb[6].mxu1  ;;  %v1009_v41 = vmul.f32 %v1005_v33, %v347_v55  ;;  %v1007_v43 = vmax.f32 %v1000_v39, 0.0  ;;  %v1002_v45 = vpop.f32.mrb[7].mxu0 }
 0x151   : > { %v1220_v42 = vmul.f32 %v1216_v34, %v347_v55  ;;  %v1218_v44 = vmax.f32 %v1211_v40, 0.0  ;;  %v1213_v46 = vpop.f32.mrb[7].mxu1  ;;  %v1010_v47 = vmul.f32 %v1006_v37, %v347_v55  ;;  %v1008_v49 = vmax.f32 %v1002_v45, 0.0 }
 0x152   : > { %v1221_v48 = vmul.f32 %v1217_v38, %v347_v55  ;;  %v1219_v50 = vmax.f32 %v1213_v46, 0.0  ;;  %v1013_v51 = vadd.f32 %v1009_v41, %v1868_v56  ;;  %v1011_v53 = vmul.f32 %v1007_v43, %v1870_v57 }
 0x153   : > { %v1224_v52 = vadd.f32 %v1220_v42, %v1868_v56  ;;  %v1222_v54 = vmul.f32 %v1218_v44, %v1870_v57  ;;  %v1014_v58 = vadd.f32 %v1010_v47, %v1868_v56  ;;  %v1012_v60 = vmul.f32 %v1008_v49, %v1870_v57 }
 0x154   : > { %v1225_v59 = vadd.f32 %v1221_v48, %v1868_v56  ;;  %v1223_v61 = vmul.f32 %v1219_v50, %v1870_v57  ;;  %v1015_v55 = vadd.f32 %v1011_v53, %v364_v15 }
 0x155   : > { %v1228_v62 = vmax.f32 %v1013_v51, %v1224_v52  ;;  %v1226_v63 = vadd.f32 %v1222_v54, %v364_v15  ;;  %v1016_v3 = vadd.f32 %v1012_v60, %v364_v15 }
 0x156   : > { %v1229_v2 = vmax.f32 %v1014_v58, %v1225_v59  ;;  %v1227_v4 = vadd.f32 %v1223_v61, %v364_v15 }
 0x157   : > { %v1232_v5 = vmax.f32 %v802_v23, %v1228_v62  ;;  %v1230_v6 = vmax.f32 %v1015_v55, %v1226_v63 }
 0x158   : > { %v1233_v7 = vmax.f32 %v803_v26, %v1229_v2  ;;  %v1231_v8 = vmax.f32 %v1016_v3, %v1227_v4 }
 0x159   : > { %v1234_v56 = vmax.f32 %v804_v29, %v1230_v6 }
 0x15a   : > { %v1471_v9 = vpack.c.bf16 %v1233_v7, %v1232_v5  ;;  %v1235_v1 = vmax.f32 %v805_v30, %v1231_v8 }
 0x15c   : > { %1248 = vst [vmem:[%s338_s10] sm:$0xff] %v1471_v9  ;;  %v1472_v57 = vpack.c.bf16 %v1235_v1, %v1234_v56 }
 0x15e   : > { %1249 = vst [vmem:[%s338_s10 + $0x8] sm:$0xff] %v1472_v57 }
 0x15f PF: > { %s17_s24 = sadd.s32 1, %s1646_s24  }
 0x160   : > { %p14_p4 = scmp.ge.s32.totalorder %s17_s24, 4  }
 0x162   :  { %16 = sbr.rel (!%p14_p4) target bundleno = 1 (0x1), region = 87 }

// kernel: dpen_forward.5
= control target key start
LH: loop header
LB: loop body
LE: loop exit
PB: predicated region body
PF: predicated region fallthrough
CT: control target
= control target key end

     0   :  { %v9686_v0 = vmov 0   ;;  %vm354_vm0 = vcmask 130048   ;;  %vm1667_vm1 = vcmask 261120   ;;  %vm5832_vm2 = vcmask 523264   ;;  %s11939_s0 = inlined_call_operand.vmem [shape: bf16[400,128], index: 0, kind: input, shape index: {}]   ;;  %s11940_s4 = inlined_call_operand.vmem [shape: bf16[32,400], index: 4, kind: input, shape index: {}]   ;;  %s11941_s1 = inlined_call_operand.vmem [shape: bf16[400,128], index: 1, kind: input, shape index: {}]   ;;  %s11942_s2 = inlined_call_operand.vmem [shape: bf16[400,128], index: 2, kind: input, shape index: {}]   ;;  %s11943_s3 = inlined_call_operand.vmem [shape: bf16[400,128], index: 3, kind: input, shape index: {}]   ;;  %s11944_s5 = inlined_call_operand.vmem [shape: f32[32,1], index: 5, kind: input, shape index: {}]   ;;  %s11945_s6 = inlined_call_operand.vmem [shape: f32[32,1], index: 6, kind: input, shape index: {}]   ;;  %s11946_s13 = inlined_call_operand.vmem [shape: f32[64,1], index: 13, kind: input, shape index: {}]   ;;  %s11947_s15 = inlined_call_operand.vmem [shape: f32[32,1], index: 15, kind: input, shape index: {}]   ;;  %s11948_s17 = inlined_call_operand.vmem [shape: f32[2,1], index: 17, kind: input, shape index: {}]   ;;  %s11949_s7 = inlined_call_operand.vmem [shape: bf16[576,32], index: 7, kind: input, shape index: {}]   ;;  %s11950_s8 = inlined_call_operand.vmem [shape: bf16[4,1152,32], index: 8, kind: input, shape index: {}]   ;;  %s11951_s9 = inlined_call_operand.vmem [shape: bf16[128,64], index: 9, kind: input, shape index: {}]   ;;  %s11952_s10 = inlined_call_operand.vmem [shape: bf16[4,32,8], index: 10, kind: input, shape index: {}]   ;;  %s11953_s11 = inlined_call_operand.vmem [shape: bf16[8,2], index: 11, kind: input, shape index: {}]   ;;  %s11954_s12 = inlined_call_operand.vmem [shape: bf16[64,128], index: 12, kind: input, shape index: {}]   ;;  %s11955_s14 = inlined_call_operand.vmem [shape: bf16[32,64], index: 14, kind: input, shape index: {}]   ;;  %s11956_s16 = inlined_call_operand.vmem [shape: bf16[2,32], index: 16, kind: input, shape index: {}]   ;;  %s11957_s18 = inlined_call_operand.vmem [shape: f32[2,2], index: 18, kind: output, shape index: {}]  }
   0x1   :  { %11961 = sst [smem:[#allocation2_spill]] %s11939_s0  ;;  %410 = vmatprep.subr.bf16.mxu1 %v9686_v0  ;;  %9222 = vset.pattern.permute.xlu0 %v9686_v0  ;;  %v9286_v57 = vld [vmem:[%s11942_s2 + $0x40] sm:$0xff]   ;;  %v9289_v60 = vld [vmem:[%s11942_s2 + $0x48] sm:$0xff]   ;;  %v9292_v63 = vld [vmem:[%s11942_s2 + $0x50] sm:$0xff]   ;;  %vm6539_vm3 = vcmask 1043456   ;;  %vm6514_vm4 = vcmask 64512  }
   0x2   :  { %11962 = sst [smem:[#allocation3_spill]] %s11940_s4  ;;  %s11964_s29 = sld [smem:[#allocation2_spill]]  ;;  %9223 = vset.pattern.permute.xlu1 %v9686_v0  ;;  %v9288_v59 = vld [vmem:[%s11942_s2] sm:$0xff]   ;;  %v9291_v62 = vld [vmem:[%s11942_s2 + $0x8] sm:$0xff]   ;;  %vm9688_vm5 = vmmov 0   ;;  %vm6960_vm6 = vcmask 9216  }
   0x3   :  { %11963 = sst [smem:[#allocation4_spill]] %s11941_s1  ;;  %s11965_s30 = sld [smem:[#allocation3_spill]] }
   0x4   :  { %s11966_s26 = sld [smem:[#allocation4_spill]] }
   0x8   :  { %v9224_v1 = vld [vmem:[%s11964_s29 + $0x40] sm:$0xff]   ;;  %v9227_v4 = vld [vmem:[%s11964_s29 + $0x48] sm:$0xff]   ;;  %v9230_v7 = vld [vmem:[%s11964_s29 + $0x50] sm:$0xff]  }
   0x9   :  { %v9225_v2 = vld [vmem:[%s11964_s29 + $0x80] sm:$0xff]   ;;  %7960 = vmatprep.subr.bf16.mxu0 %v9224_v1  ;;  %v9228_v5 = vld [vmem:[%s11964_s29 + $0x88] sm:$0xff]   ;;  %v9231_v8 = vld [vmem:[%s11964_s29 + $0x90] sm:$0xff]  }
   0xa   :  { %v9226_v3 = vld [vmem:[%s11964_s29] sm:$0xff]   ;;  %411 = vmatpush1.bf16.msra.mxu1 %v9225_v2  ;;  %v9229_v6 = vld [vmem:[%s11964_s29 + $0x8] sm:$0xff]   ;;  %v9232_v9 = vld [vmem:[%s11964_s29 + $0x10] sm:$0xff]  }
   0xb   :  { %7961 = vmatpush3.bf16.msra.mxu0 %v9226_v3  ;;  %412 = vmatprep.subr.bf16.mxu1 %v9686_v0  ;;  %v9233_v10 = vld [vmem:[%s11964_s29 + $0x58] sm:$0xff]   ;;  %v9236_v13 = vld [vmem:[%s11964_s29 + $0x60] sm:$0xff]   ;;  %v9239_v16 = vld [vmem:[%s11964_s29 + $0x68] sm:$0xff]  }
   0xc   :  { %7962 = vmatprep.subr.bf16.mxu0 %v9227_v4  ;;  %v9234_v11 = vld [vmem:[%s11964_s29 + $0x98] sm:$0xff]   ;;  %v9237_v14 = vld [vmem:[%s11964_s29 + $0xa0] sm:$0xff]   ;;  %v9240_v17 = vld [vmem:[%s11964_s29 + $0xa8] sm:$0xff]  }
   0xd   :  { %v9235_v12 = vld [vmem:[%s11964_s29 + $0x18] sm:$0xff]   ;;  %v9238_v15 = vld [vmem:[%s11964_s29 + $0x20] sm:$0xff]   ;;  %v9241_v18 = vld [vmem:[%s11964_s29 + $0x28] sm:$0xff]  }
   0xe   :  { %413 = vmatpush1.bf16.msra.mxu1 %v9228_v5  ;;  %v9242_v19 = vld [vmem:[%s11964_s29 + $0x70] sm:$0xff]   ;;  %v9245_v23 = vld [vmem:[%s11964_s29 + $0x78] sm:$0xff]   ;;  %v9255_v27 = vld [vmem:[%s11966_s26 + $0x40] sm:$0xff]  }
   0xf   :  { %7963 = vmatpush3.bf16.msra.mxu0 %v9229_v6  ;;  %414 = vmatprep.subr.bf16.mxu1 %v9686_v0  ;;  %v9243_v20 = vld [vmem:[%s11964_s29 + $0xb0] sm:$0xff]   ;;  %v9246_v24 = vld [vmem:[%s11964_s29 + $0xb8] sm:$0xff]   ;;  %v9251_v29 = vld [vmem:[%s11964_s29 + $0xc0] sm:$0xff]  }
  0x10   :  { %7964 = vmatprep.subr.bf16.mxu0 %v9230_v7  ;;  %v9244_v21 = vld [vmem:[%s11964_s29 + $0x30] sm:$0xff]   ;;  %v9871_v25 = vld [vmem:[%s11965_s30 + $0xc] ss:$16 sps:$4 sm:$0xff]   ;;  %v9257_v30 = vld [vmem:[%s11966_s26] sm:$0xff]  }
  0x11   :  { %v9859_v22 = vld [vmem:[%s11965_s30 + $0x4] ss:$16 sps:$4 sm:$0xff]   ;;  %v9247_v26 = vld [vmem:[%s11964_s29 + $0x38] sm:$0xff]   ;;  %6999 = vmatprep.mubr.msk.bf16.mxu1 %vm354_vm0, %v9871_v25  ;;  %v9885_v28 = vld [vmem:[%s11965_s30] ss:$16 sps:$4 sm:$0xff]  }
  0x12   :  { %415 = vmatpush1.bf16.msra.mxu1 %v9231_v8  ;;  %393 = vmatprep.mubr.bf16.mxu0 %v9859_v22  ;;  %v9258_v31 = vld [vmem:[%s11966_s26 + $0x48] sm:$0xff]   ;;  %v9256_v33 = vld [vmem:[%s11966_s26 + $0x80] sm:$0xff]   ;;  %v9261_v35 = vld [vmem:[%s11966_s26 + $0x50] sm:$0xff]  }
  0x13   :  { %7965 = vmatpush3.bf16.msra.mxu0 %v9232_v9  ;;  %416 = vmatprep.subr.bf16.mxu1 %v9686_v0  ;;  %v9900_v32 = vld [vmem:[%s11965_s30 + $0x8] ss:$16 sps:$4 sm:$0xff]   ;;  %v9263_v37 = vld [vmem:[%s11966_s26 + $0x10] sm:$0xff]   ;;  %v9267_v42 = vld [vmem:[%s11966_s26 + $0x60] sm:$0xff]  }
  0x14   :  { %7966 = vmatprep.subr.bf16.mxu0 %v9233_v10  ;;  %v9260_v34 = vld [vmem:[%s11966_s26 + $0x8] sm:$0xff]   ;;  %v9264_v38 = vld [vmem:[%s11966_s26 + $0x58] sm:$0xff]   ;;  %v9262_v39 = vld [vmem:[%s11966_s26 + $0x90] sm:$0xff]  }
  0x15   :  { %v9259_v36 = vld [vmem:[%s11966_s26 + $0x88] sm:$0xff]   ;;  %v9266_v40 = vld [vmem:[%s11966_s26 + $0x18] sm:$0xff]   ;;  %v9940_v43 = vld [vmem:[%s11965_s30 + $0x24] ss:$16 sps:$4 sm:$0xff]  }
  0x16   :  { %417 = vmatpush1.bf16.msra.mxu1 %v9234_v11  ;;  %v9265_v41 = vld [vmem:[%s11966_s26 + $0x98] sm:$0xff]   ;;  %v9945_v44 = vld [vmem:[%s11965_s30 + $0x20] ss:$16 sps:$4 sm:$0xff]   ;;  %v9270_v47 = vld [vmem:[%s11966_s26 + $0x68] sm:$0xff]  }
  0x17   :  { %7967 = vmatpush3.bf16.msra.mxu0 %v9235_v12  ;;  %418 = vmatprep.subr.bf16.mxu1 %v9686_v0  ;;  %v9950_v45 = vld [vmem:[%s11965_s30 + $0x2c] ss:$16 sps:$4 sm:$0xff]   ;;  %v9269_v46 = vld [vmem:[%s11966_s26 + $0x20] sm:$0xff]   ;;  %v9966_v48 = vld [vmem:[%s11965_s30 + $0x28] ss:$16 sps:$4 sm:$0xff]  }
  0x18   :  { %7968 = vmatprep.subr.bf16.mxu0 %v9236_v13  ;;  %v9268_v49 = vld [vmem:[%s11966_s26 + $0xa0] sm:$0xff]   ;;  %v9272_v50 = vld [vmem:[%s11966_s26 + $0x28] sm:$0xff]   ;;  %v9278_v51 = vld [vmem:[%s11966_s26 + $0x70] sm:$0xff]  }
  0x19   :  { %v9271_v52 = vld [vmem:[%s11966_s26 + $0xa8] sm:$0xff]   ;;  %v9281_v53 = vld [vmem:[%s11966_s26 + $0x30] sm:$0xff]   ;;  %v9282_v54 = vld [vmem:[%s11966_s26 + $0x78] sm:$0xff]  }
  0x1a   :  { %419 = vmatpush1.bf16.msra.mxu1 %v9237_v14  ;;  %v9279_v55 = vld [vmem:[%s11966_s26 + $0xb0] sm:$0xff]   ;;  %v9284_v56 = vld [vmem:[%s11966_s26 + $0x38] sm:$0xff]   ;;  %v9285_v61 = vld [vmem:[%s11966_s26 + $0xc0] sm:$0xff]  }
  0x1b   :  { %7969 = vmatpush3.bf16.msra.mxu0 %v9238_v15  ;;  %420 = vmatprep.subr.bf16.mxu1 %v9686_v0  ;;  %v9283_v58 = vld [vmem:[%s11966_s26 + $0xb8] sm:$0xff]   ;;  %v9287_v1 = vld [vmem:[%s11942_s2 + $0x80] sm:$0xff]   ;;  %v9294_v2 = vld [vmem:[%s11942_s2 + $0x10] sm:$0xff]  }
  0x1c   :  { %7970 = vmatprep.subr.bf16.mxu0 %v9239_v16  ;;  %v9295_v3 = vld [vmem:[%s11942_s2 + $0x58] sm:$0xff]   ;;  %v9290_v4 = vld [vmem:[%s11942_s2 + $0x88] sm:$0xff]   ;;  %v9298_v6 = vld [vmem:[%s11942_s2 + $0x60] sm:$0xff]  }
  0x1d   :  { %v9297_v5 = vld [vmem:[%s11942_s2 + $0x18] sm:$0xff]   ;;  %v9293_v7 = vld [vmem:[%s11942_s2 + $0x90] sm:$0xff]   ;;  %v9300_v8 = vld [vmem:[%s11942_s2 + $0x20] sm:$0xff]  }
  0x1e   :  { %421 = vmatpush1.bf16.msra.mxu1 %v9240_v17  ;;  %v9301_v9 = vld [vmem:[%s11942_s2 + $0x68] sm:$0xff]   ;;  %v9296_v10 = vld [vmem:[%s11942_s2 + $0x98] sm:$0xff]   ;;  %v9304_v12 = vld [vmem:[%s11942_s2 + $0x70] sm:$0xff]  }
  0x1f   :  { %7971 = vmatpush3.bf16.msra.mxu0 %v9241_v18  ;;  %422 = vmatprep.subr.bf16.mxu1 %v9686_v0  ;;  %v9303_v11 = vld [vmem:[%s11942_s2 + $0x28] sm:$0xff]   ;;  %v9299_v13 = vld [vmem:[%s11942_s2 + $0xa0] sm:$0xff]   ;;  %v9306_v14 = vld [vmem:[%s11942_s2 + $0x30] sm:$0xff]  }
  0x20   :  { %7972 = vmatprep.subr.bf16.mxu0 %v9242_v19  ;;  %v9307_v15 = vld [vmem:[%s11942_s2 + $0x78] sm:$0xff]   ;;  %v9302_v16 = vld [vmem:[%s11942_s2 + $0xa8] sm:$0xff]   ;;  %v68_v17 = vld [vmem:[%s11944_s5] sm:$0xff] }
  0x21   :  { %v9309_v18 = vld [vmem:[%s11942_s2 + $0x38] sm:$0xff]   ;;  %74 = vperm.xlu0 %9222, %v68_v17   ;;  %v9311_v19 = vld [vmem:[%s11943_s3 + $0x40] sm:$0xff]  }
  0x22   :  { %423 = vmatpush1.bf16.msra.mxu1 %v9243_v20  ;;  %v92_v20 = vld [vmem:[%s11945_s6] sm:$0xff] }
  0x23   :  { %7973 = vmatpush3.bf16.msra.mxu0 %v9244_v21  ;;  %424 = vmatprep.subr.bf16.mxu1 %v9686_v0  ;;  %v9305_v21 = vld [vmem:[%s11942_s2 + $0xb0] sm:$0xff]  }
  0x24   :  { %7974 = vmatprep.subr.bf16.mxu0 %v9245_v23  ;;  %98 = vperm.xlu1 %9223, %v92_v20   ;;  %v69_v23 = vld [vmem:[%s11944_s5 + $0x8] sm:$0xff] }
  0x25   :  { %79 = vperm.xlu0 %9222, %v69_v23  }
  0x26   :  { %425 = vmatpush1.bf16.msra.mxu1 %v9246_v24  ;;  %v9312_v24 = vld [vmem:[%s11943_s3] sm:$0xff]  }
  0x27   :  { %7975 = vmatpush3.bf16.msra.mxu0 %v9247_v26  ;;  %426 = vmatprep.subr.bf16.mxu1 %v9686_v0  ;;  %v9314_v26 = vld [vmem:[%s11943_s3 + $0x48] sm:$0xff]  }
  0x28   :  { %7988 = vmatprep.subr.bf16.mxu0 %v9255_v27  ;;  %v93_v27 = vld [vmem:[%s11945_s6 + $0x8] sm:$0xff] }
  0x29   :  { %103 = vperm.xlu1 %9223, %v93_v27  }
  0x2a   :  { %394 = vmatmul.mubr.bf16.vlgmr.msra.gmra.mrb[0].mxu0 %v9885_v28  ;;  %427 = vmatpush1.bf16.msra.mxu1 %v9251_v29  ;;  %v9308_v29 = vld [vmem:[%s11942_s2 + $0xb8] sm:$0xff]  }
  0x2b   :  { %720 = vmatprep.subr.bf16.mxu1 %v9686_v0  ;;  %7989 = vmatpush3.bf16.msra.mxu0 %v9257_v30  ;;  %v9315_v30 = vld [vmem:[%s11943_s3 + $0x8] sm:$0xff]  }
  0x2c   :  { %7990 = vmatprep.subr.bf16.mxu0 %v9258_v31  ;;  %401 = vmatprep.mubr.bf16.mxu0 %v9940_v43  ;;  %v9317_v31 = vld [vmem:[%s11943_s3 + $0x50] sm:$0xff]  }
  0x2d   :  { %443 = vmatmul.mubr.bf16.vlgmr.msra.gmra.mrb[0].mxu1 %v9900_v32 }
  0x2e   :  { %721 = vmatpush1.bf16.msra.mxu1 %v9256_v33  ;;  %7000 = vmatprep.mubr.msk.bf16.mxu1 %vm354_vm0, %v9950_v45  ;;  %v9310_v33 = vld [vmem:[%s11942_s2 + $0xc0] sm:$0xff]  }
  0x2f   :  { %722 = vmatprep.subr.bf16.mxu1 %v9686_v0  ;;  %7991 = vmatpush3.bf16.msra.mxu0 %v9260_v34  ;;  %v9318_v34 = vld [vmem:[%s11943_s3 + $0x10] sm:$0xff]  }
  0x30   :  { %7992 = vmatprep.subr.bf16.mxu0 %v9261_v35  ;;  %v9320_v35 = vld [vmem:[%s11943_s3 + $0x58] sm:$0xff]  }
  0x32   :  { %723 = vmatpush1.bf16.msra.mxu1 %v9259_v36  ;;  %402 = vmatmul.mubr.bf16.gmra.mrb[4].mxu0 %v9945_v44  ;;  %v71_v36 = vld [vmem:[%s11944_s5 + $0x18] sm:$0xff] }
  0x33   :  { %724 = vmatprep.subr.bf16.mxu1 %v9686_v0  ;;  %7993 = vmatpush3.bf16.msra.mxu0 %v9263_v37  ;;  %v9313_v37 = vld [vmem:[%s11943_s3 + $0x80] sm:$0xff]  }
  0x34   :  { %7994 = vmatprep.subr.bf16.mxu0 %v9264_v38  ;;  %703 = vmatprep.mubr.bf16.mxu0 %v9859_v22  ;;  %v9321_v38 = vld [vmem:[%s11943_s3 + $0x18] sm:$0xff]  }
  0x35   :  { %451 = vmatmul.mubr.bf16.gmra.mrb[4].mxu1 %v9966_v48  ;;  %89 = vperm.xlu1 %9223, %v71_v36  }
  0x36   :  { %725 = vmatpush1.bf16.msra.mxu1 %v9262_v39  ;;  %7026 = vmatprep.mubr.msk.bf16.mxu1 %vm354_vm0, %v9871_v25  ;;  %v70_v39 = vld [vmem:[%s11944_s5 + $0x10] sm:$0xff] }
  0x37   :  { %726 = vmatprep.subr.bf16.mxu1 %v9686_v0  ;;  %7995 = vmatpush3.bf16.msra.mxu0 %v9266_v40  ;;  %v9323_v40 = vld [vmem:[%s11943_s3 + $0x60] sm:$0xff]  }
  0x38   :  { %7996 = vmatprep.subr.bf16.mxu0 %v9267_v42  ;;  %84 = vperm.xlu0 %9222, %v70_v39   ;;  %v9324_v42 = vld [vmem:[%s11943_s3 + $0x20] sm:$0xff]  }
  0x3a   :  { %727 = vmatpush1.bf16.msra.mxu1 %v9265_v41  ;;  %v95_v41 = vld [vmem:[%s11945_s6 + $0x18] sm:$0xff] }
  0x3b   :  { %728 = vmatprep.subr.bf16.mxu1 %v9686_v0  ;;  %7997 = vmatpush3.bf16.msra.mxu0 %v9269_v46  ;;  %v94_v46 = vld [vmem:[%s11945_s6 + $0x10] sm:$0xff] }
  0x3c   :  { %7998 = vmatprep.subr.bf16.mxu0 %v9270_v47  ;;  %113 = vperm.xlu1 %9223, %v95_v41   ;;  %v9326_v47 = vld [vmem:[%s11943_s3 + $0x68] sm:$0xff]  }
  0x3d   :  { %108 = vperm.xlu0 %9222, %v94_v46  }
  0x3e   :  { %729 = vmatpush1.bf16.msra.mxu1 %v9268_v49  ;;  %v6657_v49 = vld [vmem:[%s11946_s13 + $0x8] sm:$0xff] }
  0x3f   :  { %730 = vmatprep.subr.bf16.mxu1 %v9686_v0  ;;  %7999 = vmatpush3.bf16.msra.mxu0 %v9272_v50  ;;  %v9319_v50 = vld [vmem:[%s11943_s3 + $0x90] sm:$0xff]  }
  0x40   :  { %8000 = vmatprep.subr.bf16.mxu0 %v9278_v51  ;;  %v9327_v51 = vld [vmem:[%s11943_s3 + $0x28] sm:$0xff]   ;;  %6671 = vperm.xlu1 %9223, %v6657_v49  }
  0x42   :  { %731 = vmatpush1.bf16.msra.mxu1 %v9271_v52  ;;  %v6656_v52 = vld [vmem:[%s11946_s13] sm:$0xff] }
  0x43   :  { %732 = vmatprep.subr.bf16.mxu1 %v9686_v0  ;;  %8001 = vmatpush3.bf16.msra.mxu0 %v9281_v53  ;;  %v9329_v53 = vld [vmem:[%s11943_s3 + $0x70] sm:$0xff]  }
  0x44   :  { %8002 = vmatprep.subr.bf16.mxu0 %v9282_v54  ;;  %v6659_v54 = vld [vmem:[%s11946_s13 + $0x18] sm:$0xff]  ;;  %6666 = vperm.xlu0 %9222, %v6656_v52  }
  0x45   :  { %6681 = vperm.xlu1 %9223, %v6659_v54  }
  0x46   :  { %733 = vmatpush1.bf16.msra.mxu1 %v9279_v55  ;;  %v9322_v55 = vld [vmem:[%s11943_s3 + $0x98] sm:$0xff]  }
  0x47   :  { %734 = vmatprep.subr.bf16.mxu1 %v9686_v0  ;;  %8003 = vmatpush3.bf16.msra.mxu0 %v9284_v56  ;;  %v9330_v56 = vld [vmem:[%s11943_s3 + $0x30] sm:$0xff]  }
  0x48   :  { %8016 = vmatprep.subr.bf16.mxu0 %v9286_v57  ;;  %v6658_v57 = vld [vmem:[%s11946_s13 + $0x10] sm:$0xff] }
  0x49   :  { %6676 = vperm.xlu0 %9222, %v6658_v57  }
  0x4a   :  { %735 = vmatpush1.bf16.msra.mxu1 %v9283_v58  ;;  %704 = vmatmul.mubr.bf16.vlgmr.msra.gmra.mrb[8].mxu0 %v9885_v28  ;;  %v9332_v58 = vld [vmem:[%s11943_s3 + $0x78] sm:$0xff]  }
  0x4b   :  { %736 = vmatprep.subr.bf16.mxu1 %v9686_v0  ;;  %8017 = vmatpush3.bf16.msra.mxu0 %v9288_v59  ;;  %v9325_v59 = vld [vmem:[%s11943_s3 + $0xa0] sm:$0xff]  }
  0x4c   :  { %711 = vmatprep.mubr.bf16.mxu0 %v9940_v43  ;;  %8018 = vmatprep.subr.bf16.mxu0 %v9289_v60  ;;  %v9333_v60 = vld [vmem:[%s11943_s3 + $0x38] sm:$0xff]  }
  0x4e   :  { %737 = vmatpush1.bf16.msra.mxu1 %v9285_v61  ;;  %v6660_v61 = vld [vmem:[%s11946_s13 + $0x20] sm:$0xff] }
  0x4f   :  { %1034 = vmatprep.subr.bf16.mxu1 %v9686_v0  ;;  %8019 = vmatpush3.bf16.msra.mxu0 %v9291_v62  ;;  %v6663_v62 = vld [vmem:[%s11946_s13 + $0x38] sm:$0xff] }
  0x50   :  { %8020 = vmatprep.subr.bf16.mxu0 %v9292_v63  ;;  %v9328_v63 = vld [vmem:[%s11943_s3 + $0xa8] sm:$0xff]   ;;  %6686 = vperm.xlu0 %9222, %v6660_v61  }
  0x51   :  { %753 = vmatmul.mubr.bf16.vlgmr.msra.gmra.mrb[8].mxu1 %v9900_v32 }
  0x52   :  { %1035 = vmatpush1.bf16.msra.mxu1 %v9287_v1  ;;  %712 = vmatmul.mubr.bf16.gmra.mrb[12].mxu0 %v9945_v44  ;;  %v6662_v1 = vld [vmem:[%s11946_s13 + $0x30] sm:$0xff] }
  0x53   :  { %1036 = vmatprep.subr.bf16.mxu1 %v9686_v0  ;;  %7027 = vmatprep.mubr.msk.bf16.mxu1 %vm354_vm0, %v9950_v45 }
  0x54   :  { %8021 = vmatpush3.bf16.msra.mxu0 %v9294_v2  ;;  %1017 = vmatprep.mubr.bf16.mxu0 %v9859_v22  ;;  %v9331_v2 = vld [vmem:[%s11943_s3 + $0xb0] sm:$0xff]  }
  0x55   :  { %8022 = vmatprep.subr.bf16.mxu0 %v9295_v3  ;;  %v6810_v3 = vld [vmem:[%s11947_s15 + $0x8] sm:$0xff]  ;;  %6696 = vperm.xlu0 %9222, %v6662_v1  }
  0x56   :  { %1037 = vmatpush1.bf16.msra.mxu1 %v9290_v4  ;;  %v6809_v4 = vld [vmem:[%s11947_s15] sm:$0xff] }
  0x57   :  { %1038 = vmatprep.subr.bf16.mxu1 %v9686_v0 }
  0x58   :  { %8023 = vmatpush3.bf16.msra.mxu0 %v9297_v5  ;;  %v9334_v5 = vld [vmem:[%s11943_s3 + $0xb8] sm:$0xff]  }
  0x59   :  { %761 = vmatmul.mubr.bf16.gmra.mrb[12].mxu1 %v9966_v48  ;;  %8024 = vmatprep.subr.bf16.mxu0 %v9298_v6  ;;  %v6812_v6 = vld [vmem:[%s11947_s15 + $0x18] sm:$0xff] }
  0x5a   :  { %1039 = vmatpush1.bf16.msra.mxu1 %v9293_v7  ;;  %7053 = vmatprep.mubr.msk.bf16.mxu1 %vm354_vm0, %v9871_v25  ;;  %v6905_v7 = vld [vmem:[%s11948_s17] sm:$0x3] }
  0x5b   :  { %1040 = vmatprep.subr.bf16.mxu1 %v9686_v0  ;;  %6815 = vperm.xlu0 %9222, %v6809_v4  }
  0x5c   :  { %8025 = vmatpush3.bf16.msra.mxu0 %v9300_v8 }
  0x5d   :  { %8026 = vmatprep.subr.bf16.mxu0 %v9301_v9 }
  0x5e   :  { %1041 = vmatpush1.bf16.msra.mxu1 %v9296_v10 }
  0x5f   :  { %1042 = vmatprep.subr.bf16.mxu1 %v9686_v0 }
  0x60   :  { %8027 = vmatpush3.bf16.msra.mxu0 %v9303_v11 }
  0x61   :  { %8028 = vmatprep.subr.bf16.mxu0 %v9304_v12 }
  0x62   :  { %1043 = vmatpush1.bf16.msra.mxu1 %v9299_v13 }
  0x63   :  { %1044 = vmatprep.subr.bf16.mxu1 %v9686_v0 }
  0x64   :  { %8029 = vmatpush3.bf16.msra.mxu0 %v9306_v14 }
  0x65   :  { %8030 = vmatprep.subr.bf16.mxu0 %v9307_v15 }
  0x66   :  { %1045 = vmatpush1.bf16.msra.mxu1 %v9302_v16 }
  0x67   :  { %1046 = vmatprep.subr.bf16.mxu1 %v9686_v0 }
  0x68   :  { %8031 = vmatpush3.bf16.msra.mxu0 %v9309_v18 }
  0x69   :  { %8044 = vmatprep.subr.bf16.mxu0 %v9311_v19 }
  0x6a   :  { %1047 = vmatpush1.bf16.msra.mxu1 %v9305_v21 }
  0x6b   :  { %1048 = vmatprep.subr.bf16.mxu1 %v9686_v0  ;;  %1018 = vmatmul.mubr.bf16.vlgmr.msra.gmra.mrb[16].mxu0 %v9885_v28 }
  0x6c   :  { %8045 = vmatpush3.bf16.msra.mxu0 %v9312_v24  ;;  %1025 = vmatprep.mubr.bf16.mxu0 %v9940_v43 }
  0x6d   :  { %8046 = vmatprep.subr.bf16.mxu0 %v9314_v26 }
  0x6e   :  { %1049 = vmatpush1.bf16.msra.mxu1 %v9308_v29 }
  0x6f   :  { %1050 = vmatprep.subr.bf16.mxu1 %v9686_v0 }
  0x70   :  { %8047 = vmatpush3.bf16.msra.mxu0 %v9315_v30 }
  0x71   :  { %8048 = vmatprep.subr.bf16.mxu0 %v9317_v31 }
  0x72   :  { %1051 = vmatpush1.bf16.msra.mxu1 %v9310_v33 }
  0x73   :  { %1344 = vmatprep.subr.bf16.mxu1 %v9686_v0  ;;  %1026 = vmatmul.mubr.bf16.gmra.mrb[20].mxu0 %v9945_v44 }
  0x74   :  { %8049 = vmatpush3.bf16.msra.mxu0 %v9318_v34  ;;  %1327 = vmatprep.mubr.bf16.mxu0 %v9859_v22  ;;  %v9316_v22 = vld [vmem:[%s11943_s3 + $0x88] sm:$0xff]  }
  0x75   :  { %1067 = vmatmul.mubr.bf16.vlgmr.msra.gmra.mrb[16].mxu1 %v9900_v32  ;;  %8050 = vmatprep.subr.bf16.mxu0 %v9320_v35 }
  0x76   :  { %1345 = vmatpush1.bf16.msra.mxu1 %v9313_v37  ;;  %7054 = vmatprep.mubr.msk.bf16.mxu1 %vm354_vm0, %v9950_v45 }
  0x77   :  { %1346 = vmatprep.subr.bf16.mxu1 %v9686_v0 }
  0x78   :  { %8051 = vmatpush3.bf16.msra.mxu0 %v9321_v38 }
  0x79   :  { %8052 = vmatprep.subr.bf16.mxu0 %v9323_v40 }
  0x7a   :  { %1347 = vmatpush1.bf16.msra.mxu1 %v9316_v22 }
  0x7b   :  { %1348 = vmatprep.subr.bf16.mxu1 %v9686_v0 }
  0x7c   :  { %8053 = vmatpush3.bf16.msra.mxu0 %v9324_v42 }
  0x7d   :  { %8054 = vmatprep.subr.bf16.mxu0 %v9326_v47  ;;  %1075 = vmatmul.mubr.bf16.gmra.mrb[20].mxu1 %v9966_v48 }
  0x7e   :  { %1349 = vmatpush1.bf16.msra.mxu1 %v9319_v50  ;;  %7080 = vmatprep.mubr.msk.bf16.mxu1 %vm354_vm0, %v9871_v25  ;;  %v6661_v25 = vld [vmem:[%s11946_s13 + $0x28] sm:$0xff] }
  0x7f   :  { %1350 = vmatprep.subr.bf16.mxu1 %v9686_v0  ;;  %6691 = vperm.xlu1 %9223, %v6661_v25  }
  0x80   :  { %8055 = vmatpush3.bf16.msra.mxu0 %v9327_v51 }
  0x81   :  { %8056 = vmatprep.subr.bf16.mxu0 %v9329_v53 }
  0x82   :  { %1351 = vmatpush1.bf16.msra.mxu1 %v9322_v55 }
  0x83   :  { %1352 = vmatprep.subr.bf16.mxu1 %v9686_v0  ;;  %6701 = vperm.xlu1 %9223, %v6663_v62  }
  0x84   :  { %8057 = vmatpush3.bf16.msra.mxu0 %v9330_v56 }
  0x85   :  { %8058 = vmatprep.subr.bf16.mxu0 %v9332_v58 }
  0x86   :  { %1353 = vmatpush1.bf16.msra.mxu1 %v9325_v59 }
  0x87   :  { %1354 = vmatprep.subr.bf16.mxu1 %v9686_v0  ;;  %6820 = vperm.xlu1 %9223, %v6810_v3  }
  0x88   :  { %8059 = vmatpush3.bf16.msra.mxu0 %v9333_v60 }
  0x8a   :  { %1355 = vmatpush1.bf16.msra.mxu1 %v9328_v63 }
  0x8b   :  { %1356 = vmatprep.subr.bf16.mxu1 %v9686_v0  ;;  %1328 = vmatmul.mubr.bf16.vlgmr.msra.gmra.mrb[24].mxu0 %v9885_v28  ;;  %v6811_v28 = vld [vmem:[%s11947_s15 + $0x10] sm:$0xff] }
  0x8c   :  { %1335 = vmatprep.mubr.bf16.mxu0 %v9940_v43  ;;  %6830 = vperm.xlu1 %9223, %v6812_v6   ;;  %v9335_v43 = vld [vmem:[%s11943_s3 + $0xc0] sm:$0xff]  }
  0x8d   :  { %6825 = vperm.xlu0 %9222, %v6811_v28  }
  0x8e   :  { %1357 = vmatpush1.bf16.msra.mxu1 %v9331_v2 }
  0x8f   :  { %1358 = vmatprep.subr.bf16.mxu1 %v9686_v0 }
  0x91   :  { %6908 = vperm.xlu0 %9222, %v6905_v7  }
  0x92   :  { %1359 = vmatpush1.bf16.msra.mxu1 %v9334_v5 }
  0x93   :  { %1360 = vmatprep.subr.bf16.mxu1 %v9686_v0  ;;  %1336 = vmatmul.mubr.bf16.gmra.mrb[28].mxu0 %v9945_v44 }
  0x96   :  { %1361 = vmatpush1.bf16.msra.mxu1 %v9335_v43 }
  0x99   :  { %1377 = vmatmul.mubr.bf16.vlgmr.msra.gmra.mrb[24].mxu1 %v9900_v32  ;;  %v9336_v32 = vld [vmem:[%s11949_s7] sm:$0xff]  }
  0x9a   :  { %7081 = vmatprep.mubr.msk.bf16.mxu1 %vm354_vm0, %v9950_v45  ;;  %8884 = vmatprep.mubr.msk.bf16.mxu0 %vm1667_vm1, %v9336_v32 }
  0xa0   :  { %v10269_v33 = vpop.permute.xlu0 %74 }
  0xa1   :  { %1385 = vmatmul.mubr.bf16.gmra.mrb[28].mxu1 %v9966_v48 }
  0xa3   :  { %v10271_v40 = vpop.permute.xlu1 %98 }
  0xa4   :  { %v10273_v22 = vpop.permute.xlu0 %79 }
  0xa8   :  { %v10277_v25 = vpop.permute.xlu1 %103 }
  0xb4   :  { %v10292_v6 = vpop.permute.xlu1 %89 }
  0xb7   :  { %v10280_v63 = vpop.permute.xlu0 %84 }
  0xfd   :  { %v7976_v8 = vpop.f32.mrb[0].mxu0 }
  0xfe   :  { %v7977_v9 = vpop.f32.mrb[1].mxu0 }
  0xff   :  { %v7978_v10 = vadd.f32 %v7977_v9, %v7976_v8  ;;  %v7979_v0 = vpop.f32.mrb[2].mxu0 }
 0x100   :  { %v7980_v11 = vpop.f32.mrb[3].mxu0  ;;  %v444_v44 = vpop.f32.mrb[0].mxu1 }
 0x101   :  { %v7981_v12 = vadd.f32 %v7980_v11, %v7979_v0  ;;  %v445_v13 = vadd.f32 %v7978_v10, %v444_v44  ;;  %v446_v14 = vpop.f32.mrb[1].mxu1 }
 0x102   :  { %v447_v15 = vpop.f32.mrb[2].mxu1 }
 0x103   :  { %v448_v16 = vadd.f32 %v7981_v12, %v447_v15  ;;  %v449_v17 = vpop.f32.mrb[3].mxu1  ;;  %v459_v39 = vmax.f32 %v445_v13, 0.0  ;;  %v10302_v15 = vpop.permute.xlu0 %108 }
 0x105   :  { %v7982_v45 = vpop.f32.mrb[4].mxu0  ;;  %v460_v41 = vmax.f32 %v448_v16, 0.0  ;;  %v463_v52 = vmul.f32 %v459_v39, %v10269_v33 }
 0x106   :  { %v7983_v48 = vpop.f32.mrb[5].mxu0 }
 0x107   :  { %v7984_v18 = vadd.f32 %v7983_v48, %v7982_v45  ;;  %v7985_v19 = vpop.f32.mrb[6].mxu0  ;;  %v464_v58 = vmul.f32 %v460_v41, %v10273_v22  ;;  %v10283_v1 = vadd.f32 %v463_v52, %v10271_v40  ;;  %v10306_v45 = vpop.permute.xlu1 %113 }
 0x108   :  { %v452_v20 = vpop.f32.mrb[4].mxu1  ;;  %v7986_v21 = vpop.f32.mrb[7].mxu0 }
 0x109   :  { %v453_v23 = vadd.f32 %v7984_v18, %v452_v20  ;;  %v7987_v24 = vadd.f32 %v7986_v21, %v7985_v19  ;;  %v454_v26 = vpop.f32.mrb[5].mxu1  ;;  %v10290_v5 = vadd.f32 %v464_v58, %v10277_v25 }
 0x10a   :  { %v455_v27 = vpop.f32.mrb[6].mxu1 }
 0x10b   :  { %v456_v29 = vadd.f32 %v7987_v24, %v455_v27  ;;  %v457_v30 = vpop.f32.mrb[7].mxu1  ;;  %v461_v2 = vmax.f32 %v453_v23, 0.0 }
 0x10d   :  { %v462_v43 = vmax.f32 %v456_v29, 0.0  ;;  %v465_v11 = vmul.f32 %v461_v2, %v10280_v63 }
 0x10f   :  { %v466_v16 = vmul.f32 %v462_v43, %v10292_v6  ;;  %v10309_v48 = vadd.f32 %v465_v11, %v10302_v15 }
 0x111   :  { %v10316_v20 = vadd.f32 %v466_v16, %v10306_v45 }
 0x11d   :  { %v8004_v31 = vpop.f32.mrb[8].mxu0 }
 0x11e   :  { %v8005_v34 = vpop.f32.mrb[9].mxu0 }
 0x11f   :  { %v8007_v35 = vpop.f32.mrb[10].mxu0  ;;  %v8006_v36 = vadd.f32 %v8005_v34, %v8004_v31 }
 0x120   :  { %v8008_v37 = vpop.f32.mrb[11].mxu0 }
 0x121   :  { %v8009_v38 = vadd.f32 %v8008_v37, %v8007_v35 }
 0x124   :  { %v754_v42 = vpop.f32.mrb[8].mxu1 }
 0x125   :  { %v755_v46 = vadd.f32 %v8006_v36, %v754_v42  ;;  %v756_v47 = vpop.f32.mrb[9].mxu1  ;;  %v8010_v49 = vpop.f32.mrb[12].mxu0 }
 0x126   :  { %v757_v50 = vpop.f32.mrb[10].mxu1  ;;  %v8011_v51 = vpop.f32.mrb[13].mxu0 }
 0x127   :  { %v769_v53 = vmax.f32 %v755_v46, 0.0  ;;  %v758_v54 = vadd.f32 %v8009_v38, %v757_v50  ;;  %v759_v55 = vpop.f32.mrb[11].mxu1  ;;  %v8013_v56 = vpop.f32.mrb[14].mxu0  ;;  %v8012_v57 = vadd.f32 %v8011_v51, %v8010_v49 }
 0x128   :  { %v8014_v59 = vpop.f32.mrb[15].mxu0 }
 0x129   :  { %v773_v60 = vmul.f32 %v769_v53, %v10269_v33  ;;  %v770_v61 = vmax.f32 %v758_v54, 0.0  ;;  %v8015_v62 = vadd.f32 %v8014_v59, %v8013_v56 }
 0x12b   :  { %v10286_v3 = vadd.f32 %v773_v60, %v10271_v40  ;;  %v774_v4 = vmul.f32 %v770_v61, %v10273_v22 }
 0x12c   :  { %v762_v28 = vpop.f32.mrb[12].mxu1 }
 0x12d   :  { %v781_v7 = vmax.f32 %v10283_v1, %v10286_v3  ;;  %v10297_v8 = vadd.f32 %v774_v4, %v10277_v25  ;;  %v763_v9 = vadd.f32 %v8012_v57, %v762_v28  ;;  %v764_v10 = vpop.f32.mrb[13].mxu1 }
 0x12e   :  { %v765_v0 = vpop.f32.mrb[14].mxu1 }
 0x12f   :  { %v782_v44 = vmax.f32 %v10290_v5, %v10297_v8  ;;  %v771_v12 = vmax.f32 %v763_v9, 0.0  ;;  %v766_v13 = vadd.f32 %v8015_v62, %v765_v0  ;;  %v767_v14 = vpop.f32.mrb[15].mxu1 }
 0x131   :  { %v775_v17 = vmul.f32 %v771_v12, %v10280_v63  ;;  %v772_v32 = vmax.f32 %v766_v13, 0.0 }
 0x133   :  { %v10312_v18 = vadd.f32 %v775_v17, %v10302_v15  ;;  %v776_v19 = vmul.f32 %v772_v32, %v10292_v6 }
 0x135   :  { %v783_v21 = vmax.f32 %v10309_v48, %v10312_v18  ;;  %v10321_v23 = vadd.f32 %v776_v19, %v10306_v45  ;;  %v9372_v48 = vld [vmem:[%s11950_s8 + $0x40] sm:$0xff]   ;;  %v9341_v18 = vld [vmem:[%s11949_s7 + $0x28] sm:$0xff]  }
 0x136   :  { %8110 = vmatprep.subr.bf16.mxu1 %v9372_v48 }
 0x137   :  { %v784_v24 = vmax.f32 %v10316_v20, %v10321_v23  ;;  %v9373_v20 = vld [vmem:[%s11950_s8] sm:$0xff]   ;;  %v9374_v23 = vld [vmem:[%s11950_s8 + $0x48] sm:$0xff]  }
 0x138   :  { %8111 = vmatpush3.bf16.msra.mxu1 %v9373_v20 }
 0x139   :  { %8112 = vmatprep.subr.bf16.mxu1 %v9374_v23 }
 0x13e   :  { %v8032_v26 = vpop.f32.mrb[16].mxu0 }
 0x13f   :  { %v8033_v27 = vpop.f32.mrb[17].mxu0 }
 0x140   :  { %v8034_v29 = vadd.f32 %v8033_v27, %v8032_v26  ;;  %v8035_v30 = vpop.f32.mrb[18].mxu0 }
 0x141   :  { %v8036_v31 = vpop.f32.mrb[19].mxu0 }
 0x142   :  { %v8037_v34 = vadd.f32 %v8036_v31, %v8035_v30 }
 0x146   :  { %v8038_v35 = vpop.f32.mrb[20].mxu0 }
 0x147   :  { %v8039_v36 = vpop.f32.mrb[21].mxu0 }
 0x148   :  { %v1068_v37 = vpop.f32.mrb[16].mxu1  ;;  %v8040_v38 = vadd.f32 %v8039_v36, %v8038_v35  ;;  %v8041_v39 = vpop.f32.mrb[22].mxu0 }
 0x149   :  { %v1069_v41 = vadd.f32 %v8034_v29, %v1068_v37  ;;  %v1070_v42 = vpop.f32.mrb[17].mxu1  ;;  %v8042_v46 = vpop.f32.mrb[23].mxu0 }
 0x14a   :  { %v1071_v47 = vpop.f32.mrb[18].mxu1  ;;  %v8043_v49 = vadd.f32 %v8042_v46, %v8041_v39 }
 0x14b   :  { %v1072_v50 = vadd.f32 %v8037_v34, %v1071_v47  ;;  %v1073_v51 = vpop.f32.mrb[19].mxu1  ;;  %v1083_v11 = vmax.f32 %v1069_v41, 0.0 }
 0x14d   :  { %v1084_v12 = vmax.f32 %v1072_v50, 0.0  ;;  %v1087_v32 = vmul.f32 %v1083_v11, %v10269_v33  ;;  %v9349_v11 = vld [vmem:[%s11949_s7 + $0x68] sm:$0xff]  }
 0x14f   :  { %v1088_v29 = vmul.f32 %v1084_v12, %v10273_v22  ;;  %v1091_v35 = vadd.f32 %v1087_v32, %v10271_v40  ;;  %v9350_v12 = vld [vmem:[%s11949_s7 + $0x70] sm:$0xff]   ;;  %v9355_v32 = vld [vmem:[%s11949_s7 + $0x98] sm:$0xff]  }
 0x150   :  { %v1076_v52 = vpop.f32.mrb[20].mxu1 }
 0x151   :  { %v1077_v53 = vadd.f32 %v8040_v38, %v1076_v52  ;;  %v1078_v54 = vpop.f32.mrb[21].mxu1  ;;  %v1092_v38 = vadd.f32 %v1088_v29, %v10277_v25  ;;  %v9359_v29 = vld [vmem:[%s11949_s7 + $0xb8] sm:$0xff]  }
 0x152   :  { %v1079_v55 = vpop.f32.mrb[22].mxu1 }
 0x153   :  { %v1080_v56 = vadd.f32 %v8043_v49, %v1079_v55  ;;  %v1081_v57 = vpop.f32.mrb[23].mxu1  ;;  %v1085_v34 = vmax.f32 %v1077_v53, 0.0 }
 0x155   :  { %v1086_v41 = vmax.f32 %v1080_v56, 0.0  ;;  %v1089_v50 = vmul.f32 %v1085_v34, %v10280_v63  ;;  %v9379_v34 = vld [vmem:[%s11950_s8 + $0x18] sm:$0xff]  }
 0x157   :  { %v1093_v57 = vadd.f32 %v1089_v50, %v10302_v15  ;;  %v9364_v50 = vld [vmem:[%s11949_s7 + $0xe0] sm:$0xff]  }
 0x15e   :  { %v8060_v58 = vpop.f32.mrb[24].mxu0 }
 0x15f   :  { %v8061_v59 = vpop.f32.mrb[25].mxu0 }
 0x160   :  { %v8062_v60 = vadd.f32 %v8061_v59, %v8060_v58  ;;  %v8063_v61 = vpop.f32.mrb[26].mxu0 }
 0x161   :  { %v8064_v62 = vpop.f32.mrb[27].mxu0 }
 0x162   :  { %v8065_v2 = vadd.f32 %v8064_v62, %v8063_v61  ;;  %v9376_v62 = vld [vmem:[%s11950_s8 + $0x50] sm:$0xff]  }
 0x166   :  { %v8066_v4 = vpop.f32.mrb[28].mxu0 }
 0x167   :  { %v8067_v28 = vpop.f32.mrb[29].mxu0 }
 0x168   :  { %v8068_v43 = vadd.f32 %v8067_v28, %v8066_v4  ;;  %v8069_v9 = vpop.f32.mrb[30].mxu0  ;;  %v9343_v4 = vld [vmem:[%s11949_s7 + $0x38] sm:$0xff]   ;;  %v9344_v28 = vld [vmem:[%s11949_s7 + $0x40] sm:$0xff]  }
 0x169   :  { %v8070_v10 = vpop.f32.mrb[31].mxu0 }
 0x16a   :  { %v8071_v0 = vadd.f32 %v8070_v10, %v8069_v9  ;;  %v9346_v9 = vld [vmem:[%s11949_s7 + $0x50] sm:$0xff]   ;;  %v9347_v10 = vld [vmem:[%s11949_s7 + $0x58] sm:$0xff]  }
 0x16c   :  { %v1378_v13 = vpop.f32.mrb[24].mxu1 }
 0x16d   :  { %v1379_v14 = vadd.f32 %v8062_v60, %v1378_v13  ;;  %v1380_v16 = vpop.f32.mrb[25].mxu1  ;;  %v9351_v13 = vld [vmem:[%s11949_s7 + $0x78] sm:$0xff]  }
 0x16e   :  { %v1381_v17 = vpop.f32.mrb[26].mxu1  ;;  %v9353_v16 = vld [vmem:[%s11949_s7 + $0x88] sm:$0xff]  }
 0x16f   :  { %v1393_v19 = vmax.f32 %v1379_v14, 0.0  ;;  %v1382_v26 = vadd.f32 %v8065_v2, %v1381_v17  ;;  %v1383_v27 = vpop.f32.mrb[27].mxu1  ;;  %v9377_v2 = vld [vmem:[%s11950_s8 + $0x10] sm:$0xff]   ;;  %v9352_v14 = vld [vmem:[%s11949_s7 + $0x80] sm:$0xff]  }
 0x170   :  { %v9354_v17 = vld [vmem:[%s11949_s7 + $0x90] sm:$0xff]  }
 0x171   :  { %v1397_v30 = vmul.f32 %v1393_v19, %v10269_v33  ;;  %v1394_v31 = vmax.f32 %v1382_v26, 0.0  ;;  %v9356_v19 = vld [vmem:[%s11949_s7 + $0xa0] sm:$0xff]   ;;  %v9357_v26 = vld [vmem:[%s11949_s7 + $0xa8] sm:$0xff]   ;;  %v9358_v27 = vld [vmem:[%s11949_s7 + $0xb0] sm:$0xff]  }
 0x173   :  { %v1401_v36 = vadd.f32 %v1397_v30, %v10271_v40  ;;  %v1398_v37 = vmul.f32 %v1394_v31, %v10273_v22  ;;  %v1090_v22 = vmul.f32 %v1086_v41, %v10292_v6  ;;  %v9360_v30 = vld [vmem:[%s11949_s7 + $0xc0] sm:$0xff]   ;;  %v9378_v31 = vld [vmem:[%s11950_s8 + $0x58] sm:$0xff]   ;;  %v9383_v41 = vld [vmem:[%s11950_s8 + $0x68] sm:$0xff]  }
 0x174   :  { %v1386_v39 = vpop.f32.mrb[28].mxu1 }
 0x175   :  { %v1405_v42 = vmax.f32 %v1091_v35, %v1401_v36  ;;  %v1402_v46 = vadd.f32 %v1398_v37, %v10277_v25  ;;  %v1387_v47 = vadd.f32 %v8068_v43, %v1386_v39  ;;  %v1388_v49 = vpop.f32.mrb[29].mxu1  ;;  %v1094_v61 = vadd.f32 %v1090_v22, %v10306_v45  ;;  %v9345_v43 = vld [vmem:[%s11949_s7 + $0x48] sm:$0xff]   ;;  %v9380_v35 = vld [vmem:[%s11950_s8 + $0x60] sm:$0xff]   ;;  %v9362_v39 = vld [vmem:[%s11949_s7 + $0xd0] sm:$0xff]  }
 0x176   :  { %v1389_v33 = vpop.f32.mrb[30].mxu1  ;;  %v9381_v36 = vld [vmem:[%s11950_s8 + $0x20] sm:$0xff]   ;;  %v9363_v49 = vld [vmem:[%s11949_s7 + $0xd8] sm:$0xff]  }
 0x177   :  { %v1406_v51 = vmax.f32 %v1092_v38, %v1402_v46  ;;  %v1395_v52 = vmax.f32 %v1387_v47, 0.0  ;;  %v1390_v53 = vadd.f32 %v8071_v0, %v1389_v33  ;;  %v1391_v54 = vpop.f32.mrb[31].mxu1  ;;  %v1409_v40 = vmax.f32 %v781_v7, %v1405_v42  ;;  %v9348_v0 = vld [vmem:[%s11949_s7 + $0x60] sm:$0xff]   ;;  %v9361_v38 = vld [vmem:[%s11949_s7 + $0xc8] sm:$0xff]   ;;  %v9385_v46 = vld [vmem:[%s11950_s8 + $0x70] sm:$0xff]  }
 0x178   :  { %v9382_v37 = vld [vmem:[%s11950_s8 + $0x200] sm:$0xff]   ;;  %v9384_v42 = vld [vmem:[%s11950_s8 + $0x28] sm:$0xff]   ;;  %v9386_v47 = vld [vmem:[%s11950_s8 + $0x30] sm:$0xff]  }
 0x179   :  { %v1399_v55 = vmul.f32 %v1395_v52, %v10280_v63  ;;  %v1396_v56 = vmax.f32 %v1390_v53, 0.0  ;;  %v1410_v25 = vmax.f32 %v782_v44, %v1406_v51  ;;  %v9338_v44 = vld [vmem:[%s11949_s7 + $0x10] sm:$0xff]   ;;  %v9387_v33 = vld [vmem:[%s11950_s8 + $0x78] sm:$0xff]   ;;  %v9389_v52 = vld [vmem:[%s11950_s8 + $0xc0] sm:$0xff]  }
 0x17a   :  { %v9388_v51 = vld [vmem:[%s11950_s8 + $0x38] sm:$0xff]   ;;  %v9365_v53 = vld [vmem:[%s11949_s7 + $0xe8] sm:$0xff]  }
 0x17b   :  { %v1403_v58 = vadd.f32 %v1399_v55, %v10302_v15  ;;  %v1400_v59 = vmul.f32 %v1396_v56, %v10292_v6  ;;  %v1413_v60 = vpack.c.bf16 %v1410_v25, %v1409_v40  ;;  %v9337_v6 = vld [vmem:[%s11949_s7 + $0x8] sm:$0xff]   ;;  %v9339_v15 = vld [vmem:[%s11949_s7 + $0x18] sm:$0xff]   ;;  %v9366_v40 = vld [vmem:[%s11949_s7 + $0xf0] sm:$0xff]  }
 0x17c   :  { %v9391_v54 = vld [vmem:[%s11950_s8 + $0x208] sm:$0xff]   ;;  %v9367_v22 = vld [vmem:[%s11949_s7 + $0xf8] sm:$0xff]   ;;  %v9368_v55 = vld [vmem:[%s11949_s7 + $0x100] sm:$0xff]  }
 0x17d   :  { %v1407_v1 = vmax.f32 %v1093_v57, %v1403_v58  ;;  %v1404_v3 = vadd.f32 %v1400_v59, %v10306_v45  ;;  %8880 = vmatprep.subr.bf16.mxu0 %v1413_v60  ;;  %v9340_v45 = vld [vmem:[%s11949_s7 + $0x20] sm:$0xff]   ;;  %v9369_v56 = vld [vmem:[%s11949_s7 + $0x108] sm:$0xff]   ;;  %v9370_v25 = vld [vmem:[%s11949_s7 + $0x110] sm:$0xff]  }
 0x17e   :  { %8881 = vmatpush3.bf16.msra.mxu0 %v1413_v60  ;;  %v9402_v57 = vld [vmem:[%s11950_s8 + $0x210] sm:$0xff]   ;;  %v9371_v58 = vld [vmem:[%s11949_s7 + $0x118] sm:$0xff]   ;;  %v9422_v60 = vld [vmem:[%s11950_s8 + $0x220] sm:$0xff]  }
 0x17f   :  { %v1408_v63 = vmax.f32 %v1094_v61, %v1404_v3  ;;  %v1411_v5 = vmax.f32 %v783_v21, %v1407_v1  ;;  %v9342_v21 = vld [vmem:[%s11949_s7 + $0x30] sm:$0xff]   ;;  %v9411_v59 = vld [vmem:[%s11950_s8 + $0x218] sm:$0xff]   ;;  %v9431_v61 = vld [vmem:[%s11950_s8 + $0x228] sm:$0xff]  }
 0x180   :  { %v9442_v1 = vld [vmem:[%s11950_s8 + $0x230] sm:$0xff]  }
 0x181   :  { %v1412_v7 = vmax.f32 %v784_v24, %v1408_v63  ;;  %v9375_v24 = vld [vmem:[%s11950_s8 + $0x8] sm:$0xff]  }
 0x182   :  { %8113 = vmatpush3.bf16.msra.mxu1 %v9375_v24 }
 0x183   :  { %v1414_v8 = vpack.c.bf16 %v1412_v7, %v1411_v5  ;;  %8114 = vmatprep.subr.bf16.mxu1 %v9376_v62  ;;  %v9449_v5 = vld [vmem:[%s11950_s8 + $0x238] sm:$0xff]  }
 0x185   :  { %8882 = vmatprep.subr.bf16.mxu0 %v1414_v8 }
 0x186   :  { %8883 = vmatpush3.bf16.msra.mxu0 %v1414_v8  ;;  %8115 = vmatpush3.bf16.msra.mxu1 %v9377_v2 }
 0x187   :  { %8116 = vmatprep.subr.bf16.mxu1 %v9378_v31  ;;  %8956 = vmatprep.subr.bf16.mxu0 %v9382_v37  ;;  %v9398_v31 = vld [vmem:[%s11950_s8 + $0xe0] sm:$0xff]  }
 0x189   :  { %8885 = vmatmul.mubr.msk.bf16.vlgmr.msra.gmra.mrb[32].mxu0 %vm1667_vm1, %v9337_v6 }
 0x18a   :  { %8888 = vmatprep.mubr.msk.bf16.mxu0 %vm1667_vm1, %v9338_v44  ;;  %8117 = vmatpush3.bf16.msra.mxu1 %v9379_v34 }
 0x18b   :  { %8118 = vmatprep.subr.bf16.mxu1 %v9380_v35  ;;  %8957 = vmatpush3.bf16.msra.mxu0 %v9382_v37 }
 0x18c   :  { %8958 = vmatprep.subr.bf16.mxu0 %v9391_v54 }
 0x18e   :  { %8119 = vmatpush3.bf16.msra.mxu1 %v9381_v36 }
 0x18f   :  { %8120 = vmatprep.subr.bf16.mxu1 %v9383_v41  ;;  %8959 = vmatpush3.bf16.msra.mxu0 %v9391_v54 }
 0x190   :  { %8960 = vmatprep.subr.bf16.mxu0 %v9402_v57 }
 0x191   :  { %8889 = vmatmul.mubr.msk.bf16.gmra.mrb[36].mxu0 %vm1667_vm1, %v9339_v15  ;;  %v9453_v15 = vld [vmem:[%s11950_s8 + $0x300] sm:$0xff]  }
 0x192   :  { %8892 = vmatprep.mubr.msk.bf16.mxu0 %vm1667_vm1, %v9340_v45  ;;  %8121 = vmatpush3.bf16.msra.mxu1 %v9384_v42  ;;  %v9401_v42 = vld [vmem:[%s11950_s8 + $0xa8] sm:$0xff]  }
 0x193   :  { %8122 = vmatprep.subr.bf16.mxu1 %v9385_v46  ;;  %8961 = vmatpush3.bf16.msra.mxu0 %v9402_v57 }
 0x194   :  { %8962 = vmatprep.subr.bf16.mxu0 %v9411_v59 }
 0x196   :  { %8123 = vmatpush3.bf16.msra.mxu1 %v9386_v47  ;;  %v9403_v47 = vld [vmem:[%s11950_s8 + $0xf0] sm:$0xff]  }
 0x197   :  { %8124 = vmatprep.subr.bf16.mxu1 %v9387_v33  ;;  %8963 = vmatpush3.bf16.msra.mxu0 %v9411_v59  ;;  %v9408_v59 = vld [vmem:[%s11950_s8 + $0x100] sm:$0xff]  }
 0x198   :  { %8964 = vmatprep.subr.bf16.mxu0 %v9422_v60 }
 0x199   :  { %8893 = vmatmul.mubr.msk.bf16.gmra.mrb[40].mxu0 %vm1667_vm1, %v9341_v18 }
 0x19a   :  { %8896 = vmatprep.mubr.msk.bf16.mxu0 %vm1667_vm1, %v9342_v21  ;;  %8125 = vmatpush3.bf16.msra.mxu1 %v9388_v51 }
 0x19b   :  { %8150 = vmatprep.subr.bf16.mxu1 %v9389_v52  ;;  %8965 = vmatpush3.bf16.msra.mxu0 %v9422_v60  ;;  %v9404_v52 = vld [vmem:[%s11950_s8 + $0xb0] sm:$0xff]   ;;  %v9409_v60 = vld [vmem:[%s11950_s8 + $0x148] sm:$0xff]  }
 0x19c   :  { %8966 = vmatprep.subr.bf16.mxu0 %v9431_v61 }
 0x19f   :  { %8967 = vmatpush3.bf16.msra.mxu0 %v9431_v61 }
 0x1a0   :  { %8968 = vmatprep.subr.bf16.mxu0 %v9442_v1 }
 0x1a1   :  { %8897 = vmatmul.mubr.msk.bf16.gmra.mrb[44].mxu0 %vm1667_vm1, %v9343_v4 }
 0x1a2   :  { %8900 = vmatprep.mubr.msk.bf16.mxu0 %vm1667_vm1, %v9344_v28 }
 0x1a3   :  { %8969 = vmatpush3.bf16.msra.mxu0 %v9442_v1  ;;  %v9410_v1 = vld [vmem:[%s11950_s8 + $0x108] sm:$0xff]  }
 0x1a4   :  { %8970 = vmatprep.subr.bf16.mxu0 %v9449_v5 }
 0x1a7   :  { %8971 = vmatpush3.bf16.msra.mxu0 %v9449_v5 }
 0x1a8   :  { %8322 = vmatprep.subr.bf16.mxu0 %v9453_v15 }
 0x1a9   :  { %8901 = vmatmul.mubr.msk.bf16.gmra.mrb[48].mxu0 %vm1667_vm1, %v9345_v43 }
 0x1aa   :  { %8904 = vmatprep.mubr.msk.bf16.mxu0 %vm1667_vm1, %v9346_v9  ;;  %v9390_v9 = vld [vmem:[%s11950_s8 + $0x80] sm:$0xff]  }
 0x1b1   :  { %8905 = vmatmul.mubr.msk.bf16.gmra.mrb[52].mxu0 %vm1667_vm1, %v9347_v10  ;;  %v9392_v10 = vld [vmem:[%s11950_s8 + $0xc8] sm:$0xff]  }
 0x1b2   :  { %8908 = vmatprep.mubr.msk.bf16.mxu0 %vm1667_vm1, %v9348_v0 }
 0x1b9   :  { %8909 = vmatmul.mubr.msk.bf16.gmra.mrb[56].mxu0 %vm1667_vm1, %v9349_v11  ;;  %v9393_v11 = vld [vmem:[%s11950_s8 + $0x88] sm:$0xff]  }
 0x1ba   :  { %8912 = vmatprep.mubr.msk.bf16.mxu0 %vm1667_vm1, %v9350_v12 }
 0x1c1   :  { %8913 = vmatmul.mubr.msk.bf16.gmra.mrb[60].mxu0 %vm1667_vm1, %v9351_v13  ;;  %v9394_v13 = vld [vmem:[%s11950_s8 + $0xd0] sm:$0xff]  }
 0x1c2   :  { %8916 = vmatprep.mubr.msk.bf16.mxu0 %vm1667_vm1, %v9352_v14 }
 0x1c9   :  { %8917 = vmatmul.mubr.msk.bf16.gmra.mrb[64].mxu0 %vm1667_vm1, %v9353_v16 }
 0x1ca   :  { %8920 = vmatprep.mubr.msk.bf16.mxu0 %vm1667_vm1, %v9354_v17 }
 0x1d1   :  { %8921 = vmatmul.mubr.msk.bf16.gmra.mrb[68].mxu0 %vm1667_vm1, %v9355_v32 }
 0x1d2   :  { %8924 = vmatprep.mubr.msk.bf16.mxu0 %vm1667_vm1, %v9356_v19  ;;  %v9395_v19 = vld [vmem:[%s11950_s8 + $0x90] sm:$0xff]  }
 0x1d9   :  { %8925 = vmatmul.mubr.msk.bf16.gmra.mrb[72].mxu0 %vm1667_vm1, %v9357_v26  ;;  %v9396_v26 = vld [vmem:[%s11950_s8 + $0xd8] sm:$0xff]  }
 0x1da   :  { %8928 = vmatprep.mubr.msk.bf16.mxu0 %vm1667_vm1, %v9358_v27 }
 0x1e1   :  { %8929 = vmatmul.mubr.msk.bf16.gmra.mrb[76].mxu0 %vm1667_vm1, %v9359_v29  ;;  %v9397_v29 = vld [vmem:[%s11950_s8 + $0x98] sm:$0xff]  }
 0x1e2   :  { %8932 = vmatprep.mubr.msk.bf16.mxu0 %vm1667_vm1, %v9360_v30 }
 0x1e9   :  { %8933 = vmatmul.mubr.msk.bf16.gmra.mrb[80].mxu0 %vm1667_vm1, %v9361_v38  ;;  %v9399_v38 = vld [vmem:[%s11950_s8 + $0xa0] sm:$0xff]  }
 0x1ea   :  { %8936 = vmatprep.mubr.msk.bf16.mxu0 %vm1667_vm1, %v9362_v39  ;;  %v9400_v39 = vld [vmem:[%s11950_s8 + $0xe8] sm:$0xff]  }
 0x1f1   :  { %8937 = vmatmul.mubr.msk.bf16.gmra.mrb[84].mxu0 %vm1667_vm1, %v9363_v49 }
 0x1f2   :  { %8940 = vmatprep.mubr.msk.bf16.mxu0 %vm1667_vm1, %v9364_v50 }
 0x1f9   :  { %8941 = vmatmul.mubr.msk.bf16.gmra.mrb[88].mxu0 %vm1667_vm1, %v9365_v53  ;;  %v9405_v53 = vld [vmem:[%s11950_s8 + $0xf8] sm:$0xff]  }
 0x1fa   :  { %8944 = vmatprep.mubr.msk.bf16.mxu0 %vm1667_vm1, %v9366_v40  ;;  %v9406_v40 = vld [vmem:[%s11950_s8 + $0xb8] sm:$0xff]  }
 0x201   :  { %8945 = vmatmul.mubr.msk.bf16.gmra.mrb[92].mxu0 %vm1667_vm1, %v9367_v22 }
 0x202   :  { %8948 = vmatprep.mubr.msk.bf16.mxu0 %vm1667_vm1, %v9368_v55  ;;  %v9407_v55 = vld [vmem:[%s11950_s8 + $0x140] sm:$0xff]  }
 0x209   :  { %8949 = vmatmul.mubr.msk.bf16.gmra.mrb[96].mxu0 %vm1667_vm1, %v9369_v56 }
 0x20a   :  { %8952 = vmatprep.mubr.msk.bf16.mxu0 %vm1667_vm1, %v9370_v25 }
 0x211   :  { %8953 = vmatmul.mubr.msk.bf16.gmra.mrb[100].mxu0 %vm1667_vm1, %v9371_v58 }
 0x25c   :  { %v8886_v3 = vpop.f32.mrb[32].mxu0 }
 0x25d   :  { %v1810_v63 = vpop.f32.mrb[33].mxu0 }
 0x25e   :  { %v8887_v7 = vpop.f32.mrb[34].mxu0 }
 0x25f   :  { %v10568_v8 = vpack.c.bf16 %v8887_v7, %v8886_v3  ;;  %v1813_v6 = vpop.f32.mrb[35].mxu0 }
 0x260   :  { %v10570_v44 = vpack.c.bf16 %v1813_v6, %v1810_v63  ;;  %v9412_v63 = vld [vmem:[%s11950_s8 + $0x150] sm:$0xff]  }
 0x264   :  { %v8890_v45 = vpop.f32.mrb[36].mxu0 }
 0x265   :  { %v1826_v48 = vpop.f32.mrb[37].mxu0 }
 0x266   :  { %v8891_v18 = vpop.f32.mrb[38].mxu0 }
 0x267   :  { %v10575_v20 = vpack.c.bf16 %v8891_v18, %v8890_v45  ;;  %v1829_v21 = vpop.f32.mrb[39].mxu0  ;;  %v9413_v45 = vld [vmem:[%s11950_s8 + $0x110] sm:$0xff]  }
 0x268   :  { %v10577_v23 = vpack.c.bf16 %v1829_v21, %v1826_v48  ;;  %v9414_v48 = vld [vmem:[%s11950_s8 + $0x158] sm:$0xff]  }
 0x269   :  { %v9415_v21 = vld [vmem:[%s11950_s8 + $0x118] sm:$0xff]  }
 0x26c   :  { %v8894_v24 = vpop.f32.mrb[40].mxu0 }
 0x26d   :  { %v1842_v62 = vpop.f32.mrb[41].mxu0 }
 0x26e   :  { %v8895_v2 = vpop.f32.mrb[42].mxu0 }
 0x26f   :  { %v10579_v4 = vpack.c.bf16 %v8895_v2, %v8894_v24  ;;  %v1845_v28 = vpop.f32.mrb[43].mxu0 }
 0x270   :  { %v10581_v43 = vpack.c.bf16 %v1845_v28, %v1842_v62  ;;  %v9416_v62 = vld [vmem:[%s11950_s8 + $0x160] sm:$0xff]  }
 0x272   :  { %2741 = vmatprep.mubr.bf16.mxu1 %v10581_v43 }
 0x273   :  { %2742 = vmatmul.mubr.bf16.vlgmr.msra.gmra.mrb[32].mxu1 %v10570_v44 }
 0x274   :  { %8151 = vmatpush3.bf16.msra.mxu1 %v9390_v9  ;;  %v8898_v0 = vpop.f32.mrb[44].mxu0  ;;  %2749 = vmatprep.mubr.bf16.mxu1 %v10579_v4 }
 0x275   :  { %v1858_v12 = vpop.f32.mrb[45].mxu0  ;;  %8152 = vmatprep.subr.bf16.mxu1 %v9392_v10 }
 0x276   :  { %v8899_v14 = vpop.f32.mrb[46].mxu0 }
 0x277   :  { %v10598_v16 = vpack.c.bf16 %v8899_v14, %v8898_v0  ;;  %v1861_v17 = vpop.f32.mrb[47].mxu0  ;;  %v9417_v0 = vld [vmem:[%s11950_s8 + $0x120] sm:$0xff]  }
 0x278   :  { %v10600_v32 = vpack.c.bf16 %v1861_v17, %v1858_v12  ;;  %8153 = vmatpush3.bf16.msra.mxu1 %v9393_v11  ;;  %v9418_v11 = vld [vmem:[%s11950_s8 + $0x168] sm:$0xff]   ;;  %v9420_v17 = vld [vmem:[%s11950_s8 + $0x170] sm:$0xff]  }
 0x279   :  { %8154 = vmatprep.subr.bf16.mxu1 %v9394_v13  ;;  %v9419_v13 = vld [vmem:[%s11950_s8 + $0x128] sm:$0xff]  }
 0x27b   :  { %2750 = vmatmul.mubr.bf16.gmra.mrb[36].mxu1 %v10568_v8 }
 0x27c   :  { %8155 = vmatpush3.bf16.msra.mxu1 %v9395_v19  ;;  %v8902_v27 = vpop.f32.mrb[48].mxu0  ;;  %2757 = vmatprep.mubr.bf16.mxu1 %v10600_v32 }
 0x27d   :  { %v1874_v30 = vpop.f32.mrb[49].mxu0  ;;  %8156 = vmatprep.subr.bf16.mxu1 %v9396_v26 }
 0x27e   :  { %v8903_v34 = vpop.f32.mrb[50].mxu0 }
 0x27f   :  { %v10616_v35 = vpack.c.bf16 %v8903_v34, %v8902_v27  ;;  %v1877_v36 = vpop.f32.mrb[51].mxu0 }
 0x280   :  { %v10618_v37 = vpack.c.bf16 %v1877_v36, %v1874_v30  ;;  %8157 = vmatpush3.bf16.msra.mxu1 %v9397_v29  ;;  %v9421_v30 = vld [vmem:[%s11950_s8 + $0x130] sm:$0xff]   ;;  %v9424_v36 = vld [vmem:[%s11950_s8 + $0x138] sm:$0xff]  }
 0x281   :  { %8158 = vmatprep.subr.bf16.mxu1 %v9398_v31  ;;  %v9423_v31 = vld [vmem:[%s11950_s8 + $0x178] sm:$0xff]  }
 0x283   :  { %2758 = vmatmul.mubr.bf16.gmra.mrb[40].mxu1 %v10577_v23 }
 0x284   :  { %8159 = vmatpush3.bf16.msra.mxu1 %v9399_v38  ;;  %v8906_v41 = vpop.f32.mrb[52].mxu0  ;;  %2765 = vmatprep.mubr.bf16.mxu1 %v10598_v16 }
 0x285   :  { %v1890_v46 = vpop.f32.mrb[53].mxu0  ;;  %8160 = vmatprep.subr.bf16.mxu1 %v9400_v39  ;;  %v9425_v39 = vld [vmem:[%s11950_s8 + $0x1c0] sm:$0xff]  }
 0x286   :  { %v8907_v49 = vpop.f32.mrb[54].mxu0 }
 0x287   :  { %v10634_v50 = vpack.c.bf16 %v8907_v49, %v8906_v41  ;;  %v1893_v33 = vpop.f32.mrb[55].mxu0  ;;  %v9426_v49 = vld [vmem:[%s11950_s8 + $0x180] sm:$0xff]  }
 0x288   :  { %v10636_v51 = vpack.c.bf16 %v1893_v33, %v1890_v46  ;;  %8161 = vmatpush3.bf16.msra.mxu1 %v9401_v42  ;;  %v9427_v33 = vld [vmem:[%s11950_s8 + $0x1c8] sm:$0xff]  }
 0x289   :  { %8162 = vmatprep.subr.bf16.mxu1 %v9403_v47 }
 0x28b   :  { %2766 = vmatmul.mubr.bf16.gmra.mrb[44].mxu1 %v10575_v20 }
 0x28c   :  { %8163 = vmatpush3.bf16.msra.mxu1 %v9404_v52  ;;  %v8910_v54 = vpop.f32.mrb[56].mxu0 }
 0x28d   :  { %v1906_v22 = vpop.f32.mrb[57].mxu0  ;;  %8164 = vmatprep.subr.bf16.mxu1 %v9405_v53  ;;  %v9428_v53 = vld [vmem:[%s11950_s8 + $0x188] sm:$0xff]  }
 0x28e   :  { %v8911_v56 = vpop.f32.mrb[58].mxu0 }
 0x28f   :  { %v10651_v25 = vpack.c.bf16 %v8911_v56, %v8910_v54  ;;  %v1909_v57 = vpop.f32.mrb[59].mxu0 }
 0x290   :  { %v10653_v58 = vpack.c.bf16 %v1909_v57, %v1906_v22  ;;  %8165 = vmatpush3.bf16.msra.mxu1 %v9406_v40  ;;  %v9429_v40 = vld [vmem:[%s11950_s8 + $0x1d0] sm:$0xff]  }
 0x291   :  { %8190 = vmatprep.subr.bf16.mxu1 %v9407_v55 }
 0x292   :  { %2806 = vmatprep.mubr.bf16.mxu1 %v10653_v58 }
 0x293   :  { %2807 = vmatmul.mubr.bf16.vlgmr.msra.gmra.mrb[48].mxu1 %v10618_v37 }
 0x294   :  { %8191 = vmatpush3.bf16.msra.mxu1 %v9408_v59  ;;  %v8914_v61 = vpop.f32.mrb[60].mxu0  ;;  %2814 = vmatprep.mubr.bf16.mxu1 %v10651_v25  ;;  %v9430_v59 = vld [vmem:[%s11950_s8 + $0x190] sm:$0xff]  }
 0x295   :  { %v1922_v3 = vpop.f32.mrb[61].mxu0  ;;  %8192 = vmatprep.subr.bf16.mxu1 %v9409_v60  ;;  %v9432_v60 = vld [vmem:[%s11950_s8 + $0x1d8] sm:$0xff]  }
 0x296   :  { %v8915_v5 = vpop.f32.mrb[62].mxu0 }
 0x297   :  { %v10670_v7 = vpack.c.bf16 %v8915_v5, %v8914_v61  ;;  %v1925_v6 = vpop.f32.mrb[63].mxu0 }
 0x298   :  { %v10672_v15 = vpack.c.bf16 %v1925_v6, %v1922_v3  ;;  %8193 = vmatpush3.bf16.msra.mxu1 %v9410_v1  ;;  %v9433_v1 = vld [vmem:[%s11950_s8 + $0x198] sm:$0xff]  }
 0x299   :  { %8194 = vmatprep.subr.bf16.mxu1 %v9412_v63  ;;  %v9434_v63 = vld [vmem:[%s11950_s8 + $0x1e0] sm:$0xff]  }
 0x29b   :  { %2815 = vmatmul.mubr.bf16.gmra.mrb[52].mxu1 %v10616_v35 }
 0x29c   :  { %8195 = vmatpush3.bf16.msra.mxu1 %v9413_v45  ;;  %v8918_v18 = vpop.f32.mrb[64].mxu0  ;;  %2822 = vmatprep.mubr.bf16.mxu1 %v10672_v15 }
 0x29d   :  { %v1938_v24 = vpop.f32.mrb[65].mxu0  ;;  %8196 = vmatprep.subr.bf16.mxu1 %v9414_v48 }
 0x29e   :  { %v8919_v2 = vpop.f32.mrb[66].mxu0 }
 0x29f   :  { %v10688_v28 = vpack.c.bf16 %v8919_v2, %v8918_v18  ;;  %v1941_v9 = vpop.f32.mrb[67].mxu0  ;;  %v9435_v18 = vld [vmem:[%s11950_s8 + $0x1a0] sm:$0xff]  }
 0x2a0   :  { %v10690_v10 = vpack.c.bf16 %v1941_v9, %v1938_v24  ;;  %8197 = vmatpush3.bf16.msra.mxu1 %v9415_v21  ;;  %v9436_v21 = vld [vmem:[%s11950_s8 + $0x1e8] sm:$0xff]   ;;  %v9438_v9 = vld [vmem:[%s11950_s8 + $0x1f0] sm:$0xff]  }
 0x2a1   :  { %8198 = vmatprep.subr.bf16.mxu1 %v9416_v62  ;;  %v9437_v62 = vld [vmem:[%s11950_s8 + $0x1a8] sm:$0xff]  }
 0x2a3   :  { %2823 = vmatmul.mubr.bf16.gmra.mrb[56].mxu1 %v10636_v51 }
 0x2a4   :  { %8199 = vmatpush3.bf16.msra.mxu1 %v9417_v0  ;;  %v8922_v12 = vpop.f32.mrb[68].mxu0  ;;  %2830 = vmatprep.mubr.bf16.mxu1 %v10670_v7 }
 0x2a5   :  { %v1954_v14 = vpop.f32.mrb[69].mxu0  ;;  %8200 = vmatprep.subr.bf16.mxu1 %v9418_v11 }
 0x2a6   :  { %v8923_v19 = vpop.f32.mrb[70].mxu0 }
 0x2a7   :  { %v10706_v26 = vpack.c.bf16 %v8923_v19, %v8922_v12  ;;  %v1957_v27 = vpop.f32.mrb[71].mxu0 }
 0x2a8   :  { %v10708_v29 = vpack.c.bf16 %v1957_v27, %v1954_v14  ;;  %8201 = vmatpush3.bf16.msra.mxu1 %v9419_v13  ;;  %v9439_v14 = vld [vmem:[%s11950_s8 + $0x1b0] sm:$0xff]   ;;  %v9441_v27 = vld [vmem:[%s11950_s8 + $0x1b8] sm:$0xff]  }
 0x2a9   :  { %8202 = vmatprep.subr.bf16.mxu1 %v9420_v17  ;;  %v9440_v17 = vld [vmem:[%s11950_s8 + $0x1f8] sm:$0xff]  }
 0x2ab   :  { %2831 = vmatmul.mubr.bf16.gmra.mrb[60].mxu1 %v10634_v50 }
 0x2ac   :  { %8203 = vmatpush3.bf16.msra.mxu1 %v9421_v30  ;;  %v8926_v34 = vpop.f32.mrb[72].mxu0 }
 0x2ad   :  { %v1970_v38 = vpop.f32.mrb[73].mxu0  ;;  %8204 = vmatprep.subr.bf16.mxu1 %v9423_v31  ;;  %v9443_v31 = vld [vmem:[%s11950_s8 + $0x280] sm:$0xff]  }
 0x2ae   :  { %v8927_v41 = vpop.f32.mrb[74].mxu0 }
 0x2af   :  { %v10723_v42 = vpack.c.bf16 %v8927_v41, %v8926_v34  ;;  %v1973_v46 = vpop.f32.mrb[75].mxu0  ;;  %v9444_v41 = vld [vmem:[%s11950_s8 + $0x240] sm:$0xff]  }
 0x2b0   :  { %v10725_v47 = vpack.c.bf16 %v1973_v46, %v1970_v38  ;;  %8205 = vmatpush3.bf16.msra.mxu1 %v9424_v36  ;;  %v9445_v46 = vld [vmem:[%s11950_s8 + $0x288] sm:$0xff]  }
 0x2b1   :  { %8230 = vmatprep.subr.bf16.mxu1 %v9425_v39 }
 0x2b2   :  { %2871 = vmatprep.mubr.bf16.mxu1 %v10725_v47 }
 0x2b3   :  { %2872 = vmatmul.mubr.bf16.vlgmr.msra.gmra.mrb[64].mxu1 %v10690_v10 }
 0x2b4   :  { %8231 = vmatpush3.bf16.msra.mxu1 %v9426_v49  ;;  %v8930_v52 = vpop.f32.mrb[76].mxu0  ;;  %2879 = vmatprep.mubr.bf16.mxu1 %v10723_v42 }
 0x2b5   :  { %v1986_v54 = vpop.f32.mrb[77].mxu0  ;;  %8232 = vmatprep.subr.bf16.mxu1 %v9427_v33  ;;  %v9446_v33 = vld [vmem:[%s11950_s8 + $0x248] sm:$0xff]  }
 0x2b6   :  { %v8931_v22 = vpop.f32.mrb[78].mxu0 }
 0x2b7   :  { %v10742_v55 = vpack.c.bf16 %v8931_v22, %v8930_v52  ;;  %v1989_v56 = vpop.f32.mrb[79].mxu0 }
 0x2b8   :  { %v10744_v57 = vpack.c.bf16 %v1989_v56, %v1986_v54  ;;  %8233 = vmatpush3.bf16.msra.mxu1 %v9428_v53  ;;  %v9447_v53 = vld [vmem:[%s11950_s8 + $0x290] sm:$0xff]  }
 0x2b9   :  { %8234 = vmatprep.subr.bf16.mxu1 %v9429_v40 }
 0x2bb   :  { %2880 = vmatmul.mubr.bf16.gmra.mrb[68].mxu1 %v10688_v28 }
 0x2bc   :  { %8235 = vmatpush3.bf16.msra.mxu1 %v9430_v59  ;;  %v8934_v61 = vpop.f32.mrb[80].mxu0  ;;  %2887 = vmatprep.mubr.bf16.mxu1 %v10744_v57  ;;  %v9448_v59 = vld [vmem:[%s11950_s8 + $0x250] sm:$0xff]  }
 0x2bd   :  { %v2002_v3 = vpop.f32.mrb[81].mxu0  ;;  %8236 = vmatprep.subr.bf16.mxu1 %v9432_v60  ;;  %v9450_v60 = vld [vmem:[%s11950_s8 + $0x298] sm:$0xff]  }
 0x2be   :  { %v8935_v5 = vpop.f32.mrb[82].mxu0 }
 0x2bf   :  { %v10760_v6 = vpack.c.bf16 %v8935_v5, %v8934_v61  ;;  %v2005_v45 = vpop.f32.mrb[83].mxu0 }
 0x2c0   :  { %v10762_v48 = vpack.c.bf16 %v2005_v45, %v2002_v3  ;;  %8237 = vmatpush3.bf16.msra.mxu1 %v9433_v1  ;;  %v9451_v1 = vld [vmem:[%s11950_s8 + $0x258] sm:$0xff]  }
 0x2c1   :  { %8238 = vmatprep.subr.bf16.mxu1 %v9434_v63  ;;  %v9452_v63 = vld [vmem:[%s11950_s8 + $0x2a0] sm:$0xff]  }
 0x2c3   :  { %2888 = vmatmul.mubr.bf16.gmra.mrb[72].mxu1 %v10708_v29 }
 0x2c4   :  { %8239 = vmatpush3.bf16.msra.mxu1 %v9435_v18  ;;  %v8938_v24 = vpop.f32.mrb[84].mxu0  ;;  %2895 = vmatprep.mubr.bf16.mxu1 %v10742_v55 }
 0x2c5   :  { %v2018_v2 = vpop.f32.mrb[85].mxu0  ;;  %8240 = vmatprep.subr.bf16.mxu1 %v9436_v21 }
 0x2c6   :  { %v8939_v0 = vpop.f32.mrb[86].mxu0 }
 0x2c7   :  { %v10778_v11 = vpack.c.bf16 %v8939_v0, %v8938_v24  ;;  %v2021_v12 = vpop.f32.mrb[87].mxu0  ;;  %v9454_v24 = vld [vmem:[%s11950_s8 + $0x260] sm:$0xff]  }
 0x2c8   :  { %v10780_v13 = vpack.c.bf16 %v2021_v12, %v2018_v2  ;;  %8241 = vmatpush3.bf16.msra.mxu1 %v9437_v62  ;;  %v9455_v62 = vld [vmem:[%s11950_s8 + $0x2c0] sm:$0xff]   ;;  %v9456_v2 = vld [vmem:[%s11950_s8 + $0x2a8] sm:$0xff]  }
 0x2c9   :  { %8242 = vmatprep.subr.bf16.mxu1 %v9438_v9  ;;  %v9457_v9 = vld [vmem:[%s11950_s8 + $0x308] sm:$0xff]  }
 0x2ca   :  { %v9458_v12 = vld [vmem:[%s11950_s8 + $0x268] sm:$0xff]  }
 0x2cb   :  { %2896 = vmatmul.mubr.bf16.gmra.mrb[76].mxu1 %v10706_v26 }
 0x2cc   :  { %8243 = vmatpush3.bf16.msra.mxu1 %v9439_v14  ;;  %v8942_v19 = vpop.f32.mrb[88].mxu0  ;;  %v9459_v14 = vld [vmem:[%s11950_s8 + $0x2c8] sm:$0xff]  }
 0x2cd   :  { %v2034_v30 = vpop.f32.mrb[89].mxu0  ;;  %8244 = vmatprep.subr.bf16.mxu1 %v9440_v17 }
 0x2ce   :  { %v8943_v34 = vpop.f32.mrb[90].mxu0 }
 0x2cf   :  { %v10795_v36 = vpack.c.bf16 %v8943_v34, %v8942_v19  ;;  %v2037_v38 = vpop.f32.mrb[91].mxu0  ;;  %v9460_v19 = vld [vmem:[%s11950_s8 + $0x2b0] sm:$0xff]  }
 0x2d0   :  { %v10797_v39 = vpack.c.bf16 %v2037_v38, %v2034_v30  ;;  %8245 = vmatpush3.bf16.msra.mxu1 %v9441_v27  ;;  %v9461_v27 = vld [vmem:[%s11950_s8 + $0x310] sm:$0xff]  }
 0x2d1   :  { %8282 = vmatprep.subr.bf16.mxu1 %v9443_v31 }
 0x2d2   :  { %2936 = vmatprep.mubr.bf16.mxu1 %v10797_v39 }
 0x2d3   :  { %2937 = vmatmul.mubr.bf16.vlgmr.msra.gmra.mrb[80].mxu1 %v10762_v48 }
 0x2d4   :  { %8283 = vmatpush3.bf16.msra.mxu1 %v9444_v41  ;;  %v8946_v49 = vpop.f32.mrb[92].mxu0  ;;  %2944 = vmatprep.mubr.bf16.mxu1 %v10795_v36  ;;  %v9462_v41 = vld [vmem:[%s11950_s8 + $0x270] sm:$0xff]  }
 0x2d5   :  { %v2050_v52 = vpop.f32.mrb[93].mxu0  ;;  %8284 = vmatprep.subr.bf16.mxu1 %v9445_v46  ;;  %v9463_v46 = vld [vmem:[%s11950_s8 + $0x2d0] sm:$0xff]  }
 0x2d6   :  { %v8947_v54 = vpop.f32.mrb[94].mxu0 }
 0x2d7   :  { %v10814_v40 = vpack.c.bf16 %v8947_v54, %v8946_v49  ;;  %v2053_v22 = vpop.f32.mrb[95].mxu0  ;;  %v9464_v49 = vld [vmem:[%s11950_s8 + $0x2b8] sm:$0xff]   ;;  %v9468_v54 = vld [vmem:[%s11950_s8 + $0x320] sm:$0xff]  }
 0x2d8   :  { %v10816_v56 = vpack.c.bf16 %v2053_v22, %v2050_v52  ;;  %8285 = vmatpush3.bf16.msra.mxu1 %v9446_v33  ;;  %v9465_v33 = vld [vmem:[%s11950_s8 + $0x318] sm:$0xff]   ;;  %v9469_v22 = vld [vmem:[%s11950_s8 + $0x380] sm:$0xff]  }
 0x2d9   :  { %8286 = vmatprep.subr.bf16.mxu1 %v9447_v53  ;;  %v9466_v52 = vld [vmem:[%s11950_s8 + $0x278] sm:$0xff]  }
 0x2da   :  { %v9467_v53 = vld [vmem:[%s11950_s8 + $0x2d8] sm:$0xff]  }
 0x2db   :  { %2945 = vmatmul.mubr.bf16.gmra.mrb[84].mxu1 %v10760_v6 }
 0x2dc   :  { %8287 = vmatpush3.bf16.msra.mxu1 %v9448_v59  ;;  %v8950_v61 = vpop.f32.mrb[96].mxu0  ;;  %2952 = vmatprep.mubr.bf16.mxu1 %v10816_v56  ;;  %v9470_v59 = vld [vmem:[%s11950_s8 + $0x2e0] sm:$0xff]  }
 0x2dd   :  { %v2066_v3 = vpop.f32.mrb[97].mxu0  ;;  %8288 = vmatprep.subr.bf16.mxu1 %v9450_v60  ;;  %v9471_v60 = vld [vmem:[%s11950_s8 + $0x340] sm:$0xff]  }
 0x2de   :  { %v8951_v5 = vpop.f32.mrb[98].mxu0 }
 0x2df   :  { %v10832_v45 = vpack.c.bf16 %v8951_v5, %v8950_v61  ;;  %v2069_v18 = vpop.f32.mrb[99].mxu0  ;;  %v9472_v61 = vld [vmem:[%s11950_s8 + $0x328] sm:$0xff]   ;;  %v9476_v5 = vld [vmem:[%s11950_s8 + $0x330] sm:$0xff]  }
 0x2e0   :  { %v10834_v21 = vpack.c.bf16 %v2069_v18, %v2066_v3  ;;  %8289 = vmatpush3.bf16.msra.mxu1 %v9451_v1  ;;  %v9473_v1 = vld [vmem:[%s11950_s8 + $0x388] sm:$0xff]   ;;  %v9477_v18 = vld [vmem:[%s11950_s8 + $0x390] sm:$0xff]  }
 0x2e1   :  { %8290 = vmatprep.subr.bf16.mxu1 %v9452_v63  ;;  %v9474_v3 = vld [vmem:[%s11950_s8 + $0x2e8] sm:$0xff]  }
 0x2e2   :  { %8972 = vmatprep.mubr.bf16.mxu0 %v10834_v21  ;;  %v9475_v63 = vld [vmem:[%s11950_s8 + $0x348] sm:$0xff]  }
 0x2e3   :  { %2953 = vmatmul.mubr.bf16.gmra.mrb[88].mxu1 %v10780_v13  ;;  %8973 = vmatmul.mubr.bf16.vlgmr.msra.gmra.mrb[104].mxu0 %v10832_v45 }
 0x2e4   :  { %8291 = vmatpush3.bf16.msra.mxu1 %v9454_v24  ;;  %8323 = vmatpush3.bf16.msra.mxu0 %v9455_v62  ;;  %v8954_v0 = vpop.f32.mrb[100].mxu0  ;;  %v9478_v24 = vld [vmem:[%s11950_s8 + $0x2f0] sm:$0xff]  }
 0x2e5   :  { %2960 = vmatprep.mubr.bf16.mxu1 %v10814_v40  ;;  %v2082_v17 = vpop.f32.mrb[101].mxu0  ;;  %8292 = vmatprep.subr.bf16.mxu1 %v9456_v2  ;;  %v9479_v62 = vld [vmem:[%s11950_s8 + $0x350] sm:$0xff]   ;;  %v9480_v2 = vld [vmem:[%s11950_s8 + $0x338] sm:$0xff]  }
 0x2e6   :  { %v8955_v30 = vpop.f32.mrb[102].mxu0  ;;  %8324 = vmatprep.subr.bf16.mxu0 %v9457_v9  ;;  %v9481_v9 = vld [vmem:[%s11950_s8 + $0x398] sm:$0xff]  }
 0x2e7   :  { %v10864_v31 = vpack.c.bf16 %v8955_v30, %v8954_v0  ;;  %v2085_v34 = vpop.f32.mrb[103].mxu0  ;;  %v9482_v0 = vld [vmem:[%s11950_s8 + $0x2f8] sm:$0xff]   ;;  %v9488_v30 = vld [vmem:[%s11950_s8 + $0x3a8] sm:$0xff]  }
 0x2e8   :  { %v10866_v38 = vpack.c.bf16 %v2085_v34, %v2082_v17  ;;  %8293 = vmatpush3.bf16.msra.mxu1 %v9458_v12  ;;  %8325 = vmatpush3.bf16.msra.mxu0 %v9459_v14  ;;  %v9483_v12 = vld [vmem:[%s11950_s8 + $0x358] sm:$0xff]   ;;  %v9484_v14 = vld [vmem:[%s11950_s8 + $0x3a0] sm:$0xff]   ;;  %v9489_v34 = vld [vmem:[%s11950_s8 + $0x408] sm:$0xff]  }
 0x2e9   :  { %8294 = vmatprep.subr.bf16.mxu1 %v9460_v19  ;;  %8326 = vmatprep.subr.bf16.mxu0 %v9461_v27  ;;  %v9485_v17 = vld [vmem:[%s11950_s8 + $0x400] sm:$0xff]  }
 0x2ea   :  { %8976 = vmatprep.mubr.bf16.mxu0 %v10866_v38  ;;  %v9486_v19 = vld [vmem:[%s11950_s8 + $0x360] sm:$0xff]  }
 0x2eb   :  { %2961 = vmatmul.mubr.bf16.gmra.mrb[92].mxu1 %v10778_v11  ;;  %8977 = vmatmul.mubr.bf16.gmra.mrb[108].mxu0 %v10864_v31  ;;  %v9487_v27 = vld [vmem:[%s11950_s8 + $0x3c0] sm:$0xff]  }
 0x2ec   :  { %8295 = vmatpush3.bf16.msra.mxu1 %v9462_v41  ;;  %8327 = vmatpush3.bf16.msra.mxu0 %v9463_v46  ;;  %v9490_v41 = vld [vmem:[%s11950_s8 + $0x368] sm:$0xff]  }
 0x2ed   :  { %3643 = vmatprep.mubr.bf16.mxu1 %v10581_v43  ;;  %3708 = vmatprep.mubr.bf16.mxu0 %v10653_v58  ;;  %v9491_v46 = vld [vmem:[%s11950_s8 + $0x3c8] sm:$0xff]  }
 0x2ee   :  { %8296 = vmatprep.subr.bf16.mxu1 %v9464_v49  ;;  %8328 = vmatprep.subr.bf16.mxu0 %v9465_v33  ;;  %v9492_v49 = vld [vmem:[%s11950_s8 + $0x3b0] sm:$0xff]  }
 0x2ef   :  { %v9493_v33 = vld [vmem:[%s11950_s8 + $0x410] sm:$0xff]  }
 0x2f0   :  { %8297 = vmatpush3.bf16.msra.mxu1 %v9466_v52  ;;  %8329 = vmatpush3.bf16.msra.mxu0 %v9467_v53  ;;  %v9494_v52 = vld [vmem:[%s11950_s8 + $0x370] sm:$0xff]  }
 0x2f1   :  { %8330 = vmatprep.subr.bf16.mxu0 %v9468_v54  ;;  %8362 = vmatprep.subr.bf16.mxu1 %v9469_v22  ;;  %v9495_v53 = vld [vmem:[%s11950_s8 + $0x3d0] sm:$0xff]   ;;  %v9496_v54 = vld [vmem:[%s11950_s8 + $0x3b8] sm:$0xff]  }
 0x2f2   :  { %v9497_v22 = vld [vmem:[%s11950_s8 + $0x418] sm:$0xff]  }
 0x2f3   :  { %3644 = vmatmul.mubr.bf16.vlgmr.msra.gmra.mrb[96].mxu1 %v10570_v44 }
 0x2f4   :  { %8331 = vmatpush3.bf16.msra.mxu0 %v9470_v59  ;;  %8363 = vmatpush3.bf16.msra.mxu1 %v9471_v60  ;;  %v9498_v59 = vld [vmem:[%s11950_s8 + $0x378] sm:$0xff]  }
 0x2f5   :  { %3651 = vmatprep.mubr.bf16.mxu1 %v10579_v4  ;;  %8332 = vmatprep.subr.bf16.mxu0 %v9472_v61  ;;  %v9499_v60 = vld [vmem:[%s11950_s8 + $0x3d8] sm:$0xff]   ;;  %v9501_v61 = vld [vmem:[%s11950_s8 + $0x440] sm:$0xff]  }
 0x2f6   :  { %8364 = vmatprep.subr.bf16.mxu1 %v9473_v1  ;;  %v9500_v1 = vld [vmem:[%s11950_s8 + $0x420] sm:$0xff]  }
 0x2f8   :  { %8333 = vmatpush3.bf16.msra.mxu0 %v9474_v3  ;;  %8365 = vmatpush3.bf16.msra.mxu1 %v9475_v63  ;;  %v9502_v3 = vld [vmem:[%s11950_s8 + $0x3e0] sm:$0xff]   ;;  %v9503_v63 = vld [vmem:[%s11950_s8 + $0x428] sm:$0xff]  }
 0x2f9   :  { %8334 = vmatprep.subr.bf16.mxu0 %v9476_v5  ;;  %8366 = vmatprep.subr.bf16.mxu1 %v9477_v18  ;;  %v9504_v5 = vld [vmem:[%s11950_s8 + $0x448] sm:$0xff]  }
 0x2fa   :  { %v9505_v18 = vld [vmem:[%s11950_s8 + $0x3e8] sm:$0xff]  }
 0x2fb   :  { %3652 = vmatmul.mubr.bf16.gmra.mrb[100].mxu1 %v10568_v8 }
 0x2fc   :  { %8335 = vmatpush3.bf16.msra.mxu0 %v9478_v24  ;;  %8367 = vmatpush3.bf16.msra.mxu1 %v9479_v62  ;;  %v9507_v24 = vld [vmem:[%s11950_s8 + $0x450] sm:$0xff]  }
 0x2fd   :  { %3659 = vmatprep.mubr.bf16.mxu1 %v10600_v32  ;;  %8336 = vmatprep.subr.bf16.mxu0 %v9480_v2  ;;  %v9506_v62 = vld [vmem:[%s11950_s8 + $0x430] sm:$0xff]  }
 0x2fe   :  { %8368 = vmatprep.subr.bf16.mxu1 %v9481_v9  ;;  %v9508_v2 = vld [vmem:[%s11950_s8 + $0x3f0] sm:$0xff]   ;;  %v9509_v9 = vld [vmem:[%s11950_s8 + $0x438] sm:$0xff]  }
 0x300   :  { %8337 = vmatpush3.bf16.msra.mxu0 %v9482_v0  ;;  %8369 = vmatpush3.bf16.msra.mxu1 %v9483_v12  ;;  %v9510_v0 = vld [vmem:[%s11950_s8 + $0x458] sm:$0xff]  }
 0x301   :  { %8370 = vmatprep.subr.bf16.mxu1 %v9484_v14  ;;  %8402 = vmatprep.subr.bf16.mxu0 %v9485_v17  ;;  %v9511_v12 = vld [vmem:[%s11950_s8 + $0x3f8] sm:$0xff]   ;;  %v9512_v14 = vld [vmem:[%s11950_s8 + $0x460] sm:$0xff]  }
 0x302   :  { %v9513_v17 = vld [vmem:[%s11950_s8 + $0x4c0] sm:$0xff]  }
 0x303   :  { %3709 = vmatmul.mubr.bf16.vlgmr.msra.gmra.mrb[112].mxu0 %v10618_v37  ;;  %3660 = vmatmul.mubr.bf16.gmra.mrb[104].mxu1 %v10577_v23 }
 0x304   :  { %3716 = vmatprep.mubr.bf16.mxu0 %v10651_v25  ;;  %8371 = vmatpush3.bf16.msra.mxu1 %v9486_v19  ;;  %v9514_v19 = vld [vmem:[%s11950_s8 + $0x480] sm:$0xff]  }
 0x305   :  { %8403 = vmatpush3.bf16.msra.mxu0 %v9487_v27  ;;  %3667 = vmatprep.mubr.bf16.mxu1 %v10598_v16  ;;  %v9515_v27 = vld [vmem:[%s11950_s8 + $0x468] sm:$0xff]  }
 0x306   :  { %8372 = vmatprep.subr.bf16.mxu1 %v9488_v30  ;;  %8404 = vmatprep.subr.bf16.mxu0 %v9489_v34  ;;  %v9516_v30 = vld [vmem:[%s11950_s8 + $0x4c8] sm:$0xff]  }
 0x307   :  { %v9517_v34 = vld [vmem:[%s11950_s8 + $0x488] sm:$0xff]  }
 0x308   :  { %8373 = vmatpush3.bf16.msra.mxu1 %v9490_v41  ;;  %v9518_v41 = vld [vmem:[%s11950_s8 + $0x470] sm:$0xff]  }
 0x309   :  { %8405 = vmatpush3.bf16.msra.mxu0 %v9491_v46  ;;  %8374 = vmatprep.subr.bf16.mxu1 %v9492_v49  ;;  %v9519_v46 = vld [vmem:[%s11950_s8 + $0x4d0] sm:$0xff]  }
 0x30a   :  { %8406 = vmatprep.subr.bf16.mxu0 %v9493_v33  ;;  %v9520_v49 = vld [vmem:[%s11950_s8 + $0x490] sm:$0xff]   ;;  %v9521_v33 = vld [vmem:[%s11950_s8 + $0x478] sm:$0xff]  }
 0x30b   :  { %3717 = vmatmul.mubr.bf16.gmra.mrb[116].mxu0 %v10616_v35  ;;  %3668 = vmatmul.mubr.bf16.gmra.mrb[108].mxu1 %v10575_v20 }
 0x30c   :  { %3724 = vmatprep.mubr.bf16.mxu0 %v10672_v15  ;;  %8375 = vmatpush3.bf16.msra.mxu1 %v9494_v52  ;;  %v9522_v52 = vld [vmem:[%s11950_s8 + $0x4d8] sm:$0xff]  }
 0x30d   :  { %8407 = vmatpush3.bf16.msra.mxu0 %v9495_v53  ;;  %3773 = vmatprep.mubr.bf16.mxu1 %v10725_v47  ;;  %v9523_v53 = vld [vmem:[%s11950_s8 + $0x498] sm:$0xff]  }
 0x30e   :  { %8376 = vmatprep.subr.bf16.mxu1 %v9496_v54  ;;  %8408 = vmatprep.subr.bf16.mxu0 %v9497_v22  ;;  %v9525_v54 = vld [vmem:[%s11950_s8 + $0x540] sm:$0xff]  }
 0x30f   :  { %v9524_v22 = vld [vmem:[%s11950_s8 + $0x4e0] sm:$0xff]  }
 0x310   :  { %8377 = vmatpush3.bf16.msra.mxu1 %v9498_v59  ;;  %v9527_v59 = vld [vmem:[%s11950_s8 + $0x500] sm:$0xff]  }
 0x311   :  { %8409 = vmatpush3.bf16.msra.mxu0 %v9499_v60  ;;  %8980 = vmatprep.subr.bf16.mxu1 %v9501_v61  ;;  %v9526_v60 = vld [vmem:[%s11950_s8 + $0x4a0] sm:$0xff]  }
 0x312   :  { %8410 = vmatprep.subr.bf16.mxu0 %v9500_v1  ;;  %v9529_v1 = vld [vmem:[%s11950_s8 + $0x548] sm:$0xff]  }
 0x313   :  { %3725 = vmatmul.mubr.bf16.gmra.mrb[120].mxu0 %v10636_v51  ;;  %3774 = vmatmul.mubr.bf16.vlgmr.msra.gmra.mrb[112].mxu1 %v10690_v10 }
 0x314   :  { %3732 = vmatprep.mubr.bf16.mxu0 %v10670_v7  ;;  %8981 = vmatpush3.bf16.msra.mxu1 %v9501_v61  ;;  %v9528_v61 = vld [vmem:[%s11950_s8 + $0x4e8] sm:$0xff]  }
 0x315   :  { %8411 = vmatpush3.bf16.msra.mxu0 %v9502_v3  ;;  %3781 = vmatprep.mubr.bf16.mxu1 %v10723_v42  ;;  %v9531_v3 = vld [vmem:[%s11950_s8 + $0x508] sm:$0xff]  }
 0x316   :  { %8412 = vmatprep.subr.bf16.mxu0 %v9503_v63  ;;  %8982 = vmatprep.subr.bf16.mxu1 %v9504_v5  ;;  %v9530_v63 = vld [vmem:[%s11950_s8 + $0x4a8] sm:$0xff]  }
 0x318   :  { %8983 = vmatpush3.bf16.msra.mxu1 %v9504_v5  ;;  %v9533_v5 = vld [vmem:[%s11950_s8 + $0x550] sm:$0xff]  }
 0x319   :  { %8413 = vmatpush3.bf16.msra.mxu0 %v9505_v18  ;;  %8984 = vmatprep.subr.bf16.mxu1 %v9507_v24  ;;  %v9532_v18 = vld [vmem:[%s11950_s8 + $0x4f0] sm:$0xff]  }
 0x31a   :  { %8414 = vmatprep.subr.bf16.mxu0 %v9506_v62  ;;  %v9534_v62 = vld [vmem:[%s11950_s8 + $0x4b0] sm:$0xff]  }
 0x31b   :  { %3733 = vmatmul.mubr.bf16.gmra.mrb[124].mxu0 %v10634_v50  ;;  %3782 = vmatmul.mubr.bf16.gmra.mrb[116].mxu1 %v10688_v28 }
 0x31c   :  { %3838 = vmatprep.mubr.bf16.mxu0 %v10797_v39  ;;  %8985 = vmatpush3.bf16.msra.mxu1 %v9507_v24  ;;  %v9535_v24 = vld [vmem:[%s11950_s8 + $0x510] sm:$0xff]  }
 0x31d   :  { %8415 = vmatpush3.bf16.msra.mxu0 %v9508_v2  ;;  %3789 = vmatprep.mubr.bf16.mxu1 %v10744_v57  ;;  %v9536_v2 = vld [vmem:[%s11950_s8 + $0x4f8] sm:$0xff]  }
 0x31e   :  { %8416 = vmatprep.subr.bf16.mxu0 %v9509_v9  ;;  %8986 = vmatprep.subr.bf16.mxu1 %v9510_v0  ;;  %v9537_v9 = vld [vmem:[%s11950_s8 + $0x558] sm:$0xff]  }
 0x320   :  { %8987 = vmatpush3.bf16.msra.mxu1 %v9510_v0  ;;  %v9539_v0 = vld [vmem:[%s11950_s8 + $0x518] sm:$0xff]  }
 0x321   :  { %8417 = vmatpush3.bf16.msra.mxu0 %v9511_v12  ;;  %8988 = vmatprep.subr.bf16.mxu1 %v9512_v14  ;;  %v9538_v12 = vld [vmem:[%s11950_s8 + $0x4b8] sm:$0xff]  }
 0x322   :  { %8454 = vmatprep.subr.bf16.mxu0 %v9513_v17  ;;  %v9541_v17 = vld [vmem:[%s11950_s8 + $0x5c0] sm:$0xff]  }
 0x323   :  { %3790 = vmatmul.mubr.bf16.gmra.mrb[120].mxu1 %v10708_v29 }
 0x324   :  { %3839 = vmatmul.mubr.bf16.vlgmr.msra.gmra.mrb[128].mxu0 %v10762_v48  ;;  %8989 = vmatpush3.bf16.msra.mxu1 %v9512_v14  ;;  %v9540_v14 = vld [vmem:[%s11950_s8 + $0x560] sm:$0xff]  }
 0x325   :  { %3846 = vmatprep.mubr.bf16.mxu0 %v10795_v36  ;;  %8455 = vmatpush3.bf16.msra.mxu0 %v9514_v19  ;;  %v9542_v19 = vld [vmem:[%s11950_s8 + $0x520] sm:$0xff]  }
 0x326   :  { %3797 = vmatprep.mubr.bf16.mxu1 %v10742_v55  ;;  %8990 = vmatprep.subr.bf16.mxu1 %v9515_v27 }
 0x327   :  { %8456 = vmatprep.subr.bf16.mxu0 %v9516_v30  ;;  %v9544_v30 = vld [vmem:[%s11950_s8 + $0x568] sm:$0xff]  }
 0x328   :  { %8991 = vmatpush3.bf16.msra.mxu1 %v9515_v27  ;;  %v9543_v27 = vld [vmem:[%s11950_s8 + $0x580] sm:$0xff]  }
 0x329   :  { %8457 = vmatpush3.bf16.msra.mxu0 %v9517_v34  ;;  %8992 = vmatprep.subr.bf16.mxu1 %v9518_v41  ;;  %v9545_v34 = vld [vmem:[%s11950_s8 + $0x5c8] sm:$0xff]  }
 0x32a   :  { %8458 = vmatprep.subr.bf16.mxu0 %v9519_v46  ;;  %v9547_v46 = vld [vmem:[%s11950_s8 + $0x588] sm:$0xff]  }
 0x32b   :  { %3798 = vmatmul.mubr.bf16.gmra.mrb[124].mxu1 %v10706_v26 }
 0x32c   :  { %3847 = vmatmul.mubr.bf16.gmra.mrb[132].mxu0 %v10760_v6  ;;  %8993 = vmatpush3.bf16.msra.mxu1 %v9518_v41  ;;  %v9546_v41 = vld [vmem:[%s11950_s8 + $0x528] sm:$0xff]  }
 0x32d   :  { %3854 = vmatprep.mubr.bf16.mxu0 %v10816_v56  ;;  %8459 = vmatpush3.bf16.msra.mxu0 %v9520_v49  ;;  %v9548_v49 = vld [vmem:[%s11950_s8 + $0x570] sm:$0xff]  }
 0x32e   :  { %8996 = vmatprep.mubr.bf16.mxu1 %v10834_v21  ;;  %8994 = vmatprep.subr.bf16.mxu1 %v9521_v33 }
 0x32f   :  { %8460 = vmatprep.subr.bf16.mxu0 %v9522_v52  ;;  %v9549_v52 = vld [vmem:[%s11950_s8 + $0x5d0] sm:$0xff]  }
 0x330   :  { %8995 = vmatpush3.bf16.msra.mxu1 %v9521_v33 }
 0x331   :  { %8461 = vmatpush3.bf16.msra.mxu0 %v9523_v53  ;;  %8494 = vmatprep.subr.bf16.mxu1 %v9525_v54 }
 0x332   :  { %8462 = vmatprep.subr.bf16.mxu0 %v9524_v22 }
 0x333   :  { %8997 = vmatmul.mubr.bf16.vlgmr.msra.gmra.mrb[128].mxu1 %v10832_v45 }
 0x334   :  { %3855 = vmatmul.mubr.bf16.gmra.mrb[136].mxu0 %v10780_v13  ;;  %8495 = vmatpush3.bf16.msra.mxu1 %v9527_v59  ;;  %v9550_v59 = vld [vmem:[%s11950_s8 + $0x530] sm:$0xff]  }
 0x335   :  { %3862 = vmatprep.mubr.bf16.mxu0 %v10814_v40  ;;  %8463 = vmatpush3.bf16.msra.mxu0 %v9526_v60 }
 0x336   :  { %9000 = vmatprep.mubr.bf16.mxu1 %v10866_v38  ;;  %8464 = vmatprep.subr.bf16.mxu0 %v9528_v61  ;;  %v9551_v61 = vld [vmem:[%s11950_s8 + $0x590] sm:$0xff]  }
 0x337   :  { %8496 = vmatprep.subr.bf16.mxu1 %v9529_v1 }
 0x338   :  { %8497 = vmatpush3.bf16.msra.mxu1 %v9531_v3  ;;  %v9552_v3 = vld [vmem:[%s11950_s8 + $0x578] sm:$0xff]  }
 0x339   :  { %8465 = vmatpush3.bf16.msra.mxu0 %v9530_v63  ;;  %8498 = vmatprep.subr.bf16.mxu1 %v9533_v5  ;;  %v9553_v63 = vld [vmem:[%s11950_s8 + $0x5d8] sm:$0xff]  }
 0x33a   :  { %8466 = vmatprep.subr.bf16.mxu0 %v9532_v18  ;;  %v9554_v5 = vld [vmem:[%s11950_s8 + $0x538] sm:$0xff]  }
 0x33b   :  { %9001 = vmatmul.mubr.bf16.gmra.mrb[132].mxu1 %v10864_v31  ;;  %v9555_v18 = vld [vmem:[%s11950_s8 + $0x598] sm:$0xff]  }
 0x33c   :  { %3863 = vmatmul.mubr.bf16.gmra.mrb[140].mxu0 %v10778_v11  ;;  %8499 = vmatpush3.bf16.msra.mxu1 %v9535_v24  ;;  %v9557_v24 = vld [vmem:[%s11950_s8 + $0x640] sm:$0xff]  }
 0x33d   :  { %8467 = vmatpush3.bf16.msra.mxu0 %v9534_v62  ;;  %4553 = vmatprep.mubr.bf16.mxu0 %v10581_v43 }
 0x33e   :  { %4618 = vmatprep.mubr.bf16.mxu1 %v10653_v58  ;;  %8468 = vmatprep.subr.bf16.mxu0 %v9536_v2  ;;  %v9556_v2 = vld [vmem:[%s11950_s8 + $0x5e0] sm:$0xff]  }
 0x33f   :  { %8500 = vmatprep.subr.bf16.mxu1 %v9537_v9 }
 0x340   :  { %8501 = vmatpush3.bf16.msra.mxu1 %v9539_v0 }
 0x341   :  { %8469 = vmatpush3.bf16.msra.mxu0 %v9538_v12  ;;  %8502 = vmatprep.subr.bf16.mxu1 %v9540_v14 }
 0x342   :  { %8534 = vmatprep.subr.bf16.mxu0 %v9541_v17  ;;  %v9558_v17 = vld [vmem:[%s11950_s8 + $0x5a0] sm:$0xff]  }
 0x344   :  { %4554 = vmatmul.mubr.bf16.vlgmr.msra.gmra.mrb[144].mxu0 %v10570_v44  ;;  %8503 = vmatpush3.bf16.msra.mxu1 %v9542_v19 }
 0x345   :  { %4561 = vmatprep.mubr.bf16.mxu0 %v10579_v4  ;;  %8535 = vmatpush3.bf16.msra.mxu0 %v9543_v27  ;;  %v9559_v27 = vld [vmem:[%s11950_s8 + $0x600] sm:$0xff]  }
 0x346   :  { %v8126_v33 = vpop.f32.mrb[32].mxu1  ;;  %8504 = vmatprep.subr.bf16.mxu1 %v9544_v30  ;;  %8536 = vmatprep.subr.bf16.mxu0 %v9545_v34  ;;  %v9560_v30 = vld [vmem:[%s11950_s8 + $0x5e8] sm:$0xff]  }
 0x347   :  { %v8127_v53 = vpop.f32.mrb[33].mxu1  ;;  %v9561_v34 = vld [vmem:[%s11950_s8 + $0x648] sm:$0xff]  }
 0x348   :  { %v11175_v54 = vadd.f32 %v8127_v53, %v8126_v33  ;;  %8505 = vmatpush3.bf16.msra.mxu1 %v9546_v41  ;;  %v8129_v22 = vpop.f32.mrb[34].mxu1  ;;  %v9562_v41 = vld [vmem:[%s11950_s8 + $0x5a8] sm:$0xff]   ;;  %v9564_v33 = vld [vmem:[%s11950_s8 + $0x5f0] sm:$0xff]  }
 0x349   :  { %8537 = vmatpush3.bf16.msra.mxu0 %v9547_v46  ;;  %v8130_v60 = vpop.f32.mrb[35].mxu1  ;;  %8506 = vmatprep.subr.bf16.mxu1 %v9548_v49  ;;  %v9563_v49 = vld [vmem:[%s11950_s8 + $0x608] sm:$0xff]   ;;  %v9565_v53 = vld [vmem:[%s11950_s8 + $0x650] sm:$0xff]  }
 0x34a   :  { %v11183_v1 = vadd.f32 %v8130_v60, %v8129_v22  ;;  %8538 = vmatprep.subr.bf16.mxu0 %v9549_v52 }
 0x34c   :  { %4562 = vmatmul.mubr.bf16.gmra.mrb[148].mxu0 %v10568_v8  ;;  %8507 = vmatpush3.bf16.msra.mxu1 %v9550_v59 }
 0x34d   :  { %4569 = vmatprep.mubr.bf16.mxu0 %v10600_v32  ;;  %8539 = vmatpush3.bf16.msra.mxu0 %v9551_v61  ;;  %v9566_v61 = vld [vmem:[%s11950_s8 + $0x5b0] sm:$0xff]  }
 0x34e   :  { %v8132_v62 = vpop.f32.mrb[36].mxu1  ;;  %8508 = vmatprep.subr.bf16.mxu1 %v9552_v3  ;;  %8540 = vmatprep.subr.bf16.mxu0 %v9553_v63  ;;  %v9567_v63 = vld [vmem:[%s11950_s8 + $0x610] sm:$0xff]  }
 0x34f   :  { %v8133_v9 = vpop.f32.mrb[37].mxu1 }
 0x350   :  { %v11205_v0 = vadd.f32 %v8133_v9, %v8132_v62  ;;  %8509 = vmatpush3.bf16.msra.mxu1 %v9554_v5  ;;  %v8135_v12 = vpop.f32.mrb[38].mxu1  ;;  %v9568_v5 = vld [vmem:[%s11950_s8 + $0x5f8] sm:$0xff]   ;;  %v9573_v9 = vld [vmem:[%s11950_s8 + $0x680] sm:$0xff]  }
 0x351   :  { %8541 = vmatpush3.bf16.msra.mxu0 %v9555_v18  ;;  %v8136_v14 = vpop.f32.mrb[39].mxu1  ;;  %8574 = vmatprep.subr.bf16.mxu1 %v9557_v24  ;;  %v9569_v18 = vld [vmem:[%s11950_s8 + $0x658] sm:$0xff]  }
 0x352   :  { %v11210_v19 = vadd.f32 %v8136_v14, %v8135_v12  ;;  %8542 = vmatprep.subr.bf16.mxu0 %v9556_v2  ;;  %v9570_v24 = vld [vmem:[%s11950_s8 + $0x5b8] sm:$0xff]   ;;  %v9572_v14 = vld [vmem:[%s11950_s8 + $0x660] sm:$0xff]  }
 0x353   :  { %4619 = vmatmul.mubr.bf16.vlgmr.msra.gmra.mrb[136].mxu1 %v10618_v37  ;;  %v9571_v2 = vld [vmem:[%s11950_s8 + $0x618] sm:$0xff]  }
 0x354   :  { %4570 = vmatmul.mubr.bf16.gmra.mrb[152].mxu0 %v10577_v23  ;;  %4626 = vmatprep.mubr.bf16.mxu1 %v10651_v25 }
 0x355   :  { %4577 = vmatprep.mubr.bf16.mxu0 %v10598_v16  ;;  %8543 = vmatpush3.bf16.msra.mxu0 %v9558_v17 }
 0x356   :  { %8575 = vmatpush3.bf16.msra.mxu1 %v9559_v27  ;;  %v8138_v46 = vpop.f32.mrb[40].mxu1  ;;  %8544 = vmatprep.subr.bf16.mxu0 %v9560_v30 }
 0x357   :  { %8576 = vmatprep.subr.bf16.mxu1 %v9561_v34  ;;  %v8139_v52 = vpop.f32.mrb[41].mxu1 }
 0x358   :  { %v11237_v22 = vadd.f32 %v8139_v52, %v8138_v46  ;;  %v8141_v59 = vpop.f32.mrb[42].mxu1  ;;  %v9576_v46 = vld [vmem:[%s11950_s8 + $0x688] sm:$0xff]  }
 0x359   :  { %8545 = vmatpush3.bf16.msra.mxu0 %v9562_v41  ;;  %v8142_v60 = vpop.f32.mrb[43].mxu1  ;;  %v9574_v41 = vld [vmem:[%s11950_s8 + $0x620] sm:$0xff]   ;;  %v9577_v52 = vld [vmem:[%s11950_s8 + $0x628] sm:$0xff]  }
 0x35a   :  { %8577 = vmatpush3.bf16.msra.mxu1 %v9563_v49  ;;  %v11242_v3 = vadd.f32 %v8142_v60, %v8141_v59  ;;  %8546 = vmatprep.subr.bf16.mxu0 %v9564_v33  ;;  %v9575_v49 = vld [vmem:[%s11950_s8 + $0x668] sm:$0xff]   ;;  %v9578_v60 = vld [vmem:[%s11950_s8 + $0x670] sm:$0xff]  }
 0x35b   :  { %4627 = vmatmul.mubr.bf16.gmra.mrb[140].mxu1 %v10616_v35  ;;  %8578 = vmatprep.subr.bf16.mxu1 %v9565_v53  ;;  %v9579_v53 = vld [vmem:[%s11950_s8 + $0x690] sm:$0xff]  }
 0x35c   :  { %4578 = vmatmul.mubr.bf16.gmra.mrb[156].mxu0 %v10575_v20  ;;  %4634 = vmatprep.mubr.bf16.mxu1 %v10672_v15 }
 0x35d   :  { %8547 = vmatpush3.bf16.msra.mxu0 %v9566_v61  ;;  %4683 = vmatprep.mubr.bf16.mxu0 %v10725_v47 }
 0x35e   :  { %8579 = vmatpush3.bf16.msra.mxu1 %v9567_v63  ;;  %v8144_v62 = vpop.f32.mrb[44].mxu1  ;;  %8548 = vmatprep.subr.bf16.mxu0 %v9568_v5 }
 0x35f   :  { %8580 = vmatprep.subr.bf16.mxu1 %v9569_v18  ;;  %v8145_v12 = vpop.f32.mrb[45].mxu1 }
 0x360   :  { %v11269_v17 = vadd.f32 %v8145_v12, %v8144_v62  ;;  %v8147_v27 = vpop.f32.mrb[46].mxu1  ;;  %v9580_v62 = vld [vmem:[%s11950_s8 + $0x630] sm:$0xff]  }
 0x361   :  { %8549 = vmatpush3.bf16.msra.mxu0 %v9570_v24  ;;  %v8148_v30 = vpop.f32.mrb[47].mxu1 }
 0x362   :  { %8581 = vmatpush3.bf16.msra.mxu1 %v9571_v2  ;;  %v11271_v34 = vadd.f32 %v8148_v30, %v8147_v27  ;;  %9004 = vmatprep.subr.bf16.mxu0 %v9573_v9  ;;  %v9582_v2 = vld [vmem:[%s11950_s8 + $0x698] sm:$0xff]   ;;  %v9584_v27 = vld [vmem:[%s11950_s8 + $0x6a0] sm:$0xff]  }
 0x363   :  { %4635 = vmatmul.mubr.bf16.gmra.mrb[144].mxu1 %v10636_v51  ;;  %8582 = vmatprep.subr.bf16.mxu1 %v9572_v14  ;;  %v9583_v14 = vld [vmem:[%s11950_s8 + $0x638] sm:$0xff]   ;;  %v9585_v30 = vld [vmem:[%s11950_s8 + $0x700] sm:$0xff]  }
 0x364   :  { %4684 = vmatmul.mubr.bf16.vlgmr.msra.gmra.mrb[160].mxu0 %v10690_v10  ;;  %4642 = vmatprep.mubr.bf16.mxu1 %v10670_v7 }
 0x365   :  { %4691 = vmatprep.mubr.bf16.mxu0 %v10723_v42  ;;  %9005 = vmatpush3.bf16.msra.mxu0 %v9573_v9  ;;  %v9581_v9 = vld [vmem:[%s11950_s8 + $0x678] sm:$0xff]  }
 0x366   :  { %8583 = vmatpush3.bf16.msra.mxu1 %v9574_v41  ;;  %v8166_v33 = vpop.f32.mrb[48].mxu1  ;;  %9006 = vmatprep.subr.bf16.mxu0 %v9576_v46 }
 0x367   :  { %8584 = vmatprep.subr.bf16.mxu1 %v9575_v49  ;;  %v8167_v59 = vpop.f32.mrb[49].mxu1 }
 0x368   :  { %v8168_v61 = vadd.f32 %v8167_v59, %v8166_v33  ;;  %v8169_v63 = vpop.f32.mrb[50].mxu1  ;;  %v9587_v59 = vld [vmem:[%s11950_s8 + $0x6a8] sm:$0xff]  }
 0x369   :  { %9007 = vmatpush3.bf16.msra.mxu0 %v9576_v46  ;;  %v8170_v5 = vpop.f32.mrb[51].mxu1 }
 0x36a   :  { %v11296_v18 = vadd.f32 %v8168_v61, %v11175_v54  ;;  %8585 = vmatpush3.bf16.msra.mxu1 %v9577_v52  ;;  %v8171_v24 = vadd.f32 %v8170_v5, %v8169_v63  ;;  %9008 = vmatprep.subr.bf16.mxu0 %v9579_v53  ;;  %v9590_v5 = vld [vmem:[%s11950_s8 + $0x6b0] sm:$0xff]  }
 0x36b   :  { %4643 = vmatmul.mubr.bf16.gmra.mrb[148].mxu1 %v10634_v50  ;;  %8586 = vmatprep.subr.bf16.mxu1 %v9578_v60 }
 0x36c   :  { %v11309_v54 = vadd.f32 %v8171_v24, %v11183_v1  ;;  %4692 = vmatmul.mubr.bf16.gmra.mrb[164].mxu0 %v10688_v28  ;;  %4748 = vmatprep.mubr.bf16.mxu1 %v10797_v39 }
 0x36d   :  { %4699 = vmatprep.mubr.bf16.mxu0 %v10744_v57  ;;  %9009 = vmatpush3.bf16.msra.mxu0 %v9579_v53  ;;  %v9586_v53 = vld [vmem:[%s11950_s8 + $0x6c0] sm:$0xff]  }
 0x36e   :  { %8587 = vmatpush3.bf16.msra.mxu1 %v9580_v62  ;;  %v8172_v12 = vpop.f32.mrb[52].mxu1  ;;  %9010 = vmatprep.subr.bf16.mxu0 %v9582_v2 }
 0x36f   :  { %8588 = vmatprep.subr.bf16.mxu1 %v9581_v9  ;;  %v8173_v1 = vpop.f32.mrb[53].mxu1 }
 0x370   :  { %v8174_v41 = vadd.f32 %v8173_v1, %v8172_v12  ;;  %v8175_v46 = vpop.f32.mrb[54].mxu1  ;;  %v9593_v1 = vld [vmem:[%s11950_s8 + $0x6b8] sm:$0xff]  }
 0x371   :  { %9011 = vmatpush3.bf16.msra.mxu0 %v9582_v2  ;;  %v8176_v49 = vpop.f32.mrb[55].mxu1  ;;  %v9591_v2 = vld [vmem:[%s11950_s8 + $0x710] sm:$0xff]  }
 0x372   :  { %v11324_v33 = vadd.f32 %v8174_v41, %v11205_v0  ;;  %8589 = vmatpush3.bf16.msra.mxu1 %v9583_v14  ;;  %v8177_v52 = vadd.f32 %v8176_v49, %v8175_v46  ;;  %9012 = vmatprep.subr.bf16.mxu0 %v9584_v27  ;;  %v9588_v0 = vld [vmem:[%s11950_s8 + $0x708] sm:$0xff]   ;;  %v9597_v49 = vld [vmem:[%s11950_s8 + $0x780] sm:$0xff]  }
 0x373   :  { %8626 = vmatprep.subr.bf16.mxu1 %v9585_v30 }
 0x374   :  { %v11333_v60 = vadd.f32 %v8177_v52, %v11210_v19  ;;  %4700 = vmatmul.mubr.bf16.gmra.mrb[168].mxu0 %v10708_v29  ;;  %v9589_v19 = vld [vmem:[%s11950_s8 + $0x6c8] sm:$0xff]  }
 0x375   :  { %4749 = vmatmul.mubr.bf16.vlgmr.msra.gmra.mrb[152].mxu1 %v10762_v48  ;;  %4707 = vmatprep.mubr.bf16.mxu0 %v10742_v55 }
 0x376   :  { %4756 = vmatprep.mubr.bf16.mxu1 %v10795_v36  ;;  %9013 = vmatpush3.bf16.msra.mxu0 %v9584_v27  ;;  %v8178_v61 = vpop.f32.mrb[56].mxu1  ;;  %v9592_v27 = vld [vmem:[%s11950_s8 + $0x6d0] sm:$0xff]  }
 0x377   :  { %8627 = vmatpush3.bf16.msra.mxu1 %v9586_v53  ;;  %9014 = vmatprep.subr.bf16.mxu0 %v9587_v59  ;;  %v8179_v63 = vpop.f32.mrb[57].mxu1 }
 0x378   :  { %8628 = vmatprep.subr.bf16.mxu1 %v9588_v0  ;;  %v8180_v24 = vadd.f32 %v8179_v63, %v8178_v61  ;;  %v8181_v62 = vpop.f32.mrb[58].mxu1 }
 0x379   :  { %v8182_v9 = vpop.f32.mrb[59].mxu1 }
 0x37a   :  { %v11352_v12 = vadd.f32 %v8180_v24, %v11237_v22  ;;  %9015 = vmatpush3.bf16.msra.mxu0 %v9587_v59  ;;  %v8183_v14 = vadd.f32 %v8182_v9, %v8181_v62  ;;  %v9594_v22 = vld [vmem:[%s11950_s8 + $0x718] sm:$0xff]   ;;  %v9596_v59 = vld [vmem:[%s11950_s8 + $0x720] sm:$0xff]   ;;  %v9601_v62 = vld [vmem:[%s11950_s8 + $0x788] sm:$0xff]  }
 0x37b   :  { %8629 = vmatpush3.bf16.msra.mxu1 %v9589_v19  ;;  %9016 = vmatprep.subr.bf16.mxu0 %v9590_v5  ;;  %v9598_v19 = vld [vmem:[%s11950_s8 + $0x6e0] sm:$0xff]   ;;  %v9602_v9 = vld [vmem:[%s11950_s8 + $0x6e8] sm:$0xff]  }
 0x37c   :  { %v11361_v30 = vadd.f32 %v8183_v14, %v11242_v3  ;;  %4708 = vmatmul.mubr.bf16.gmra.mrb[172].mxu0 %v10706_v26  ;;  %8630 = vmatprep.subr.bf16.mxu1 %v9591_v2  ;;  %v9595_v3 = vld [vmem:[%s11950_s8 + $0x6d8] sm:$0xff]   ;;  %v9603_v14 = vld [vmem:[%s11950_s8 + $0x748] sm:$0xff]  }
 0x37d   :  { %4757 = vmatmul.mubr.bf16.gmra.mrb[156].mxu1 %v10760_v6  ;;  %9020 = vmatprep.mubr.bf16.mxu0 %v10834_v21 }
 0x37e   :  { %4764 = vmatprep.mubr.bf16.mxu1 %v10816_v56  ;;  %9017 = vmatpush3.bf16.msra.mxu0 %v9590_v5  ;;  %v8184_v41 = vpop.f32.mrb[60].mxu1  ;;  %v9599_v5 = vld [vmem:[%s11950_s8 + $0x740] sm:$0xff]  }
 0x37f   :  { %8631 = vmatpush3.bf16.msra.mxu1 %v9592_v27  ;;  %9018 = vmatprep.subr.bf16.mxu0 %v9593_v1  ;;  %v8185_v46 = vpop.f32.mrb[61].mxu1 }
 0x380   :  { %8632 = vmatprep.subr.bf16.mxu1 %v9594_v22  ;;  %v8186_v52 = vadd.f32 %v8185_v46, %v8184_v41  ;;  %v8187_v53 = vpop.f32.mrb[62].mxu1  ;;  %v9604_v22 = vld [vmem:[%s11950_s8 + $0x730] sm:$0xff]  }
 0x381   :  { %v8188_v0 = vpop.f32.mrb[63].mxu1  ;;  %v9605_v41 = vld [vmem:[%s11950_s8 + $0x790] sm:$0xff]  }
 0x382   :  { %v11380_v61 = vadd.f32 %v8186_v52, %v11269_v17  ;;  %9019 = vmatpush3.bf16.msra.mxu0 %v9593_v1  ;;  %v8189_v63 = vadd.f32 %v8188_v0, %v8187_v53  ;;  %v9600_v17 = vld [vmem:[%s11950_s8 + $0x728] sm:$0xff]   ;;  %v9606_v52 = vld [vmem:[%s11950_s8 + $0x6f0] sm:$0xff]   ;;  %v9609_v0 = vld [vmem:[%s11950_s8 + $0x798] sm:$0xff]  }
 0x383   :  { %8633 = vmatpush3.bf16.msra.mxu1 %v9595_v3  ;;  %8666 = vmatprep.subr.bf16.mxu0 %v9597_v49  ;;  %v9607_v53 = vld [vmem:[%s11950_s8 + $0x750] sm:$0xff]  }
 0x384   :  { %v11389_v24 = vadd.f32 %v8189_v63, %v11271_v34  ;;  %8634 = vmatprep.subr.bf16.mxu1 %v9596_v59 }
 0x385   :  { %4765 = vmatmul.mubr.bf16.gmra.mrb[160].mxu1 %v10780_v13  ;;  %9021 = vmatmul.mubr.bf16.vlgmr.msra.gmra.mrb[176].mxu0 %v10832_v45 }
 0x386   :  { %4772 = vmatprep.mubr.bf16.mxu1 %v10814_v40  ;;  %9024 = vmatprep.mubr.bf16.mxu0 %v10866_v38  ;;  %v8206_v2 = vpop.f32.mrb[64].mxu1 }
 0x387   :  { %8635 = vmatpush3.bf16.msra.mxu1 %v9598_v19  ;;  %8667 = vmatpush3.bf16.msra.mxu0 %v9599_v5  ;;  %v8207_v34 = vpop.f32.mrb[65].mxu1  ;;  %v9610_v19 = vld [vmem:[%s11950_s8 + $0x6f8] sm:$0xff]  }
 0x388   :  { %8636 = vmatprep.subr.bf16.mxu1 %v9600_v17  ;;  %8668 = vmatprep.subr.bf16.mxu0 %v9601_v62  ;;  %v8208_v27 = vadd.f32 %v8207_v34, %v8206_v2  ;;  %v8209_v1 = vpop.f32.mrb[66].mxu1  ;;  %v9611_v5 = vld [vmem:[%s11950_s8 + $0x758] sm:$0xff]  }
 0x389   :  { %v8210_v46 = vpop.f32.mrb[67].mxu1 }
 0x38a   :  { %v11414_v3 = vadd.f32 %v8208_v27, %v11296_v18  ;;  %v8211_v49 = vadd.f32 %v8210_v46, %v8209_v1  ;;  %v9608_v18 = vld [vmem:[%s11950_s8 + $0x738] sm:$0xff]   ;;  %v9615_v1 = vld [vmem:[%s11950_s8 + $0x7c0] sm:$0xff]   ;;  %v9618_v46 = vld [vmem:[%s11950_s8 + $0x768] sm:$0xff]  }
 0x38b   :  { %8637 = vmatpush3.bf16.msra.mxu1 %v9602_v9  ;;  %8669 = vmatpush3.bf16.msra.mxu0 %v9603_v14  ;;  %v9614_v14 = vld [vmem:[%s11950_s8 + $0x760] sm:$0xff]  }
 0x38c   :  { %v11423_v59 = vadd.f32 %v8211_v49, %v11309_v54  ;;  %8638 = vmatprep.subr.bf16.mxu1 %v9604_v22  ;;  %8670 = vmatprep.subr.bf16.mxu0 %v9605_v41  ;;  %v9617_v22 = vld [vmem:[%s11950_s8 + $0x808] sm:$0xff]  }
 0x38d   :  { %4773 = vmatmul.mubr.bf16.gmra.mrb[164].mxu1 %v10778_v11  ;;  %9025 = vmatmul.mubr.bf16.gmra.mrb[180].mxu0 %v10864_v31 }
 0x38e   :  { %5463 = vmatprep.mubr.bf16.mxu1 %v10581_v43  ;;  %5528 = vmatprep.mubr.bf16.mxu0 %v10653_v58  ;;  %v8212_v54 = vpop.f32.mrb[68].mxu1  ;;  %v9612_v43 = vld [vmem:[%s11950_s8 + $0x7a0] sm:$0xff]  }
 0x38f   :  { %8639 = vmatpush3.bf16.msra.mxu1 %v9606_v52  ;;  %8671 = vmatpush3.bf16.msra.mxu0 %v9607_v53  ;;  %v8213_v63 = vpop.f32.mrb[69].mxu1  ;;  %v9613_v58 = vld [vmem:[%s11950_s8 + $0x800] sm:$0xff]   ;;  %v9619_v52 = vld [vmem:[%s11950_s8 + $0x7c8] sm:$0xff]  }
 0x390   :  { %8640 = vmatprep.subr.bf16.mxu1 %v9608_v18  ;;  %8672 = vmatprep.subr.bf16.mxu0 %v9609_v0  ;;  %v8214_v17 = vadd.f32 %v8213_v63, %v8212_v54  ;;  %v8215_v62 = vpop.f32.mrb[70].mxu1  ;;  %v9621_v18 = vld [vmem:[%s11950_s8 + $0x810] sm:$0xff]  }
 0x391   :  { %v8216_v2 = vpop.f32.mrb[71].mxu1  ;;  %v9622_v63 = vld [vmem:[%s11950_s8 + $0x770] sm:$0xff]  }
 0x392   :  { %v11448_v34 = vadd.f32 %v8214_v17, %v11324_v33  ;;  %v8217_v9 = vadd.f32 %v8216_v2, %v8215_v62  ;;  %v9616_v33 = vld [vmem:[%s11950_s8 + $0x7a8] sm:$0xff]   ;;  %v9625_v17 = vld [vmem:[%s11950_s8 + $0x818] sm:$0xff]  }
 0x393   :  { %8641 = vmatpush3.bf16.msra.mxu1 %v9610_v19  ;;  %8673 = vmatpush3.bf16.msra.mxu0 %v9611_v5  ;;  %v9623_v5 = vld [vmem:[%s11950_s8 + $0x7d0] sm:$0xff]   ;;  %v9627_v2 = vld [vmem:[%s11950_s8 + $0x7d8] sm:$0xff]  }
 0x394   :  { %v11454_v27 = vadd.f32 %v8217_v9, %v11333_v60  ;;  %8674 = vmatprep.subr.bf16.mxu0 %v9612_v43  ;;  %8706 = vmatprep.subr.bf16.mxu1 %v9613_v58  ;;  %v9626_v43 = vld [vmem:[%s11950_s8 + $0x778] sm:$0xff]  }
 0x396   :  { %5464 = vmatmul.mubr.bf16.vlgmr.msra.gmra.mrb[168].mxu1 %v10570_v44  ;;  %v8218_v41 = vpop.f32.mrb[72].mxu1  ;;  %v9620_v44 = vld [vmem:[%s11950_s8 + $0x7b0] sm:$0xff]  }
 0x397   :  { %5471 = vmatprep.mubr.bf16.mxu1 %v10579_v4  ;;  %8675 = vmatpush3.bf16.msra.mxu0 %v9614_v14  ;;  %v8219_v60 = vpop.f32.mrb[73].mxu1  ;;  %v9628_v14 = vld [vmem:[%s11950_s8 + $0x820] sm:$0xff]  }
 0x398   :  { %8707 = vmatpush3.bf16.msra.mxu1 %v9615_v1  ;;  %8676 = vmatprep.subr.bf16.mxu0 %v9616_v33  ;;  %v8220_v49 = vadd.f32 %v8219_v60, %v8218_v41  ;;  %v8221_v53 = vpop.f32.mrb[74].mxu1  ;;  %v9630_v41 = vld [vmem:[%s11950_s8 + $0x7e0] sm:$0xff]  }
 0x399   :  { %8708 = vmatprep.subr.bf16.mxu1 %v9617_v22  ;;  %v8222_v4 = vpop.f32.mrb[75].mxu1  ;;  %v9631_v60 = vld [vmem:[%s11950_s8 + $0x840] sm:$0xff]  }
 0x39a   :  { %v11480_v0 = vadd.f32 %v8220_v49, %v11352_v12  ;;  %v8223_v54 = vadd.f32 %v8222_v4, %v8221_v53  ;;  %v9624_v12 = vld [vmem:[%s11950_s8 + $0x7b8] sm:$0xff]   ;;  %v9634_v53 = vld [vmem:[%s11950_s8 + $0x7e8] sm:$0xff]  }
 0x39b   :  { %8677 = vmatpush3.bf16.msra.mxu0 %v9618_v46  ;;  %v9633_v46 = vld [vmem:[%s11950_s8 + $0x888] sm:$0xff]  }
 0x39c   :  { %8709 = vmatpush3.bf16.msra.mxu1 %v9619_v52  ;;  %v11486_v19 = vadd.f32 %v8223_v54, %v11361_v30  ;;  %8678 = vmatprep.subr.bf16.mxu0 %v9620_v44  ;;  %v9635_v44 = vld [vmem:[%s11950_s8 + $0x848] sm:$0xff]   ;;  %v9638_v54 = vld [vmem:[%s11950_s8 + $0x7f0] sm:$0xff]  }
 0x39d   :  { %8710 = vmatprep.subr.bf16.mxu1 %v9621_v18 }
 0x39e   :  { %5472 = vmatmul.mubr.bf16.gmra.mrb[172].mxu1 %v10568_v8  ;;  %v8224_v62 = vpop.f32.mrb[76].mxu1  ;;  %v9629_v8 = vld [vmem:[%s11950_s8 + $0x880] sm:$0xff]  }
 0x39f   :  { %5479 = vmatprep.mubr.bf16.mxu1 %v10600_v32  ;;  %8679 = vmatpush3.bf16.msra.mxu0 %v9622_v63  ;;  %v8225_v30 = vpop.f32.mrb[77].mxu1  ;;  %v9639_v63 = vld [vmem:[%s11950_s8 + $0x850] sm:$0xff]  }
 0x3a0   :  { %8711 = vmatpush3.bf16.msra.mxu1 %v9623_v5  ;;  %8680 = vmatprep.subr.bf16.mxu0 %v9624_v12  ;;  %v8226_v58 = vadd.f32 %v8225_v30, %v8224_v62  ;;  %v8227_v9 = vpop.f32.mrb[78].mxu1  ;;  %v9640_v12 = vld [vmem:[%s11950_s8 + $0x838] sm:$0xff]  }
 0x3a1   :  { %8712 = vmatprep.subr.bf16.mxu1 %v9625_v17  ;;  %v8228_v32 = vpop.f32.mrb[79].mxu1  ;;  %v9642_v30 = vld [vmem:[%s11950_s8 + $0x7f8] sm:$0xff]  }
 0x3a2   :  { %v11512_v1 = vadd.f32 %v8226_v58, %v11380_v61  ;;  %v8229_v33 = vadd.f32 %v8228_v32, %v8227_v9  ;;  %v9632_v61 = vld [vmem:[%s11950_s8 + $0x828] sm:$0xff]   ;;  %v9646_v9 = vld [vmem:[%s11950_s8 + $0x860] sm:$0xff]  }
 0x3a3   :  { %8681 = vmatpush3.bf16.msra.mxu0 %v9626_v43  ;;  %v9643_v43 = vld [vmem:[%s11950_s8 + $0x858] sm:$0xff]   ;;  %v9647_v32 = vld [vmem:[%s11950_s8 + $0x8a8] sm:$0xff]  }
 0x3a4   :  { %8713 = vmatpush3.bf16.msra.mxu1 %v9627_v2  ;;  %v11515_v22 = vadd.f32 %v8229_v33, %v11389_v24  ;;  %8746 = vmatprep.subr.bf16.mxu0 %v9629_v8 }
 0x3a5   :  { %8714 = vmatprep.subr.bf16.mxu1 %v9628_v14 }
 0x3a6   :  { %5480 = vmatmul.mubr.bf16.gmra.mrb[176].mxu1 %v10577_v23  ;;  %5529 = vmatmul.mubr.bf16.vlgmr.msra.gmra.mrb[184].mxu0 %v10618_v37  ;;  %v8246_v24 = vpop.f32.mrb[80].mxu1 }
 0x3a7   :  { %5487 = vmatprep.mubr.bf16.mxu1 %v10598_v16  ;;  %5536 = vmatprep.mubr.bf16.mxu0 %v10651_v25  ;;  %v8247_v49 = vpop.f32.mrb[81].mxu1  ;;  %v9636_v16 = vld [vmem:[%s11950_s8 + $0x830] sm:$0xff]  }
 0x3a8   :  { %8715 = vmatpush3.bf16.msra.mxu1 %v9630_v41  ;;  %8747 = vmatpush3.bf16.msra.mxu0 %v9631_v60  ;;  %v8248_v52 = vadd.f32 %v8247_v49, %v8246_v24  ;;  %v8249_v23 = vpop.f32.mrb[82].mxu1  ;;  %v9637_v25 = vld [vmem:[%s11950_s8 + $0x890] sm:$0xff]  }
 0x3a9   :  { %8716 = vmatprep.subr.bf16.mxu1 %v9632_v61  ;;  %8748 = vmatprep.subr.bf16.mxu0 %v9633_v46  ;;  %v8250_v37 = vpop.f32.mrb[83].mxu1 }
 0x3aa   :  { %v8251_v4 = vadd.f32 %v8250_v37, %v8249_v23  ;;  %v2939_v18 = vadd.f32 %v8248_v52, %v11414_v3  ;;  %v9641_v3 = vld [vmem:[%s11950_s8 + $0x898] sm:$0xff]   ;;  %v9651_v23 = vld [vmem:[%s11950_s8 + $0x8d0] sm:$0xff]  }
 0x3ac   :  { %8717 = vmatpush3.bf16.msra.mxu1 %v9634_v53  ;;  %8749 = vmatpush3.bf16.msra.mxu0 %v9635_v44  ;;  %v2942_v5 = vadd.f32 %v8251_v4, %v11423_v59  ;;  %v9653_v4 = vld [vmem:[%s11950_s8 + $0x8b8] sm:$0xff]  }
 0x3ad   :  { %8718 = vmatprep.subr.bf16.mxu1 %v9636_v16  ;;  %8750 = vmatprep.subr.bf16.mxu0 %v9637_v25  ;;  %v9652_v16 = vld [vmem:[%s11950_s8 + $0x870] sm:$0xff]  }
 0x3ae   :  { %5488 = vmatmul.mubr.bf16.gmra.mrb[180].mxu1 %v10575_v20  ;;  %5537 = vmatmul.mubr.bf16.gmra.mrb[188].mxu0 %v10616_v35  ;;  %v8252_v17 = vpop.f32.mrb[84].mxu1 }
 0x3af   :  { %5544 = vmatprep.mubr.bf16.mxu0 %v10672_v15  ;;  %5593 = vmatprep.mubr.bf16.mxu1 %v10725_v47  ;;  %v8253_v59 = vpop.f32.mrb[85].mxu1  ;;  %v9644_v15 = vld [vmem:[%s11950_s8 + $0x8a0] sm:$0xff]  }
 0x3b0   :  { %8719 = vmatpush3.bf16.msra.mxu1 %v9638_v54  ;;  %8751 = vmatpush3.bf16.msra.mxu0 %v9639_v63  ;;  %v8254_v62 = vadd.f32 %v8253_v59, %v8252_v17  ;;  %v8255_v20 = vpop.f32.mrb[86].mxu1  ;;  %v9645_v47 = vld [vmem:[%s11950_s8 + $0x8c0] sm:$0xff]  }
 0x3b1   :  { %8720 = vmatprep.subr.bf16.mxu1 %v9640_v12  ;;  %8752 = vmatprep.subr.bf16.mxu0 %v9641_v3  ;;  %v8256_v35 = vpop.f32.mrb[87].mxu1 }
 0x3b2   :  { %v8257_v58 = vadd.f32 %v8256_v35, %v8255_v20  ;;  %v2947_v2 = vadd.f32 %v8254_v62, %v11448_v34  ;;  %v9648_v34 = vld [vmem:[%s11950_s8 + $0x8c8] sm:$0xff]  }
 0x3b4   :  { %8721 = vmatpush3.bf16.msra.mxu1 %v9642_v30  ;;  %8753 = vmatpush3.bf16.msra.mxu0 %v9643_v43  ;;  %v2950_v8 = vadd.f32 %v8257_v58, %v11454_v27 }
 0x3b5   :  { %8754 = vmatprep.subr.bf16.mxu0 %v9644_v15  ;;  %9028 = vmatprep.subr.bf16.mxu1 %v9645_v47  ;;  %v9657_v15 = vld [vmem:[%s11950_s8 + $0x8e8] sm:$0xff]  }
 0x3b6   :  { %5545 = vmatmul.mubr.bf16.gmra.mrb[192].mxu0 %v10636_v51  ;;  %v8258_v14 = vpop.f32.mrb[88].mxu1  ;;  %v8974_v33 = vpop.f32.mrb[104].mxu0  ;;  %v9649_v51 = vld [vmem:[%s11950_s8 + $0x868] sm:$0xff]  }
 0x3b7   :  { %5594 = vmatmul.mubr.bf16.vlgmr.msra.gmra.mrb[184].mxu1 %v10690_v10  ;;  %5552 = vmatprep.mubr.bf16.mxu0 %v10670_v7  ;;  %v11589_v41 = vadd.f32 %v8974_v33, %v2947_v2  ;;  %v8259_v27 = vpop.f32.mrb[89].mxu1  ;;  %v3003_v60 = vpop.f32.mrb[105].mxu0 }
 0x3b8   :  { %5601 = vmatprep.mubr.bf16.mxu1 %v10723_v42  ;;  %8755 = vmatpush3.bf16.msra.mxu0 %v9646_v9  ;;  %v8260_v61 = vadd.f32 %v8259_v27, %v8258_v14  ;;  %v11592_v46 = vadd.f32 %v3003_v60, %v2939_v18  ;;  %v8261_v24 = vpop.f32.mrb[90].mxu1  ;;  %v8975_v49 = vpop.f32.mrb[106].mxu0  ;;  %v9650_v42 = vld [vmem:[%s11950_s8 + $0x8b0] sm:$0xff]  }
 0x3b9   :  { %9029 = vmatpush3.bf16.msra.mxu1 %v9645_v47  ;;  %8756 = vmatprep.subr.bf16.mxu0 %v9647_v32  ;;  %v11597_v10 = vadd.f32 %v8975_v49, %v2950_v8  ;;  %v8262_v7 = vpop.f32.mrb[91].mxu1  ;;  %v3006_v52 = vpop.f32.mrb[107].mxu0  ;;  %v9658_v8 = vld [vmem:[%s11950_s8 + $0x8f0] sm:$0xff]  }
 0x3ba   :  { %9030 = vmatprep.subr.bf16.mxu1 %v9648_v34  ;;  %v8263_v53 = vadd.f32 %v8262_v7, %v8261_v24  ;;  %v11602_v44 = vadd.f32 %v3006_v52, %v2942_v5  ;;  %v2955_v37 = vadd.f32 %v8260_v61, %v11480_v0  ;;  %v9654_v0 = vld [vmem:[%s11950_s8 + $0x8d8] sm:$0xff]  }
 0x3bc   :  { %8757 = vmatpush3.bf16.msra.mxu0 %v9649_v51  ;;  %v2958_v25 = vadd.f32 %v8263_v53, %v11486_v19 }
 0x3bd   :  { %9031 = vmatpush3.bf16.msra.mxu1 %v9648_v34  ;;  %8758 = vmatprep.subr.bf16.mxu0 %v9650_v42 }
 0x3be   :  { %5553 = vmatmul.mubr.bf16.gmra.mrb[196].mxu0 %v10634_v50  ;;  %9032 = vmatprep.subr.bf16.mxu1 %v9651_v23  ;;  %v8264_v18 = vpop.f32.mrb[92].mxu1  ;;  %v8978_v54 = vpop.f32.mrb[108].mxu0  ;;  %v9655_v50 = vld [vmem:[%s11950_s8 + $0x878] sm:$0xff]  }
 0x3bf   :  { %5602 = vmatmul.mubr.bf16.gmra.mrb[188].mxu1 %v10688_v28  ;;  %5658 = vmatprep.mubr.bf16.mxu0 %v10797_v39  ;;  %v8265_v19 = vpop.f32.mrb[93].mxu1  ;;  %v3019_v63 = vpop.f32.mrb[109].mxu0 }
 0x3c0   :  { %5609 = vmatprep.mubr.bf16.mxu1 %v10744_v57  ;;  %8759 = vmatpush3.bf16.msra.mxu0 %v9652_v16  ;;  %v8266_v5 = vadd.f32 %v8265_v19, %v8264_v18  ;;  %v11622_v12 = vadd.f32 %v3019_v63, %v2955_v37  ;;  %v8267_v3 = vpop.f32.mrb[94].mxu1  ;;  %v8979_v17 = vpop.f32.mrb[110].mxu0  ;;  %v9656_v57 = vld [vmem:[%s11950_s8 + $0x8e0] sm:$0xff]  }
 0x3c1   :  { %9033 = vmatpush3.bf16.msra.mxu1 %v9651_v23  ;;  %8760 = vmatprep.subr.bf16.mxu0 %v9653_v4  ;;  %v8268_v59 = vpop.f32.mrb[95].mxu1  ;;  %v3022_v28 = vpop.f32.mrb[111].mxu0 }
 0x3c2   :  { %9034 = vmatprep.subr.bf16.mxu1 %v9654_v0  ;;  %v2963_v39 = vadd.f32 %v8266_v5, %v11512_v1  ;;  %v8269_v62 = vadd.f32 %v8268_v59, %v8267_v3  ;;  %v11628_v30 = vadd.f32 %v3022_v28, %v2958_v25 }
 0x3c4   :  { %8761 = vmatpush3.bf16.msra.mxu0 %v9655_v50  ;;  %v2966_v43 = vadd.f32 %v8269_v62, %v11515_v22  ;;  %v11634_v20 = vadd.f32 %v8978_v54, %v2963_v39 }
 0x3c5   :  { %9035 = vmatpush3.bf16.msra.mxu1 %v9654_v0 }
 0x3c6   :  { %9036 = vmatprep.subr.bf16.mxu1 %v9656_v57  ;;  %v8298_v35 = vpop.f32.mrb[96].mxu1  ;;  %v11639_v1 = vadd.f32 %v8979_v17, %v2966_v43 }
 0x3c7   :  { %5610 = vmatmul.mubr.bf16.gmra.mrb[192].mxu1 %v10708_v29  ;;  %5659 = vmatmul.mubr.bf16.vlgmr.msra.gmra.mrb[200].mxu0 %v10762_v48  ;;  %v8299_v47 = vpop.f32.mrb[97].mxu1  ;;  %v9659_v48 = vld [vmem:[%s11950_s8 + $0x8f8] sm:$0xff]  }
 0x3c8   :  { %5617 = vmatprep.mubr.bf16.mxu1 %v10742_v55  ;;  %5666 = vmatprep.mubr.bf16.mxu0 %v10795_v36  ;;  %v8300_v22 = vadd.f32 %v8299_v47, %v8298_v35  ;;  %v8301_v58 = vpop.f32.mrb[98].mxu1 }
 0x3c9   :  { %9037 = vmatpush3.bf16.msra.mxu1 %v9656_v57  ;;  %v8302_v2 = vpop.f32.mrb[99].mxu1 }
 0x3ca   :  { %9038 = vmatprep.subr.bf16.mxu1 %v9657_v15  ;;  %v8303_v9 = vadd.f32 %v8302_v2, %v8301_v58 }
 0x3cd   :  { %9039 = vmatpush3.bf16.msra.mxu1 %v9657_v15 }
 0x3ce   :  { %9040 = vmatprep.subr.bf16.mxu1 %v9658_v8  ;;  %v8304_v29 = vpop.f32.mrb[100].mxu1 }
 0x3cf   :  { %5618 = vmatmul.mubr.bf16.gmra.mrb[196].mxu1 %v10706_v26  ;;  %5667 = vmatmul.mubr.bf16.gmra.mrb[204].mxu0 %v10760_v6  ;;  %v8305_v55 = vpop.f32.mrb[101].mxu1 }
 0x3d0   :  { %5674 = vmatprep.mubr.bf16.mxu0 %v10816_v56  ;;  %9044 = vmatprep.mubr.bf16.mxu1 %v10834_v21  ;;  %v8306_v36 = vadd.f32 %v8305_v55, %v8304_v29  ;;  %v8307_v32 = vpop.f32.mrb[102].mxu1 }
 0x3d1   :  { %9041 = vmatpush3.bf16.msra.mxu1 %v9658_v8  ;;  %v8308_v14 = vpop.f32.mrb[103].mxu1 }
 0x3d2   :  { %9042 = vmatprep.subr.bf16.mxu1 %v9659_v48  ;;  %v8309_v33 = vadd.f32 %v8308_v14, %v8307_v32 }
 0x3d5   :  { %9043 = vmatpush3.bf16.msra.mxu1 %v9659_v48 }
 0x3d6   :  { %v8338_v34 = vpop.f32.mrb[112].mxu0  ;;  %v8310_v27 = vpop.f32.mrb[104].mxu1 }
 0x3d7   :  { %5675 = vmatmul.mubr.bf16.gmra.mrb[208].mxu0 %v10780_v13  ;;  %v8339_v60 = vpop.f32.mrb[113].mxu0  ;;  %v8311_v26 = vpop.f32.mrb[105].mxu1 }
 0x3d8   :  { %9045 = vmatmul.mubr.bf16.vlgmr.msra.gmra.mrb[200].mxu1 %v10832_v45  ;;  %5682 = vmatprep.mubr.bf16.mxu0 %v10814_v40  ;;  %v8340_v6 = vadd.f32 %v8339_v60, %v8338_v34  ;;  %v8312_v56 = vadd.f32 %v8311_v26, %v8310_v27  ;;  %v8341_v21 = vpop.f32.mrb[114].mxu0  ;;  %v8313_v61 = vpop.f32.mrb[106].mxu1 }
 0x3d9   :  { %9048 = vmatprep.mubr.bf16.mxu1 %v10866_v38  ;;  %v8342_v51 = vpop.f32.mrb[115].mxu0  ;;  %v8314_v24 = vpop.f32.mrb[107].mxu1 }
 0x3da   :  { %v3711_v49 = vadd.f32 %v8340_v6, %v8300_v22  ;;  %v8343_v7 = vadd.f32 %v8342_v51, %v8341_v21  ;;  %v8315_v52 = vadd.f32 %v8314_v24, %v8313_v61 }
 0x3dc   :  { %v3714_v42 = vadd.f32 %v8343_v7, %v8303_v9 }
 0x3de   :  { %v8344_v53 = vpop.f32.mrb[116].mxu0  ;;  %v8316_v13 = vpop.f32.mrb[108].mxu1 }
 0x3df   :  { %5683 = vmatmul.mubr.bf16.gmra.mrb[212].mxu0 %v10778_v11  ;;  %v8345_v23 = vpop.f32.mrb[117].mxu0  ;;  %v8317_v45 = vpop.f32.mrb[109].mxu1 }
 0x3e0   :  { %9049 = vmatmul.mubr.bf16.gmra.mrb[204].mxu1 %v10864_v31  ;;  %v8346_v40 = vadd.f32 %v8345_v23, %v8344_v53  ;;  %v8318_v37 = vadd.f32 %v8317_v45, %v8316_v13  ;;  %v8347_v16 = vpop.f32.mrb[118].mxu0  ;;  %v8319_v25 = vpop.f32.mrb[110].mxu1 }
 0x3e1   :  { %v8348_v4 = vpop.f32.mrb[119].mxu0  ;;  %v8320_v38 = vpop.f32.mrb[111].mxu1 }
 0x3e2   :  { %v3719_v18 = vadd.f32 %v8346_v40, %v8306_v36  ;;  %v8349_v54 = vadd.f32 %v8348_v4, %v8347_v16  ;;  %v8321_v0 = vadd.f32 %v8320_v38, %v8319_v25 }
 0x3e4   :  { %v3722_v19 = vadd.f32 %v8349_v54, %v8309_v33 }
 0x3e6   :  { %v8350_v63 = vpop.f32.mrb[120].mxu0  ;;  %v8378_v5 = vpop.f32.mrb[112].mxu1 }
 0x3e7   :  { %v8351_v50 = vpop.f32.mrb[121].mxu0  ;;  %v8379_v3 = vpop.f32.mrb[113].mxu1 }
 0x3e8   :  { %v8352_v17 = vadd.f32 %v8351_v50, %v8350_v63  ;;  %v8353_v11 = vpop.f32.mrb[122].mxu0  ;;  %v8380_v59 = vadd.f32 %v8379_v3, %v8378_v5  ;;  %v8381_v28 = vpop.f32.mrb[114].mxu1 }
 0x3e9   :  { %v8354_v39 = vpop.f32.mrb[123].mxu0  ;;  %v8382_v31 = vpop.f32.mrb[115].mxu1 }
 0x3ea   :  { %v3727_v62 = vadd.f32 %v8352_v17, %v8312_v56  ;;  %v3776_v57 = vadd.f32 %v8380_v59, %v3711_v49  ;;  %v8355_v43 = vadd.f32 %v8354_v39, %v8353_v11  ;;  %v8383_v35 = vadd.f32 %v8382_v31, %v8381_v28 }
 0x3ec   :  { %v3730_v15 = vadd.f32 %v8355_v43, %v8315_v52  ;;  %v3779_v47 = vadd.f32 %v8383_v35, %v3714_v42 }
 0x3ee   :  { %v8356_v22 = vpop.f32.mrb[124].mxu0  ;;  %v8384_v58 = vpop.f32.mrb[116].mxu1 }
 0x3ef   :  { %v8357_v2 = vpop.f32.mrb[125].mxu0  ;;  %v8385_v9 = vpop.f32.mrb[117].mxu1 }
 0x3f0   :  { %v8358_v8 = vadd.f32 %v8357_v2, %v8356_v22  ;;  %v8359_v29 = vpop.f32.mrb[126].mxu0  ;;  %v8386_v48 = vadd.f32 %v8385_v9, %v8384_v58  ;;  %v8387_v55 = vpop.f32.mrb[118].mxu1 }
 0x3f1   :  { %v8360_v36 = vpop.f32.mrb[127].mxu0  ;;  %v8388_v32 = vpop.f32.mrb[119].mxu1 }
 0x3f2   :  { %v3735_v14 = vadd.f32 %v8358_v8, %v8318_v37  ;;  %v3784_v33 = vadd.f32 %v8386_v48, %v3719_v18  ;;  %v8361_v34 = vadd.f32 %v8360_v36, %v8359_v29  ;;  %v8389_v27 = vadd.f32 %v8388_v32, %v8387_v55 }
 0x3f4   :  { %v3738_v60 = vadd.f32 %v8361_v34, %v8321_v0  ;;  %v3787_v26 = vadd.f32 %v8389_v27, %v3722_v19 }
 0x3f6   :  { %v8390_v6 = vpop.f32.mrb[120].mxu1 }
 0x3f7   :  { %v8418_v56 = vpop.f32.mrb[128].mxu0  ;;  %v8391_v21 = vpop.f32.mrb[121].mxu1 }
 0x3f8   :  { %v8419_v61 = vpop.f32.mrb[129].mxu0  ;;  %v8392_v51 = vadd.f32 %v8391_v21, %v8390_v6  ;;  %v8393_v24 = vpop.f32.mrb[122].mxu1 }
 0x3f9   :  { %v8420_v49 = vadd.f32 %v8419_v61, %v8418_v56  ;;  %v8421_v7 = vpop.f32.mrb[130].mxu0  ;;  %v8394_v52 = vpop.f32.mrb[123].mxu1 }
 0x3fa   :  { %v3792_v42 = vadd.f32 %v8392_v51, %v3727_v62  ;;  %v8422_v53 = vpop.f32.mrb[131].mxu0  ;;  %v8395_v13 = vadd.f32 %v8394_v52, %v8393_v24 }
 0x3fb   :  { %v8423_v23 = vadd.f32 %v8422_v53, %v8421_v7  ;;  %v3841_v45 = vadd.f32 %v8420_v49, %v3776_v57 }
 0x3fc   :  { %v3795_v40 = vadd.f32 %v8395_v13, %v3730_v15 }
 0x3fd   :  { %v3844_v37 = vadd.f32 %v8423_v23, %v3779_v47 }
 0x3fe   :  { %v8396_v16 = vpop.f32.mrb[124].mxu1 }
 0x3ff   :  { %v8424_v25 = vpop.f32.mrb[132].mxu0  ;;  %v8397_v4 = vpop.f32.mrb[125].mxu1 }
 0x400   :  { %v8425_v38 = vpop.f32.mrb[133].mxu0  ;;  %v8398_v18 = vadd.f32 %v8397_v4, %v8396_v16  ;;  %v8399_v54 = vpop.f32.mrb[126].mxu1 }
 0x401   :  { %v8426_v0 = vadd.f32 %v8425_v38, %v8424_v25  ;;  %v8427_v19 = vpop.f32.mrb[134].mxu0  ;;  %v8400_v63 = vpop.f32.mrb[127].mxu1 }
 0x402   :  { %v3800_v5 = vadd.f32 %v8398_v18, %v3735_v14  ;;  %v8428_v50 = vpop.f32.mrb[135].mxu0  ;;  %v8401_v3 = vadd.f32 %v8400_v63, %v8399_v54 }
 0x403   :  { %v8429_v17 = vadd.f32 %v8428_v50, %v8427_v19  ;;  %v3849_v11 = vadd.f32 %v8426_v0, %v3784_v33 }
 0x404   :  { %v3803_v59 = vadd.f32 %v8401_v3, %v3738_v60 }
 0x405   :  { %v3852_v28 = vadd.f32 %v8429_v17, %v3787_v26 }
 0x406   :  { %v8998_v39 = vpop.f32.mrb[128].mxu1 }
 0x407   :  { %v8430_v31 = vpop.f32.mrb[136].mxu0  ;;  %v11661_v62 = vadd.f32 %v8998_v39, %v3849_v11  ;;  %v3905_v57 = vpop.f32.mrb[129].mxu1 }
 0x408   :  { %v8431_v43 = vpop.f32.mrb[137].mxu0  ;;  %v11663_v35 = vadd.f32 %v3905_v57, %v3841_v45  ;;  %v8999_v15 = vpop.f32.mrb[130].mxu1 }
 0x409   :  { %v8432_v47 = vadd.f32 %v8431_v43, %v8430_v31  ;;  %v3938_v22 = vmax.f32 %v11589_v41, %v11661_v62  ;;  %v8433_v58 = vpop.f32.mrb[138].mxu0  ;;  %v11667_v2 = vadd.f32 %v8999_v15, %v3852_v28  ;;  %v3908_v9 = vpop.f32.mrb[131].mxu1 }
 0x40a   :  { %v3936_v8 = vmax.f32 %v11592_v46, %v11663_v35  ;;  %v8434_v29 = vpop.f32.mrb[139].mxu0  ;;  %v11671_v48 = vadd.f32 %v3908_v9, %v3844_v37 }
 0x40b   :  { %v8435_v55 = vadd.f32 %v8434_v29, %v8433_v58  ;;  %v3939_v36 = vmax.f32 %v11597_v10, %v11667_v2  ;;  %v3857_v32 = vadd.f32 %v8432_v47, %v3792_v42 }
 0x40c   :  { %v3937_v14 = vmax.f32 %v11602_v44, %v11671_v48 }
 0x40d   :  { %v3860_v33 = vadd.f32 %v8435_v55, %v3795_v40 }
 0x40e   :  { %v9002_v34 = vpop.f32.mrb[132].mxu1 }
 0x40f   :  { %v8436_v27 = vpop.f32.mrb[140].mxu0  ;;  %v3921_v60 = vpop.f32.mrb[133].mxu1 }
 0x410   :  { %v8437_v26 = vpop.f32.mrb[141].mxu0  ;;  %v11677_v6 = vadd.f32 %v3921_v60, %v3857_v32  ;;  %v9003_v56 = vpop.f32.mrb[134].mxu1 }
 0x411   :  { %v8438_v21 = vadd.f32 %v8437_v26, %v8436_v27  ;;  %v8439_v61 = vpop.f32.mrb[142].mxu0  ;;  %v3924_v51 = vpop.f32.mrb[135].mxu1 }
 0x412   :  { %v3940_v24 = vmax.f32 %v11622_v12, %v11677_v6  ;;  %v8440_v49 = vpop.f32.mrb[143].mxu0  ;;  %v11681_v7 = vadd.f32 %v3924_v51, %v3860_v33 }
 0x413   :  { %v3865_v52 = vadd.f32 %v8438_v21, %v3800_v5  ;;  %v8441_v42 = vadd.f32 %v8440_v49, %v8439_v61 }
 0x414   :  { %v3941_v53 = vmax.f32 %v11628_v30, %v11681_v7 }
 0x415   :  { %v11685_v13 = vadd.f32 %v9002_v34, %v3865_v52  ;;  %v3868_v23 = vadd.f32 %v8441_v42, %v3803_v59 }
 0x417   :  { %v3942_v45 = vmax.f32 %v11634_v20, %v11685_v13  ;;  %v11689_v40 = vadd.f32 %v9003_v56, %v3868_v23  ;;  %v8470_v37 = vpop.f32.mrb[144].mxu0 }
 0x418   :  { %v8471_v16 = vpop.f32.mrb[145].mxu0 }
 0x419   :  { %v3943_v25 = vmax.f32 %v11639_v1, %v11689_v40  ;;  %v8472_v4 = vadd.f32 %v8471_v16, %v8470_v37  ;;  %v8473_v38 = vpop.f32.mrb[146].mxu0 }
 0x41a   :  { %v8474_v18 = vpop.f32.mrb[147].mxu0 }
 0x41b   :  { %v8475_v54 = vadd.f32 %v8474_v18, %v8473_v38 }
 0x41f   :  { %v8476_v0 = vpop.f32.mrb[148].mxu0 }
 0x420   :  { %v8477_v19 = vpop.f32.mrb[149].mxu0 }
 0x421   :  { %v8478_v63 = vadd.f32 %v8477_v19, %v8476_v0  ;;  %v8479_v5 = vpop.f32.mrb[150].mxu0 }
 0x422   :  { %v8480_v50 = vpop.f32.mrb[151].mxu0 }
 0x423   :  { %v8481_v3 = vadd.f32 %v8480_v50, %v8479_v5 }
 0x426   :  { %v8510_v17 = vpop.f32.mrb[136].mxu1 }
 0x427   :  { %v8482_v11 = vpop.f32.mrb[152].mxu0  ;;  %v8511_v59 = vpop.f32.mrb[137].mxu1 }
 0x428   :  { %v8483_v28 = vpop.f32.mrb[153].mxu0  ;;  %v8512_v39 = vadd.f32 %v8511_v59, %v8510_v17  ;;  %v8513_v31 = vpop.f32.mrb[138].mxu1 }
 0x429   :  { %v8484_v57 = vadd.f32 %v8483_v28, %v8482_v11  ;;  %v8485_v43 = vpop.f32.mrb[154].mxu0  ;;  %v8514_v15 = vpop.f32.mrb[139].mxu1 }
 0x42a   :  { %v4621_v47 = vadd.f32 %v8512_v39, %v8472_v4  ;;  %v8486_v58 = vpop.f32.mrb[155].mxu0  ;;  %v8515_v9 = vadd.f32 %v8514_v15, %v8513_v31 }
 0x42b   :  { %v8487_v29 = vadd.f32 %v8486_v58, %v8485_v43 }
 0x42c   :  { %v4624_v55 = vadd.f32 %v8515_v9, %v8475_v54 }
 0x42e   :  { %v8516_v32 = vpop.f32.mrb[140].mxu1 }
 0x42f   :  { %v8488_v33 = vpop.f32.mrb[156].mxu0  ;;  %v8517_v34 = vpop.f32.mrb[141].mxu1 }
 0x430   :  { %v8489_v27 = vpop.f32.mrb[157].mxu0  ;;  %v8518_v60 = vadd.f32 %v8517_v34, %v8516_v32  ;;  %v8519_v26 = vpop.f32.mrb[142].mxu1 }
 0x431   :  { %v8490_v56 = vadd.f32 %v8489_v27, %v8488_v33  ;;  %v8491_v21 = vpop.f32.mrb[158].mxu0  ;;  %v8520_v61 = vpop.f32.mrb[143].mxu1 }
 0x432   :  { %v4629_v51 = vadd.f32 %v8518_v60, %v8478_v63  ;;  %v8492_v49 = vpop.f32.mrb[159].mxu0  ;;  %v8521_v52 = vadd.f32 %v8520_v61, %v8519_v26 }
 0x433   :  { %v8493_v42 = vadd.f32 %v8492_v49, %v8491_v21 }
 0x434   :  { %v4632_v23 = vadd.f32 %v8521_v52, %v8481_v3 }
 0x436   :  { %v8522_v37 = vpop.f32.mrb[144].mxu1 }
 0x437   :  { %v8550_v16 = vpop.f32.mrb[160].mxu0  ;;  %v8523_v4 = vpop.f32.mrb[145].mxu1 }
 0x438   :  { %v8524_v38 = vadd.f32 %v8523_v4, %v8522_v37  ;;  %v8551_v18 = vpop.f32.mrb[161].mxu0  ;;  %v8525_v54 = vpop.f32.mrb[146].mxu1 }
 0x439   :  { %v8552_v0 = vadd.f32 %v8551_v18, %v8550_v16  ;;  %v8553_v19 = vpop.f32.mrb[162].mxu0  ;;  %v8526_v5 = vpop.f32.mrb[147].mxu1 }
 0x43a   :  { %v4637_v50 = vadd.f32 %v8524_v38, %v8484_v57  ;;  %v8527_v17 = vadd.f32 %v8526_v5, %v8525_v54  ;;  %v8554_v11 = vpop.f32.mrb[163].mxu0 }
 0x43b   :  { %v4686_v59 = vadd.f32 %v8552_v0, %v4621_v47  ;;  %v8555_v28 = vadd.f32 %v8554_v11, %v8553_v19  ;;  %v9660_v47 = vld [vmem:[%s11951_s9] sm:$0xff]  }
 0x43c   :  { %v4640_v39 = vadd.f32 %v8527_v17, %v8487_v29  ;;  %9060 = vmatprep.mubr.msk.bf16.mxu0 %vm5832_vm2, %v9660_v47 }
 0x43d   :  { %v4689_v63 = vadd.f32 %v8555_v28, %v4624_v55 }
 0x43e   :  { %v8528_v31 = vpop.f32.mrb[148].mxu1 }
 0x43f   :  { %v8556_v43 = vpop.f32.mrb[164].mxu0  ;;  %v8529_v15 = vpop.f32.mrb[149].mxu1 }
 0x440   :  { %v8530_v3 = vadd.f32 %v8529_v15, %v8528_v31  ;;  %v8557_v58 = vpop.f32.mrb[165].mxu0  ;;  %v8531_v9 = vpop.f32.mrb[150].mxu1 }
 0x441   :  { %v8558_v32 = vadd.f32 %v8557_v58, %v8556_v43  ;;  %v8559_v33 = vpop.f32.mrb[166].mxu0  ;;  %v8532_v34 = vpop.f32.mrb[151].mxu1 }
 0x442   :  { %v4645_v27 = vadd.f32 %v8530_v3, %v8490_v56  ;;  %v8533_v60 = vadd.f32 %v8532_v34, %v8531_v9  ;;  %v8560_v26 = vpop.f32.mrb[167].mxu0 }
 0x443   :  { %v4694_v21 = vadd.f32 %v8558_v32, %v4629_v51  ;;  %v8561_v57 = vadd.f32 %v8560_v26, %v8559_v33 }
 0x444   :  { %v4648_v61 = vadd.f32 %v8533_v60, %v8493_v42 }
 0x445   :  { %v4697_v29 = vadd.f32 %v8561_v57, %v4632_v23 }
 0x447   :  { %v8562_v55 = vpop.f32.mrb[168].mxu0 }
 0x448   :  { %v8590_v49 = vpop.f32.mrb[152].mxu1  ;;  %v8563_v52 = vpop.f32.mrb[169].mxu0 }
 0x449   :  { %v8564_v37 = vadd.f32 %v8563_v52, %v8562_v55  ;;  %v8591_v16 = vpop.f32.mrb[153].mxu1  ;;  %v8565_v4 = vpop.f32.mrb[170].mxu0 }
 0x44a   :  { %v8592_v56 = vadd.f32 %v8591_v16, %v8590_v49  ;;  %v8593_v38 = vpop.f32.mrb[154].mxu1  ;;  %v8566_v18 = vpop.f32.mrb[171].mxu0 }
 0x44b   :  { %v4702_v51 = vadd.f32 %v8564_v37, %v4637_v50  ;;  %v8567_v54 = vadd.f32 %v8566_v18, %v8565_v4  ;;  %v8594_v42 = vpop.f32.mrb[155].mxu1 }
 0x44c   :  { %v8595_v0 = vadd.f32 %v8594_v42, %v8593_v38  ;;  %v4751_v19 = vadd.f32 %v8592_v56, %v4686_v59 }
 0x44d   :  { %v4705_v5 = vadd.f32 %v8567_v54, %v4640_v39 }
 0x44e   :  { %v4754_v17 = vadd.f32 %v8595_v0, %v4689_v63 }
 0x44f   :  { %v8568_v11 = vpop.f32.mrb[172].mxu0 }
 0x450   :  { %v8596_v23 = vpop.f32.mrb[156].mxu1  ;;  %v8569_v28 = vpop.f32.mrb[173].mxu0 }
 0x451   :  { %v8570_v31 = vadd.f32 %v8569_v28, %v8568_v11  ;;  %v8597_v43 = vpop.f32.mrb[157].mxu1  ;;  %v8571_v15 = vpop.f32.mrb[174].mxu0 }
 0x452   :  { %v8598_v3 = vadd.f32 %v8597_v43, %v8596_v23  ;;  %v8599_v58 = vpop.f32.mrb[158].mxu1  ;;  %v8572_v9 = vpop.f32.mrb[175].mxu0 }
 0x453   :  { %v4710_v32 = vadd.f32 %v8570_v31, %v4645_v27  ;;  %v8573_v33 = vadd.f32 %v8572_v9, %v8571_v15  ;;  %v8600_v34 = vpop.f32.mrb[159].mxu1 }
 0x454   :  { %v8601_v60 = vadd.f32 %v8600_v34, %v8599_v58  ;;  %v4759_v50 = vadd.f32 %v8598_v3, %v4694_v21 }
 0x455   :  { %v4713_v26 = vadd.f32 %v8573_v33, %v4648_v61 }
 0x456   :  { %v4762_v57 = vadd.f32 %v8601_v60, %v4697_v29 }
 0x458   :  { %v8602_v47 = vpop.f32.mrb[160].mxu1  ;;  %v9022_v59 = vpop.f32.mrb[176].mxu0 }
 0x459   :  { %v4824_v39 = vadd.f32 %v9022_v59, %v4759_v50  ;;  %v8603_v63 = vpop.f32.mrb[161].mxu1  ;;  %v4815_v55 = vpop.f32.mrb[177].mxu0 }
 0x45a   :  { %v8604_v49 = vadd.f32 %v8603_v63, %v8602_v47  ;;  %v4816_v52 = vadd.f32 %v4815_v55, %v4751_v19  ;;  %v8605_v37 = vpop.f32.mrb[162].mxu1  ;;  %v9023_v16 = vpop.f32.mrb[178].mxu0 }
 0x45b   :  { %v11700_v4 = vmax.f32 %v3938_v22, %v4824_v39  ;;  %v4827_v27 = vadd.f32 %v9023_v16, %v4762_v57  ;;  %v8606_v56 = vpop.f32.mrb[163].mxu1  ;;  %v4818_v38 = vpop.f32.mrb[179].mxu0 }
 0x45c   :  { %v11705_v21 = vmax.f32 %v3936_v8, %v4816_v52  ;;  %v8607_v61 = vadd.f32 %v8606_v56, %v8605_v37  ;;  %v4819_v29 = vadd.f32 %v4818_v38, %v4754_v17  ;;  %v4767_v18 = vadd.f32 %v8604_v49, %v4702_v51 }
 0x45d   :  { %v11710_v54 = vmax.f32 %v3939_v36, %v4827_v27 }
 0x45e   :  { %v11715_v41 = vmax.f32 %v3937_v14, %v4819_v29  ;;  %v4770_v62 = vadd.f32 %v8607_v61, %v4705_v5 }
 0x460   :  { %v8608_v22 = vpop.f32.mrb[164].mxu1  ;;  %v9026_v42 = vpop.f32.mrb[180].mxu0 }
 0x461   :  { %v8609_v0 = vpop.f32.mrb[165].mxu1  ;;  %v4831_v46 = vpop.f32.mrb[181].mxu0 }
 0x462   :  { %v8610_v35 = vadd.f32 %v8609_v0, %v8608_v22  ;;  %v4832_v8 = vadd.f32 %v4831_v46, %v4767_v18  ;;  %v8611_v19 = vpop.f32.mrb[166].mxu1  ;;  %v9027_v17 = vpop.f32.mrb[182].mxu0 }
 0x463   :  { %v8612_v51 = vpop.f32.mrb[167].mxu1  ;;  %v4834_v11 = vpop.f32.mrb[183].mxu0 }
 0x464   :  { %v4775_v23 = vadd.f32 %v8610_v35, %v4710_v32  ;;  %v11720_v10 = vmax.f32 %v3940_v24, %v4832_v8  ;;  %v8613_v44 = vadd.f32 %v8612_v51, %v8611_v19  ;;  %v4835_v2 = vadd.f32 %v4834_v11, %v4770_v62 }
 0x466   :  { %v4840_v48 = vadd.f32 %v9026_v42, %v4775_v23  ;;  %v4778_v36 = vadd.f32 %v8613_v44, %v4713_v26  ;;  %v11725_v14 = vmax.f32 %v3941_v53, %v4835_v2 }
 0x468   :  { %v11730_v5 = vmax.f32 %v3942_v45, %v4840_v48  ;;  %v4843_v28 = vadd.f32 %v9027_v17, %v4778_v36 }
 0x469   :  { %v8642_v31 = vpop.f32.mrb[168].mxu1 }
 0x46a   :  { %v11735_v12 = vmax.f32 %v3943_v25, %v4843_v28  ;;  %v8643_v6 = vpop.f32.mrb[169].mxu1 }
 0x46b   :  { %v8644_v24 = vadd.f32 %v8643_v6, %v8642_v31  ;;  %v8645_v43 = vpop.f32.mrb[170].mxu1 }
 0x46c   :  { %v8646_v15 = vpop.f32.mrb[171].mxu1 }
 0x46d   :  { %v8647_v3 = vadd.f32 %v8646_v15, %v8645_v43 }
 0x471   :  { %v8648_v30 = vpop.f32.mrb[172].mxu1 }
 0x472   :  { %v8649_v7 = vpop.f32.mrb[173].mxu1 }
 0x473   :  { %v8650_v53 = vadd.f32 %v8649_v7, %v8648_v30  ;;  %v8651_v58 = vpop.f32.mrb[174].mxu1 }
 0x474   :  { %v8652_v9 = vpop.f32.mrb[175].mxu1 }
 0x475   :  { %v8653_v20 = vadd.f32 %v8652_v9, %v8651_v58 }
 0x479   :  { %v8654_v13 = vpop.f32.mrb[176].mxu1  ;;  %v8682_v45 = vpop.f32.mrb[184].mxu0 }
 0x47a   :  { %v8655_v32 = vpop.f32.mrb[177].mxu1  ;;  %v8683_v33 = vpop.f32.mrb[185].mxu0 }
 0x47b   :  { %v8656_v34 = vadd.f32 %v8655_v32, %v8654_v13  ;;  %v8684_v60 = vadd.f32 %v8683_v33, %v8682_v45  ;;  %v8657_v1 = vpop.f32.mrb[178].mxu1  ;;  %v8685_v40 = vpop.f32.mrb[186].mxu0 }
 0x47c   :  { %v8658_v25 = vpop.f32.mrb[179].mxu1  ;;  %v8686_v50 = vpop.f32.mrb[187].mxu0 }
 0x47d   :  { %v5531_v26 = vadd.f32 %v8684_v60, %v8644_v24  ;;  %v8659_v57 = vadd.f32 %v8658_v25, %v8657_v1  ;;  %v8687_v47 = vadd.f32 %v8686_v50, %v8685_v40 }
 0x47f   :  { %v5534_v59 = vadd.f32 %v8687_v47, %v8647_v3 }
 0x481   :  { %v8660_v39 = vpop.f32.mrb[180].mxu1  ;;  %v8688_v63 = vpop.f32.mrb[188].mxu0 }
 0x482   :  { %v8661_v55 = vpop.f32.mrb[181].mxu1  ;;  %v8689_v49 = vpop.f32.mrb[189].mxu0 }
 0x483   :  { %v8662_v52 = vadd.f32 %v8661_v55, %v8660_v39  ;;  %v8690_v37 = vadd.f32 %v8689_v49, %v8688_v63  ;;  %v8663_v16 = vpop.f32.mrb[182].mxu1  ;;  %v8691_v27 = vpop.f32.mrb[190].mxu0 }
 0x484   :  { %v8664_v56 = vpop.f32.mrb[183].mxu1  ;;  %v8692_v38 = vpop.f32.mrb[191].mxu0 }
 0x485   :  { %v5539_v61 = vadd.f32 %v8690_v37, %v8650_v53  ;;  %v8665_v29 = vadd.f32 %v8664_v56, %v8663_v16  ;;  %v8693_v18 = vadd.f32 %v8692_v38, %v8691_v27 }
 0x487   :  { %v5542_v62 = vadd.f32 %v8693_v18, %v8653_v20 }
 0x489   :  { %v8694_v22 = vpop.f32.mrb[192].mxu0 }
 0x48a   :  { %v8722_v42 = vpop.f32.mrb[184].mxu1  ;;  %v8695_v0 = vpop.f32.mrb[193].mxu0 }
 0x48b   :  { %v8696_v46 = vadd.f32 %v8695_v0, %v8694_v22  ;;  %v8723_v35 = vpop.f32.mrb[185].mxu1  ;;  %v8697_v8 = vpop.f32.mrb[194].mxu0 }
 0x48c   :  { %v8724_v19 = vadd.f32 %v8723_v35, %v8722_v42  ;;  %v8725_v17 = vpop.f32.mrb[186].mxu1  ;;  %v8698_v51 = vpop.f32.mrb[195].mxu0 }
 0x48d   :  { %v5547_v11 = vadd.f32 %v8696_v46, %v8656_v34  ;;  %v8699_v23 = vadd.f32 %v8698_v51, %v8697_v8  ;;  %v8726_v44 = vpop.f32.mrb[187].mxu1 }
 0x48e   :  { %v5596_v2 = vadd.f32 %v8724_v19, %v5531_v26  ;;  %v8727_v48 = vadd.f32 %v8726_v44, %v8725_v17 }
 0x48f   :  { %v5550_v36 = vadd.f32 %v8699_v23, %v8659_v57 }
 0x490   :  { %v5599_v28 = vadd.f32 %v8727_v48, %v5534_v59 }
 0x491   :  { %v8700_v31 = vpop.f32.mrb[196].mxu0 }
 0x492   :  { %v8728_v6 = vpop.f32.mrb[188].mxu1  ;;  %v8701_v24 = vpop.f32.mrb[197].mxu0 }
 0x493   :  { %v8702_v43 = vadd.f32 %v8701_v24, %v8700_v31  ;;  %v8729_v15 = vpop.f32.mrb[189].mxu1  ;;  %v8703_v3 = vpop.f32.mrb[198].mxu0 }
 0x494   :  { %v8730_v30 = vadd.f32 %v8729_v15, %v8728_v6  ;;  %v8731_v7 = vpop.f32.mrb[190].mxu1  ;;  %v8704_v53 = vpop.f32.mrb[199].mxu0 }
 0x495   :  { %v5555_v58 = vadd.f32 %v8702_v43, %v8662_v52  ;;  %v8705_v9 = vadd.f32 %v8704_v53, %v8703_v3  ;;  %v8732_v20 = vpop.f32.mrb[191].mxu1 }
 0x496   :  { %v5604_v13 = vadd.f32 %v8730_v30, %v5539_v61  ;;  %v8733_v45 = vadd.f32 %v8732_v20, %v8731_v7 }
 0x497   :  { %v5558_v32 = vadd.f32 %v8705_v9, %v8665_v29 }
 0x498   :  { %v5607_v33 = vadd.f32 %v8733_v45, %v5542_v62 }
 0x49a   :  { %v8734_v34 = vpop.f32.mrb[192].mxu1  ;;  %v8762_v60 = vpop.f32.mrb[200].mxu0 }
 0x49b   :  { %v8735_v1 = vpop.f32.mrb[193].mxu1  ;;  %v8763_v40 = vpop.f32.mrb[201].mxu0 }
 0x49c   :  { %v8736_v25 = vadd.f32 %v8735_v1, %v8734_v34  ;;  %v8764_v50 = vadd.f32 %v8763_v40, %v8762_v60  ;;  %v8737_v26 = vpop.f32.mrb[194].mxu1  ;;  %v8765_v57 = vpop.f32.mrb[202].mxu0 }
 0x49d   :  { %v8738_v47 = vpop.f32.mrb[195].mxu1  ;;  %v8766_v59 = vpop.f32.mrb[203].mxu0 }
 0x49e   :  { %v5612_v39 = vadd.f32 %v8736_v25, %v5547_v11  ;;  %v8739_v63 = vadd.f32 %v8738_v47, %v8737_v26  ;;  %v8767_v55 = vadd.f32 %v8766_v59, %v8765_v57  ;;  %v5661_v49 = vadd.f32 %v8764_v50, %v5596_v2 }
 0x4a0   :  { %v5615_v52 = vadd.f32 %v8739_v63, %v5550_v36  ;;  %v5664_v37 = vadd.f32 %v8767_v55, %v5599_v28 }
 0x4a2   :  { %v8740_v16 = vpop.f32.mrb[196].mxu1  ;;  %v8768_v27 = vpop.f32.mrb[204].mxu0 }
 0x4a3   :  { %v8741_v56 = vpop.f32.mrb[197].mxu1  ;;  %v8769_v38 = vpop.f32.mrb[205].mxu0 }
 0x4a4   :  { %v8742_v61 = vadd.f32 %v8741_v56, %v8740_v16  ;;  %v8770_v29 = vadd.f32 %v8769_v38, %v8768_v27  ;;  %v8743_v18 = vpop.f32.mrb[198].mxu1  ;;  %v8771_v62 = vpop.f32.mrb[206].mxu0 }
 0x4a5   :  { %v8744_v22 = vpop.f32.mrb[199].mxu1  ;;  %v8772_v42 = vpop.f32.mrb[207].mxu0 }
 0x4a6   :  { %v5620_v0 = vadd.f32 %v8742_v61, %v5555_v58  ;;  %v8745_v46 = vadd.f32 %v8744_v22, %v8743_v18  ;;  %v8773_v35 = vadd.f32 %v8772_v42, %v8771_v62  ;;  %v5669_v8 = vadd.f32 %v8770_v29, %v5604_v13  ;;  %v9668_v62 = vld [vmem:[%s11952_s10 + $0x10] sm:$0xff]   ;;  %v9664_v22 = vld [vmem:[%s11951_s9 + $0x20] sm:$0xff]   ;;  %v9665_v42 = vld [vmem:[%s11951_s9 + $0x28] sm:$0xff]  }
 0x4a8   :  { %v5623_v19 = vadd.f32 %v8745_v46, %v5558_v32  ;;  %v5672_v17 = vadd.f32 %v8773_v35, %v5607_v33  ;;  %v9667_v46 = vld [vmem:[%s11951_s9 + $0x38] sm:$0xff]   ;;  %v9669_v35 = vld [vmem:[%s11952_s10] sm:$0xff]  }
 0x4a9   :  { %9076 = vmatprep.subr.bf16.mxu1 %v9669_v35 }
 0x4aa   :  { %v8774_v51 = vpop.f32.mrb[208].mxu0  ;;  %9077 = vmatpush3.bf16.msra.mxu1 %v9669_v35 }
 0x4ab   :  { %v9046_v11 = vpop.f32.mrb[200].mxu1  ;;  %v8775_v23 = vpop.f32.mrb[209].mxu0 }
 0x4ac   :  { %v5734_v44 = vadd.f32 %v9046_v11, %v5669_v8  ;;  %v8776_v2 = vadd.f32 %v8775_v23, %v8774_v51  ;;  %v5725_v48 = vpop.f32.mrb[201].mxu1  ;;  %v8777_v36 = vpop.f32.mrb[210].mxu0  ;;  %v9670_v8 = vld [vmem:[%s11952_s10 + $0x8] sm:$0xff]   ;;  %v9673_v51 = vld [vmem:[%s11952_s10 + $0x30] sm:$0xff]  }
 0x4ad   :  { %v5726_v28 = vadd.f32 %v5725_v48, %v5661_v49  ;;  %v9047_v31 = vpop.f32.mrb[202].mxu1  ;;  %v8778_v6 = vpop.f32.mrb[211].mxu0  ;;  %9078 = vmatprep.subr.bf16.mxu1 %v9670_v8 }
 0x4ae   :  { %v5758_v24 = vmax.f32 %v11700_v4, %v5734_v44  ;;  %v5737_v43 = vadd.f32 %v9047_v31, %v5672_v17  ;;  %v8779_v15 = vadd.f32 %v8778_v6, %v8777_v36  ;;  %v5728_v3 = vpop.f32.mrb[203].mxu1  ;;  %v5677_v30 = vadd.f32 %v8776_v2, %v5612_v39  ;;  %9079 = vmatpush3.bf16.msra.mxu1 %v9670_v8  ;;  %v9672_v17 = vld [vmem:[%s11952_s10 + $0x20] sm:$0xff]  }
 0x4af   :  { %v5756_v7 = vmax.f32 %v11705_v21, %v5726_v28  ;;  %v5729_v53 = vadd.f32 %v5728_v3, %v5664_v37  ;;  %9116 = vmatprep.subr.bf16.mxu1 %v9672_v17 }
 0x4b0   :  { %v5759_v58 = vmax.f32 %v11710_v54, %v5737_v43  ;;  %v5680_v9 = vadd.f32 %v8779_v15, %v5615_v52  ;;  %v5766_v13 = vmax.f32 %v5758_v24, 0.0  ;;  %v9674_v43 = vld [vmem:[%s11952_s10 + $0x28] sm:$0xff]   ;;  %v9675_v15 = vld [vmem:[%s11952_s10 + $0x38] sm:$0xff]  }
 0x4b1   :  { %v5757_v20 = vmax.f32 %v11715_v41, %v5729_v53  ;;  %v5764_v33 = vmax.f32 %v5756_v7, 0.0 }
 0x4b2   :  { %v5767_v45 = vmax.f32 %v5759_v58, 0.0  ;;  %v8780_v32 = vpop.f32.mrb[212].mxu0 }
 0x4b3   :  { %v5765_v34 = vmax.f32 %v5757_v20, 0.0  ;;  %v9050_v60 = vpop.f32.mrb[204].mxu1  ;;  %v8781_v1 = vpop.f32.mrb[213].mxu0 }
 0x4b4   :  { %v8782_v4 = vadd.f32 %v8781_v1, %v8780_v32  ;;  %v5741_v40 = vpop.f32.mrb[205].mxu1  ;;  %v8783_v25 = vpop.f32.mrb[214].mxu0  ;;  %v5773_v50 = vpack.c.bf16 %v5767_v45, %v5766_v13 }
 0x4b5   :  { %v5742_v26 = vadd.f32 %v5741_v40, %v5677_v30  ;;  %v9051_v57 = vpop.f32.mrb[206].mxu1  ;;  %v8784_v21 = vpop.f32.mrb[215].mxu0  ;;  %v5772_v47 = vpack.c.bf16 %v5765_v34, %v5764_v33 }
 0x4b6   :  { %v5685_v59 = vadd.f32 %v8782_v4, %v5620_v0  ;;  %v8785_v54 = vadd.f32 %v8784_v21, %v8783_v25  ;;  %v5744_v39 = vpop.f32.mrb[207].mxu1  ;;  %v9666_v0 = vld [vmem:[%s11951_s9 + $0x30] sm:$0xff]  }
 0x4b7   :  { %v5760_v41 = vmax.f32 %v11720_v10, %v5742_v26  ;;  %v5745_v63 = vadd.f32 %v5744_v39, %v5680_v9  ;;  %9052 = vmatprep.subr.bf16.mxu0 %v5772_v47 }
 0x4b8   :  { %v5750_v55 = vadd.f32 %v9050_v60, %v5685_v59  ;;  %v5688_v49 = vadd.f32 %v8785_v54, %v5623_v19  ;;  %9053 = vmatpush3.bf16.msra.mxu0 %v5772_v47  ;;  %v9671_v19 = vld [vmem:[%s11952_s10 + $0x18] sm:$0xff]  }
 0x4b9   :  { %v5761_v52 = vmax.f32 %v11725_v14, %v5745_v63  ;;  %9054 = vmatprep.subr.bf16.mxu0 %v5773_v50  ;;  %v5768_v27 = vmax.f32 %v5760_v41, 0.0  ;;  %v9661_v14 = vld [vmem:[%s11951_s9 + $0x8] sm:$0xff]  }
 0x4ba   :  { %v5753_v37 = vadd.f32 %v9051_v57, %v5688_v49  ;;  %v5762_v16 = vmax.f32 %v11730_v5, %v5750_v55  ;;  %v9662_v5 = vld [vmem:[%s11951_s9 + $0x10] sm:$0xff]  }
 0x4bb   :  { %v5769_v56 = vmax.f32 %v5761_v52, 0.0 }
 0x4bc   :  { %9055 = vmatpush3.bf16.msra.mxu0 %v5773_v50  ;;  %v5763_v38 = vmax.f32 %v11735_v12, %v5753_v37  ;;  %v5770_v29 = vmax.f32 %v5762_v16, 0.0  ;;  %v9663_v12 = vld [vmem:[%s11951_s9 + $0x18] sm:$0xff]   ;;  %v6513_v37 = vld [vmem:[%s11953_s11] sm:$0xf] }
 0x4bd   :  { %v5774_v61 = vpack.c.bf16 %v5769_v56, %v5768_v27  ;;  %v6541_v16 = vsel %vm6539_vm3, %v6513_v37, 0 }
 0x4be   :  { %v5771_v18 = vmax.f32 %v5763_v38, 0.0 }
 0x4bf   :  { %9056 = vmatprep.subr.bf16.mxu0 %v5774_v61 }
 0x4c0   :  { %9057 = vmatpush3.bf16.msra.mxu0 %v5774_v61  ;;  %v5775_v10 = vpack.c.bf16 %v5771_v18, %v5770_v29 }
 0x4c2   :  { %9058 = vmatprep.subr.bf16.mxu0 %v5775_v10 }
 0x4c4   :  { %9059 = vmatpush3.bf16.msra.mxu0 %v5775_v10 }
 0x4c5   :  { %9096 = vmatprep.subr.bf16.mxu0 %v9668_v62 }
 0x4c7   :  { %9061 = vmatmul.mubr.msk.bf16.vlgmr.msra.gmra.mrb[216].mxu0 %vm5832_vm2, %v9661_v14 }
 0x4c8   :  { %9064 = vmatprep.mubr.msk.bf16.mxu0 %vm5832_vm2, %v9662_v5  ;;  %9097 = vmatpush3.bf16.msra.mxu0 %v9668_v62 }
 0x4c9   :  { %9098 = vmatprep.subr.bf16.mxu0 %v9671_v19 }
 0x4cc   :  { %9099 = vmatpush3.bf16.msra.mxu0 %v9671_v19 }
 0x4cd   :  { %9136 = vmatprep.subr.bf16.mxu0 %v9673_v51 }
 0x4cf   :  { %9065 = vmatmul.mubr.msk.bf16.gmra.mrb[220].mxu0 %vm5832_vm2, %v9663_v12 }
 0x4d0   :  { %9068 = vmatprep.mubr.msk.bf16.mxu0 %vm5832_vm2, %v9664_v22 }
 0x4d7   :  { %9069 = vmatmul.mubr.msk.bf16.gmra.mrb[224].mxu0 %vm5832_vm2, %v9665_v42 }
 0x4d8   :  { %9072 = vmatprep.mubr.msk.bf16.mxu0 %vm5832_vm2, %v9666_v0 }
 0x4df   :  { %9073 = vmatmul.mubr.msk.bf16.gmra.mrb[228].mxu0 %vm5832_vm2, %v9667_v46 }
 0x59a   :  { %v9062_v11 = vpop.f32.mrb[216].mxu0 }
 0x59b   :  { %v5891_v23 = vpop.f32.mrb[217].mxu0  ;;  %v5956_v2 = vmax.f32 %v9062_v11, 0.0 }
 0x59c   :  { %v9063_v44 = vpop.f32.mrb[218].mxu0  ;;  %v5954_v28 = vmax.f32 %v5891_v23, 0.0 }
 0x59d   :  { %v5957_v48 = vmax.f32 %v9063_v44, 0.0  ;;  %v5894_v36 = vpop.f32.mrb[219].mxu0 }
 0x59e   :  { %v5955_v31 = vmax.f32 %v5894_v36, 0.0 }
 0x59f   :  { %v5971_v6 = vpack.c.bf16 %v5957_v48, %v5956_v2 }
 0x5a0   :  { %v5970_v24 = vpack.c.bf16 %v5955_v31, %v5954_v28 }
 0x5a2   :  { %v9066_v3 = vpop.f32.mrb[220].mxu0  ;;  %9080 = vmatprep.mubr.msk.bf16.mxu1 %vm1667_vm1, %v5970_v24  ;;  %9100 = vmatprep.mubr.msk.bf16.mxu0 %vm1667_vm1, %v5970_v24 }
 0x5a3   :  { %v5907_v30 = vpop.f32.mrb[221].mxu0  ;;  %9081 = vmatmul.mubr.msk.bf16.vlgmr.msra.gmra.mrb[208].mxu1 %vm1667_vm1, %v5971_v6  ;;  %9101 = vmatmul.mubr.msk.bf16.vlgmr.msra.gmra.mrb[232].mxu0 %vm1667_vm1, %v5971_v6  ;;  %v5960_v53 = vmax.f32 %v9066_v3, 0.0 }
 0x5a4   :  { %v9067_v7 = vpop.f32.mrb[222].mxu0  ;;  %9117 = vmatpush3.bf16.msra.mxu1 %v9672_v17  ;;  %9137 = vmatpush3.bf16.msra.mxu0 %v9673_v51  ;;  %v5958_v20 = vmax.f32 %v5907_v30, 0.0 }
 0x5a5   :  { %v5961_v58 = vmax.f32 %v9067_v7, 0.0  ;;  %v5910_v9 = vpop.f32.mrb[223].mxu0  ;;  %9118 = vmatprep.subr.bf16.mxu1 %v9674_v43  ;;  %9138 = vmatprep.subr.bf16.mxu0 %v9675_v15 }
 0x5a6   :  { %v5959_v13 = vmax.f32 %v5910_v9, 0.0 }
 0x5a7   :  { %v5973_v45 = vpack.c.bf16 %v5961_v58, %v5960_v53 }
 0x5a8   :  { %v5972_v32 = vpack.c.bf16 %v5959_v13, %v5958_v20  ;;  %9119 = vmatpush3.bf16.msra.mxu1 %v9674_v43  ;;  %9139 = vmatpush3.bf16.msra.mxu0 %v9675_v15 }
 0x5a9   :  { %9218 = vmatprep.subr.msk.bf16.mxu1 %vm6539_vm3, %v6513_v37 }
 0x5aa   :  { %v9070_v33 = vpop.f32.mrb[224].mxu0  ;;  %9084 = vmatprep.mubr.msk.bf16.mxu1 %vm1667_vm1, %v5972_v32  ;;  %9104 = vmatprep.mubr.msk.bf16.mxu0 %vm1667_vm1, %v5972_v32 }
 0x5ab   :  { %v5923_v34 = vpop.f32.mrb[225].mxu0  ;;  %9085 = vmatmul.mubr.msk.bf16.gmra.mrb[212].mxu1 %vm1667_vm1, %v5973_v45  ;;  %9105 = vmatmul.mubr.msk.bf16.gmra.mrb[236].mxu0 %vm1667_vm1, %v5973_v45  ;;  %v5964_v1 = vmax.f32 %v9070_v33, 0.0 }
 0x5ac   :  { %v9071_v60 = vpop.f32.mrb[226].mxu0  ;;  %v5962_v25 = vmax.f32 %v5923_v34, 0.0 }
 0x5ad   :  { %v5965_v4 = vmax.f32 %v9071_v60, 0.0  ;;  %v5926_v40 = vpop.f32.mrb[227].mxu0 }
 0x5ae   :  { %v5963_v50 = vmax.f32 %v5926_v40, 0.0 }
 0x5af   :  { %v5975_v26 = vpack.c.bf16 %v5965_v4, %v5964_v1 }
 0x5b0   :  { %v5974_v57 = vpack.c.bf16 %v5963_v50, %v5962_v25 }
 0x5b2   :  { %v9074_v21 = vpop.f32.mrb[228].mxu0  ;;  %9088 = vmatprep.mubr.msk.bf16.mxu1 %vm1667_vm1, %v5974_v57  ;;  %9108 = vmatprep.mubr.msk.bf16.mxu0 %vm1667_vm1, %v5974_v57 }
 0x5b3   :  { %v5939_v47 = vpop.f32.mrb[229].mxu0  ;;  %9089 = vmatmul.mubr.msk.bf16.gmra.mrb[216].mxu1 %vm1667_vm1, %v5975_v26  ;;  %9109 = vmatmul.mubr.msk.bf16.gmra.mrb[240].mxu0 %vm1667_vm1, %v5975_v26  ;;  %v5968_v54 = vmax.f32 %v9074_v21, 0.0 }
 0x5b4   :  { %v9075_v59 = vpop.f32.mrb[230].mxu0  ;;  %v5966_v63 = vmax.f32 %v5939_v47, 0.0 }
 0x5b5   :  { %v5969_v39 = vmax.f32 %v9075_v59, 0.0  ;;  %v5942_v41 = vpop.f32.mrb[231].mxu0 }
 0x5b6   :  { %v5967_v55 = vmax.f32 %v5942_v41, 0.0 }
 0x5b7   :  { %v5977_v49 = vpack.c.bf16 %v5969_v39, %v5968_v54 }
 0x5b8   :  { %v5976_v52 = vpack.c.bf16 %v5967_v55, %v5966_v63 }
 0x5ba   :  { %9092 = vmatprep.mubr.msk.bf16.mxu1 %vm1667_vm1, %v5976_v52  ;;  %9112 = vmatprep.mubr.msk.bf16.mxu0 %vm1667_vm1, %v5976_v52 }
 0x5bb   :  { %9093 = vmatmul.mubr.msk.bf16.gmra.mrb[220].mxu1 %vm1667_vm1, %v5977_v49  ;;  %9113 = vmatmul.mubr.msk.bf16.gmra.mrb[244].mxu0 %vm1667_vm1, %v5977_v49 }
 0x5bc   :  { %9120 = vmatprep.mubr.msk.bf16.mxu1 %vm1667_vm1, %v5970_v24  ;;  %9140 = vmatprep.mubr.msk.bf16.mxu0 %vm1667_vm1, %v5970_v24 }
 0x5c3   :  { %9121 = vmatmul.mubr.msk.bf16.vlgmr.msra.gmra.mrb[224].mxu1 %vm1667_vm1, %v5971_v6  ;;  %9141 = vmatmul.mubr.msk.bf16.vlgmr.msra.gmra.mrb[248].mxu0 %vm1667_vm1, %v5971_v6 }
 0x5c4   :  { %9124 = vmatprep.mubr.msk.bf16.mxu1 %vm1667_vm1, %v5972_v32  ;;  %9144 = vmatprep.mubr.msk.bf16.mxu0 %vm1667_vm1, %v5972_v32 }
 0x5c5   :  { %9157 = vmatpush3.bf16.msra.mxu1 %v6541_v16 }
 0x5cb   :  { %9125 = vmatmul.mubr.msk.bf16.gmra.mrb[228].mxu1 %vm1667_vm1, %v5973_v45  ;;  %9145 = vmatmul.mubr.msk.bf16.gmra.mrb[252].mxu0 %vm1667_vm1, %v5973_v45 }
 0x5cc   :  { %9128 = vmatprep.mubr.msk.bf16.mxu1 %vm1667_vm1, %v5974_v57  ;;  %9148 = vmatprep.mubr.msk.bf16.mxu0 %vm1667_vm1, %v5974_v57 }
 0x5d3   :  { %9129 = vmatmul.mubr.msk.bf16.gmra.mrb[232].mxu1 %vm1667_vm1, %v5975_v26  ;;  %9149 = vmatmul.mubr.msk.bf16.gmra.mrb[0].mxu0 %vm1667_vm1, %v5975_v26 }
 0x5d4   :  { %9132 = vmatprep.mubr.msk.bf16.mxu1 %vm1667_vm1, %v5976_v52  ;;  %9152 = vmatprep.mubr.msk.bf16.mxu0 %vm1667_vm1, %v5976_v52 }
 0x5db   :  { %9133 = vmatmul.mubr.msk.bf16.gmra.mrb[236].mxu1 %vm1667_vm1, %v5977_v49  ;;  %9153 = vmatmul.mubr.msk.bf16.gmra.mrb[4].mxu0 %vm1667_vm1, %v5977_v49 }
 0x676   :  { %v9082_v27 = vpop.f32.mrb[208].mxu1  ;;  %v9102_v56 = vpop.f32.mrb[232].mxu0 }
 0x677   :  { %v6231_v38 = vmax.f32 %v9082_v27, %v9102_v56  ;;  %v6052_v61 = vpop.f32.mrb[209].mxu1  ;;  %v6166_v29 = vpop.f32.mrb[233].mxu0 }
 0x678   :  { %v6229_v18 = vmax.f32 %v6052_v61, %v6166_v29  ;;  %v9083_v10 = vpop.f32.mrb[210].mxu1  ;;  %v9103_v62 = vpop.f32.mrb[234].mxu0 }
 0x679   :  { %v6232_v14 = vmax.f32 %v9083_v10, %v9103_v62  ;;  %v6055_v5 = vpop.f32.mrb[211].mxu1  ;;  %v6169_v12 = vpop.f32.mrb[235].mxu0 }
 0x67a   :  { %v6230_v22 = vmax.f32 %v6055_v5, %v6169_v12 }
 0x67e   :  { %v9086_v42 = vpop.f32.mrb[212].mxu1  ;;  %v9106_v0 = vpop.f32.mrb[236].mxu0 }
 0x67f   :  { %v6235_v46 = vmax.f32 %v9086_v42, %v9106_v0  ;;  %v6068_v35 = vpop.f32.mrb[213].mxu1  ;;  %v6182_v8 = vpop.f32.mrb[237].mxu0 }
 0x680   :  { %v6233_v19 = vmax.f32 %v6068_v35, %v6182_v8  ;;  %v9087_v17 = vpop.f32.mrb[214].mxu1  ;;  %v9107_v51 = vpop.f32.mrb[238].mxu0 }
 0x681   :  { %v6236_v11 = vmax.f32 %v9087_v17, %v9107_v51  ;;  %v6071_v23 = vpop.f32.mrb[215].mxu1  ;;  %v6185_v44 = vpop.f32.mrb[239].mxu0 }
 0x682   :  { %v6234_v2 = vmax.f32 %v6071_v23, %v6185_v44 }
 0x686   :  { %v11832_v48 = vpop.f32.mrb[216].mxu1  ;;  %v11834_v36 = vpop.f32.mrb[240].mxu0 }
 0x687   :  { %v6239_v28 = vmax.f32 %v11832_v48, %v11834_v36  ;;  %v11838_v31 = vpop.f32.mrb[217].mxu1  ;;  %v11840_v6 = vpop.f32.mrb[241].mxu0 }
 0x688   :  { %v6237_v24 = vmax.f32 %v11838_v31, %v11840_v6  ;;  %v11844_v43 = vpop.f32.mrb[218].mxu1  ;;  %v11846_v15 = vpop.f32.mrb[242].mxu0 }
 0x689   :  { %v6240_v3 = vmax.f32 %v11844_v43, %v11846_v15  ;;  %v11850_v30 = vpop.f32.mrb[219].mxu1  ;;  %v11852_v7 = vpop.f32.mrb[243].mxu0 }
 0x68a   :  { %v6238_v53 = vmax.f32 %v11850_v30, %v11852_v7 }
 0x68e   :  { %v11856_v58 = vpop.f32.mrb[220].mxu1  ;;  %v11858_v9 = vpop.f32.mrb[244].mxu0 }
 0x68f   :  { %v6243_v20 = vmax.f32 %v11856_v58, %v11858_v9  ;;  %v11862_v13 = vpop.f32.mrb[221].mxu1  ;;  %v11864_v45 = vpop.f32.mrb[245].mxu0 }
 0x690   :  { %v6241_v32 = vmax.f32 %v11862_v13, %v11864_v45  ;;  %v11868_v33 = vpop.f32.mrb[222].mxu1  ;;  %v11870_v34 = vpop.f32.mrb[246].mxu0 }
 0x691   :  { %v6244_v60 = vmax.f32 %v11868_v33, %v11870_v34  ;;  %v11874_v1 = vpop.f32.mrb[223].mxu1  ;;  %v11876_v4 = vpop.f32.mrb[247].mxu0  ;;  %v9676_v33 = vld [vmem:[%s11954_s12] sm:$0xff]  }
 0x692   :  { %v6242_v40 = vmax.f32 %v11874_v1, %v11876_v4  ;;  %9190 = vmatprep.mubr.bf16.mxu0 %v9676_v33 }
 0x696   :  { %v9122_v25 = vpop.f32.mrb[224].mxu1  ;;  %v9142_v50 = vpop.f32.mrb[248].mxu0 }
 0x697   :  { %v6361_v26 = vmax.f32 %v6231_v38, %v9122_v25  ;;  %v6296_v57 = vpop.f32.mrb[225].mxu1  ;;  %v6426_v21 = vpop.f32.mrb[249].mxu0 }
 0x698   :  { %v6359_v47 = vmax.f32 %v6229_v18, %v6296_v57  ;;  %v9123_v59 = vpop.f32.mrb[226].mxu1  ;;  %v9143_v54 = vpop.f32.mrb[250].mxu0 }
 0x699   :  { %v6491_v39 = vmax.f32 %v6361_v26, %v9142_v50  ;;  %v6362_v41 = vmax.f32 %v6232_v14, %v9123_v59  ;;  %v6299_v63 = vpop.f32.mrb[227].mxu1  ;;  %v6429_v55 = vpop.f32.mrb[251].mxu0 }
 0x69a   :  { %v6489_v49 = vmax.f32 %v6359_v47, %v6426_v21  ;;  %v6360_v52 = vmax.f32 %v6230_v22, %v6299_v63 }
 0x69b   :  { %v6492_v37 = vmax.f32 %v6362_v41, %v9143_v54 }
 0x69c   :  { %v6490_v16 = vmax.f32 %v6360_v52, %v6429_v55 }
 0x69d   :  { %v6506_v27 = vpack.c.bf16 %v6492_v37, %v6491_v39 }
 0x69e   :  { %v6505_v56 = vpack.c.bf16 %v6490_v16, %v6489_v49  ;;  %v9126_v61 = vpop.f32.mrb[228].mxu1  ;;  %v9146_v29 = vpop.f32.mrb[252].mxu0 }
 0x69f   :  { %v6365_v10 = vmax.f32 %v6235_v46, %v9126_v61  ;;  %v6312_v38 = vpop.f32.mrb[229].mxu1  ;;  %v6442_v62 = vpop.f32.mrb[253].mxu0 }
 0x6a0   :  { %v6363_v5 = vmax.f32 %v6233_v19, %v6312_v38  ;;  %v9127_v18 = vpop.f32.mrb[230].mxu1  ;;  %v9147_v12 = vpop.f32.mrb[254].mxu0  ;;  %9158 = vmatprep.mubr.msk.bf16.mxu1 %vm6514_vm4, %v6505_v56 }
 0x6a1   :  { %v6495_v14 = vmax.f32 %v6365_v10, %v9146_v29  ;;  %v6366_v42 = vmax.f32 %v6236_v11, %v9127_v18  ;;  %v6315_v0 = vpop.f32.mrb[231].mxu1  ;;  %v6445_v35 = vpop.f32.mrb[255].mxu0  ;;  %9159 = vmatmul.mubr.msk.bf16.vlgmr.msra.gmra.mrb[240].mxu1 %vm6514_vm4, %v6506_v27 }
 0x6a2   :  { %v6493_v22 = vmax.f32 %v6363_v5, %v6442_v62  ;;  %v6364_v8 = vmax.f32 %v6234_v2, %v6315_v0 }
 0x6a3   :  { %v6496_v17 = vmax.f32 %v6366_v42, %v9147_v12 }
 0x6a4   :  { %v6494_v51 = vmax.f32 %v6364_v8, %v6445_v35 }
 0x6a5   :  { %v6508_v23 = vpack.c.bf16 %v6496_v17, %v6495_v14 }
 0x6a6   :  { %v6507_v44 = vpack.c.bf16 %v6494_v51, %v6493_v22  ;;  %v9130_v46 = vpop.f32.mrb[232].mxu1  ;;  %v9150_v25 = vpop.f32.mrb[0].mxu0  ;;  %v9677_v51 = vld [vmem:[%s11954_s12 + $0x8] sm:$0xff]  }
 0x6a7   :  { %v6369_v19 = vmax.f32 %v6239_v28, %v9130_v46  ;;  %v6328_v50 = vpop.f32.mrb[233].mxu1  ;;  %v6458_v26 = vpop.f32.mrb[1].mxu0  ;;  %v9680_v46 = vld [vmem:[%s11955_s14] sm:$0xff]  }
 0x6a8   :  { %v6367_v11 = vmax.f32 %v6237_v24, %v6328_v50  ;;  %v9131_v57 = vpop.f32.mrb[234].mxu1  ;;  %v9151_v21 = vpop.f32.mrb[2].mxu0  ;;  %9162 = vmatprep.mubr.msk.bf16.mxu1 %vm6514_vm4, %v6507_v44  ;;  %v9679_v44 = vld [vmem:[%s11954_s12 + $0x18] sm:$0xff]  }
 0x6a9   :  { %v6499_v2 = vmax.f32 %v6369_v19, %v9150_v25  ;;  %v6370_v47 = vmax.f32 %v6240_v3, %v9131_v57  ;;  %v6331_v59 = vpop.f32.mrb[235].mxu1  ;;  %v6461_v54 = vpop.f32.mrb[3].mxu0  ;;  %9163 = vmatmul.mubr.msk.bf16.gmra.mrb[244].mxu1 %vm6514_vm4, %v6508_v23  ;;  %v9678_v23 = vld [vmem:[%s11954_s12 + $0x10] sm:$0xff]  }
 0x6aa   :  { %v6497_v48 = vmax.f32 %v6367_v11, %v6458_v26  ;;  %v6368_v36 = vmax.f32 %v6238_v53, %v6331_v59  ;;  %v6667_v25 = vpop.permute.xlu0 %6666  ;;  %v6672_v19 = vpop.permute.xlu1 %6671 }
 0x6ab   :  { %v6500_v28 = vmax.f32 %v6370_v47, %v9151_v21 }
 0x6ac   :  { %v6498_v31 = vmax.f32 %v6368_v36, %v6461_v54 }
 0x6ad   :  { %v6510_v6 = vpack.c.bf16 %v6500_v28, %v6499_v2 }
 0x6ae   :  { %v6509_v24 = vpack.c.bf16 %v6498_v31, %v6497_v48  ;;  %v9134_v39 = vpop.f32.mrb[236].mxu1  ;;  %v9154_v41 = vpop.f32.mrb[4].mxu0 }
 0x6af   :  { %v6373_v43 = vmax.f32 %v6243_v20, %v9134_v39  ;;  %v6344_v15 = vpop.f32.mrb[237].mxu1  ;;  %v6474_v3 = vpop.f32.mrb[5].mxu0 }
 0x6b0   :  { %v6371_v63 = vmax.f32 %v6241_v32, %v6344_v15  ;;  %v9135_v55 = vpop.f32.mrb[238].mxu1  ;;  %v9155_v49 = vpop.f32.mrb[6].mxu0  ;;  %9166 = vmatprep.mubr.msk.bf16.mxu1 %vm6514_vm4, %v6509_v24 }
 0x6b1   :  { %v6503_v30 = vmax.f32 %v6373_v43, %v9154_v41  ;;  %v6374_v7 = vmax.f32 %v6244_v60, %v9135_v55  ;;  %v6347_v53 = vpop.f32.mrb[239].mxu1  ;;  %v6477_v52 = vpop.f32.mrb[7].mxu0  ;;  %9167 = vmatmul.mubr.msk.bf16.gmra.mrb[248].mxu1 %vm6514_vm4, %v6510_v6 }
 0x6b2   :  { %v6501_v58 = vmax.f32 %v6371_v63, %v6474_v3  ;;  %v6372_v9 = vmax.f32 %v6242_v40, %v6347_v53  ;;  %v6677_v50 = vpop.permute.xlu0 %6676  ;;  %v6682_v26 = vpop.permute.xlu1 %6681 }
 0x6b3   :  { %v6504_v20 = vmax.f32 %v6374_v7, %v9155_v49 }
 0x6b4   :  { %v6502_v13 = vmax.f32 %v6372_v9, %v6477_v52 }
 0x6b5   :  { %v6512_v45 = vpack.c.bf16 %v6504_v20, %v6503_v30 }
 0x6b6   :  { %v6511_v32 = vpack.c.bf16 %v6502_v13, %v6501_v58  ;;  %v6687_v2 = vpop.permute.xlu0 %6686  ;;  %v6692_v36 = vpop.permute.xlu1 %6691 }
 0x6b8   :  { %9170 = vmatprep.mubr.msk.bf16.mxu1 %vm6514_vm4, %v6511_v32 }
 0x6b9   :  { %9171 = vmatmul.mubr.msk.bf16.gmra.mrb[252].mxu1 %vm6514_vm4, %v6512_v45 }
 0x6ba   :  { %9206 = vmatprep.mubr.msk.bf16.mxu1 %vm5832_vm2, %v9680_v46  ;;  %v6697_v43 = vpop.permute.xlu0 %6696  ;;  %v6702_v49 = vpop.permute.xlu1 %6701 }
 0x774   :  { %v9160_v34 = vpop.f32.mrb[240].mxu1 }
 0x775   :  { %v6577_v60 = vpop.f32.mrb[241].mxu1 }
 0x776   :  { %v9161_v37 = vpop.f32.mrb[242].mxu1 }
 0x777   :  { %v6649_v16 = vpack.c.bf16 %v9161_v37, %v9160_v34  ;;  %v6580_v27 = vpop.f32.mrb[243].mxu1  ;;  %v9681_v34 = vld [vmem:[%s11955_s14 + $0x8] sm:$0xff]   ;;  %v6816_v37 = vpop.permute.xlu0 %6815 }
 0x778   :  { %v6648_v1 = vpack.c.bf16 %v6580_v27, %v6577_v60  ;;  %v9687_v60 = vmov 0.0  }
 0x77a   :  { %9174 = vmatprep.subr.bf16.mxu0 %v6648_v1 }
 0x77b   :  { %9175 = vmatpush3.bf16.msra.mxu0 %v6648_v1  ;;  %v6826_v27 = vpop.permute.xlu0 %6825 }
 0x77c   :  { %v9164_v4 = vpop.f32.mrb[244].mxu1  ;;  %9176 = vmatprep.subr.bf16.mxu0 %v6649_v16 }
 0x77d   :  { %v6593_v40 = vpop.f32.mrb[245].mxu1 }
 0x77e   :  { %v9165_v56 = vpop.f32.mrb[246].mxu1 }
 0x77f   :  { %v6651_v61 = vpack.c.bf16 %v9165_v56, %v9164_v4  ;;  %v6596_v29 = vpop.f32.mrb[247].mxu1  ;;  %9177 = vmatpush3.bf16.msra.mxu0 %v6649_v16  ;;  %v6821_v16 = vpop.permute.xlu1 %6820 }
 0x780   :  { %v6650_v10 = vpack.c.bf16 %v6596_v29, %v6593_v40 }
 0x782   :  { %9178 = vmatprep.subr.bf16.mxu0 %v6650_v10 }
 0x783   :  { %9179 = vmatpush3.bf16.msra.mxu0 %v6650_v10  ;;  %v6831_v56 = vpop.permute.xlu1 %6830 }
 0x784   :  { %v9168_v38 = vpop.f32.mrb[248].mxu1  ;;  %9180 = vmatprep.subr.bf16.mxu0 %v6651_v61 }
 0x785   :  { %v6609_v62 = vpop.f32.mrb[249].mxu1 }
 0x786   :  { %v9169_v5 = vpop.f32.mrb[250].mxu1 }
 0x787   :  { %v6653_v18 = vpack.c.bf16 %v9169_v5, %v9168_v38  ;;  %v6612_v12 = vpop.f32.mrb[251].mxu1  ;;  %9181 = vmatpush3.bf16.msra.mxu0 %v6651_v61 }
 0x788   :  { %v6652_v14 = vpack.c.bf16 %v6612_v12, %v6609_v62 }
 0x78a   :  { %9182 = vmatprep.subr.bf16.mxu0 %v6652_v14 }
 0x78b   :  { %9183 = vmatpush3.bf16.msra.mxu0 %v6652_v14 }
 0x78c   :  { %v9172_v42 = vpop.f32.mrb[252].mxu1  ;;  %9184 = vmatprep.subr.bf16.mxu0 %v6653_v18 }
 0x78d   :  { %v6625_v0 = vpop.f32.mrb[253].mxu1 }
 0x78e   :  { %v9173_v35 = vpop.f32.mrb[254].mxu1 }
 0x78f   :  { %v6655_v22 = vpack.c.bf16 %v9173_v35, %v9172_v42  ;;  %v6628_v8 = vpop.f32.mrb[255].mxu1  ;;  %9185 = vmatpush3.bf16.msra.mxu0 %v6653_v18  ;;  %v6902_v35 = vld [vmem:[%s11956_s16] sm:$0x1] }
 0x790   :  { %v6654_v17 = vpack.c.bf16 %v6628_v8, %v6625_v0 }
 0x792   :  { %9186 = vmatprep.subr.bf16.mxu0 %v6654_v17 }
 0x793   :  { %9187 = vmatpush3.bf16.msra.mxu0 %v6654_v17 }
 0x794   :  { %9188 = vmatprep.subr.bf16.mxu0 %v6655_v22 }
 0x797   :  { %9189 = vmatpush3.bf16.msra.mxu0 %v6655_v22  ;;  %v6909_v22 = vpop.permute.xlu0 %6908 }
 0x79a   :  { %9191 = vmatmul.mubr.bf16.vlgmr.msra.gmra.mrb[8].mxu0 %v9677_v51 }
 0x79b   :  { %9194 = vmatprep.mubr.bf16.mxu0 %v9678_v23 }
 0x7a2   :  { %9195 = vmatmul.mubr.bf16.gmra.mrb[12].mxu0 %v9679_v44 }
 0x86d   :  { %v9192_v11 = vpop.f32.mrb[8].mxu0 }
 0x86e   :  { %v6771_v57 = vadd.f32 %v9192_v11, %v6677_v50  ;;  %v6762_v21 = vpop.f32.mrb[9].mxu0 }
 0x86f   :  { %v6763_v47 = vadd.f32 %v6762_v21, %v6667_v25  ;;  %v9193_v59 = vpop.f32.mrb[10].mxu0 }
 0x870   :  { %v6774_v54 = vadd.f32 %v9193_v59, %v6682_v26  ;;  %v6765_v48 = vpop.f32.mrb[11].mxu0  ;;  %v6795_v31 = vmax.f32 %v6771_v57, 0.0 }
 0x871   :  { %v6766_v28 = vadd.f32 %v6765_v48, %v6672_v19  ;;  %v6793_v24 = vmax.f32 %v6763_v47, 0.0 }
 0x872   :  { %v6796_v6 = vmax.f32 %v6774_v54, 0.0 }
 0x873   :  { %v6794_v39 = vmax.f32 %v6766_v28, 0.0 }
 0x874   :  { %v6806_v41 = vpack.c.bf16 %v6796_v6, %v6795_v31 }
 0x875   :  { %v6805_v15 = vpack.c.bf16 %v6794_v39, %v6793_v24  ;;  %v9196_v3 = vpop.f32.mrb[12].mxu0 }
 0x876   :  { %v6787_v63 = vadd.f32 %v9196_v3, %v6697_v43  ;;  %v6778_v55 = vpop.f32.mrb[13].mxu0 }
 0x877   :  { %v6779_v30 = vadd.f32 %v6778_v55, %v6687_v2  ;;  %v9197_v7 = vpop.f32.mrb[14].mxu0  ;;  %9198 = vmatprep.subr.bf16.mxu1 %v6805_v15 }
 0x878   :  { %v6790_v53 = vadd.f32 %v9197_v7, %v6702_v49  ;;  %v6781_v52 = vpop.f32.mrb[15].mxu0  ;;  %9199 = vmatpush3.bf16.msra.mxu1 %v6805_v15  ;;  %v6799_v9 = vmax.f32 %v6787_v63, 0.0 }
 0x879   :  { %v6782_v58 = vadd.f32 %v6781_v52, %v6692_v36  ;;  %9200 = vmatprep.subr.bf16.mxu1 %v6806_v41  ;;  %v6797_v13 = vmax.f32 %v6779_v30, 0.0 }
 0x87a   :  { %v6800_v20 = vmax.f32 %v6790_v53, 0.0 }
 0x87b   :  { %v6798_v45 = vmax.f32 %v6782_v58, 0.0 }
 0x87c   :  { %v6808_v32 = vpack.c.bf16 %v6800_v20, %v6799_v9  ;;  %9201 = vmatpush3.bf16.msra.mxu1 %v6806_v41 }
 0x87d   :  { %v6807_v33 = vpack.c.bf16 %v6798_v45, %v6797_v13 }
 0x87f   :  { %9202 = vmatprep.subr.bf16.mxu1 %v6807_v33 }
 0x880   :  { %9203 = vmatpush3.bf16.msra.mxu1 %v6807_v33 }
 0x881   :  { %9204 = vmatprep.subr.bf16.mxu1 %v6808_v32 }
 0x884   :  { %9205 = vmatpush3.bf16.msra.mxu1 %v6808_v32 }
 0x885   :  { %9210 = vmatprep.subr.bf16.mxu1 %v9687_v60 }
 0x887   :  { %9207 = vmatmul.mubr.msk.bf16.vlgmr.msra.gmra.mrb[0].mxu1 %vm5832_vm2, %v9681_v34 }
 0x888   :  { %9214 = vmatprep.mubr.msk.bf16.mxu1 %vm9688_vm5, %v9687_v60 }
 0x95a   :  { %v9208_v1 = vpop.f32.mrb[0].mxu1 }
 0x95b   :  { %v6892_v4 = vadd.f32 %v9208_v1, %v6826_v27  ;;  %v6883_v40 = vpop.f32.mrb[1].mxu1 }
 0x95c   :  { %v6884_v61 = vadd.f32 %v6883_v40, %v6816_v37  ;;  %v9209_v29 = vpop.f32.mrb[2].mxu1 }
 0x95d   :  { %v6895_v10 = vadd.f32 %v9209_v29, %v6831_v56  ;;  %v6886_v38 = vpop.f32.mrb[3].mxu1  ;;  %v6900_v5 = vmax.f32 %v6892_v4, 0.0 }
 0x95e   :  { %v6887_v62 = vadd.f32 %v6886_v38, %v6821_v16  ;;  %v6898_v12 = vmax.f32 %v6884_v61, 0.0 }
 0x95f   :  { %v6901_v18 = vmax.f32 %v6895_v10, 0.0 }
 0x960   :  { %v6899_v14 = vmax.f32 %v6887_v62, 0.0 }
 0x961   :  { %v6904_v42 = vpack.c.bf16 %v6901_v18, %v6900_v5 }
 0x962   :  { %v6903_v0 = vpack.c.bf16 %v6899_v14, %v6898_v12 }
 0x964   :  { %9211 = vmatpush3.bf16.msra.mxu1 %v6903_v0 }
 0x965   :  { %9212 = vmatprep.subr.bf16.mxu1 %v9687_v60 }
 0x968   :  { %9213 = vmatpush3.bf16.msra.mxu1 %v6904_v42 }
 0x96b   :  { %9215 = vmatmul.mubr.msk.bf16.vlgmr.msra.gmra.mrb[4].mxu1 %vm1667_vm1, %v6902_v35 }
 0xa3e   :  { %v6948_v8 = vpop.f32.mrb[4].mxu1 }
 0xa3f   :  { %v6949_v17 = vadd.f32 %v6948_v8, %v6909_v22  ;;  %v9216_v51 = vpop.f32.mrb[5].mxu1 }
 0xa40   :  { %v6951_v23 = vpop.f32.mrb[6].mxu1 }
 0xa41   :  { %v7959_v44 = vmul.f32 -1.442695, %v6949_v17  ;;  %v9217_v46 = vpop.f32.mrb[7].mxu1 }
 0xa43   :  { %9682 = vpow2.f32 %v7959_v44 }
 0xa4d   :  { %v9683_v25 = vpop.eup %9682 }
 0xa4e   :  { %v6957_v19 = vadd.f32 1.0, %v9683_v25 }
 0xa50   :  { %9684 = vrcp.f32 %v6957_v19 }
 0xa5a   :  { %v9685_v50 = vpop.eup %9684 }
 0xa5b   :  { %6961 = vst.msk [vmem:[%s11957_s18] sm:$0x3] %vm6960_vm6, %v9685_v50 }

</bundles_post_ra>
